<compile_context>
chip_gen: v7x
topology: tpu7x:2x2x1
jax: 0.10.0
libtpu: 0.0.40
codegen_flags: <defaults>
</compile_context>

<pallas_src>
import math

import jax
import jax.numpy as jnp
from jax.experimental import pallas as pl
from jax.experimental.pallas import tpu as pltpu


def _make_resblock_kernel(K, D, H, W, C, G, num_layers):
    """Fused residual-block kernel factory (batch-packed, flat-spatial)."""
    p = K // 2
    Dp, Hp, Wp = D + 2 * p, H + 2 * p, W + 2 * p
    SP = Dp * Hp * Wp                                   # padded-flat length
    base = p * Hp * Wp + p * Wp + p                     # first interior voxel
    CR = (D - 1) * Hp * Wp + (H - 1) * Wp + W           # compute-range length
    GC = G * C                                          # packed rows (<= 8)
    # Flat offset of each of the K^3 taps relative to the output voxel.
    tap_offs = [(kd - p) * Hp * Wp + (kh - p) * Wp + (kw - p)
                for kd in range(K) for kh in range(K) for kw in range(K)]

    def kernel(x_ref, w_ref, b_ref, mask_ref, out_ref, buf0, buf1):
        bufs = (buf0, buf1)
        # Zero the scratch buffers so the pad margins of every intermediate
        # activation are true zero padding (gap positions inside the compute
        # range are handled by the interior mask below).
        if num_layers > 1:
            buf0[...] = jnp.zeros_like(buf0)
        if num_layers > 2:
            buf1[...] = jnp.zeros_like(buf1)

        # Hoist the sublane broadcast of the interior mask out of the loop.
        mask = (jnp.broadcast_to(mask_ref[...], (GC, CR))
                if num_layers > 1 else None)

        def conv_from(src_ref, src_is_batched, layer):
            w_l = w_ref[layer]                          # (GC, K^3*GC) blk-diag
            b_l = b_ref[layer]                          # (GC, 1)
            acc = jnp.zeros((GC, CR), jnp.float32)      # lane-dense accumulator
            for t, off in enumerate(tap_offs):
                s = base + off                          # static, in [0, SP-CR]
                if src_is_batched:
                    xs = src_ref[0, :, s:s + CR]        # (GC, CR) lane shift
                else:
                    xs = src_ref[:, s:s + CR]
                wt = w_l[:, t * GC:(t + 1) * GC]        # (GC, GC)
                acc = acc + jnp.dot(wt, xs, preferred_element_type=jnp.float32)
            return acc + b_l                            # bias bcast over lanes

        src, batched = x_ref, True
        for layer in range(num_layers):
            acc = conv_from(src, batched, layer)
            if layer < num_layers - 1:
                dst = bufs[layer % 2]
                # ReLU, then zero pad/gap positions so the next layer sees a
                # properly zero-padded activation volume (all in VMEM).
                dst[:, base:base + CR] = jnp.maximum(acc, 0.0) * mask
                src, batched = dst, False
            else:
                # Final conv (no ReLU) + residual add of the original input.
                res = x_ref[0, :, base:base + CR]
                out_ref[0] = (acc + res).astype(out_ref.dtype)

    return kernel


def residual_block_forward(x, params):
    """out = x + block(x); x is NCDHW float32, params are PyTorch-layout."""
    N, C, D, H, W = x.shape
    K = params[0][0].shape[-1]
    NL = len(params)
    p = K // 2
    Dp, Hp, Wp = D + 2 * p, H + 2 * p, W + 2 * p
    SP = Dp * Hp * Wp
    base = p * Hp * Wp + p * Wp + p
    CR = (D - 1) * Hp * Wp + (H - 1) * Wp + W

    # Pack G batch elements per grid step along the sublane axis.
    G = min(max(1, 8 // C), N)
    while N % G:
        G -= 1
    GC = G * C
    NB = N // G

    # Pack weights to lane-dense block-diagonal 2-D: (layers, GC, K^3*GC),
    # tap-major; biases tiled over the packed batch: (layers, GC, 1).
    eye = jnp.eye(G, dtype=x.dtype)
    w_list, b_list = [], []
    for (w, b) in params:
        w_taps = jnp.transpose(w, (2, 3, 4, 0, 1)).reshape(K ** 3, C, C)
        bd = jnp.einsum('gh,tij->tgihj', eye, w_taps).reshape(K ** 3, GC, GC)
        w_list.append(jnp.transpose(bd, (1, 0, 2)).reshape(GC, K ** 3 * GC))
        b_list.append(jnp.tile(b, G).reshape(GC, 1))
    w2d = jnp.stack(w_list)                              # (NL, GC, K^3*GC)
    bvec = jnp.stack(b_list)                             # (NL, GC, 1)

    # Pad spatial dims ONCE, flatten, and fold G batch elems into sublanes.
    xp = jnp.pad(x, ((0, 0), (0, 0), (p, p), (p, p), (p, p)))
    x_flat = xp.reshape(NB, GC, SP)

    # Interior mask over the compute range [base, base+CR).
    interior = jnp.pad(jnp.ones((D, H, W), jnp.float32),
                       ((p, p), (p, p), (p, p))).reshape(SP)[base:base + CR]
    mask = interior.reshape(1, CR)

    kernel = _make_resblock_kernel(K, D, H, W, C, G, NL)

    out_flat = pl.pallas_call(
        kernel,
        out_shape=jax.ShapeDtypeStruct((NB, GC, CR), x.dtype),
        grid=(NB,),
        in_specs=[
            pl.BlockSpec((1, GC, SP), lambda n: (n, 0, 0)),
            pl.BlockSpec((NL, GC, K ** 3 * GC), lambda n: (0, 0, 0)),
            pl.BlockSpec((NL, GC, 1), lambda n: (0, 0, 0)),
            pl.BlockSpec((1, CR), lambda n: (0, 0)),
        ],
        out_specs=pl.BlockSpec((1, GC, CR), lambda n: (n, 0, 0)),
        scratch_shapes=[pltpu.VMEM((GC, SP), jnp.float32),
                        pltpu.VMEM((GC, SP), jnp.float32)],
        compiler_params=pltpu.CompilerParams(
            dimension_semantics=("parallel",),
            vmem_limit_bytes=64 * 1024 * 1024),
    )(x_flat, w2d, bvec, mask)

    # Unpack batch, scatter the compute range back to padded-flat, crop.
    out_cr = out_flat.reshape(N, C, CR)
    out_padflat = jnp.pad(out_cr, ((0, 0), (0, 0), (base, SP - base - CR)))
    out = out_padflat.reshape(N, C, Dp, Hp, Wp)[:, :, p:p + D, p:p + H, p:p + W]
    return out


def init_residual_block_params(key, channels, kernel, depth, bias):
    """PyTorch-like uniform init for depth+1 Conv3d layers (OIDHW weights)."""
    fan_in = channels * kernel ** 3
    bound = 1.0 / math.sqrt(fan_in)
    params = []
    for _ in range(depth + 1):
        key, kw_, kb_ = jax.random.split(key, 3)
        w = jax.random.uniform(
            kw_, (channels, channels, kernel, kernel, kernel),
            jnp.float32, -bound, bound)
        if bias:
            b = jax.random.uniform(kb_, (channels,), jnp.float32, -bound, bound)
        else:
            b = jnp.zeros((channels,), jnp.float32)
        params.append((w, b))
    return params


def reference_forward(x, params):
    """Plain-JAX reference (lax.conv) for correctness checking."""
    def conv(h, w, b):
        y = jax.lax.conv_general_dilated(
            h, w, window_strides=(1, 1, 1), padding="SAME",
            dimension_numbers=("NCDHW", "OIDHW", "NCDHW"))
        return y + b.reshape(1, -1, 1, 1, 1)

    h = x
    for (w, b) in params[:-1]:
        h = jax.nn.relu(conv(h, w, b))
    w, b = params[-1]
    return x + conv(h, w, b)


if __name__ == "__main__":
    # ResidualBlock(channels=4, dropout=False, kernel=3, depth=2, bias=True)
    channels, kernel, depth, bias = 4, 3, 2, True
    N, D, H, W = 2, 8, 8, 8

    key = jax.random.PRNGKey(0)
    kx, kp = jax.random.split(key)
    x = jax.random.normal(kx, (N, channels, D, H, W), jnp.float32)  # NCDHW
    params = init_residual_block_params(kp, channels, kernel, depth, bias)

    fwd = jax.jit(residual_block_forward)
    out = jax.block_until_ready(fwd(x, params))

    ref = reference_forward(x, params)
    assert out.shape == ref.shape == (N, channels, D, H, W)
    max_err = float(jnp.max(jnp.abs(out - ref)))
    assert max_err < 1e-3, f"mismatch vs reference: {max_err}"

    print("KERNEL_OK")
</pallas_src>

<mosaic_0001>
module attributes {stable_mosaic.version = 11 : i64} {
  func.func @kernel(%arg0: i32, %arg1: memref<1x8x1000xf32, #tpu.memory_space<vmem>>, %arg2: memref<3x8x216xf32, #tpu.memory_space<vmem>>, %arg3: memref<3x8x1xf32, #tpu.memory_space<vmem>>, %arg4: memref<1x778xf32, #tpu.memory_space<vmem>>, %arg5: memref<1x8x778xf32, #tpu.memory_space<vmem>>, %arg6: memref<8x1000xf32, #tpu.memory_space<vmem>>, %arg7: memref<8x1000xf32, #tpu.memory_space<vmem>>) attributes {dimension_semantics = [#tpu.dimension_semantics<parallel>], iteration_bounds = array<i64: 1>, scalar_prefetch = 0 : i64, scratch_operands = 2 : i64, tpu.core_type = #tpu.core_type<tc>, window_params = [{transform_indices = @transform_0, window_bounds = array<i64: 1, 8, 1000>}, {pipeline_mode = #tpu.pipeline_mode<synchronous>, transform_indices = @transform_1, window_bounds = array<i64: 3, 8, 216>}, {pipeline_mode = #tpu.pipeline_mode<synchronous>, transform_indices = @transform_2, window_bounds = array<i64: 3, 8, 1>}, {pipeline_mode = #tpu.pipeline_mode<synchronous>, transform_indices = @transform_3, window_bounds = array<i64: 1, 778>}, {transform_indices = @transform_4, window_bounds = array<i64: 1, 8, 778>}]} {
    %cst = arith.constant 0.000000e+00 : f32
    %0 = vector.broadcast %cst : f32 to vector<8x1000xf32>
    %c0 = arith.constant 0 : index
    %c0_0 = arith.constant 0 : index
    %1 = vector.load %arg6[%c0, %c0_0] : memref<8x1000xf32, #tpu.memory_space<vmem>>, vector<8x1000xf32>
    tpu.vector_store %arg6[%c0, %c0_0], %0 {strides = array<i32>} : memref<8x1000xf32, #tpu.memory_space<vmem>>, vector<8x1000xf32>,
    %cst_1 = arith.constant 0.000000e+00 : f32
    %2 = vector.broadcast %cst_1 : f32 to vector<8x1000xf32>
    %c0_2 = arith.constant 0 : index
    %c0_3 = arith.constant 0 : index
    %3 = vector.load %arg7[%c0_2, %c0_3] : memref<8x1000xf32, #tpu.memory_space<vmem>>, vector<8x1000xf32>
    tpu.vector_store %arg7[%c0_2, %c0_3], %2 {strides = array<i32>} : memref<8x1000xf32, #tpu.memory_space<vmem>>, vector<8x1000xf32>,
    %c0_4 = arith.constant 0 : index
    %c0_5 = arith.constant 0 : index
    %4 = vector.load %arg4[%c0_4, %c0_5] : memref<1x778xf32, #tpu.memory_space<vmem>>, vector<1x778xf32>
    %5 = vector.shape_cast %4 : vector<1x778xf32> to vector<1x778xf32>
    %6 = vector.broadcast %5 : vector<1x778xf32> to vector<8x778xf32>
    %c0_6 = arith.constant 0 : index
    %c0_7 = arith.constant 0 : index
    %c0_8 = arith.constant 0 : index
    %7 = vector.load %arg2[%c0_6, %c0_7, %c0_8] : memref<3x8x216xf32, #tpu.memory_space<vmem>>, vector<1x8x216xf32>
    %8 = vector.shape_cast %7 : vector<1x8x216xf32> to vector<8x216xf32>
    %c0_9 = arith.constant 0 : index
    %c0_10 = arith.constant 0 : index
    %c0_11 = arith.constant 0 : index
    %9 = vector.load %arg3[%c0_9, %c0_10, %c0_11] : memref<3x8x1xf32, #tpu.memory_space<vmem>>, vector<1x8x1xf32>
    %10 = vector.shape_cast %9 : vector<1x8x1xf32> to vector<8x1xf32>
    %cst_12 = arith.constant 0.000000e+00 : f32
    %11 = vector.broadcast %cst_12 : f32 to vector<8x778xf32>
    %c0_13 = arith.constant 0 : index
    %c0_14 = arith.constant 0 : index
    %c0_15 = arith.constant 0 : index
    %12 = vector.load %arg1[%c0_13, %c0_14, %c0_15] : memref<1x8x1000xf32, #tpu.memory_space<vmem>>, vector<1x8x778xf32>
    %13 = vector.shape_cast %12 : vector<1x8x778xf32> to vector<8x778xf32>
    %14 = vector.extract_strided_slice %8 {offsets = [0, 0], sizes = [8, 8], strides = [1, 1]} : vector<8x216xf32> to vector<8x8xf32>
    %cst_16 = arith.constant dense<0.000000e+00> : vector<8x778xf32>
    %15 = tpu.matmul %14, %13, %cst_16 {dimension_numbers = #tpu.dot_dimension_numbers<[1], [0], [0], [1], [0, 0, 1, 1], [], []>} : vector<8x8xf32>, vector<8x778xf32>, vector<8x778xf32> -> vector<8x778xf32>
    %16 = arith.addf %11, %15 : vector<8x778xf32>
    %c0_17 = arith.constant 0 : index
    %c0_18 = arith.constant 0 : index
    %c1 = arith.constant 1 : index
    %17 = vector.load %arg1[%c0_17, %c0_18, %c1] : memref<1x8x1000xf32, #tpu.memory_space<vmem>>, vector<1x8x778xf32>
    %18 = vector.shape_cast %17 : vector<1x8x778xf32> to vector<8x778xf32>
    %19 = vector.extract_strided_slice %8 {offsets = [0, 8], sizes = [8, 8], strides = [1, 1]} : vector<8x216xf32> to vector<8x8xf32>
    %cst_19 = arith.constant dense<0.000000e+00> : vector<8x778xf32>
    %20 = tpu.matmul %19, %18, %cst_19 {dimension_numbers = #tpu.dot_dimension_numbers<[1], [0], [0], [1], [0, 0, 1, 1], [], []>} : vector<8x8xf32>, vector<8x778xf32>, vector<8x778xf32> -> vector<8x778xf32>
    %21 = arith.addf %16, %20 : vector<8x778xf32>
    %c0_20 = arith.constant 0 : index
    %c0_21 = arith.constant 0 : index
    %c2 = arith.constant 2 : index
    %22 = vector.load %arg1[%c0_20, %c0_21, %c2] : memref<1x8x1000xf32, #tpu.memory_space<vmem>>, vector<1x8x778xf32>
    %23 = vector.shape_cast %22 : vector<1x8x778xf32> to vector<8x778xf32>
    %24 = vector.extract_strided_slice %8 {offsets = [0, 16], sizes = [8, 8], strides = [1, 1]} : vector<8x216xf32> to vector<8x8xf32>
    %cst_22 = arith.constant dense<0.000000e+00> : vector<8x778xf32>
    %25 = tpu.matmul %24, %23, %cst_22 {dimension_numbers = #tpu.dot_dimension_numbers<[1], [0], [0], [1], [0, 0, 1, 1], [], []>} : vector<8x8xf32>, vector<8x778xf32>, vector<8x778xf32> -> vector<8x778xf32>
    %26 = arith.addf %21, %25 : vector<8x778xf32>
    %c0_23 = arith.constant 0 : index
    %c0_24 = arith.constant 0 : index
    %c10 = arith.constant 10 : index
    %27 = vector.load %arg1[%c0_23, %c0_24, %c10] : memref<1x8x1000xf32, #tpu.memory_space<vmem>>, vector<1x8x778xf32>
    %28 = vector.shape_cast %27 : vector<1x8x778xf32> to vector<8x778xf32>
    %29 = vector.extract_strided_slice %8 {offsets = [0, 24], sizes = [8, 8], strides = [1, 1]} : vector<8x216xf32> to vector<8x8xf32>
    %cst_25 = arith.constant dense<0.000000e+00> : vector<8x778xf32>
    %30 = tpu.matmul %29, %28, %cst_25 {dimension_numbers = #tpu.dot_dimension_numbers<[1], [0], [0], [1], [0, 0, 1, 1], [], []>} : vector<8x8xf32>, vector<8x778xf32>, vector<8x778xf32> -> vector<8x778xf32>
    %31 = arith.addf %26, %30 : vector<8x778xf32>
    %c0_26 = arith.constant 0 : index
    %c0_27 = arith.constant 0 : index
    %c11 = arith.constant 11 : index
    %32 = vector.load %arg1[%c0_26, %c0_27, %c11] : memref<1x8x1000xf32, #tpu.memory_space<vmem>>, vector<1x8x778xf32>
    %33 = vector.shape_cast %32 : vector<1x8x778xf32> to vector<8x778xf32>
    %34 = vector.extract_strided_slice %8 {offsets = [0, 32], sizes = [8, 8], strides = [1, 1]} : vector<8x216xf32> to vector<8x8xf32>
    %cst_28 = arith.constant dense<0.000000e+00> : vector<8x778xf32>
    %35 = tpu.matmul %34, %33, %cst_28 {dimension_numbers = #tpu.dot_dimension_numbers<[1], [0], [0], [1], [0, 0, 1, 1], [], []>} : vector<8x8xf32>, vector<8x778xf32>, vector<8x778xf32> -> vector<8x778xf32>
    %36 = arith.addf %31, %35 : vector<8x778xf32>
    %c0_29 = arith.constant 0 : index
    %c0_30 = arith.constant 0 : index
    %c12 = arith.constant 12 : index
    %37 = vector.load %arg1[%c0_29, %c0_30, %c12] : memref<1x8x1000xf32, #tpu.memory_space<vmem>>, vector<1x8x778xf32>
    %38 = vector.shape_cast %37 : vector<1x8x778xf32> to vector<8x778xf32>
    %39 = vector.extract_strided_slice %8 {offsets = [0, 40], sizes = [8, 8], strides = [1, 1]} : vector<8x216xf32> to vector<8x8xf32>
    %cst_31 = arith.constant dense<0.000000e+00> : vector<8x778xf32>
    %40 = tpu.matmul %39, %38, %cst_31 {dimension_numbers = #tpu.dot_dimension_numbers<[1], [0], [0], [1], [0, 0, 1, 1], [], []>} : vector<8x8xf32>, vector<8x778xf32>, vector<8x778xf32> -> vector<8x778xf32>
    %41 = arith.addf %36, %40 : vector<8x778xf32>
    %c0_32 = arith.constant 0 : index
    %c0_33 = arith.constant 0 : index
    %c20 = arith.constant 20 : index
    %42 = vector.load %arg1[%c0_32, %c0_33, %c20] : memref<1x8x1000xf32, #tpu.memory_space<vmem>>, vector<1x8x778xf32>
    %43 = vector.shape_cast %42 : vector<1x8x778xf32> to vector<8x778xf32>
    %44 = vector.extract_strided_slice %8 {offsets = [0, 48], sizes = [8, 8], strides = [1, 1]} : vector<8x216xf32> to vector<8x8xf32>
    %cst_34 = arith.constant dense<0.000000e+00> : vector<8x778xf32>
    %45 = tpu.matmul %44, %43, %cst_34 {dimension_numbers = #tpu.dot_dimension_numbers<[1], [0], [0], [1], [0, 0, 1, 1], [], []>} : vector<8x8xf32>, vector<8x778xf32>, vector<8x778xf32> -> vector<8x778xf32>
    %46 = arith.addf %41, %45 : vector<8x778xf32>
    %c0_35 = arith.constant 0 : index
    %c0_36 = arith.constant 0 : index
    %c21 = arith.constant 21 : index
    %47 = vector.load %arg1[%c0_35, %c0_36, %c21] : memref<1x8x1000xf32, #tpu.memory_space<vmem>>, vector<1x8x778xf32>
    %48 = vector.shape_cast %47 : vector<1x8x778xf32> to vector<8x778xf32>
    %49 = vector.extract_strided_slice %8 {offsets = [0, 56], sizes = [8, 8], strides = [1, 1]} : vector<8x216xf32> to vector<8x8xf32>
    %cst_37 = arith.constant dense<0.000000e+00> : vector<8x778xf32>
    %50 = tpu.matmul %49, %48, %cst_37 {dimension_numbers = #tpu.dot_dimension_numbers<[1], [0], [0], [1], [0, 0, 1, 1], [], []>} : vector<8x8xf32>, vector<8x778xf32>, vector<8x778xf32> -> vector<8x778xf32>
    %51 = arith.addf %46, %50 : vector<8x778xf32>
    %c0_38 = arith.constant 0 : index
    %c0_39 = arith.constant 0 : index
    %c22 = arith.constant 22 : index
    %52 = vector.load %arg1[%c0_38, %c0_39, %c22] : memref<1x8x1000xf32, #tpu.memory_space<vmem>>, vector<1x8x778xf32>
    %53 = vector.shape_cast %52 : vector<1x8x778xf32> to vector<8x778xf32>
    %54 = vector.extract_strided_slice %8 {offsets = [0, 64], sizes = [8, 8], strides = [1, 1]} : vector<8x216xf32> to vector<8x8xf32>
    %cst_40 = arith.constant dense<0.000000e+00> : vector<8x778xf32>
    %55 = tpu.matmul %54, %53, %cst_40 {dimension_numbers = #tpu.dot_dimension_numbers<[1], [0], [0], [1], [0, 0, 1, 1], [], []>} : vector<8x8xf32>, vector<8x778xf32>, vector<8x778xf32> -> vector<8x778xf32>
    %56 = arith.addf %51, %55 : vector<8x778xf32>
    %c0_41 = arith.constant 0 : index
    %c0_42 = arith.constant 0 : index
    %c100 = arith.constant 100 : index
    %57 = vector.load %arg1[%c0_41, %c0_42, %c100] : memref<1x8x1000xf32, #tpu.memory_space<vmem>>, vector<1x8x778xf32>
    %58 = vector.shape_cast %57 : vector<1x8x778xf32> to vector<8x778xf32>
    %59 = vector.extract_strided_slice %8 {offsets = [0, 72], sizes = [8, 8], strides = [1, 1]} : vector<8x216xf32> to vector<8x8xf32>
    %cst_43 = arith.constant dense<0.000000e+00> : vector<8x778xf32>
    %60 = tpu.matmul %59, %58, %cst_43 {dimension_numbers = #tpu.dot_dimension_numbers<[1], [0], [0], [1], [0, 0, 1, 1], [], []>} : vector<8x8xf32>, vector<8x778xf32>, vector<8x778xf32> -> vector<8x778xf32>
    %61 = arith.addf %56, %60 : vector<8x778xf32>
    %c0_44 = arith.constant 0 : index
    %c0_45 = arith.constant 0 : index
    %c101 = arith.constant 101 : index
    %62 = vector.load %arg1[%c0_44, %c0_45, %c101] : memref<1x8x1000xf32, #tpu.memory_space<vmem>>, vector<1x8x778xf32>
    %63 = vector.shape_cast %62 : vector<1x8x778xf32> to vector<8x778xf32>
    %64 = vector.extract_strided_slice %8 {offsets = [0, 80], sizes = [8, 8], strides = [1, 1]} : vector<8x216xf32> to vector<8x8xf32>
    %cst_46 = arith.constant dense<0.000000e+00> : vector<8x778xf32>
    %65 = tpu.matmul %64, %63, %cst_46 {dimension_numbers = #tpu.dot_dimension_numbers<[1], [0], [0], [1], [0, 0, 1, 1], [], []>} : vector<8x8xf32>, vector<8x778xf32>, vector<8x778xf32> -> vector<8x778xf32>
    %66 = arith.addf %61, %65 : vector<8x778xf32>
    %c0_47 = arith.constant 0 : index
    %c0_48 = arith.constant 0 : index
    %c102 = arith.constant 102 : index
    %67 = vector.load %arg1[%c0_47, %c0_48, %c102] : memref<1x8x1000xf32, #tpu.memory_space<vmem>>, vector<1x8x778xf32>
    %68 = vector.shape_cast %67 : vector<1x8x778xf32> to vector<8x778xf32>
    %69 = vector.extract_strided_slice %8 {offsets = [0, 88], sizes = [8, 8], strides = [1, 1]} : vector<8x216xf32> to vector<8x8xf32>
    %cst_49 = arith.constant dense<0.000000e+00> : vector<8x778xf32>
    %70 = tpu.matmul %69, %68, %cst_49 {dimension_numbers = #tpu.dot_dimension_numbers<[1], [0], [0], [1], [0, 0, 1, 1], [], []>} : vector<8x8xf32>, vector<8x778xf32>, vector<8x778xf32> -> vector<8x778xf32>
    %71 = arith.addf %66, %70 : vector<8x778xf32>
    %c0_50 = arith.constant 0 : index
    %c0_51 = arith.constant 0 : index
    %c110 = arith.constant 110 : index
    %72 = vector.load %arg1[%c0_50, %c0_51, %c110] : memref<1x8x1000xf32, #tpu.memory_space<vmem>>, vector<1x8x778xf32>
    %73 = vector.shape_cast %72 : vector<1x8x778xf32> to vector<8x778xf32>
    %74 = vector.extract_strided_slice %8 {offsets = [0, 96], sizes = [8, 8], strides = [1, 1]} : vector<8x216xf32> to vector<8x8xf32>
    %cst_52 = arith.constant dense<0.000000e+00> : vector<8x778xf32>
    %75 = tpu.matmul %74, %73, %cst_52 {dimension_numbers = #tpu.dot_dimension_numbers<[1], [0], [0], [1], [0, 0, 1, 1], [], []>} : vector<8x8xf32>, vector<8x778xf32>, vector<8x778xf32> -> vector<8x778xf32>
    %76 = arith.addf %71, %75 : vector<8x778xf32>
    %c0_53 = arith.constant 0 : index
    %c0_54 = arith.constant 0 : index
    %c111 = arith.constant 111 : index
    %77 = vector.load %arg1[%c0_53, %c0_54, %c111] : memref<1x8x1000xf32, #tpu.memory_space<vmem>>, vector<1x8x778xf32>
    %78 = vector.shape_cast %77 : vector<1x8x778xf32> to vector<8x778xf32>
    %79 = vector.extract_strided_slice %8 {offsets = [0, 104], sizes = [8, 8], strides = [1, 1]} : vector<8x216xf32> to vector<8x8xf32>
    %cst_55 = arith.constant dense<0.000000e+00> : vector<8x778xf32>
    %80 = tpu.matmul %79, %78, %cst_55 {dimension_numbers = #tpu.dot_dimension_numbers<[1], [0], [0], [1], [0, 0, 1, 1], [], []>} : vector<8x8xf32>, vector<8x778xf32>, vector<8x778xf32> -> vector<8x778xf32>
    %81 = arith.addf %76, %80 : vector<8x778xf32>
    %c0_56 = arith.constant 0 : index
    %c0_57 = arith.constant 0 : index
    %c112 = arith.constant 112 : index
    %82 = vector.load %arg1[%c0_56, %c0_57, %c112] : memref<1x8x1000xf32, #tpu.memory_space<vmem>>, vector<1x8x778xf32>
    %83 = vector.shape_cast %82 : vector<1x8x778xf32> to vector<8x778xf32>
    %84 = vector.extract_strided_slice %8 {offsets = [0, 112], sizes = [8, 8], strides = [1, 1]} : vector<8x216xf32> to vector<8x8xf32>
    %cst_58 = arith.constant dense<0.000000e+00> : vector<8x778xf32>
    %85 = tpu.matmul %84, %83, %cst_58 {dimension_numbers = #tpu.dot_dimension_numbers<[1], [0], [0], [1], [0, 0, 1, 1], [], []>} : vector<8x8xf32>, vector<8x778xf32>, vector<8x778xf32> -> vector<8x778xf32>
    %86 = arith.addf %81, %85 : vector<8x778xf32>
    %c0_59 = arith.constant 0 : index
    %c0_60 = arith.constant 0 : index
    %c120 = arith.constant 120 : index
    %87 = vector.load %arg1[%c0_59, %c0_60, %c120] : memref<1x8x1000xf32, #tpu.memory_space<vmem>>, vector<1x8x778xf32>
    %88 = vector.shape_cast %87 : vector<1x8x778xf32> to vector<8x778xf32>
    %89 = vector.extract_strided_slice %8 {offsets = [0, 120], sizes = [8, 8], strides = [1, 1]} : vector<8x216xf32> to vector<8x8xf32>
    %cst_61 = arith.constant dense<0.000000e+00> : vector<8x778xf32>
    %90 = tpu.matmul %89, %88, %cst_61 {dimension_numbers = #tpu.dot_dimension_numbers<[1], [0], [0], [1], [0, 0, 1, 1], [], []>} : vector<8x8xf32>, vector<8x778xf32>, vector<8x778xf32> -> vector<8x778xf32>
    %91 = arith.addf %86, %90 : vector<8x778xf32>
    %c0_62 = arith.constant 0 : index
    %c0_63 = arith.constant 0 : index
    %c121 = arith.constant 121 : index
    %92 = vector.load %arg1[%c0_62, %c0_63, %c121] : memref<1x8x1000xf32, #tpu.memory_space<vmem>>, vector<1x8x778xf32>
    %93 = vector.shape_cast %92 : vector<1x8x778xf32> to vector<8x778xf32>
    %94 = vector.extract_strided_slice %8 {offsets = [0, 128], sizes = [8, 8], strides = [1, 1]} : vector<8x216xf32> to vector<8x8xf32>
    %cst_64 = arith.constant dense<0.000000e+00> : vector<8x778xf32>
    %95 = tpu.matmul %94, %93, %cst_64 {dimension_numbers = #tpu.dot_dimension_numbers<[1], [0], [0], [1], [0, 0, 1, 1], [], []>} : vector<8x8xf32>, vector<8x778xf32>, vector<8x778xf32> -> vector<8x778xf32>
    %96 = arith.addf %91, %95 : vector<8x778xf32>
    %c0_65 = arith.constant 0 : index
    %c0_66 = arith.constant 0 : index
    %c122 = arith.constant 122 : index
    %97 = vector.load %arg1[%c0_65, %c0_66, %c122] : memref<1x8x1000xf32, #tpu.memory_space<vmem>>, vector<1x8x778xf32>
    %98 = vector.shape_cast %97 : vector<1x8x778xf32> to vector<8x778xf32>
    %99 = vector.extract_strided_slice %8 {offsets = [0, 136], sizes = [8, 8], strides = [1, 1]} : vector<8x216xf32> to vector<8x8xf32>
    %cst_67 = arith.constant dense<0.000000e+00> : vector<8x778xf32>
    %100 = tpu.matmul %99, %98, %cst_67 {dimension_numbers = #tpu.dot_dimension_numbers<[1], [0], [0], [1], [0, 0, 1, 1], [], []>} : vector<8x8xf32>, vector<8x778xf32>, vector<8x778xf32> -> vector<8x778xf32>
    %101 = arith.addf %96, %100 : vector<8x778xf32>
    %c0_68 = arith.constant 0 : index
    %c0_69 = arith.constant 0 : index
    %c200 = arith.constant 200 : index
    %102 = vector.load %arg1[%c0_68, %c0_69, %c200] : memref<1x8x1000xf32, #tpu.memory_space<vmem>>, vector<1x8x778xf32>
    %103 = vector.shape_cast %102 : vector<1x8x778xf32> to vector<8x778xf32>
    %104 = vector.extract_strided_slice %8 {offsets = [0, 144], sizes = [8, 8], strides = [1, 1]} : vector<8x216xf32> to vector<8x8xf32>
    %cst_70 = arith.constant dense<0.000000e+00> : vector<8x778xf32>
    %105 = tpu.matmul %104, %103, %cst_70 {dimension_numbers = #tpu.dot_dimension_numbers<[1], [0], [0], [1], [0, 0, 1, 1], [], []>} : vector<8x8xf32>, vector<8x778xf32>, vector<8x778xf32> -> vector<8x778xf32>
    %106 = arith.addf %101, %105 : vector<8x778xf32>
    %c0_71 = arith.constant 0 : index
    %c0_72 = arith.constant 0 : index
    %c201 = arith.constant 201 : index
    %107 = vector.load %arg1[%c0_71, %c0_72, %c201] : memref<1x8x1000xf32, #tpu.memory_space<vmem>>, vector<1x8x778xf32>
    %108 = vector.shape_cast %107 : vector<1x8x778xf32> to vector<8x778xf32>
    %109 = vector.extract_strided_slice %8 {offsets = [0, 152], sizes = [8, 8], strides = [1, 1]} : vector<8x216xf32> to vector<8x8xf32>
    %cst_73 = arith.constant dense<0.000000e+00> : vector<8x778xf32>
    %110 = tpu.matmul %109, %108, %cst_73 {dimension_numbers = #tpu.dot_dimension_numbers<[1], [0], [0], [1], [0, 0, 1, 1], [], []>} : vector<8x8xf32>, vector<8x778xf32>, vector<8x778xf32> -> vector<8x778xf32>
    %111 = arith.addf %106, %110 : vector<8x778xf32>
    %c0_74 = arith.constant 0 : index
    %c0_75 = arith.constant 0 : index
    %c202 = arith.constant 202 : index
    %112 = vector.load %arg1[%c0_74, %c0_75, %c202] : memref<1x8x1000xf32, #tpu.memory_space<vmem>>, vector<1x8x778xf32>
    %113 = vector.shape_cast %112 : vector<1x8x778xf32> to vector<8x778xf32>
    %114 = vector.extract_strided_slice %8 {offsets = [0, 160], sizes = [8, 8], strides = [1, 1]} : vector<8x216xf32> to vector<8x8xf32>
    %cst_76 = arith.constant dense<0.000000e+00> : vector<8x778xf32>
    %115 = tpu.matmul %114, %113, %cst_76 {dimension_numbers = #tpu.dot_dimension_numbers<[1], [0], [0], [1], [0, 0, 1, 1], [], []>} : vector<8x8xf32>, vector<8x778xf32>, vector<8x778xf32> -> vector<8x778xf32>
    %116 = arith.addf %111, %115 : vector<8x778xf32>
    %c0_77 = arith.constant 0 : index
    %c0_78 = arith.constant 0 : index
    %c210 = arith.constant 210 : index
    %117 = vector.load %arg1[%c0_77, %c0_78, %c210] : memref<1x8x1000xf32, #tpu.memory_space<vmem>>, vector<1x8x778xf32>
    %118 = vector.shape_cast %117 : vector<1x8x778xf32> to vector<8x778xf32>
    %119 = vector.extract_strided_slice %8 {offsets = [0, 168], sizes = [8, 8], strides = [1, 1]} : vector<8x216xf32> to vector<8x8xf32>
    %cst_79 = arith.constant dense<0.000000e+00> : vector<8x778xf32>
    %120 = tpu.matmul %119, %118, %cst_79 {dimension_numbers = #tpu.dot_dimension_numbers<[1], [0], [0], [1], [0, 0, 1, 1], [], []>} : vector<8x8xf32>, vector<8x778xf32>, vector<8x778xf32> -> vector<8x778xf32>
    %121 = arith.addf %116, %120 : vector<8x778xf32>
    %c0_80 = arith.constant 0 : index
    %c0_81 = arith.constant 0 : index
    %c211 = arith.constant 211 : index
    %122 = vector.load %arg1[%c0_80, %c0_81, %c211] : memref<1x8x1000xf32, #tpu.memory_space<vmem>>, vector<1x8x778xf32>
    %123 = vector.shape_cast %122 : vector<1x8x778xf32> to vector<8x778xf32>
    %124 = vector.extract_strided_slice %8 {offsets = [0, 176], sizes = [8, 8], strides = [1, 1]} : vector<8x216xf32> to vector<8x8xf32>
    %cst_82 = arith.constant dense<0.000000e+00> : vector<8x778xf32>
    %125 = tpu.matmul %124, %123, %cst_82 {dimension_numbers = #tpu.dot_dimension_numbers<[1], [0], [0], [1], [0, 0, 1, 1], [], []>} : vector<8x8xf32>, vector<8x778xf32>, vector<8x778xf32> -> vector<8x778xf32>
    %126 = arith.addf %121, %125 : vector<8x778xf32>
    %c0_83 = arith.constant 0 : index
    %c0_84 = arith.constant 0 : index
    %c212 = arith.constant 212 : index
    %127 = vector.load %arg1[%c0_83, %c0_84, %c212] : memref<1x8x1000xf32, #tpu.memory_space<vmem>>, vector<1x8x778xf32>
    %128 = vector.shape_cast %127 : vector<1x8x778xf32> to vector<8x778xf32>
    %129 = vector.extract_strided_slice %8 {offsets = [0, 184], sizes = [8, 8], strides = [1, 1]} : vector<8x216xf32> to vector<8x8xf32>
    %cst_85 = arith.constant dense<0.000000e+00> : vector<8x778xf32>
    %130 = tpu.matmul %129, %128, %cst_85 {dimension_numbers = #tpu.dot_dimension_numbers<[1], [0], [0], [1], [0, 0, 1, 1], [], []>} : vector<8x8xf32>, vector<8x778xf32>, vector<8x778xf32> -> vector<8x778xf32>
    %131 = arith.addf %126, %130 : vector<8x778xf32>
    %c0_86 = arith.constant 0 : index
    %c0_87 = arith.constant 0 : index
    %c220 = arith.constant 220 : index
    %132 = vector.load %arg1[%c0_86, %c0_87, %c220] : memref<1x8x1000xf32, #tpu.memory_space<vmem>>, vector<1x8x778xf32>
    %133 = vector.shape_cast %132 : vector<1x8x778xf32> to vector<8x778xf32>
    %134 = vector.extract_strided_slice %8 {offsets = [0, 192], sizes = [8, 8], strides = [1, 1]} : vector<8x216xf32> to vector<8x8xf32>
    %cst_88 = arith.constant dense<0.000000e+00> : vector<8x778xf32>
    %135 = tpu.matmul %134, %133, %cst_88 {dimension_numbers = #tpu.dot_dimension_numbers<[1], [0], [0], [1], [0, 0, 1, 1], [], []>} : vector<8x8xf32>, vector<8x778xf32>, vector<8x778xf32> -> vector<8x778xf32>
    %136 = arith.addf %131, %135 : vector<8x778xf32>
    %c0_89 = arith.constant 0 : index
    %c0_90 = arith.constant 0 : index
    %c221 = arith.constant 221 : index
    %137 = vector.load %arg1[%c0_89, %c0_90, %c221] : memref<1x8x1000xf32, #tpu.memory_space<vmem>>, vector<1x8x778xf32>
    %138 = vector.shape_cast %137 : vector<1x8x778xf32> to vector<8x778xf32>
    %139 = vector.extract_strided_slice %8 {offsets = [0, 200], sizes = [8, 8], strides = [1, 1]} : vector<8x216xf32> to vector<8x8xf32>
    %cst_91 = arith.constant dense<0.000000e+00> : vector<8x778xf32>
    %140 = tpu.matmul %139, %138, %cst_91 {dimension_numbers = #tpu.dot_dimension_numbers<[1], [0], [0], [1], [0, 0, 1, 1], [], []>} : vector<8x8xf32>, vector<8x778xf32>, vector<8x778xf32> -> vector<8x778xf32>
    %141 = arith.addf %136, %140 : vector<8x778xf32>
    %c0_92 = arith.constant 0 : index
    %c0_93 = arith.constant 0 : index
    %c222 = arith.constant 222 : index
    %142 = vector.load %arg1[%c0_92, %c0_93, %c222] : memref<1x8x1000xf32, #tpu.memory_space<vmem>>, vector<1x8x778xf32>
    %143 = vector.shape_cast %142 : vector<1x8x778xf32> to vector<8x778xf32>
    %144 = vector.extract_strided_slice %8 {offsets = [0, 208], sizes = [8, 8], strides = [1, 1]} : vector<8x216xf32> to vector<8x8xf32>
    %cst_94 = arith.constant dense<0.000000e+00> : vector<8x778xf32>
    %145 = tpu.matmul %144, %143, %cst_94 {dimension_numbers = #tpu.dot_dimension_numbers<[1], [0], [0], [1], [0, 0, 1, 1], [], []>} : vector<8x8xf32>, vector<8x778xf32>, vector<8x778xf32> -> vector<8x778xf32>
    %146 = arith.addf %141, %145 : vector<8x778xf32>
    %147 = vector.broadcast %10 : vector<8x1xf32> to vector<8x778xf32>
    %148 = arith.addf %146, %147 : vector<8x778xf32>
    %cst_95 = arith.constant 0.000000e+00 : f32
    %149 = vector.broadcast %cst_95 : f32 to vector<8x778xf32>
    %150 = arith.maximumf %148, %149 : vector<8x778xf32>
    %151 = arith.mulf %150, %6 : vector<8x778xf32>
    %c0_96 = arith.constant 0 : index
    %c111_97 = arith.constant 111 : index
    %152 = vector.load %arg6[%c0_96, %c111_97] : memref<8x1000xf32, #tpu.memory_space<vmem>>, vector<8x778xf32>
    tpu.vector_store %arg6[%c0_96, %c111_97], %151 {strides = array<i32>} : memref<8x1000xf32, #tpu.memory_space<vmem>>, vector<8x778xf32>,
    %c1_98 = arith.constant 1 : index
    %c0_99 = arith.constant 0 : index
    %c0_100 = arith.constant 0 : index
    %153 = vector.load %arg2[%c1_98, %c0_99, %c0_100] : memref<3x8x216xf32, #tpu.memory_space<vmem>>, vector<1x8x216xf32>
    %154 = vector.shape_cast %153 : vector<1x8x216xf32> to vector<8x216xf32>
    %c1_101 = arith.constant 1 : index
    %c0_102 = arith.constant 0 : index
    %c0_103 = arith.constant 0 : index
    %155 = vector.load %arg3[%c1_101, %c0_102, %c0_103] : memref<3x8x1xf32, #tpu.memory_space<vmem>>, vector<1x8x1xf32>
    %156 = vector.shape_cast %155 : vector<1x8x1xf32> to vector<8x1xf32>
    %cst_104 = arith.constant 0.000000e+00 : f32
    %157 = vector.broadcast %cst_104 : f32 to vector<8x778xf32>
    %c0_105 = arith.constant 0 : index
    %c0_106 = arith.constant 0 : index
    %158 = vector.load %arg6[%c0_105, %c0_106] : memref<8x1000xf32, #tpu.memory_space<vmem>>, vector<8x778xf32>
    %159 = vector.extract_strided_slice %154 {offsets = [0, 0], sizes = [8, 8], strides = [1, 1]} : vector<8x216xf32> to vector<8x8xf32>
    %cst_107 = arith.constant dense<0.000000e+00> : vector<8x778xf32>
    %160 = tpu.matmul %159, %158, %cst_107 {dimension_numbers = #tpu.dot_dimension_numbers<[1], [0], [0], [1], [0, 0, 1, 1], [], []>} : vector<8x8xf32>, vector<8x778xf32>, vector<8x778xf32> -> vector<8x778xf32>
    %161 = arith.addf %157, %160 : vector<8x778xf32>
    %c0_108 = arith.constant 0 : index
    %c1_109 = arith.constant 1 : index
    %162 = vector.load %arg6[%c0_108, %c1_109] : memref<8x1000xf32, #tpu.memory_space<vmem>>, vector<8x778xf32>
    %163 = vector.extract_strided_slice %154 {offsets = [0, 8], sizes = [8, 8], strides = [1, 1]} : vector<8x216xf32> to vector<8x8xf32>
    %cst_110 = arith.constant dense<0.000000e+00> : vector<8x778xf32>
    %164 = tpu.matmul %163, %162, %cst_110 {dimension_numbers = #tpu.dot_dimension_numbers<[1], [0], [0], [1], [0, 0, 1, 1], [], []>} : vector<8x8xf32>, vector<8x778xf32>, vector<8x778xf32> -> vector<8x778xf32>
    %165 = arith.addf %161, %164 : vector<8x778xf32>
    %c0_111 = arith.constant 0 : index
    %c2_112 = arith.constant 2 : index
    %166 = vector.load %arg6[%c0_111, %c2_112] : memref<8x1000xf32, #tpu.memory_space<vmem>>, vector<8x778xf32>
    %167 = vector.extract_strided_slice %154 {offsets = [0, 16], sizes = [8, 8], strides = [1, 1]} : vector<8x216xf32> to vector<8x8xf32>
    %cst_113 = arith.constant dense<0.000000e+00> : vector<8x778xf32>
    %168 = tpu.matmul %167, %166, %cst_113 {dimension_numbers = #tpu.dot_dimension_numbers<[1], [0], [0], [1], [0, 0, 1, 1], [], []>} : vector<8x8xf32>, vector<8x778xf32>, vector<8x778xf32> -> vector<8x778xf32>
    %169 = arith.addf %165, %168 : vector<8x778xf32>
    %c0_114 = arith.constant 0 : index
    %c10_115 = arith.constant 10 : index
    %170 = vector.load %arg6[%c0_114, %c10_115] : memref<8x1000xf32, #tpu.memory_space<vmem>>, vector<8x778xf32>
    %171 = vector.extract_strided_slice %154 {offsets = [0, 24], sizes = [8, 8], strides = [1, 1]} : vector<8x216xf32> to vector<8x8xf32>
    %cst_116 = arith.constant dense<0.000000e+00> : vector<8x778xf32>
    %172 = tpu.matmul %171, %170, %cst_116 {dimension_numbers = #tpu.dot_dimension_numbers<[1], [0], [0], [1], [0, 0, 1, 1], [], []>} : vector<8x8xf32>, vector<8x778xf32>, vector<8x778xf32> -> vector<8x778xf32>
    %173 = arith.addf %169, %172 : vector<8x778xf32>
    %c0_117 = arith.constant 0 : index
    %c11_118 = arith.constant 11 : index
    %174 = vector.load %arg6[%c0_117, %c11_118] : memref<8x1000xf32, #tpu.memory_space<vmem>>, vector<8x778xf32>
    %175 = vector.extract_strided_slice %154 {offsets = [0, 32], sizes = [8, 8], strides = [1, 1]} : vector<8x216xf32> to vector<8x8xf32>
    %cst_119 = arith.constant dense<0.000000e+00> : vector<8x778xf32>
    %176 = tpu.matmul %175, %174, %cst_119 {dimension_numbers = #tpu.dot_dimension_numbers<[1], [0], [0], [1], [0, 0, 1, 1], [], []>} : vector<8x8xf32>, vector<8x778xf32>, vector<8x778xf32> -> vector<8x778xf32>
    %177 = arith.addf %173, %176 : vector<8x778xf32>
    %c0_120 = arith.constant 0 : index
    %c12_121 = arith.constant 12 : index
    %178 = vector.load %arg6[%c0_120, %c12_121] : memref<8x1000xf32, #tpu.memory_space<vmem>>, vector<8x778xf32>
    %179 = vector.extract_strided_slice %154 {offsets = [0, 40], sizes = [8, 8], strides = [1, 1]} : vector<8x216xf32> to vector<8x8xf32>
    %cst_122 = arith.constant dense<0.000000e+00> : vector<8x778xf32>
    %180 = tpu.matmul %179, %178, %cst_122 {dimension_numbers = #tpu.dot_dimension_numbers<[1], [0], [0], [1], [0, 0, 1, 1], [], []>} : vector<8x8xf32>, vector<8x778xf32>, vector<8x778xf32> -> vector<8x778xf32>
    %181 = arith.addf %177, %180 : vector<8x778xf32>
    %c0_123 = arith.constant 0 : index
    %c20_124 = arith.constant 20 : index
    %182 = vector.load %arg6[%c0_123, %c20_124] : memref<8x1000xf32, #tpu.memory_space<vmem>>, vector<8x778xf32>
    %183 = vector.extract_strided_slice %154 {offsets = [0, 48], sizes = [8, 8], strides = [1, 1]} : vector<8x216xf32> to vector<8x8xf32>
    %cst_125 = arith.constant dense<0.000000e+00> : vector<8x778xf32>
    %184 = tpu.matmul %183, %182, %cst_125 {dimension_numbers = #tpu.dot_dimension_numbers<[1], [0], [0], [1], [0, 0, 1, 1], [], []>} : vector<8x8xf32>, vector<8x778xf32>, vector<8x778xf32> -> vector<8x778xf32>
    %185 = arith.addf %181, %184 : vector<8x778xf32>
    %c0_126 = arith.constant 0 : index
    %c21_127 = arith.constant 21 : index
    %186 = vector.load %arg6[%c0_126, %c21_127] : memref<8x1000xf32, #tpu.memory_space<vmem>>, vector<8x778xf32>
    %187 = vector.extract_strided_slice %154 {offsets = [0, 56], sizes = [8, 8], strides = [1, 1]} : vector<8x216xf32> to vector<8x8xf32>
    %cst_128 = arith.constant dense<0.000000e+00> : vector<8x778xf32>
    %188 = tpu.matmul %187, %186, %cst_128 {dimension_numbers = #tpu.dot_dimension_numbers<[1], [0], [0], [1], [0, 0, 1, 1], [], []>} : vector<8x8xf32>, vector<8x778xf32>, vector<8x778xf32> -> vector<8x778xf32>
    %189 = arith.addf %185, %188 : vector<8x778xf32>
    %c0_129 = arith.constant 0 : index
    %c22_130 = arith.constant 22 : index
    %190 = vector.load %arg6[%c0_129, %c22_130] : memref<8x1000xf32, #tpu.memory_space<vmem>>, vector<8x778xf32>
    %191 = vector.extract_strided_slice %154 {offsets = [0, 64], sizes = [8, 8], strides = [1, 1]} : vector<8x216xf32> to vector<8x8xf32>
    %cst_131 = arith.constant dense<0.000000e+00> : vector<8x778xf32>
    %192 = tpu.matmul %191, %190, %cst_131 {dimension_numbers = #tpu.dot_dimension_numbers<[1], [0], [0], [1], [0, 0, 1, 1], [], []>} : vector<8x8xf32>, vector<8x778xf32>, vector<8x778xf32> -> vector<8x778xf32>
    %193 = arith.addf %189, %192 : vector<8x778xf32>
    %c0_132 = arith.constant 0 : index
    %c100_133 = arith.constant 100 : index
    %194 = vector.load %arg6[%c0_132, %c100_133] : memref<8x1000xf32, #tpu.memory_space<vmem>>, vector<8x778xf32>
    %195 = vector.extract_strided_slice %154 {offsets = [0, 72], sizes = [8, 8], strides = [1, 1]} : vector<8x216xf32> to vector<8x8xf32>
    %cst_134 = arith.constant dense<0.000000e+00> : vector<8x778xf32>
    %196 = tpu.matmul %195, %194, %cst_134 {dimension_numbers = #tpu.dot_dimension_numbers<[1], [0], [0], [1], [0, 0, 1, 1], [], []>} : vector<8x8xf32>, vector<8x778xf32>, vector<8x778xf32> -> vector<8x778xf32>
    %197 = arith.addf %193, %196 : vector<8x778xf32>
    %c0_135 = arith.constant 0 : index
    %c101_136 = arith.constant 101 : index
    %198 = vector.load %arg6[%c0_135, %c101_136] : memref<8x1000xf32, #tpu.memory_space<vmem>>, vector<8x778xf32>
    %199 = vector.extract_strided_slice %154 {offsets = [0, 80], sizes = [8, 8], strides = [1, 1]} : vector<8x216xf32> to vector<8x8xf32>
    %cst_137 = arith.constant dense<0.000000e+00> : vector<8x778xf32>
    %200 = tpu.matmul %199, %198, %cst_137 {dimension_numbers = #tpu.dot_dimension_numbers<[1], [0], [0], [1], [0, 0, 1, 1], [], []>} : vector<8x8xf32>, vector<8x778xf32>, vector<8x778xf32> -> vector<8x778xf32>
    %201 = arith.addf %197, %200 : vector<8x778xf32>
    %c0_138 = arith.constant 0 : index
    %c102_139 = arith.constant 102 : index
    %202 = vector.load %arg6[%c0_138, %c102_139] : memref<8x1000xf32, #tpu.memory_space<vmem>>, vector<8x778xf32>
    %203 = vector.extract_strided_slice %154 {offsets = [0, 88], sizes = [8, 8], strides = [1, 1]} : vector<8x216xf32> to vector<8x8xf32>
    %cst_140 = arith.constant dense<0.000000e+00> : vector<8x778xf32>
    %204 = tpu.matmul %203, %202, %cst_140 {dimension_numbers = #tpu.dot_dimension_numbers<[1], [0], [0], [1], [0, 0, 1, 1], [], []>} : vector<8x8xf32>, vector<8x778xf32>, vector<8x778xf32> -> vector<8x778xf32>
    %205 = arith.addf %201, %204 : vector<8x778xf32>
    %c0_141 = arith.constant 0 : index
    %c110_142 = arith.constant 110 : index
    %206 = vector.load %arg6[%c0_141, %c110_142] : memref<8x1000xf32, #tpu.memory_space<vmem>>, vector<8x778xf32>
    %207 = vector.extract_strided_slice %154 {offsets = [0, 96], sizes = [8, 8], strides = [1, 1]} : vector<8x216xf32> to vector<8x8xf32>
    %cst_143 = arith.constant dense<0.000000e+00> : vector<8x778xf32>
    %208 = tpu.matmul %207, %206, %cst_143 {dimension_numbers = #tpu.dot_dimension_numbers<[1], [0], [0], [1], [0, 0, 1, 1], [], []>} : vector<8x8xf32>, vector<8x778xf32>, vector<8x778xf32> -> vector<8x778xf32>
    %209 = arith.addf %205, %208 : vector<8x778xf32>
    %c0_144 = arith.constant 0 : index
    %c111_145 = arith.constant 111 : index
    %210 = vector.load %arg6[%c0_144, %c111_145] : memref<8x1000xf32, #tpu.memory_space<vmem>>, vector<8x778xf32>
    %211 = vector.extract_strided_slice %154 {offsets = [0, 104], sizes = [8, 8], strides = [1, 1]} : vector<8x216xf32> to vector<8x8xf32>
    %cst_146 = arith.constant dense<0.000000e+00> : vector<8x778xf32>
    %212 = tpu.matmul %211, %210, %cst_146 {dimension_numbers = #tpu.dot_dimension_numbers<[1], [0], [0], [1], [0, 0, 1, 1], [], []>} : vector<8x8xf32>, vector<8x778xf32>, vector<8x778xf32> -> vector<8x778xf32>
    %213 = arith.addf %209, %212 : vector<8x778xf32>
    %c0_147 = arith.constant 0 : index
    %c112_148 = arith.constant 112 : index
    %214 = vector.load %arg6[%c0_147, %c112_148] : memref<8x1000xf32, #tpu.memory_space<vmem>>, vector<8x778xf32>
    %215 = vector.extract_strided_slice %154 {offsets = [0, 112], sizes = [8, 8], strides = [1, 1]} : vector<8x216xf32> to vector<8x8xf32>
    %cst_149 = arith.constant dense<0.000000e+00> : vector<8x778xf32>
    %216 = tpu.matmul %215, %214, %cst_149 {dimension_numbers = #tpu.dot_dimension_numbers<[1], [0], [0], [1], [0, 0, 1, 1], [], []>} : vector<8x8xf32>, vector<8x778xf32>, vector<8x778xf32> -> vector<8x778xf32>
    %217 = arith.addf %213, %216 : vector<8x778xf32>
    %c0_150 = arith.constant 0 : index
    %c120_151 = arith.constant 120 : index
    %218 = vector.load %arg6[%c0_150, %c120_151] : memref<8x1000xf32, #tpu.memory_space<vmem>>, vector<8x778xf32>
    %219 = vector.extract_strided_slice %154 {offsets = [0, 120], sizes = [8, 8], strides = [1, 1]} : vector<8x216xf32> to vector<8x8xf32>
    %cst_152 = arith.constant dense<0.000000e+00> : vector<8x778xf32>
    %220 = tpu.matmul %219, %218, %cst_152 {dimension_numbers = #tpu.dot_dimension_numbers<[1], [0], [0], [1], [0, 0, 1, 1], [], []>} : vector<8x8xf32>, vector<8x778xf32>, vector<8x778xf32> -> vector<8x778xf32>
    %221 = arith.addf %217, %220 : vector<8x778xf32>
    %c0_153 = arith.constant 0 : index
    %c121_154 = arith.constant 121 : index
    %222 = vector.load %arg6[%c0_153, %c121_154] : memref<8x1000xf32, #tpu.memory_space<vmem>>, vector<8x778xf32>
    %223 = vector.extract_strided_slice %154 {offsets = [0, 128], sizes = [8, 8], strides = [1, 1]} : vector<8x216xf32> to vector<8x8xf32>
    %cst_155 = arith.constant dense<0.000000e+00> : vector<8x778xf32>
    %224 = tpu.matmul %223, %222, %cst_155 {dimension_numbers = #tpu.dot_dimension_numbers<[1], [0], [0], [1], [0, 0, 1, 1], [], []>} : vector<8x8xf32>, vector<8x778xf32>, vector<8x778xf32> -> vector<8x778xf32>
    %225 = arith.addf %221, %224 : vector<8x778xf32>
    %c0_156 = arith.constant 0 : index
    %c122_157 = arith.constant 122 : index
    %226 = vector.load %arg6[%c0_156, %c122_157] : memref<8x1000xf32, #tpu.memory_space<vmem>>, vector<8x778xf32>
    %227 = vector.extract_strided_slice %154 {offsets = [0, 136], sizes = [8, 8], strides = [1, 1]} : vector<8x216xf32> to vector<8x8xf32>
    %cst_158 = arith.constant dense<0.000000e+00> : vector<8x778xf32>
    %228 = tpu.matmul %227, %226, %cst_158 {dimension_numbers = #tpu.dot_dimension_numbers<[1], [0], [0], [1], [0, 0, 1, 1], [], []>} : vector<8x8xf32>, vector<8x778xf32>, vector<8x778xf32> -> vector<8x778xf32>
    %229 = arith.addf %225, %228 : vector<8x778xf32>
    %c0_159 = arith.constant 0 : index
    %c200_160 = arith.constant 200 : index
    %230 = vector.load %arg6[%c0_159, %c200_160] : memref<8x1000xf32, #tpu.memory_space<vmem>>, vector<8x778xf32>
    %231 = vector.extract_strided_slice %154 {offsets = [0, 144], sizes = [8, 8], strides = [1, 1]} : vector<8x216xf32> to vector<8x8xf32>
    %cst_161 = arith.constant dense<0.000000e+00> : vector<8x778xf32>
    %232 = tpu.matmul %231, %230, %cst_161 {dimension_numbers = #tpu.dot_dimension_numbers<[1], [0], [0], [1], [0, 0, 1, 1], [], []>} : vector<8x8xf32>, vector<8x778xf32>, vector<8x778xf32> -> vector<8x778xf32>
    %233 = arith.addf %229, %232 : vector<8x778xf32>
    %c0_162 = arith.constant 0 : index
    %c201_163 = arith.constant 201 : index
    %234 = vector.load %arg6[%c0_162, %c201_163] : memref<8x1000xf32, #tpu.memory_space<vmem>>, vector<8x778xf32>
    %235 = vector.extract_strided_slice %154 {offsets = [0, 152], sizes = [8, 8], strides = [1, 1]} : vector<8x216xf32> to vector<8x8xf32>
    %cst_164 = arith.constant dense<0.000000e+00> : vector<8x778xf32>
    %236 = tpu.matmul %235, %234, %cst_164 {dimension_numbers = #tpu.dot_dimension_numbers<[1], [0], [0], [1], [0, 0, 1, 1], [], []>} : vector<8x8xf32>, vector<8x778xf32>, vector<8x778xf32> -> vector<8x778xf32>
    %237 = arith.addf %233, %236 : vector<8x778xf32>
    %c0_165 = arith.constant 0 : index
    %c202_166 = arith.constant 202 : index
    %238 = vector.load %arg6[%c0_165, %c202_166] : memref<8x1000xf32, #tpu.memory_space<vmem>>, vector<8x778xf32>
    %239 = vector.extract_strided_slice %154 {offsets = [0, 160], sizes = [8, 8], strides = [1, 1]} : vector<8x216xf32> to vector<8x8xf32>
    %cst_167 = arith.constant dense<0.000000e+00> : vector<8x778xf32>
    %240 = tpu.matmul %239, %238, %cst_167 {dimension_numbers = #tpu.dot_dimension_numbers<[1], [0], [0], [1], [0, 0, 1, 1], [], []>} : vector<8x8xf32>, vector<8x778xf32>, vector<8x778xf32> -> vector<8x778xf32>
    %241 = arith.addf %237, %240 : vector<8x778xf32>
    %c0_168 = arith.constant 0 : index
    %c210_169 = arith.constant 210 : index
    %242 = vector.load %arg6[%c0_168, %c210_169] : memref<8x1000xf32, #tpu.memory_space<vmem>>, vector<8x778xf32>
    %243 = vector.extract_strided_slice %154 {offsets = [0, 168], sizes = [8, 8], strides = [1, 1]} : vector<8x216xf32> to vector<8x8xf32>
    %cst_170 = arith.constant dense<0.000000e+00> : vector<8x778xf32>
    %244 = tpu.matmul %243, %242, %cst_170 {dimension_numbers = #tpu.dot_dimension_numbers<[1], [0], [0], [1], [0, 0, 1, 1], [], []>} : vector<8x8xf32>, vector<8x778xf32>, vector<8x778xf32> -> vector<8x778xf32>
    %245 = arith.addf %241, %244 : vector<8x778xf32>
    %c0_171 = arith.constant 0 : index
    %c211_172 = arith.constant 211 : index
    %246 = vector.load %arg6[%c0_171, %c211_172] : memref<8x1000xf32, #tpu.memory_space<vmem>>, vector<8x778xf32>
    %247 = vector.extract_strided_slice %154 {offsets = [0, 176], sizes = [8, 8], strides = [1, 1]} : vector<8x216xf32> to vector<8x8xf32>
    %cst_173 = arith.constant dense<0.000000e+00> : vector<8x778xf32>
    %248 = tpu.matmul %247, %246, %cst_173 {dimension_numbers = #tpu.dot_dimension_numbers<[1], [0], [0], [1], [0, 0, 1, 1], [], []>} : vector<8x8xf32>, vector<8x778xf32>, vector<8x778xf32> -> vector<8x778xf32>
    %249 = arith.addf %245, %248 : vector<8x778xf32>
    %c0_174 = arith.constant 0 : index
    %c212_175 = arith.constant 212 : index
    %250 = vector.load %arg6[%c0_174, %c212_175] : memref<8x1000xf32, #tpu.memory_space<vmem>>, vector<8x778xf32>
    %251 = vector.extract_strided_slice %154 {offsets = [0, 184], sizes = [8, 8], strides = [1, 1]} : vector<8x216xf32> to vector<8x8xf32>
    %cst_176 = arith.constant dense<0.000000e+00> : vector<8x778xf32>
    %252 = tpu.matmul %251, %250, %cst_176 {dimension_numbers = #tpu.dot_dimension_numbers<[1], [0], [0], [1], [0, 0, 1, 1], [], []>} : vector<8x8xf32>, vector<8x778xf32>, vector<8x778xf32> -> vector<8x778xf32>
    %253 = arith.addf %249, %252 : vector<8x778xf32>
    %c0_177 = arith.constant 0 : index
    %c220_178 = arith.constant 220 : index
    %254 = vector.load %arg6[%c0_177, %c220_178] : memref<8x1000xf32, #tpu.memory_space<vmem>>, vector<8x778xf32>
    %255 = vector.extract_strided_slice %154 {offsets = [0, 192], sizes = [8, 8], strides = [1, 1]} : vector<8x216xf32> to vector<8x8xf32>
    %cst_179 = arith.constant dense<0.000000e+00> : vector<8x778xf32>
    %256 = tpu.matmul %255, %254, %cst_179 {dimension_numbers = #tpu.dot_dimension_numbers<[1], [0], [0], [1], [0, 0, 1, 1], [], []>} : vector<8x8xf32>, vector<8x778xf32>, vector<8x778xf32> -> vector<8x778xf32>
    %257 = arith.addf %253, %256 : vector<8x778xf32>
    %c0_180 = arith.constant 0 : index
    %c221_181 = arith.constant 221 : index
    %258 = vector.load %arg6[%c0_180, %c221_181] : memref<8x1000xf32, #tpu.memory_space<vmem>>, vector<8x778xf32>
    %259 = vector.extract_strided_slice %154 {offsets = [0, 200], sizes = [8, 8], strides = [1, 1]} : vector<8x216xf32> to vector<8x8xf32>
    %cst_182 = arith.constant dense<0.000000e+00> : vector<8x778xf32>
    %260 = tpu.matmul %259, %258, %cst_182 {dimension_numbers = #tpu.dot_dimension_numbers<[1], [0], [0], [1], [0, 0, 1, 1], [], []>} : vector<8x8xf32>, vector<8x778xf32>, vector<8x778xf32> -> vector<8x778xf32>
    %261 = arith.addf %257, %260 : vector<8x778xf32>
    %c0_183 = arith.constant 0 : index
    %c222_184 = arith.constant 222 : index
    %262 = vector.load %arg6[%c0_183, %c222_184] : memref<8x1000xf32, #tpu.memory_space<vmem>>, vector<8x778xf32>
    %263 = vector.extract_strided_slice %154 {offsets = [0, 208], sizes = [8, 8], strides = [1, 1]} : vector<8x216xf32> to vector<8x8xf32>
    %cst_185 = arith.constant dense<0.000000e+00> : vector<8x778xf32>
    %264 = tpu.matmul %263, %262, %cst_185 {dimension_numbers = #tpu.dot_dimension_numbers<[1], [0], [0], [1], [0, 0, 1, 1], [], []>} : vector<8x8xf32>, vector<8x778xf32>, vector<8x778xf32> -> vector<8x778xf32>
    %265 = arith.addf %261, %264 : vector<8x778xf32>
    %266 = vector.broadcast %156 : vector<8x1xf32> to vector<8x778xf32>
    %267 = arith.addf %265, %266 : vector<8x778xf32>
    %cst_186 = arith.constant 0.000000e+00 : f32
    %268 = vector.broadcast %cst_186 : f32 to vector<8x778xf32>
    %269 = arith.maximumf %267, %268 : vector<8x778xf32>
    %270 = arith.mulf %269, %6 : vector<8x778xf32>
    %c0_187 = arith.constant 0 : index
    %c111_188 = arith.constant 111 : index
    %271 = vector.load %arg7[%c0_187, %c111_188] : memref<8x1000xf32, #tpu.memory_space<vmem>>, vector<8x778xf32>
    tpu.vector_store %arg7[%c0_187, %c111_188], %270 {strides = array<i32>} : memref<8x1000xf32, #tpu.memory_space<vmem>>, vector<8x778xf32>,
    %c2_189 = arith.constant 2 : index
    %c0_190 = arith.constant 0 : index
    %c0_191 = arith.constant 0 : index
    %272 = vector.load %arg2[%c2_189, %c0_190, %c0_191] : memref<3x8x216xf32, #tpu.memory_space<vmem>>, vector<1x8x216xf32>
    %273 = vector.shape_cast %272 : vector<1x8x216xf32> to vector<8x216xf32>
    %c2_192 = arith.constant 2 : index
    %c0_193 = arith.constant 0 : index
    %c0_194 = arith.constant 0 : index
    %274 = vector.load %arg3[%c2_192, %c0_193, %c0_194] : memref<3x8x1xf32, #tpu.memory_space<vmem>>, vector<1x8x1xf32>
    %275 = vector.shape_cast %274 : vector<1x8x1xf32> to vector<8x1xf32>
    %cst_195 = arith.constant 0.000000e+00 : f32
    %276 = vector.broadcast %cst_195 : f32 to vector<8x778xf32>
    %c0_196 = arith.constant 0 : index
    %c0_197 = arith.constant 0 : index
    %277 = vector.load %arg7[%c0_196, %c0_197] : memref<8x1000xf32, #tpu.memory_space<vmem>>, vector<8x778xf32>
    %278 = vector.extract_strided_slice %273 {offsets = [0, 0], sizes = [8, 8], strides = [1, 1]} : vector<8x216xf32> to vector<8x8xf32>
    %cst_198 = arith.constant dense<0.000000e+00> : vector<8x778xf32>
    %279 = tpu.matmul %278, %277, %cst_198 {dimension_numbers = #tpu.dot_dimension_numbers<[1], [0], [0], [1], [0, 0, 1, 1], [], []>} : vector<8x8xf32>, vector<8x778xf32>, vector<8x778xf32> -> vector<8x778xf32>
    %280 = arith.addf %276, %279 : vector<8x778xf32>
    %c0_199 = arith.constant 0 : index
    %c1_200 = arith.constant 1 : index
    %281 = vector.load %arg7[%c0_199, %c1_200] : memref<8x1000xf32, #tpu.memory_space<vmem>>, vector<8x778xf32>
    %282 = vector.extract_strided_slice %273 {offsets = [0, 8], sizes = [8, 8], strides = [1, 1]} : vector<8x216xf32> to vector<8x8xf32>
    %cst_201 = arith.constant dense<0.000000e+00> : vector<8x778xf32>
    %283 = tpu.matmul %282, %281, %cst_201 {dimension_numbers = #tpu.dot_dimension_numbers<[1], [0], [0], [1], [0, 0, 1, 1], [], []>} : vector<8x8xf32>, vector<8x778xf32>, vector<8x778xf32> -> vector<8x778xf32>
    %284 = arith.addf %280, %283 : vector<8x778xf32>
    %c0_202 = arith.constant 0 : index
    %c2_203 = arith.constant 2 : index
    %285 = vector.load %arg7[%c0_202, %c2_203] : memref<8x1000xf32, #tpu.memory_space<vmem>>, vector<8x778xf32>
    %286 = vector.extract_strided_slice %273 {offsets = [0, 16], sizes = [8, 8], strides = [1, 1]} : vector<8x216xf32> to vector<8x8xf32>
    %cst_204 = arith.constant dense<0.000000e+00> : vector<8x778xf32>
    %287 = tpu.matmul %286, %285, %cst_204 {dimension_numbers = #tpu.dot_dimension_numbers<[1], [0], [0], [1], [0, 0, 1, 1], [], []>} : vector<8x8xf32>, vector<8x778xf32>, vector<8x778xf32> -> vector<8x778xf32>
    %288 = arith.addf %284, %287 : vector<8x778xf32>
    %c0_205 = arith.constant 0 : index
    %c10_206 = arith.constant 10 : index
    %289 = vector.load %arg7[%c0_205, %c10_206] : memref<8x1000xf32, #tpu.memory_space<vmem>>, vector<8x778xf32>
    %290 = vector.extract_strided_slice %273 {offsets = [0, 24], sizes = [8, 8], strides = [1, 1]} : vector<8x216xf32> to vector<8x8xf32>
    %cst_207 = arith.constant dense<0.000000e+00> : vector<8x778xf32>
    %291 = tpu.matmul %290, %289, %cst_207 {dimension_numbers = #tpu.dot_dimension_numbers<[1], [0], [0], [1], [0, 0, 1, 1], [], []>} : vector<8x8xf32>, vector<8x778xf32>, vector<8x778xf32> -> vector<8x778xf32>
    %292 = arith.addf %288, %291 : vector<8x778xf32>
    %c0_208 = arith.constant 0 : index
    %c11_209 = arith.constant 11 : index
    %293 = vector.load %arg7[%c0_208, %c11_209] : memref<8x1000xf32, #tpu.memory_space<vmem>>, vector<8x778xf32>
    %294 = vector.extract_strided_slice %273 {offsets = [0, 32], sizes = [8, 8], strides = [1, 1]} : vector<8x216xf32> to vector<8x8xf32>
    %cst_210 = arith.constant dense<0.000000e+00> : vector<8x778xf32>
    %295 = tpu.matmul %294, %293, %cst_210 {dimension_numbers = #tpu.dot_dimension_numbers<[1], [0], [0], [1], [0, 0, 1, 1], [], []>} : vector<8x8xf32>, vector<8x778xf32>, vector<8x778xf32> -> vector<8x778xf32>
    %296 = arith.addf %292, %295 : vector<8x778xf32>
    %c0_211 = arith.constant 0 : index
    %c12_212 = arith.constant 12 : index
    %297 = vector.load %arg7[%c0_211, %c12_212] : memref<8x1000xf32, #tpu.memory_space<vmem>>, vector<8x778xf32>
    %298 = vector.extract_strided_slice %273 {offsets = [0, 40], sizes = [8, 8], strides = [1, 1]} : vector<8x216xf32> to vector<8x8xf32>
    %cst_213 = arith.constant dense<0.000000e+00> : vector<8x778xf32>
    %299 = tpu.matmul %298, %297, %cst_213 {dimension_numbers = #tpu.dot_dimension_numbers<[1], [0], [0], [1], [0, 0, 1, 1], [], []>} : vector<8x8xf32>, vector<8x778xf32>, vector<8x778xf32> -> vector<8x778xf32>
    %300 = arith.addf %296, %299 : vector<8x778xf32>
    %c0_214 = arith.constant 0 : index
    %c20_215 = arith.constant 20 : index
    %301 = vector.load %arg7[%c0_214, %c20_215] : memref<8x1000xf32, #tpu.memory_space<vmem>>, vector<8x778xf32>
    %302 = vector.extract_strided_slice %273 {offsets = [0, 48], sizes = [8, 8], strides = [1, 1]} : vector<8x216xf32> to vector<8x8xf32>
    %cst_216 = arith.constant dense<0.000000e+00> : vector<8x778xf32>
    %303 = tpu.matmul %302, %301, %cst_216 {dimension_numbers = #tpu.dot_dimension_numbers<[1], [0], [0], [1], [0, 0, 1, 1], [], []>} : vector<8x8xf32>, vector<8x778xf32>, vector<8x778xf32> -> vector<8x778xf32>
    %304 = arith.addf %300, %303 : vector<8x778xf32>
    %c0_217 = arith.constant 0 : index
    %c21_218 = arith.constant 21 : index
    %305 = vector.load %arg7[%c0_217, %c21_218] : memref<8x1000xf32, #tpu.memory_space<vmem>>, vector<8x778xf32>
    %306 = vector.extract_strided_slice %273 {offsets = [0, 56], sizes = [8, 8], strides = [1, 1]} : vector<8x216xf32> to vector<8x8xf32>
    %cst_219 = arith.constant dense<0.000000e+00> : vector<8x778xf32>
    %307 = tpu.matmul %306, %305, %cst_219 {dimension_numbers = #tpu.dot_dimension_numbers<[1], [0], [0], [1], [0, 0, 1, 1], [], []>} : vector<8x8xf32>, vector<8x778xf32>, vector<8x778xf32> -> vector<8x778xf32>
    %308 = arith.addf %304, %307 : vector<8x778xf32>
    %c0_220 = arith.constant 0 : index
    %c22_221 = arith.constant 22 : index
    %309 = vector.load %arg7[%c0_220, %c22_221] : memref<8x1000xf32, #tpu.memory_space<vmem>>, vector<8x778xf32>
    %310 = vector.extract_strided_slice %273 {offsets = [0, 64], sizes = [8, 8], strides = [1, 1]} : vector<8x216xf32> to vector<8x8xf32>
    %cst_222 = arith.constant dense<0.000000e+00> : vector<8x778xf32>
    %311 = tpu.matmul %310, %309, %cst_222 {dimension_numbers = #tpu.dot_dimension_numbers<[1], [0], [0], [1], [0, 0, 1, 1], [], []>} : vector<8x8xf32>, vector<8x778xf32>, vector<8x778xf32> -> vector<8x778xf32>
    %312 = arith.addf %308, %311 : vector<8x778xf32>
    %c0_223 = arith.constant 0 : index
    %c100_224 = arith.constant 100 : index
    %313 = vector.load %arg7[%c0_223, %c100_224] : memref<8x1000xf32, #tpu.memory_space<vmem>>, vector<8x778xf32>
    %314 = vector.extract_strided_slice %273 {offsets = [0, 72], sizes = [8, 8], strides = [1, 1]} : vector<8x216xf32> to vector<8x8xf32>
    %cst_225 = arith.constant dense<0.000000e+00> : vector<8x778xf32>
    %315 = tpu.matmul %314, %313, %cst_225 {dimension_numbers = #tpu.dot_dimension_numbers<[1], [0], [0], [1], [0, 0, 1, 1], [], []>} : vector<8x8xf32>, vector<8x778xf32>, vector<8x778xf32> -> vector<8x778xf32>
    %316 = arith.addf %312, %315 : vector<8x778xf32>
    %c0_226 = arith.constant 0 : index
    %c101_227 = arith.constant 101 : index
    %317 = vector.load %arg7[%c0_226, %c101_227] : memref<8x1000xf32, #tpu.memory_space<vmem>>, vector<8x778xf32>
    %318 = vector.extract_strided_slice %273 {offsets = [0, 80], sizes = [8, 8], strides = [1, 1]} : vector<8x216xf32> to vector<8x8xf32>
    %cst_228 = arith.constant dense<0.000000e+00> : vector<8x778xf32>
    %319 = tpu.matmul %318, %317, %cst_228 {dimension_numbers = #tpu.dot_dimension_numbers<[1], [0], [0], [1], [0, 0, 1, 1], [], []>} : vector<8x8xf32>, vector<8x778xf32>, vector<8x778xf32> -> vector<8x778xf32>
    %320 = arith.addf %316, %319 : vector<8x778xf32>
    %c0_229 = arith.constant 0 : index
    %c102_230 = arith.constant 102 : index
    %321 = vector.load %arg7[%c0_229, %c102_230] : memref<8x1000xf32, #tpu.memory_space<vmem>>, vector<8x778xf32>
    %322 = vector.extract_strided_slice %273 {offsets = [0, 88], sizes = [8, 8], strides = [1, 1]} : vector<8x216xf32> to vector<8x8xf32>
    %cst_231 = arith.constant dense<0.000000e+00> : vector<8x778xf32>
    %323 = tpu.matmul %322, %321, %cst_231 {dimension_numbers = #tpu.dot_dimension_numbers<[1], [0], [0], [1], [0, 0, 1, 1], [], []>} : vector<8x8xf32>, vector<8x778xf32>, vector<8x778xf32> -> vector<8x778xf32>
    %324 = arith.addf %320, %323 : vector<8x778xf32>
    %c0_232 = arith.constant 0 : index
    %c110_233 = arith.constant 110 : index
    %325 = vector.load %arg7[%c0_232, %c110_233] : memref<8x1000xf32, #tpu.memory_space<vmem>>, vector<8x778xf32>
    %326 = vector.extract_strided_slice %273 {offsets = [0, 96], sizes = [8, 8], strides = [1, 1]} : vector<8x216xf32> to vector<8x8xf32>
    %cst_234 = arith.constant dense<0.000000e+00> : vector<8x778xf32>
    %327 = tpu.matmul %326, %325, %cst_234 {dimension_numbers = #tpu.dot_dimension_numbers<[1], [0], [0], [1], [0, 0, 1, 1], [], []>} : vector<8x8xf32>, vector<8x778xf32>, vector<8x778xf32> -> vector<8x778xf32>
    %328 = arith.addf %324, %327 : vector<8x778xf32>
    %c0_235 = arith.constant 0 : index
    %c111_236 = arith.constant 111 : index
    %329 = vector.load %arg7[%c0_235, %c111_236] : memref<8x1000xf32, #tpu.memory_space<vmem>>, vector<8x778xf32>
    %330 = vector.extract_strided_slice %273 {offsets = [0, 104], sizes = [8, 8], strides = [1, 1]} : vector<8x216xf32> to vector<8x8xf32>
    %cst_237 = arith.constant dense<0.000000e+00> : vector<8x778xf32>
    %331 = tpu.matmul %330, %329, %cst_237 {dimension_numbers = #tpu.dot_dimension_numbers<[1], [0], [0], [1], [0, 0, 1, 1], [], []>} : vector<8x8xf32>, vector<8x778xf32>, vector<8x778xf32> -> vector<8x778xf32>
    %332 = arith.addf %328, %331 : vector<8x778xf32>
    %c0_238 = arith.constant 0 : index
    %c112_239 = arith.constant 112 : index
    %333 = vector.load %arg7[%c0_238, %c112_239] : memref<8x1000xf32, #tpu.memory_space<vmem>>, vector<8x778xf32>
    %334 = vector.extract_strided_slice %273 {offsets = [0, 112], sizes = [8, 8], strides = [1, 1]} : vector<8x216xf32> to vector<8x8xf32>
    %cst_240 = arith.constant dense<0.000000e+00> : vector<8x778xf32>
    %335 = tpu.matmul %334, %333, %cst_240 {dimension_numbers = #tpu.dot_dimension_numbers<[1], [0], [0], [1], [0, 0, 1, 1], [], []>} : vector<8x8xf32>, vector<8x778xf32>, vector<8x778xf32> -> vector<8x778xf32>
    %336 = arith.addf %332, %335 : vector<8x778xf32>
    %c0_241 = arith.constant 0 : index
    %c120_242 = arith.constant 120 : index
    %337 = vector.load %arg7[%c0_241, %c120_242] : memref<8x1000xf32, #tpu.memory_space<vmem>>, vector<8x778xf32>
    %338 = vector.extract_strided_slice %273 {offsets = [0, 120], sizes = [8, 8], strides = [1, 1]} : vector<8x216xf32> to vector<8x8xf32>
    %cst_243 = arith.constant dense<0.000000e+00> : vector<8x778xf32>
    %339 = tpu.matmul %338, %337, %cst_243 {dimension_numbers = #tpu.dot_dimension_numbers<[1], [0], [0], [1], [0, 0, 1, 1], [], []>} : vector<8x8xf32>, vector<8x778xf32>, vector<8x778xf32> -> vector<8x778xf32>
    %340 = arith.addf %336, %339 : vector<8x778xf32>
    %c0_244 = arith.constant 0 : index
    %c121_245 = arith.constant 121 : index
    %341 = vector.load %arg7[%c0_244, %c121_245] : memref<8x1000xf32, #tpu.memory_space<vmem>>, vector<8x778xf32>
    %342 = vector.extract_strided_slice %273 {offsets = [0, 128], sizes = [8, 8], strides = [1, 1]} : vector<8x216xf32> to vector<8x8xf32>
    %cst_246 = arith.constant dense<0.000000e+00> : vector<8x778xf32>
    %343 = tpu.matmul %342, %341, %cst_246 {dimension_numbers = #tpu.dot_dimension_numbers<[1], [0], [0], [1], [0, 0, 1, 1], [], []>} : vector<8x8xf32>, vector<8x778xf32>, vector<8x778xf32> -> vector<8x778xf32>
    %344 = arith.addf %340, %343 : vector<8x778xf32>
    %c0_247 = arith.constant 0 : index
    %c122_248 = arith.constant 122 : index
    %345 = vector.load %arg7[%c0_247, %c122_248] : memref<8x1000xf32, #tpu.memory_space<vmem>>, vector<8x778xf32>
    %346 = vector.extract_strided_slice %273 {offsets = [0, 136], sizes = [8, 8], strides = [1, 1]} : vector<8x216xf32> to vector<8x8xf32>
    %cst_249 = arith.constant dense<0.000000e+00> : vector<8x778xf32>
    %347 = tpu.matmul %346, %345, %cst_249 {dimension_numbers = #tpu.dot_dimension_numbers<[1], [0], [0], [1], [0, 0, 1, 1], [], []>} : vector<8x8xf32>, vector<8x778xf32>, vector<8x778xf32> -> vector<8x778xf32>
    %348 = arith.addf %344, %347 : vector<8x778xf32>
    %c0_250 = arith.constant 0 : index
    %c200_251 = arith.constant 200 : index
    %349 = vector.load %arg7[%c0_250, %c200_251] : memref<8x1000xf32, #tpu.memory_space<vmem>>, vector<8x778xf32>
    %350 = vector.extract_strided_slice %273 {offsets = [0, 144], sizes = [8, 8], strides = [1, 1]} : vector<8x216xf32> to vector<8x8xf32>
    %cst_252 = arith.constant dense<0.000000e+00> : vector<8x778xf32>
    %351 = tpu.matmul %350, %349, %cst_252 {dimension_numbers = #tpu.dot_dimension_numbers<[1], [0], [0], [1], [0, 0, 1, 1], [], []>} : vector<8x8xf32>, vector<8x778xf32>, vector<8x778xf32> -> vector<8x778xf32>
    %352 = arith.addf %348, %351 : vector<8x778xf32>
    %c0_253 = arith.constant 0 : index
    %c201_254 = arith.constant 201 : index
    %353 = vector.load %arg7[%c0_253, %c201_254] : memref<8x1000xf32, #tpu.memory_space<vmem>>, vector<8x778xf32>
    %354 = vector.extract_strided_slice %273 {offsets = [0, 152], sizes = [8, 8], strides = [1, 1]} : vector<8x216xf32> to vector<8x8xf32>
    %cst_255 = arith.constant dense<0.000000e+00> : vector<8x778xf32>
    %355 = tpu.matmul %354, %353, %cst_255 {dimension_numbers = #tpu.dot_dimension_numbers<[1], [0], [0], [1], [0, 0, 1, 1], [], []>} : vector<8x8xf32>, vector<8x778xf32>, vector<8x778xf32> -> vector<8x778xf32>
    %356 = arith.addf %352, %355 : vector<8x778xf32>
    %c0_256 = arith.constant 0 : index
    %c202_257 = arith.constant 202 : index
    %357 = vector.load %arg7[%c0_256, %c202_257] : memref<8x1000xf32, #tpu.memory_space<vmem>>, vector<8x778xf32>
    %358 = vector.extract_strided_slice %273 {offsets = [0, 160], sizes = [8, 8], strides = [1, 1]} : vector<8x216xf32> to vector<8x8xf32>
    %cst_258 = arith.constant dense<0.000000e+00> : vector<8x778xf32>
    %359 = tpu.matmul %358, %357, %cst_258 {dimension_numbers = #tpu.dot_dimension_numbers<[1], [0], [0], [1], [0, 0, 1, 1], [], []>} : vector<8x8xf32>, vector<8x778xf32>, vector<8x778xf32> -> vector<8x778xf32>
    %360 = arith.addf %356, %359 : vector<8x778xf32>
    %c0_259 = arith.constant 0 : index
    %c210_260 = arith.constant 210 : index
    %361 = vector.load %arg7[%c0_259, %c210_260] : memref<8x1000xf32, #tpu.memory_space<vmem>>, vector<8x778xf32>
    %362 = vector.extract_strided_slice %273 {offsets = [0, 168], sizes = [8, 8], strides = [1, 1]} : vector<8x216xf32> to vector<8x8xf32>
    %cst_261 = arith.constant dense<0.000000e+00> : vector<8x778xf32>
    %363 = tpu.matmul %362, %361, %cst_261 {dimension_numbers = #tpu.dot_dimension_numbers<[1], [0], [0], [1], [0, 0, 1, 1], [], []>} : vector<8x8xf32>, vector<8x778xf32>, vector<8x778xf32> -> vector<8x778xf32>
    %364 = arith.addf %360, %363 : vector<8x778xf32>
    %c0_262 = arith.constant 0 : index
    %c211_263 = arith.constant 211 : index
    %365 = vector.load %arg7[%c0_262, %c211_263] : memref<8x1000xf32, #tpu.memory_space<vmem>>, vector<8x778xf32>
    %366 = vector.extract_strided_slice %273 {offsets = [0, 176], sizes = [8, 8], strides = [1, 1]} : vector<8x216xf32> to vector<8x8xf32>
    %cst_264 = arith.constant dense<0.000000e+00> : vector<8x778xf32>
    %367 = tpu.matmul %366, %365, %cst_264 {dimension_numbers = #tpu.dot_dimension_numbers<[1], [0], [0], [1], [0, 0, 1, 1], [], []>} : vector<8x8xf32>, vector<8x778xf32>, vector<8x778xf32> -> vector<8x778xf32>
    %368 = arith.addf %364, %367 : vector<8x778xf32>
    %c0_265 = arith.constant 0 : index
    %c212_266 = arith.constant 212 : index
    %369 = vector.load %arg7[%c0_265, %c212_266] : memref<8x1000xf32, #tpu.memory_space<vmem>>, vector<8x778xf32>
    %370 = vector.extract_strided_slice %273 {offsets = [0, 184], sizes = [8, 8], strides = [1, 1]} : vector<8x216xf32> to vector<8x8xf32>
    %cst_267 = arith.constant dense<0.000000e+00> : vector<8x778xf32>
    %371 = tpu.matmul %370, %369, %cst_267 {dimension_numbers = #tpu.dot_dimension_numbers<[1], [0], [0], [1], [0, 0, 1, 1], [], []>} : vector<8x8xf32>, vector<8x778xf32>, vector<8x778xf32> -> vector<8x778xf32>
    %372 = arith.addf %368, %371 : vector<8x778xf32>
    %c0_268 = arith.constant 0 : index
    %c220_269 = arith.constant 220 : index
    %373 = vector.load %arg7[%c0_268, %c220_269] : memref<8x1000xf32, #tpu.memory_space<vmem>>, vector<8x778xf32>
    %374 = vector.extract_strided_slice %273 {offsets = [0, 192], sizes = [8, 8], strides = [1, 1]} : vector<8x216xf32> to vector<8x8xf32>
    %cst_270 = arith.constant dense<0.000000e+00> : vector<8x778xf32>
    %375 = tpu.matmul %374, %373, %cst_270 {dimension_numbers = #tpu.dot_dimension_numbers<[1], [0], [0], [1], [0, 0, 1, 1], [], []>} : vector<8x8xf32>, vector<8x778xf32>, vector<8x778xf32> -> vector<8x778xf32>
    %376 = arith.addf %372, %375 : vector<8x778xf32>
    %c0_271 = arith.constant 0 : index
    %c221_272 = arith.constant 221 : index
    %377 = vector.load %arg7[%c0_271, %c221_272] : memref<8x1000xf32, #tpu.memory_space<vmem>>, vector<8x778xf32>
    %378 = vector.extract_strided_slice %273 {offsets = [0, 200], sizes = [8, 8], strides = [1, 1]} : vector<8x216xf32> to vector<8x8xf32>
    %cst_273 = arith.constant dense<0.000000e+00> : vector<8x778xf32>
    %379 = tpu.matmul %378, %377, %cst_273 {dimension_numbers = #tpu.dot_dimension_numbers<[1], [0], [0], [1], [0, 0, 1, 1], [], []>} : vector<8x8xf32>, vector<8x778xf32>, vector<8x778xf32> -> vector<8x778xf32>
    %380 = arith.addf %376, %379 : vector<8x778xf32>
    %c0_274 = arith.constant 0 : index
    %c222_275 = arith.constant 222 : index
    %381 = vector.load %arg7[%c0_274, %c222_275] : memref<8x1000xf32, #tpu.memory_space<vmem>>, vector<8x778xf32>
    %382 = vector.extract_strided_slice %273 {offsets = [0, 208], sizes = [8, 8], strides = [1, 1]} : vector<8x216xf32> to vector<8x8xf32>
    %cst_276 = arith.constant dense<0.000000e+00> : vector<8x778xf32>
    %383 = tpu.matmul %382, %381, %cst_276 {dimension_numbers = #tpu.dot_dimension_numbers<[1], [0], [0], [1], [0, 0, 1, 1], [], []>} : vector<8x8xf32>, vector<8x778xf32>, vector<8x778xf32> -> vector<8x778xf32>
    %384 = arith.addf %380, %383 : vector<8x778xf32>
    %385 = vector.broadcast %275 : vector<8x1xf32> to vector<8x778xf32>
    %386 = arith.addf %384, %385 : vector<8x778xf32>
    %c0_277 = arith.constant 0 : index
    %c0_278 = arith.constant 0 : index
    %c111_279 = arith.constant 111 : index
    %387 = vector.load %arg1[%c0_277, %c0_278, %c111_279] : memref<1x8x1000xf32, #tpu.memory_space<vmem>>, vector<1x8x778xf32>
    %388 = vector.shape_cast %387 : vector<1x8x778xf32> to vector<8x778xf32>
    %389 = arith.addf %386, %388 : vector<8x778xf32>
    %c0_280 = arith.constant 0 : index
    %c0_281 = arith.constant 0 : index
    %c0_282 = arith.constant 0 : index
    %390 = vector.load %arg5[%c0_280, %c0_281, %c0_282] : memref<1x8x778xf32, #tpu.memory_space<vmem>>, vector<1x8x778xf32>
    %391 = vector.shape_cast %390 : vector<1x8x778xf32> to vector<8x778xf32>
    %392 = vector.shape_cast %389 : vector<8x778xf32> to vector<1x8x778xf32>
    tpu.vector_store %arg5[%c0_280, %c0_281, %c0_282], %392 {strides = array<i32>} : memref<1x8x778xf32, #tpu.memory_space<vmem>>, vector<1x8x778xf32>,
    return
  }
  func.func @transform_0(%arg0: i32) -> (i32, i32, i32) {
    %c0_i32 = arith.constant 0 : i32
    %c0_i32_0 = arith.constant 0 : i32
    %c0_i32_1 = arith.constant 0 : i32
    return %arg0, %c0_i32, %c0_i32_0 : i32, i32, i32
  }
  func.func @transform_1(%arg0: i32) -> (i32, i32, i32) {
    %c0_i32 = arith.constant 0 : i32
    %c0_i32_0 = arith.constant 0 : i32
    %c0_i32_1 = arith.constant 0 : i32
    %c0_i32_2 = arith.constant 0 : i32
    return %c0_i32, %c0_i32_0, %c0_i32_1 : i32, i32, i32
  }
  func.func @transform_2(%arg0: i32) -> (i32, i32, i32) {
    %c0_i32 = arith.constant 0 : i32
    %c0_i32_0 = arith.constant 0 : i32
    %c0_i32_1 = arith.constant 0 : i32
    %c0_i32_2 = arith.constant 0 : i32
    return %c0_i32, %c0_i32_0, %c0_i32_1 : i32, i32, i32
  }
  func.func @transform_3(%arg0: i32) -> (i32, i32) {
    %c0_i32 = arith.constant 0 : i32
    %c0_i32_0 = arith.constant 0 : i32
    %c0_i32_1 = arith.constant 0 : i32
    return %c0_i32, %c0_i32_0 : i32, i32
  }
  func.func @transform_4(%arg0: i32) -> (i32, i32, i32) {
    %c0_i32 = arith.constant 0 : i32
    %c0_i32_0 = arith.constant 0 : i32
    %c0_i32_1 = arith.constant 0 : i32
    return %arg0, %c0_i32, %c0_i32_0 : i32, i32, i32
  }
}

</mosaic_0001>

<bundles_post_ra>
// kernel: tile.22
= control target key start
LH: loop header
LB: loop body
LE: loop exit
PB: predicated region body
PF: predicated region fallthrough
CT: control target
= control target key end

     0   :  { %s22_s0 = inlined_call_operand.vmem [shape: f32[4], index: 0, kind: input, shape index: {}]   ;;  %s23_s1 = inlined_call_operand.vmem [shape: f32[2,4], index: 1, kind: output, shape index: {}]  }
   0x1   :  { %v4_v0 = vld [vmem:[%s22_s0] ss:$0 sm:$0xff] }
   0x2   :  { %5 = vst [vmem:[%s23_s1] sm:$0x3] %v4_v0 }

// kernel: tile.27
= control target key start
LH: loop header
LB: loop body
LE: loop exit
PB: predicated region body
PF: predicated region fallthrough
CT: control target
= control target key end

     0   :  { %vm7_vm0 = vcmask 31744   ;;  %vm13_vm1 = vcmask 64544   ;;  %s39_s0 = inlined_call_operand.vmem [shape: f32[2,4], index: 0, kind: input, shape index: {}]   ;;  %s40_s1 = inlined_call_operand.vmem [shape: f32[1,8,1], index: 1, kind: output, shape index: {}]  }
   0x1   :  { %v4_v0 = vld [vmem:[%s39_s0] sm:$0x3]  ;;  %s22_s0 = smov 4  }
   0x2   :  { %5 = vst [vmem:[#allocation1] sm:$0x3] %v4_v0 }
   0x9   :  { %v10_v1 = vld [vmem:[#allocation1 + $0x1] sm:$0x1]   ;;  %v6_v2 = vld [vmem:[#allocation1] sm:$0x1]  }
   0xa   :  { %11 = vrot.lane.b32.xlu0 %v10_v1, %s22_s0  ;;  %8 = vst.msk [vmem:[#allocation0] sm:$0x1] %vm7_vm0, %v6_v2  }
  0x7c   :  { %v12_v3 = vpop.permute.xlu0 %11  }
  0x7d   :  { %14 = vst.msk [vmem:[#allocation0] sm:$0x1] %vm13_vm1, %v12_v3  }
  0x84   :  { %v18_v4 = vld [vmem:[#allocation0] sm:$0x1] }
  0x85   :  { %20 = vst [vmem:[%s40_s1] sm:$0x1] %v18_v4 }

// kernel: tile.18
= control target key start
LH: loop header
LB: loop body
LE: loop exit
PB: predicated region body
PF: predicated region fallthrough
CT: control target
= control target key end

     0   :  { %2 = vsyncpa [#allocation1], 0  ;;  %s44_s6 = smov [#allocation0]   ;;  %s70_s0 = inlined_call_operand.hbm [shape: f32[4], index: 0, kind: input, shape index: {}]   ;;  %s71_s1 = inlined_call_operand.vmem [shape: f32[2,4], index: 1, kind: output, shape index: {}]  }
   0x1   :  { %s9_s7 = sshll.u32 %s44_s6, 4  ;;  %s20_s10 = scalar_lea.hbm %s70_s0, 16  ;;  %s10_s7 = int_to_ptr.vmem [resolvable:$true] %s9_s7 }
   0x2   :  { %p21_p0 = scmp.ne.s32.totalorder %s70_s0, %s20_s10  ;;  %p24_p1 = scmp.lt.u32.totalorder %s20_s10, %s70_s0 }
   0x4   :  { %p26_p2 = pnand %p24_p1, %p21_p0 }
   0x6   :  { %29 = shalt.err (!%p26_p2)
}
   0x7   :  { %s30_s15 = scalar_lea.vmem %s10_s7, 16  ;;  %s34_s16 = scalar_lea.vmem %s10_s7, 32 }
   0x8   :  { %p31_p3 = scmp.ne.s32.totalorder %s10_s7, %s30_s15  ;;  %p35_p4 = scmp.lt.s32.totalorder %s10_s7, %s10_s7 }
   0x9   :  { %p36_p5 = scmp.lt.s32.totalorder %s34_s16, %s30_s15 }
   0xb   :  { %p37_p6 = por %p36_p5, %p35_p4 }
   0xd   :  { %p38_p7 = pnand %p37_p6, %p31_p3 }
   0xf   :  { %41 = shalt.err (!%p38_p7)
}
  0x10   :  { %12 = dma.hbm_to_vmem [thread:$0]  %s70_s0, 16, %s10_s7, [#allocation1]  }
  0x11   :  { %42 = dma.done.wait [#allocation1], 16  }
  0x12   :  { %43 = vsyncadd [#allocation1], 4294967280  ;;  %v16_v0 = vld [vmem:[#allocation0] ss:$0 sm:$0xff] }
  0x13   :  { %17 = vst [vmem:[%s71_s1] sm:$0x3] %v16_v0 }
  0x14   :  { %18 = vsyncpa [#allocation1], 1 }

// kernel: residual_block_forward.1
= control target key start
LH: loop header
LB: loop body
LE: loop exit
PB: predicated region body
PF: predicated region fallthrough
CT: control target
= control target key end

     0   :  { %9 = vsyncpa [#allocation5], 0  ;;  %s32306_s0 = inlined_call_operand.hbm [shape: f32[1,8,1000], index: 0, kind: input, shape index: {}]   ;;  %s32307_s1 = inlined_call_operand.hbm [shape: f32[3,8,216], index: 1, kind: input, shape index: {}]   ;;  %s32308_s2 = inlined_call_operand.hbm [shape: f32[3,8,1], index: 2, kind: input, shape index: {}]   ;;  %s32309_s3 = inlined_call_operand.hbm [shape: f32[1,778], index: 3, kind: input, shape index: {}]   ;;  %s32310_s4 = inlined_call_operand.hbm [shape: f32[1,8,778], index: 4, kind: output, shape index: {}]  }
   0x1   :  { %10 = vsyncpa [#allocation8], 0 }
   0x2   :  { %11 = vsyncpa [#allocation11], 0 }
   0x3   :  { %12 = vsyncpa [#allocation6], 0  ;;  %s27926_s15 = smov [#allocation7]   ;;  %s27808_s19 = scalar_lea.hbm %s32307_s1, 768 }
   0x4   :  { %s28_s16 = sshll.u32 %s27926_s15, 4  ;;  %p27809_p0 = scmp.ne.s32.totalorder %s32307_s1, %s27808_s19  ;;  %s29_s16 = int_to_ptr.vmem [resolvable:$true] %s28_s16 }
   0x5   :  { %p27812_p1 = scmp.lt.u32.totalorder %s27808_s19, %s32307_s1 }
   0x7   :  { %p27814_p2 = pnand %p27812_p1, %p27809_p0 }
   0x9   :  { %27817 = shalt.err (!%p27814_p2)
}
   0xa   :  { %s27818_s24 = scalar_lea.vmem %s29_s16, 768  ;;  %p27823_p4 = scmp.lt.s32.totalorder %s29_s16, %s29_s16 }
   0xb   :  { %p27819_p3 = scmp.ne.s32.totalorder %s29_s16, %s27818_s24  ;;  %p27824_p5 = scmp.lt.s32.totalorder %s27818_s24, %s27818_s24 }
   0xd   :  { %p27825_p6 = por %p27824_p5, %p27823_p4 }
   0xf   :  { %p27826_p7 = pnand %p27825_p6, %p27819_p3 }
  0x11   :  { %27829 = shalt.err (!%p27826_p7)
}
  0x12   :  { %s27927_s25 = smov 256   ;;  %s27928_s26 = smov 16  }
  0x13   :  { %34 = dma.hbm_to_vmem [thread:$0]  %s32307_s1, 768, %s29_s16, [#allocation8], %s27927_s25, %s27927_s25, %s27928_s26  }
  0x14   :  { %s27929_s29 = smov [#allocation4]   ;;  %s27930_s5 = smov [#allocation9]  }
  0x15   :  { %s19_s30 = sshll.u32 %s27929_s29, 4  ;;  %s40_s6 = sshll.u32 %s27930_s5, 4  ;;  %s20_s30 = int_to_ptr.vmem [resolvable:$true] %s19_s30  ;;  %s41_s6 = int_to_ptr.vmem [resolvable:$true] %s40_s6 }
  0x16   :  { %s27830_s9 = scalar_lea.hbm %s32306_s0, 1024 }
  0x17   :  { %p27831_p8 = scmp.ne.s32.totalorder %s32306_s0, %s27830_s9  ;;  %p27834_p9 = scmp.lt.u32.totalorder %s27830_s9, %s32306_s0 }
  0x19   :  { %p27836_p10 = pnand %p27834_p9, %p27831_p8 }
  0x1b   :  { %27839 = shalt.err (!%p27836_p10)
}
  0x1c   :  { %s27840_s1 = scalar_lea.vmem %s20_s30, 1024  ;;  %p27845_p12 = scmp.lt.s32.totalorder %s20_s30, %s20_s30 }
  0x1d   :  { %p27841_p11 = scmp.ne.s32.totalorder %s20_s30, %s27840_s1  ;;  %p27846_p13 = scmp.lt.s32.totalorder %s27840_s1, %s27840_s1 }
  0x1f   :  { %p27847_p0 = por %p27846_p13, %p27845_p12 }
  0x21   :  { %p27848_p1 = pnand %p27847_p0, %p27841_p11 }
  0x23   :  { %27851 = shalt.err (!%p27848_p1)
}
  0x24   :  { %22 = dma.hbm_to_vmem [thread:$0]  %s32306_s0, 1024, %s20_s30, [#allocation5]  }
  0x25   :  { %s27852_s18 = scalar_lea.hbm %s32308_s2, 384 }
  0x26   :  { %p27853_p2 = scmp.ne.s32.totalorder %s32308_s2, %s27852_s18  ;;  %p27856_p3 = scmp.lt.u32.totalorder %s27852_s18, %s32308_s2 }
  0x28   :  { %p27858_p4 = pnand %p27856_p3, %p27853_p2 }
  0x2a   :  { %27861 = shalt.err (!%p27858_p4)
}
  0x2b   :  { %s27862_s23 = scalar_lea.vmem %s41_s6, 384  ;;  %p27867_p6 = scmp.lt.s32.totalorder %s41_s6, %s41_s6 }
  0x2c   :  { %p27863_p5 = scmp.ne.s32.totalorder %s41_s6, %s27862_s23  ;;  %p27868_p7 = scmp.lt.s32.totalorder %s27862_s23, %s27862_s23 }
  0x2e   :  { %p27869_p8 = por %p27868_p7, %p27867_p6 }
  0x30   :  { %p27870_p9 = pnand %p27869_p8, %p27863_p5 }
  0x32   :  { %27873 = shalt.err (!%p27870_p9)
}
  0x33   :  { %s27931_s0 = smov 128   ;;  %s27932_s24 = smov 8  }
  0x34   :  { %46 = dma.hbm_to_vmem [thread:$0]  %s32308_s2, 384, %s41_s6, [#allocation8], %s27931_s0, %s27931_s0, %s27932_s24  }
  0x35   :  { %s27933_s28 = smov [#allocation10]   ;;  %s27874_s7 = scalar_lea.hbm %s32309_s3, 112 }
  0x36   :  { %s53_s29 = sshll.u32 %s27933_s28, 4  ;;  %p27875_p10 = scmp.ne.s32.totalorder %s32309_s3, %s27874_s7  ;;  %s54_s29 = int_to_ptr.vmem [resolvable:$true] %s53_s29 }
  0x37   :  { %p27878_p11 = scmp.lt.u32.totalorder %s27874_s7, %s32309_s3 }
  0x39   :  { %p27880_p12 = pnand %p27878_p11, %p27875_p10 }
  0x3b   :  { %27883 = shalt.err (!%p27880_p12)
}
  0x3c   :  { %s27884_s12 = scalar_lea.vmem %s54_s29, 112  ;;  %s27888_s2 = scalar_lea.vmem %s54_s29, 128 }
  0x3d   :  { %p27885_p13 = scmp.ne.s32.totalorder %s54_s29, %s27884_s12  ;;  %p27889_p0 = scmp.lt.s32.totalorder %s54_s29, %s54_s29 }
  0x3e   :  { %p27890_p1 = scmp.lt.s32.totalorder %s27888_s2, %s27884_s12 }
  0x40   :  { %p27891_p2 = por %p27890_p1, %p27889_p0 }
  0x42   :  { %p27892_p3 = pnand %p27891_p2, %p27885_p13 }
  0x44   :  { %27895 = shalt.err (!%p27892_p3)
}
  0x45   :  { %56 = dma.hbm_to_vmem [thread:$0]  %s32309_s3, 112, %s54_s29, [#allocation11]  }
  0x46   :  { %27918 = dma.done.wait [#allocation5], 1024  }
  0x47   :  { %27919 = vsyncadd [#allocation5], 4294966272 }
  0x48   :  { %27920 = dma.done.wait [#allocation8], 1152  }
  0x49   :  { %27921 = vsyncadd [#allocation8], 4294966144 }
  0x4a   :  { %27922 = dma.done.wait [#allocation11], 112  }
  0x4b   :  { %27923 = vsyncadd [#allocation11], 4294967184  ;;  %v27934_v0 = vmov 0.0   ;;  %v28056_v1 = vld [vmem:[#allocation4 + $0x18] sm:$0xff]  ;;  %v28058_v2 = vld [vmem:[#allocation4 + $0x8] sm:$0xff]  ;;  %s32350_s3 = smov 127  }
  0x4c   :  { %309 = vmatprep.mubr.f32.mxu1 %v27934_v0  ;;  %69 = vst [vmem:[#allocation2] sm:$0xff] %v27934_v0  ;;  %75 = vst [vmem:[#allocation2 + $0x30] sm:$0xff] %v27934_v0  ;;  %238 = vmatprep.mubr.f32.mxu0 %v27934_v0  ;;  %v28064_v3 = vld [vmem:[#allocation4 + $0x20] sm:$0xff]  ;;  %v28066_v4 = vld [vmem:[#allocation4 + $0x10] sm:$0xff]  ;;  %s27936_s1 = smov 120   ;;  %s27937_s14 = smov 126  }
  0x4d   :  { %78 = vst [vmem:[#allocation3] sm:$0xff] %v27934_v0  ;;  %84 = vst [vmem:[#allocation3 + $0x30] sm:$0xff] %v27934_v0  ;;  %149 = vrot.lane.b32.xlu0 %v28056_v1, %s32350_s3  ;;  %145 = vrot.lane.b32.xlu1 %v28058_v2, %s32350_s3  ;;  %v28072_v5 = vld [vmem:[#allocation4] sm:$0xff]  ;;  %v28080_v7 = vld [vmem:[#allocation4 + $0x28] sm:$0xff]  ;;  %s27938_s15 = smov 112   ;;  %s27939_s16 = smov 118  }
  0x4e   :  { %v28074_v6 = vld [vmem:[#allocation7] sm:$0xff]  ;;  %v28082_v8 = vld [vmem:[#allocation4 + $0x30] sm:$0xff]  ;;  %s27940_s17 = smov 104   ;;  %s27941_s18 = smov 117   ;;  %vm157_vm0 = vcmask 1039360   ;;  %vm171_vm1 = vcmask 64512  }
  0x4f   :  { %s27942_s19 = smov 96   ;;  %s27943_s20 = smov 116   ;;  %vm27951_vm2 = vmmov 0   ;;  %vm758_vm3 = vcmask 1031168   ;;  %vm1080_vm4 = vcmask 965632   ;;  %vm32402_vm5 = vcmask 957440  }
  0x50   :  { %s27944_s21 = smov 88   ;;  %s27945_s22 = smov 108   ;;  %vm1724_vm6 = vcmask 949248   ;;  %vm2046_vm7 = vcmask 883712   ;;  %vm2368_vm8 = vcmask 875520   ;;  %vm2690_vm9 = vcmask 867328  }
  0x51   :  { %151 = vrot.lane.b32.xlu0 %v28064_v3, %s32350_s3  ;;  %147 = vrot.lane.b32.xlu1 %v28066_v4, %s32350_s3  ;;  %s27946_s23 = smov 80   ;;  %s27947_s0 = smov 107   ;;  %vm32408_vm10 = vcmask 228352   ;;  %vm3334_vm11 = vcmask 220160   ;;  %vm32410_vm12 = vcmask 211968   ;;  %vm32409_vm13 = vcmask 146432  }
  0x52   :  { %s27948_s25 = smov 72   ;;  %s32400_s27 = smov 106   ;;  %vm32324_vm14 = vcmask 138240   ;;  %vm32321_vm15 = vcmask 130048  }
  0x53   :  { %s32416_s28 = smov 64   ;;  %s32394_s29 = smov 28  }
  0x54   :  { %s27953_s30 = smov 56   ;;  %s32360_s5 = smov 27  }
  0x55   :  { %143 = vrot.lane.b32.xlu0 %v28072_v5, %s32350_s3  ;;  %134 = vrot.lane.b32.xlu1 %v28074_v6, %s27936_s1  ;;  %s32413_s7 = smov 48   ;;  %s32386_s8 = smov 26  }
  0x56   :  { %s27957_s9 = smov 40   ;;  %s32377_s10 = smov 18  }
  0x57   :  { %s27959_s11 = smov 32   ;;  %s32370_s12 = smov 17  }
  0x58   :  { %s32339_s2 = smov 24   ;;  %s32313_s6 = smov 7  }
  0x59   :  { %153 = vrot.lane.b32.xlu0 %v28080_v7, %s32350_s3  ;;  %155 = vrot.lane.b32.xlu1 %v28082_v8, %s32350_s3  ;;  %s32311_s13 = smov 6  }
  0x5d   :  { %750 = vrot.lane.b32.xlu0 %v28056_v1, %s27937_s14  ;;  %752 = vrot.lane.b32.xlu1 %v28064_v3, %s27937_s14 }
  0x61   :  { %746 = vrot.lane.b32.xlu0 %v28058_v2, %s27937_s14  ;;  %748 = vrot.lane.b32.xlu1 %v28066_v4, %s27937_s14 }
  0x65   :  { %744 = vrot.lane.b32.xlu0 %v28072_v5, %s27937_s14  ;;  %742 = vrot.lane.b32.xlu1 %v28074_v6, %s27938_s15 }
  0x69   :  { %754 = vrot.lane.b32.xlu0 %v28080_v7, %s27937_s14  ;;  %756 = vrot.lane.b32.xlu1 %v28082_v8, %s27937_s14 }
  0x6d   :  { %1072 = vrot.lane.b32.xlu0 %v28056_v1, %s27939_s16  ;;  %1074 = vrot.lane.b32.xlu1 %v28064_v3, %s27939_s16 }
  0x71   :  { %1068 = vrot.lane.b32.xlu0 %v28058_v2, %s27939_s16  ;;  %1070 = vrot.lane.b32.xlu1 %v28066_v4, %s27939_s16 }
  0x75   :  { %1066 = vrot.lane.b32.xlu0 %v28072_v5, %s27939_s16  ;;  %1064 = vrot.lane.b32.xlu1 %v28074_v6, %s27940_s17 }
  0x79   :  { %1076 = vrot.lane.b32.xlu0 %v28080_v7, %s27939_s16  ;;  %1078 = vrot.lane.b32.xlu1 %v28082_v8, %s27939_s16 }
  0x7d   :  { %1394 = vrot.lane.b32.xlu0 %v28056_v1, %s27941_s18  ;;  %1396 = vrot.lane.b32.xlu1 %v28064_v3, %s27941_s18 }
  0x81   :  { %1390 = vrot.lane.b32.xlu0 %v28058_v2, %s27941_s18  ;;  %1392 = vrot.lane.b32.xlu1 %v28066_v4, %s27941_s18 }
  0x85   :  { %1388 = vrot.lane.b32.xlu0 %v28072_v5, %s27941_s18  ;;  %1386 = vrot.lane.b32.xlu1 %v28074_v6, %s27942_s19 }
  0x89   :  { %1398 = vrot.lane.b32.xlu0 %v28080_v7, %s27941_s18  ;;  %1400 = vrot.lane.b32.xlu1 %v28082_v8, %s27941_s18 }
  0x8d   :  { %1716 = vrot.lane.b32.xlu0 %v28056_v1, %s27943_s20  ;;  %1718 = vrot.lane.b32.xlu1 %v28064_v3, %s27943_s20 }
  0x91   :  { %1712 = vrot.lane.b32.xlu0 %v28058_v2, %s27943_s20  ;;  %1714 = vrot.lane.b32.xlu1 %v28066_v4, %s27943_s20 }
  0x95   :  { %1710 = vrot.lane.b32.xlu0 %v28072_v5, %s27943_s20  ;;  %1708 = vrot.lane.b32.xlu1 %v28074_v6, %s27944_s21 }
  0x99   :  { %1720 = vrot.lane.b32.xlu0 %v28080_v7, %s27943_s20  ;;  %1722 = vrot.lane.b32.xlu1 %v28082_v8, %s27943_s20 }
  0x9d   :  { %2038 = vrot.lane.b32.xlu0 %v28056_v1, %s27945_s22  ;;  %2040 = vrot.lane.b32.xlu1 %v28064_v3, %s27945_s22 }
  0xa1   :  { %2034 = vrot.lane.b32.xlu0 %v28058_v2, %s27945_s22  ;;  %2036 = vrot.lane.b32.xlu1 %v28066_v4, %s27945_s22 }
  0xa5   :  { %2032 = vrot.lane.b32.xlu0 %v28072_v5, %s27945_s22  ;;  %2030 = vrot.lane.b32.xlu1 %v28074_v6, %s27946_s23 }
  0xa9   :  { %2042 = vrot.lane.b32.xlu0 %v28080_v7, %s27945_s22  ;;  %2044 = vrot.lane.b32.xlu1 %v28082_v8, %s27945_s22 }
  0xad   :  { %2360 = vrot.lane.b32.xlu0 %v28056_v1, %s27947_s0  ;;  %2362 = vrot.lane.b32.xlu1 %v28064_v3, %s27947_s0 }
  0xb1   :  { %2356 = vrot.lane.b32.xlu0 %v28058_v2, %s27947_s0  ;;  %2358 = vrot.lane.b32.xlu1 %v28066_v4, %s27947_s0 }
  0xb5   :  { %2354 = vrot.lane.b32.xlu0 %v28072_v5, %s27947_s0  ;;  %2352 = vrot.lane.b32.xlu1 %v28074_v6, %s27948_s25 }
  0xb9   :  { %2364 = vrot.lane.b32.xlu0 %v28080_v7, %s27947_s0  ;;  %2366 = vrot.lane.b32.xlu1 %v28082_v8, %s27947_s0 }
  0xbd   :  { %2682 = vrot.lane.b32.xlu0 %v28056_v1, %s32400_s27  ;;  %2684 = vrot.lane.b32.xlu1 %v28064_v3, %s32400_s27 }
  0xbf   :  { %v150_v9 = vpop.permute.xlu0 %149  ;;  %v146_v10 = vpop.permute.xlu1 %145 }
  0xc1   :  { %2678 = vrot.lane.b32.xlu0 %v28058_v2, %s32400_s27  ;;  %2680 = vrot.lane.b32.xlu1 %v28066_v4, %s32400_s27 }
  0xc3   :  { %v152_v11 = vpop.permute.xlu0 %151  ;;  %v148_v12 = vpop.permute.xlu1 %147 }
  0xc4   :  { %v159_v13 = vsel %vm157_vm0, %v146_v10, %v148_v12  ;;  %v161_v14 = vsel %vm157_vm0, %v150_v9, %v152_v11  ;;  %v160_v15 = vsel %vm157_vm0, %v148_v12, %v150_v9 }
  0xc5   :  { %174 = vmatprep.subr.mxu0 %v159_v13  ;;  %245 = vmatprep.subr.mxu1 %v161_v14 }
  0xc6   :  { %2676 = vrot.lane.b32.xlu0 %v28072_v5, %s32400_s27  ;;  %2674 = vrot.lane.b32.xlu1 %v28074_v6, %s32416_s28 }
  0xc7   :  { %246 = vmatpush1.msra.mxu1 %v160_v15  ;;  %v144_v16 = vpop.permute.xlu0 %143  ;;  %v135_v17 = vpop.permute.xlu1 %134 }
  0xc8   :  { %v158_v18 = vsel %vm157_vm0, %v144_v16, %v146_v10  ;;  %26374 = vmatmul.mubr.msk.f32.vlgmr.msra.gmra.mrb[0].mxu1 %vm171_vm1, %v135_v17  ;;  %26859 = vmatprep.subr.mxu1 %v27934_v0 }
  0xc9   :  { %175 = vmatpush1.msra.mxu0 %v158_v18  ;;  %26861 = vmatprep.mubr.msk.f32.mxu1 %vm27951_vm2, %v27934_v0 }
  0xca   :  { %2686 = vrot.lane.b32.xlu0 %v28080_v7, %s32400_s27  ;;  %2688 = vrot.lane.b32.xlu1 %v28082_v8, %s32400_s27 }
  0xcb   :  { %26373 = vmatmul.mubr.msk.f32.vlgmr.msra.gmra.mrb[0].mxu0 %vm171_vm1, %v135_v17  ;;  %v154_v19 = vpop.permute.xlu0 %153  ;;  %v156_v20 = vpop.permute.xlu1 %155 }
  0xcc   :  { %26860 = vmatpush3.msra.mxu1 %v156_v20  ;;  %v163_v21 = vsel %vm157_vm0, %v154_v19, %v156_v20  ;;  %v162_v22 = vsel %vm157_vm0, %v152_v11, %v154_v19  ;;  %380 = vmatprep.mubr.f32.mxu0 %v27934_v0 }
  0xcd   :  { %316 = vmatprep.subr.mxu0 %v163_v21  ;;  %26862 = vmatmul.mubr.msk.f32.vlgmr.msra.gmra.mrb[2].mxu1 %vm171_vm1, %v135_v17 }
  0xce   :  { %3004 = vrot.lane.b32.xlu0 %v28056_v1, %s32394_s29  ;;  %3006 = vrot.lane.b32.xlu1 %v28064_v3, %s32394_s29 }
  0xcf   :  { %317 = vmatpush1.msra.mxu0 %v162_v22  ;;  %530 = vmatprep.subr.mxu1 %v28056_v1  ;;  %v751_v23 = vpop.permute.xlu0 %750  ;;  %v753_v24 = vpop.permute.xlu1 %752 }
  0xd0   :  { %26375 = vmatmul.mubr.msk.f32.vlgmr.msra.gmra.mrb[2].mxu0 %vm171_vm1, %v135_v17  ;;  %531 = vmatpush1.msra.mxu1 %v28066_v4  ;;  %v762_v25 = vsel %vm758_vm3, %v751_v23, %v753_v24 }
  0xd1   :  { %594 = vmatprep.mubr.f32.mxu1 %v27934_v0  ;;  %26864 = vmatprep.subr.mxu1 %v27934_v0 }
  0xd2   :  { %3000 = vrot.lane.b32.xlu0 %v28058_v2, %s32394_s29  ;;  %3002 = vrot.lane.b32.xlu1 %v28066_v4, %s32394_s29 }
  0xd3   :  { %459 = vmatprep.subr.mxu0 %v28058_v2  ;;  %26378 = vmatmul.mubr.msk.f32.vlgmr.msra.gmra.mrb[0].mxu1 %vm171_vm1, %v28074_v6  ;;  %v747_v26 = vpop.permute.xlu0 %746  ;;  %v749_v27 = vpop.permute.xlu1 %748 }
  0xd4   :  { %26865 = vmatpush3.msra.mxu1 %v28082_v8  ;;  %460 = vmatpush1.msra.mxu0 %v28072_v5  ;;  %v760_v28 = vsel %vm758_vm3, %v747_v26, %v749_v27  ;;  %v761_v29 = vsel %vm758_vm3, %v749_v27, %v751_v23 }
  0xd5   :  { %523 = vmatprep.mubr.f32.mxu0 %v27934_v0  ;;  %845 = vmatprep.subr.mxu1 %v762_v25 }
  0xd6   :  { %26377 = vmatmul.mubr.msk.f32.vlgmr.msra.gmra.mrb[0].mxu0 %vm171_vm1, %v28074_v6  ;;  %601 = vmatprep.subr.mxu0 %v28080_v7 }
  0xd7   :  { %602 = vmatpush1.msra.mxu0 %v28064_v3  ;;  %26866 = vmatprep.mubr.msk.f32.mxu1 %vm27951_vm2, %v27934_v0  ;;  %v745_v30 = vpop.permute.xlu0 %744  ;;  %v743_v31 = vpop.permute.xlu1 %742 }
  0xd8   :  { %2998 = vrot.lane.b32.xlu0 %v28072_v5, %s32394_s29  ;;  %2996 = vrot.lane.b32.xlu1 %v28074_v6, %s27953_s30  ;;  %v759_v32 = vsel %vm758_vm3, %v745_v30, %v747_v26 }
  0xd9   :  { %26867 = vmatmul.mubr.msk.f32.vlgmr.msra.gmra.mrb[4].mxu1 %vm171_vm1, %v28074_v6  ;;  %774 = vmatprep.subr.mxu0 %v760_v28 }
  0xda   :  { %846 = vmatpush1.msra.mxu1 %v761_v29  ;;  %665 = vmatprep.mubr.f32.mxu0 %v27934_v0 }
  0xdb   :  { %26379 = vmatmul.mubr.msk.f32.vlgmr.msra.gmra.mrb[2].mxu0 %vm171_vm1, %v28074_v6  ;;  %909 = vmatprep.mubr.f32.mxu1 %v27934_v0  ;;  %v755_v33 = vpop.permute.xlu0 %754  ;;  %v757_v34 = vpop.permute.xlu1 %756 }
  0xdc   :  { %3008 = vrot.lane.b32.xlu0 %v28080_v7, %s32394_s29  ;;  %3010 = vrot.lane.b32.xlu1 %v28082_v8, %s32394_s29  ;;  %v764_v35 = vsel %vm758_vm3, %v755_v33, %v757_v34  ;;  %v763_v36 = vsel %vm758_vm3, %v753_v24, %v755_v33 }
  0xdd   :  { %775 = vmatpush1.msra.mxu0 %v759_v32  ;;  %26382 = vmatmul.mubr.msk.f32.vlgmr.msra.gmra.mrb[0].mxu1 %vm171_vm1, %v743_v31 }
  0xde   :  { %838 = vmatprep.mubr.f32.mxu0 %v27934_v0  ;;  %26869 = vmatprep.subr.mxu1 %v27934_v0 }
  0xdf   :  { %26381 = vmatmul.mubr.msk.f32.vlgmr.msra.gmra.mrb[0].mxu0 %vm171_vm1, %v743_v31  ;;  %26870 = vmatpush3.msra.mxu1 %v757_v34  ;;  %v1073_v37 = vpop.permute.xlu0 %1072  ;;  %v1075_v38 = vpop.permute.xlu1 %1074 }
  0xe0   :  { %26871 = vmatprep.mubr.msk.f32.mxu1 %vm27951_vm2, %v27934_v0  ;;  %3326 = vrot.lane.b32.xlu0 %v28056_v1, %s32360_s5  ;;  %v1084_v39 = vsel %vm1080_vm4, %v1073_v37, %v1075_v38 }
  0xe1   :  { %3328 = vrot.lane.b32.xlu1 %v28064_v3, %s32360_s5  ;;  %916 = vmatprep.subr.mxu0 %v764_v35 }
  0xe2   :  { %26872 = vmatmul.mubr.msk.f32.vlgmr.msra.gmra.mrb[6].mxu1 %vm171_vm1, %v743_v31  ;;  %917 = vmatpush1.msra.mxu0 %v763_v36 }
  0xe3   :  { %980 = vmatprep.mubr.f32.mxu0 %v27934_v0  ;;  %1167 = vmatprep.subr.mxu1 %v1084_v39  ;;  %v1069_v40 = vpop.permute.xlu0 %1068  ;;  %v1071_v41 = vpop.permute.xlu1 %1070 }
  0xe4   :  { %26383 = vmatmul.mubr.msk.f32.vlgmr.msra.gmra.mrb[2].mxu0 %vm171_vm1, %v743_v31  ;;  %3322 = vrot.lane.b32.xlu0 %v28058_v2, %s32360_s5  ;;  %v1082_v42 = vsel %vm1080_vm4, %v1069_v40, %v1071_v41  ;;  %v1083_v43 = vsel %vm1080_vm4, %v1071_v41, %v1073_v37 }
  0xe5   :  { %3324 = vrot.lane.b32.xlu1 %v28066_v4, %s32360_s5  ;;  %1096 = vmatprep.subr.mxu0 %v1082_v42 }
  0xe6   :  { %1168 = vmatpush1.msra.mxu1 %v1083_v43  ;;  %1231 = vmatprep.mubr.f32.mxu1 %v27934_v0 }
  0xe7   :  { %v1067_v44 = vpop.permute.xlu0 %1066  ;;  %v1065_v45 = vpop.permute.xlu1 %1064  ;;  %1160 = vmatprep.mubr.f32.mxu0 %v27934_v0  ;;  %26874 = vmatprep.subr.mxu1 %v27934_v0 }
  0xe8   :  { %3320 = vrot.lane.b32.xlu0 %v28072_v5, %s32360_s5  ;;  %v1081_v46 = vsel %vm1080_vm4, %v1067_v44, %v1069_v40  ;;  %26386 = vmatmul.mubr.msk.f32.vlgmr.msra.gmra.mrb[0].mxu1 %vm171_vm1, %v1065_v45 }
  0xe9   :  { %3318 = vrot.lane.b32.xlu1 %v28074_v6, %s32413_s7  ;;  %1097 = vmatpush1.msra.mxu0 %v1081_v46 }
  0xea   :  { %26385 = vmatmul.mubr.msk.f32.vlgmr.msra.gmra.mrb[0].mxu0 %vm171_vm1, %v1065_v45  ;;  %26876 = vmatprep.mubr.msk.f32.mxu1 %vm27951_vm2, %v27934_v0 }
  0xeb   :  { %v1077_v47 = vpop.permute.xlu0 %1076  ;;  %v1079_v48 = vpop.permute.xlu1 %1078  ;;  %1302 = vmatprep.mubr.f32.mxu0 %v27934_v0 }
  0xec   :  { %3330 = vrot.lane.b32.xlu0 %v28080_v7, %s32360_s5  ;;  %26875 = vmatpush3.msra.mxu1 %v1079_v48  ;;  %v1086_v49 = vsel %vm1080_vm4, %v1077_v47, %v1079_v48  ;;  %v1085_v50 = vsel %vm1080_vm4, %v1075_v38, %v1077_v47 }
  0xed   :  { %3332 = vrot.lane.b32.xlu1 %v28082_v8, %s32360_s5  ;;  %1238 = vmatprep.subr.mxu0 %v1086_v49 }
  0xee   :  { %26877 = vmatmul.mubr.msk.f32.vlgmr.msra.gmra.mrb[8].mxu1 %vm171_vm1, %v1065_v45  ;;  %1239 = vmatpush1.msra.mxu0 %v1085_v50 }
  0xef   :  { %v1395_v51 = vpop.permute.xlu0 %1394  ;;  %26387 = vmatmul.mubr.msk.f32.vlgmr.msra.gmra.mrb[2].mxu0 %vm171_vm1, %v1065_v45  ;;  %v1397_v52 = vpop.permute.xlu1 %1396  ;;  %1553 = vmatprep.mubr.f32.mxu1 %v27934_v0 }
  0xf0   :  { %3648 = vrot.lane.b32.xlu0 %v28056_v1, %s32386_s8  ;;  %v1406_v53 = vsel %vm32402_vm5, %v1395_v51, %v1397_v52  ;;  %1482 = vmatprep.mubr.f32.mxu0 %v27934_v0 }
  0xf1   :  { %3650 = vrot.lane.b32.xlu1 %v28064_v3, %s32386_s8  ;;  %1489 = vmatprep.subr.mxu1 %v1406_v53 }
  0xf3   :  { %v1391_v54 = vpop.permute.xlu0 %1390  ;;  %v1393_v55 = vpop.permute.xlu1 %1392 }
  0xf4   :  { %3644 = vrot.lane.b32.xlu0 %v28058_v2, %s32386_s8  ;;  %v1404_v56 = vsel %vm32402_vm5, %v1391_v54, %v1393_v55  ;;  %v1405_v57 = vsel %vm32402_vm5, %v1393_v55, %v1395_v51 }
  0xf5   :  { %3646 = vrot.lane.b32.xlu1 %v28066_v4, %s32386_s8  ;;  %1418 = vmatprep.subr.mxu0 %v1404_v56 }
  0xf6   :  { %1490 = vmatpush1.msra.mxu1 %v1405_v57 }
  0xf7   :  { %v1389_v58 = vpop.permute.xlu0 %1388  ;;  %v1387_v59 = vpop.permute.xlu1 %1386  ;;  %26879 = vmatprep.subr.mxu1 %v27934_v0 }
  0xf8   :  { %3642 = vrot.lane.b32.xlu0 %v28072_v5, %s32386_s8  ;;  %v1403_v60 = vsel %vm32402_vm5, %v1389_v58, %v1391_v54  ;;  %26390 = vmatmul.mubr.msk.f32.vlgmr.msra.gmra.mrb[0].mxu1 %vm171_vm1, %v1387_v59 }
  0xf9   :  { %3640 = vrot.lane.b32.xlu1 %v28074_v6, %s27957_s9  ;;  %1419 = vmatpush1.msra.mxu0 %v1403_v60 }
  0xfa   :  { %26389 = vmatmul.mubr.msk.f32.vlgmr.msra.gmra.mrb[0].mxu0 %vm171_vm1, %v1387_v59  ;;  %26881 = vmatprep.mubr.msk.f32.mxu1 %vm27951_vm2, %v27934_v0 }
  0xfb   :  { %v1399_v61 = vpop.permute.xlu0 %1398  ;;  %v1401_v62 = vpop.permute.xlu1 %1400  ;;  %1624 = vmatprep.mubr.f32.mxu0 %v27934_v0 }
  0xfc   :  { %3652 = vrot.lane.b32.xlu0 %v28080_v7, %s32386_s8  ;;  %26880 = vmatpush3.msra.mxu1 %v1401_v62  ;;  %v1408_v63 = vsel %vm32402_vm5, %v1399_v61, %v1401_v62  ;;  %v1407_v9 = vsel %vm32402_vm5, %v1397_v52, %v1399_v61 }
  0xfd   :  { %3654 = vrot.lane.b32.xlu1 %v28082_v8, %s32386_s8  ;;  %1560 = vmatprep.subr.mxu0 %v1408_v63 }
  0xfe   :  { %26882 = vmatmul.mubr.msk.f32.vlgmr.msra.gmra.mrb[10].mxu1 %vm171_vm1, %v1387_v59  ;;  %1561 = vmatpush1.msra.mxu0 %v1407_v9 }
  0xff   :  { %v1717_v10 = vpop.permute.xlu0 %1716  ;;  %26391 = vmatmul.mubr.msk.f32.vlgmr.msra.gmra.mrb[2].mxu0 %vm171_vm1, %v1387_v59  ;;  %v1719_v11 = vpop.permute.xlu1 %1718  ;;  %1875 = vmatprep.mubr.f32.mxu1 %v27934_v0 }
 0x100   :  { %3970 = vrot.lane.b32.xlu0 %v28056_v1, %s32377_s10  ;;  %v1728_v12 = vsel %vm1724_vm6, %v1717_v10, %v1719_v11  ;;  %1804 = vmatprep.mubr.f32.mxu0 %v27934_v0 }
 0x101   :  { %3972 = vrot.lane.b32.xlu1 %v28064_v3, %s32377_s10  ;;  %1811 = vmatprep.subr.mxu1 %v1728_v12 }
 0x103   :  { %v1713_v13 = vpop.permute.xlu0 %1712  ;;  %v1715_v14 = vpop.permute.xlu1 %1714 }
 0x104   :  { %3966 = vrot.lane.b32.xlu0 %v28058_v2, %s32377_s10  ;;  %v1726_v15 = vsel %vm1724_vm6, %v1713_v13, %v1715_v14  ;;  %v1727_v16 = vsel %vm1724_vm6, %v1715_v14, %v1717_v10 }
 0x105   :  { %3968 = vrot.lane.b32.xlu1 %v28066_v4, %s32377_s10  ;;  %1740 = vmatprep.subr.mxu0 %v1726_v15 }
 0x106   :  { %1812 = vmatpush1.msra.mxu1 %v1727_v16 }
 0x107   :  { %v1711_v17 = vpop.permute.xlu0 %1710  ;;  %v1709_v18 = vpop.permute.xlu1 %1708  ;;  %26884 = vmatprep.subr.mxu1 %v27934_v0 }
 0x108   :  { %3964 = vrot.lane.b32.xlu0 %v28072_v5, %s32377_s10  ;;  %v1725_v19 = vsel %vm1724_vm6, %v1711_v17, %v1713_v13  ;;  %26394 = vmatmul.mubr.msk.f32.vlgmr.msra.gmra.mrb[0].mxu1 %vm171_vm1, %v1709_v18 }
 0x109   :  { %3962 = vrot.lane.b32.xlu1 %v28074_v6, %s27959_s11  ;;  %1741 = vmatpush1.msra.mxu0 %v1725_v19 }
 0x10a   :  { %26393 = vmatmul.mubr.msk.f32.vlgmr.msra.gmra.mrb[0].mxu0 %vm171_vm1, %v1709_v18  ;;  %26886 = vmatprep.mubr.msk.f32.mxu1 %vm27951_vm2, %v27934_v0 }
 0x10b   :  { %v1721_v20 = vpop.permute.xlu0 %1720  ;;  %v1723_v21 = vpop.permute.xlu1 %1722  ;;  %1946 = vmatprep.mubr.f32.mxu0 %v27934_v0 }
 0x10c   :  { %3974 = vrot.lane.b32.xlu0 %v28080_v7, %s32377_s10  ;;  %26885 = vmatpush3.msra.mxu1 %v1723_v21  ;;  %v1730_v22 = vsel %vm1724_vm6, %v1721_v20, %v1723_v21  ;;  %v1729_v23 = vsel %vm1724_vm6, %v1719_v11, %v1721_v20 }
 0x10d   :  { %3976 = vrot.lane.b32.xlu1 %v28082_v8, %s32377_s10  ;;  %1882 = vmatprep.subr.mxu0 %v1730_v22 }
 0x10e   :  { %26887 = vmatmul.mubr.msk.f32.vlgmr.msra.gmra.mrb[12].mxu1 %vm171_vm1, %v1709_v18  ;;  %1883 = vmatpush1.msra.mxu0 %v1729_v23 }
 0x10f   :  { %v2039_v24 = vpop.permute.xlu0 %2038  ;;  %26395 = vmatmul.mubr.msk.f32.vlgmr.msra.gmra.mrb[2].mxu0 %vm171_vm1, %v1709_v18  ;;  %v2041_v25 = vpop.permute.xlu1 %2040  ;;  %2197 = vmatprep.mubr.f32.mxu1 %v27934_v0 }
 0x110   :  { %4292 = vrot.lane.b32.xlu0 %v28056_v1, %s32370_s12  ;;  %v2050_v26 = vsel %vm2046_vm7, %v2039_v24, %v2041_v25  ;;  %2126 = vmatprep.mubr.f32.mxu0 %v27934_v0 }
 0x111   :  { %4294 = vrot.lane.b32.xlu1 %v28064_v3, %s32370_s12  ;;  %2133 = vmatprep.subr.mxu1 %v2050_v26 }
 0x113   :  { %v2035_v27 = vpop.permute.xlu0 %2034  ;;  %v2037_v28 = vpop.permute.xlu1 %2036 }
 0x114   :  { %4288 = vrot.lane.b32.xlu0 %v28058_v2, %s32370_s12  ;;  %v2048_v29 = vsel %vm2046_vm7, %v2035_v27, %v2037_v28  ;;  %v2049_v30 = vsel %vm2046_vm7, %v2037_v28, %v2039_v24 }
 0x115   :  { %4290 = vrot.lane.b32.xlu1 %v28066_v4, %s32370_s12  ;;  %2062 = vmatprep.subr.mxu0 %v2048_v29 }
 0x116   :  { %2134 = vmatpush1.msra.mxu1 %v2049_v30 }
 0x117   :  { %v2033_v31 = vpop.permute.xlu0 %2032  ;;  %v2031_v32 = vpop.permute.xlu1 %2030  ;;  %26889 = vmatprep.subr.mxu1 %v27934_v0 }
 0x118   :  { %4286 = vrot.lane.b32.xlu0 %v28072_v5, %s32370_s12  ;;  %v2047_v33 = vsel %vm2046_vm7, %v2033_v31, %v2035_v27  ;;  %26398 = vmatmul.mubr.msk.f32.vlgmr.msra.gmra.mrb[0].mxu1 %vm171_vm1, %v2031_v32  ;;  %v28510_v31 = vld [vmem:[#allocation7 + $0x8] sm:$0xff] }
 0x119   :  { %4284 = vrot.lane.b32.xlu1 %v28074_v6, %s32339_s2  ;;  %2063 = vmatpush1.msra.mxu0 %v2047_v33 }
 0x11a   :  { %26397 = vmatmul.mubr.msk.f32.vlgmr.msra.gmra.mrb[0].mxu0 %vm171_vm1, %v2031_v32  ;;  %26891 = vmatprep.mubr.msk.f32.mxu1 %vm27951_vm2, %v27934_v0 }
 0x11b   :  { %v2043_v34 = vpop.permute.xlu0 %2042  ;;  %v2045_v35 = vpop.permute.xlu1 %2044  ;;  %2268 = vmatprep.mubr.f32.mxu0 %v27934_v0 }
 0x11c   :  { %4296 = vrot.lane.b32.xlu0 %v28080_v7, %s32370_s12  ;;  %26890 = vmatpush3.msra.mxu1 %v2045_v35  ;;  %v2052_v36 = vsel %vm2046_vm7, %v2043_v34, %v2045_v35  ;;  %v2051_v37 = vsel %vm2046_vm7, %v2041_v25, %v2043_v34 }
 0x11d   :  { %4298 = vrot.lane.b32.xlu1 %v28082_v8, %s32370_s12  ;;  %2204 = vmatprep.subr.mxu0 %v2052_v36 }
 0x11e   :  { %26892 = vmatmul.mubr.msk.f32.vlgmr.msra.gmra.mrb[14].mxu1 %vm171_vm1, %v2031_v32  ;;  %2205 = vmatpush1.msra.mxu0 %v2051_v37 }
 0x11f   :  { %v2361_v38 = vpop.permute.xlu0 %2360  ;;  %26399 = vmatmul.mubr.msk.f32.vlgmr.msra.gmra.mrb[2].mxu0 %vm171_vm1, %v2031_v32  ;;  %v2363_v39 = vpop.permute.xlu1 %2362  ;;  %2519 = vmatprep.mubr.f32.mxu1 %v27934_v0 }
 0x120   :  { %4614 = vrot.lane.b32.xlu0 %v28056_v1, %s27928_s26  ;;  %v2372_v40 = vsel %vm2368_vm8, %v2361_v38, %v2363_v39  ;;  %2448 = vmatprep.mubr.f32.mxu0 %v27934_v0 }
 0x121   :  { %4616 = vrot.lane.b32.xlu1 %v28064_v3, %s27928_s26  ;;  %2455 = vmatprep.subr.mxu1 %v2372_v40 }
 0x123   :  { %v2357_v41 = vpop.permute.xlu0 %2356  ;;  %v2359_v42 = vpop.permute.xlu1 %2358 }
 0x124   :  { %4610 = vrot.lane.b32.xlu0 %v28058_v2, %s27928_s26  ;;  %v2370_v43 = vsel %vm2368_vm8, %v2357_v41, %v2359_v42  ;;  %v2371_v44 = vsel %vm2368_vm8, %v2359_v42, %v2361_v38 }
 0x125   :  { %4612 = vrot.lane.b32.xlu1 %v28066_v4, %s27928_s26  ;;  %2384 = vmatprep.subr.mxu0 %v2370_v43 }
 0x126   :  { %2456 = vmatpush1.msra.mxu1 %v2371_v44 }
 0x127   :  { %v2355_v45 = vpop.permute.xlu0 %2354  ;;  %v2353_v46 = vpop.permute.xlu1 %2352  ;;  %26894 = vmatprep.subr.mxu1 %v27934_v0 }
 0x128   :  { %4608 = vrot.lane.b32.xlu0 %v28072_v5, %s27928_s26  ;;  %v2369_v47 = vsel %vm2368_vm8, %v2355_v45, %v2357_v41  ;;  %26402 = vmatmul.mubr.msk.f32.vlgmr.msra.gmra.mrb[0].mxu1 %vm171_vm1, %v2353_v46  ;;  %v28550_v45 = vld [vmem:[#allocation4 + $0x8] sm:$0xff] }
 0x129   :  { %4606 = vrot.lane.b32.xlu1 %v28074_v6, %s27928_s26  ;;  %2385 = vmatpush1.msra.mxu0 %v2369_v47 }
 0x12a   :  { %26401 = vmatmul.mubr.msk.f32.vlgmr.msra.gmra.mrb[0].mxu0 %vm171_vm1, %v2353_v46  ;;  %26896 = vmatprep.mubr.msk.f32.mxu1 %vm27951_vm2, %v27934_v0 }
 0x12b   :  { %v2365_v48 = vpop.permute.xlu0 %2364  ;;  %v2367_v49 = vpop.permute.xlu1 %2366  ;;  %2590 = vmatprep.mubr.f32.mxu0 %v27934_v0 }
 0x12c   :  { %4618 = vrot.lane.b32.xlu0 %v28080_v7, %s27928_s26  ;;  %26895 = vmatpush3.msra.mxu1 %v2367_v49  ;;  %v2374_v50 = vsel %vm2368_vm8, %v2365_v48, %v2367_v49  ;;  %v2373_v51 = vsel %vm2368_vm8, %v2363_v39, %v2365_v48  ;;  %v28535_v39 = vld [vmem:[#allocation2] sm:$0xff]  ;;  %v28562_v48 = vld [vmem:[#allocation4 + $0x30] sm:$0xff] }
 0x12d   :  { %4620 = vrot.lane.b32.xlu1 %v28082_v8, %s27928_s26  ;;  %2526 = vmatprep.subr.mxu0 %v2374_v50 }
 0x12e   :  { %26897 = vmatmul.mubr.msk.f32.vlgmr.msra.gmra.mrb[16].mxu1 %vm171_vm1, %v2353_v46  ;;  %2527 = vmatpush1.msra.mxu0 %v2373_v51 }
 0x12f   :  { %v2683_v52 = vpop.permute.xlu0 %2682  ;;  %26403 = vmatmul.mubr.msk.f32.vlgmr.msra.gmra.mrb[2].mxu0 %vm171_vm1, %v2353_v46  ;;  %v2685_v53 = vpop.permute.xlu1 %2684  ;;  %2841 = vmatprep.mubr.f32.mxu1 %v27934_v0 }
 0x130   :  { %4952 = vrot.lane.b32.xlu0 %v28056_v1, %s27932_s24  ;;  %v2694_v54 = vsel %vm2690_vm9, %v2683_v52, %v2685_v53  ;;  %2770 = vmatprep.mubr.f32.mxu0 %v27934_v0 }
 0x131   :  { %4954 = vrot.lane.b32.xlu1 %v28064_v3, %s27932_s24  ;;  %2777 = vmatprep.subr.mxu1 %v2694_v54  ;;  %v28578_v54 = vld [vmem:[#allocation4 + $0x28] sm:$0xff] }
 0x133   :  { %v2679_v55 = vpop.permute.xlu0 %2678  ;;  %v2681_v56 = vpop.permute.xlu1 %2680 }
 0x134   :  { %4948 = vrot.lane.b32.xlu0 %v28058_v2, %s27932_s24  ;;  %v2692_v57 = vsel %vm2690_vm9, %v2679_v55, %v2681_v56  ;;  %v2693_v58 = vsel %vm2690_vm9, %v2681_v56, %v2683_v52  ;;  %v28572_v52 = vld [vmem:[#allocation4 + $0x20] sm:$0xff] }
 0x135   :  { %4950 = vrot.lane.b32.xlu1 %v28066_v4, %s27932_s24  ;;  %2706 = vmatprep.subr.mxu0 %v2692_v57  ;;  %v28582_v57 = vld [vmem:[#allocation4 + $0x10] sm:$0xff] }
 0x136   :  { %2778 = vmatpush1.msra.mxu1 %v2693_v58 }
 0x137   :  { %26899 = vmatprep.subr.mxu1 %v27934_v0 }
 0x138   :  { %4946 = vrot.lane.b32.xlu0 %v28072_v5, %s27932_s24  ;;  %v2677_v59 = vpop.permute.xlu0 %2676  ;;  %v2675_v60 = vpop.permute.xlu1 %2674 }
 0x139   :  { %4936 = vrot.lane.b32.xlu1 %v28074_v6, %s27932_s24  ;;  %v2691_v61 = vsel %vm2690_vm9, %v2677_v59, %v2679_v55  ;;  %26406 = vmatmul.mubr.msk.f32.vlgmr.msra.gmra.mrb[0].mxu1 %vm171_vm1, %v2675_v60  ;;  %v28455_v6 = vld [vmem:[#allocation4 + $0x38] sm:$0xff] }
 0x13a   :  { %2707 = vmatpush1.msra.mxu0 %v2691_v61  ;;  %26901 = vmatprep.mubr.msk.f32.mxu1 %vm27951_vm2, %v27934_v0 }
 0x13b   :  { %26405 = vmatmul.mubr.msk.f32.vlgmr.msra.gmra.mrb[0].mxu0 %vm171_vm1, %v2675_v60 }
 0x13c   :  { %4956 = vrot.lane.b32.xlu0 %v28080_v7, %s27932_s24  ;;  %v2687_v62 = vpop.permute.xlu0 %2686  ;;  %v2689_v63 = vpop.permute.xlu1 %2688  ;;  %2912 = vmatprep.mubr.f32.mxu0 %v27934_v0 }
 0x13d   :  { %4958 = vrot.lane.b32.xlu1 %v28082_v8, %s27932_s24  ;;  %26900 = vmatpush3.msra.mxu1 %v2689_v63  ;;  %v2696_v9 = vsel %vm2690_vm9, %v2687_v62, %v2689_v63  ;;  %v2695_v10 = vsel %vm2690_vm9, %v2685_v53, %v2687_v62 }
 0x13e   :  { %2848 = vmatprep.subr.mxu0 %v2696_v9  ;;  %26902 = vmatmul.mubr.msk.f32.vlgmr.msra.gmra.mrb[18].mxu1 %vm171_vm1, %v2675_v60 }
 0x13f   :  { %2849 = vmatpush1.msra.mxu0 %v2695_v10  ;;  %3163 = vmatprep.mubr.f32.mxu1 %v27934_v0 }
 0x140   :  { %4960 = vrot.lane.b32.xlu0 %v28455_v6, %s27932_s24  ;;  %v3005_v11 = vpop.permute.xlu0 %3004  ;;  %26407 = vmatmul.mubr.msk.f32.vlgmr.msra.gmra.mrb[2].mxu0 %vm171_vm1, %v2675_v60  ;;  %v3007_v12 = vpop.permute.xlu1 %3006 }
 0x141   :  { %5274 = vrot.lane.b32.xlu1 %v28056_v1, %s32313_s6  ;;  %v3016_v13 = vsel %vm32408_vm10, %v3005_v11, %v3007_v12  ;;  %3092 = vmatprep.mubr.f32.mxu0 %v27934_v0 }
 0x142   :  { %3099 = vmatprep.subr.mxu1 %v3016_v13 }
 0x144   :  { %5276 = vrot.lane.b32.xlu0 %v28064_v3, %s32313_s6  ;;  %v3001_v14 = vpop.permute.xlu0 %3000  ;;  %v3003_v15 = vpop.permute.xlu1 %3002 }
 0x145   :  { %5270 = vrot.lane.b32.xlu1 %v28058_v2, %s32313_s6  ;;  %v3014_v16 = vsel %vm32408_vm10, %v3001_v14, %v3003_v15  ;;  %v3015_v17 = vsel %vm32408_vm10, %v3003_v15, %v3005_v11 }
 0x146   :  { %3028 = vmatprep.subr.mxu0 %v3014_v16  ;;  %3100 = vmatpush1.msra.mxu1 %v3015_v17 }
 0x147   :  { %26904 = vmatprep.subr.mxu1 %v27934_v0 }
 0x148   :  { %5272 = vrot.lane.b32.xlu0 %v28066_v4, %s32313_s6 }
 0x149   :  { %5268 = vrot.lane.b32.xlu1 %v28072_v5, %s32313_s6 }
 0x14a   :  { %v2999_v18 = vpop.permute.xlu0 %2998  ;;  %v2997_v19 = vpop.permute.xlu1 %2996 }
 0x14b   :  { %v3013_v20 = vsel %vm32408_vm10, %v2999_v18, %v3001_v14  ;;  %26410 = vmatmul.mubr.msk.f32.vlgmr.msra.gmra.mrb[0].mxu1 %vm171_vm1, %v2997_v19 }
 0x14c   :  { %5278 = vrot.lane.b32.xlu0 %v28080_v7, %s32313_s6  ;;  %3029 = vmatpush1.msra.mxu0 %v3013_v20 }
 0x14d   :  { %5280 = vrot.lane.b32.xlu1 %v28082_v8, %s32313_s6  ;;  %26409 = vmatmul.mubr.msk.f32.vlgmr.msra.gmra.mrb[0].mxu0 %vm171_vm1, %v2997_v19 }
 0x14e   :  { %v3009_v21 = vpop.permute.xlu0 %3008  ;;  %v3011_v22 = vpop.permute.xlu1 %3010  ;;  %26906 = vmatprep.mubr.msk.f32.mxu1 %vm27951_vm2, %v27934_v0  ;;  %3234 = vmatprep.mubr.f32.mxu0 %v27934_v0 }
 0x14f   :  { %26905 = vmatpush3.msra.mxu1 %v3011_v22  ;;  %v3018_v23 = vsel %vm32408_vm10, %v3009_v21, %v3011_v22  ;;  %v3017_v24 = vsel %vm32408_vm10, %v3007_v12, %v3009_v21 }
 0x150   :  { %5282 = vrot.lane.b32.xlu0 %v28455_v6, %s32313_s6  ;;  %3170 = vmatprep.subr.mxu0 %v3018_v23  ;;  %s32317_s6 = smov 54  }
 0x151   :  { %5600 = vrot.lane.b32.xlu1 %v28056_v1, %s32311_s13  ;;  %26907 = vmatmul.mubr.msk.f32.vlgmr.msra.gmra.mrb[20].mxu1 %vm171_vm1, %v2997_v19 }
 0x152   :  { %3171 = vmatpush1.msra.mxu0 %v3017_v24  ;;  %v3327_v25 = vpop.permute.xlu0 %3326  ;;  %3485 = vmatprep.mubr.f32.mxu1 %v27934_v0 }
 0x153   :  { %26411 = vmatmul.mubr.msk.f32.vlgmr.msra.gmra.mrb[2].mxu0 %vm171_vm1, %v2997_v19  ;;  %v3329_v26 = vpop.permute.xlu1 %3328 }
 0x154   :  { %5602 = vrot.lane.b32.xlu0 %v28064_v3, %s32311_s13  ;;  %v3338_v27 = vsel %vm3334_vm11, %v3327_v25, %v3329_v26  ;;  %3414 = vmatprep.mubr.f32.mxu0 %v27934_v0 }
 0x155   :  { %5596 = vrot.lane.b32.xlu1 %v28058_v2, %s32311_s13  ;;  %3421 = vmatprep.subr.mxu1 %v3338_v27 }
 0x156   :  { %v3323_v1 = vpop.permute.xlu0 %3322 }
 0x157   :  { %v3325_v28 = vpop.permute.xlu1 %3324 }
 0x158   :  { %5598 = vrot.lane.b32.xlu0 %v28066_v4, %s32311_s13  ;;  %v3336_v29 = vsel %vm3334_vm11, %v3323_v1, %v3325_v28  ;;  %v3337_v30 = vsel %vm3334_vm11, %v3325_v28, %v3327_v25 }
 0x159   :  { %5594 = vrot.lane.b32.xlu1 %v28072_v5, %s32311_s13  ;;  %3350 = vmatprep.subr.mxu0 %v3336_v29 }
 0x15a   :  { %3422 = vmatpush1.msra.mxu1 %v3337_v30  ;;  %v3321_v32 = vpop.permute.xlu0 %3320 }
 0x15b   :  { %v3335_v2 = vsel %vm3334_vm11, %v3321_v32, %v3323_v1  ;;  %v3319_v33 = vpop.permute.xlu1 %3318  ;;  %26909 = vmatprep.subr.mxu1 %v27934_v0 }
 0x15c   :  { %5592 = vrot.lane.b32.xlu0 %v28510_v31, %s27936_s1  ;;  %3351 = vmatpush1.msra.mxu0 %v3335_v2 }
 0x15d   :  { %5604 = vrot.lane.b32.xlu1 %v28080_v7, %s32311_s13  ;;  %26414 = vmatmul.mubr.msk.f32.vlgmr.msra.gmra.mrb[0].mxu1 %vm171_vm1, %v3319_v33 }
 0x15e   :  { %26413 = vmatmul.mubr.msk.f32.vlgmr.msra.gmra.mrb[0].mxu0 %vm171_vm1, %v3319_v33  ;;  %v3331_v5 = vpop.permute.xlu0 %3330  ;;  %26911 = vmatprep.mubr.msk.f32.mxu1 %vm27951_vm2, %v27934_v0 }
 0x15f   :  { %v3333_v34 = vpop.permute.xlu1 %3332  ;;  %v3339_v35 = vsel %vm3334_vm11, %v3329_v26, %v3331_v5  ;;  %3556 = vmatprep.mubr.f32.mxu0 %v27934_v0 }
 0x160   :  { %26910 = vmatpush3.msra.mxu1 %v3333_v34  ;;  %5606 = vrot.lane.b32.xlu0 %v28082_v8, %s32311_s13  ;;  %v3340_v36 = vsel %vm3334_vm11, %v3331_v5, %v3333_v34 }
 0x161   :  { %5608 = vrot.lane.b32.xlu1 %v28455_v6, %s32311_s13  ;;  %3492 = vmatprep.subr.mxu0 %v3340_v36  ;;  %s32315_s13 = smov 55  }
 0x162   :  { %26912 = vmatmul.mubr.msk.f32.vlgmr.msra.gmra.mrb[22].mxu1 %vm171_vm1, %v3319_v33  ;;  %3493 = vmatpush1.msra.mxu0 %v3339_v35  ;;  %v3649_v37 = vpop.permute.xlu0 %3648 }
 0x163   :  { %26415 = vmatmul.mubr.msk.f32.vlgmr.msra.gmra.mrb[2].mxu0 %vm171_vm1, %v3319_v33  ;;  %v3651_v38 = vpop.permute.xlu1 %3650  ;;  %3807 = vmatprep.mubr.f32.mxu1 %v27934_v0 }
 0x164   :  { %5925 = vrot.lane.b32.xlu0 %v28064_v3, %s27953_s30  ;;  %v3660_v8 = vsel %vm32410_vm12, %v3649_v37, %v3651_v38  ;;  %3736 = vmatprep.mubr.f32.mxu0 %v28535_v39  ;;  %v28544_v3 = vld [vmem:[#allocation4 + $0x18] sm:$0xff] }
 0x165   :  { %5927 = vrot.lane.b32.xlu1 %v28080_v7, %s27953_s30  ;;  %3743 = vmatprep.subr.mxu1 %v3660_v8 }
 0x166   :  { %v3645_v40 = vpop.permute.xlu0 %3644 }
 0x167   :  { %v3647_v41 = vpop.permute.xlu1 %3646 }
 0x168   :  { %5921 = vrot.lane.b32.xlu0 %v28066_v4, %s27953_s30  ;;  %v3658_v0 = vsel %vm32410_vm12, %v3645_v40, %v3647_v41  ;;  %v3659_v42 = vsel %vm32410_vm12, %v3647_v41, %v3649_v37 }
 0x169   :  { %5923 = vrot.lane.b32.xlu1 %v28544_v3, %s27953_s30  ;;  %3672 = vmatprep.subr.mxu0 %v3658_v0 }
 0x16a   :  { %3744 = vmatpush1.msra.mxu1 %v3659_v42  ;;  %v3643_v43 = vpop.permute.xlu0 %3642 }
 0x16b   :  { %v3657_v7 = vsel %vm32410_vm12, %v3643_v43, %v3645_v40  ;;  %v3641_v44 = vpop.permute.xlu1 %3640  ;;  %26914 = vmatprep.subr.mxu1 %v28535_v39 }
 0x16c   :  { %5919 = vrot.lane.b32.xlu0 %v28550_v45, %s27953_s30  ;;  %3673 = vmatpush1.msra.mxu0 %v3657_v7 }
 0x16d   :  { %5917 = vrot.lane.b32.xlu1 %v28510_v31, %s27938_s15  ;;  %26418 = vmatmul.mubr.msk.f32.vlgmr.msra.gmra.mrb[0].mxu1 %vm171_vm1, %v3641_v44 }
 0x16e   :  { %26417 = vmatmul.mubr.msk.f32.vlgmr.msra.gmra.mrb[0].mxu0 %vm171_vm1, %v3641_v44  ;;  %v3653_v4 = vpop.permute.xlu0 %3652  ;;  %26916 = vmatprep.mubr.msk.f32.mxu1 %vm27951_vm2, %v28535_v39 }
 0x16f   :  { %v3655_v46 = vpop.permute.xlu1 %3654  ;;  %v3661_v47 = vsel %vm32410_vm12, %v3651_v38, %v3653_v4  ;;  %3878 = vmatprep.mubr.f32.mxu0 %v28535_v39 }
 0x170   :  { %26915 = vmatpush3.msra.mxu1 %v3655_v46  ;;  %5929 = vrot.lane.b32.xlu0 %v28562_v48, %s27953_s30  ;;  %v3662_v49 = vsel %vm32410_vm12, %v3653_v4, %v3655_v46 }
 0x171   :  { %5931 = vrot.lane.b32.xlu1 %v28455_v6, %s27953_s30  ;;  %3814 = vmatprep.subr.mxu0 %v3662_v49 }
 0x172   :  { %26917 = vmatmul.mubr.msk.f32.vlgmr.msra.gmra.mrb[24].mxu1 %vm171_vm1, %v3641_v44  ;;  %3815 = vmatpush1.msra.mxu0 %v3661_v47  ;;  %v3971_v50 = vpop.permute.xlu0 %3970 }
 0x173   :  { %26419 = vmatmul.mubr.msk.f32.vlgmr.msra.gmra.mrb[2].mxu0 %vm171_vm1, %v3641_v44  ;;  %v3973_v51 = vpop.permute.xlu1 %3972  ;;  %4129 = vmatprep.mubr.f32.mxu1 %v28535_v39 }
 0x174   :  { %6247 = vrot.lane.b32.xlu0 %v28572_v52, %s32315_s13  ;;  %v3982_v53 = vsel %vm32409_vm13, %v3971_v50, %v3973_v51  ;;  %4058 = vmatprep.mubr.f32.mxu0 %v28535_v39 }
 0x175   :  { %6249 = vrot.lane.b32.xlu1 %v28578_v54, %s32315_s13  ;;  %4065 = vmatprep.subr.mxu1 %v3982_v53 }
 0x176   :  { %v3967_v55 = vpop.permute.xlu0 %3966 }
 0x177   :  { %v3969_v56 = vpop.permute.xlu1 %3968 }
 0x178   :  { %6243 = vrot.lane.b32.xlu0 %v28582_v57, %s32315_s13  ;;  %v3980_v58 = vsel %vm32409_vm13, %v3967_v55, %v3969_v56  ;;  %v3981_v59 = vsel %vm32409_vm13, %v3969_v56, %v3971_v50 }
 0x179   :  { %6245 = vrot.lane.b32.xlu1 %v28544_v3, %s32315_s13  ;;  %3994 = vmatprep.subr.mxu0 %v3980_v58 }
 0x17a   :  { %4066 = vmatpush1.msra.mxu1 %v3981_v59  ;;  %v3965_v60 = vpop.permute.xlu0 %3964 }
 0x17b   :  { %v3979_v61 = vsel %vm32409_vm13, %v3965_v60, %v3967_v55  ;;  %v3963_v62 = vpop.permute.xlu1 %3962  ;;  %26919 = vmatprep.subr.mxu1 %v28535_v39 }
 0x17c   :  { %6241 = vrot.lane.b32.xlu0 %v28550_v45, %s32315_s13  ;;  %3995 = vmatpush1.msra.mxu0 %v3979_v61 }
 0x17d   :  { %6239 = vrot.lane.b32.xlu1 %v28510_v31, %s27940_s17  ;;  %26422 = vmatmul.mubr.msk.f32.vlgmr.msra.gmra.mrb[0].mxu1 %vm171_vm1, %v3963_v62 }
 0x17e   :  { %26421 = vmatmul.mubr.msk.f32.vlgmr.msra.gmra.mrb[0].mxu0 %vm171_vm1, %v3963_v62  ;;  %v3975_v63 = vpop.permute.xlu0 %3974  ;;  %26921 = vmatprep.mubr.msk.f32.mxu1 %vm27951_vm2, %v28535_v39 }
 0x17f   :  { %v3977_v9 = vpop.permute.xlu1 %3976  ;;  %v3983_v10 = vsel %vm32409_vm13, %v3973_v51, %v3975_v63  ;;  %4200 = vmatprep.mubr.f32.mxu0 %v28535_v39 }
 0x180   :  { %26920 = vmatpush3.msra.mxu1 %v3977_v9  ;;  %6251 = vrot.lane.b32.xlu0 %v28562_v48, %s32315_s13  ;;  %v3984_v11 = vsel %vm32409_vm13, %v3975_v63, %v3977_v9 }
 0x181   :  { %6253 = vrot.lane.b32.xlu1 %v28455_v6, %s32315_s13  ;;  %4136 = vmatprep.subr.mxu0 %v3984_v11  ;;  %s32319_s13 = smov 46  }
 0x182   :  { %26922 = vmatmul.mubr.msk.f32.vlgmr.msra.gmra.mrb[26].mxu1 %vm171_vm1, %v3963_v62  ;;  %4137 = vmatpush1.msra.mxu0 %v3983_v10  ;;  %v4293_v12 = vpop.permute.xlu0 %4292 }
 0x183   :  { %26423 = vmatmul.mubr.msk.f32.vlgmr.msra.gmra.mrb[2].mxu0 %vm171_vm1, %v3963_v62  ;;  %v4295_v13 = vpop.permute.xlu1 %4294  ;;  %4451 = vmatprep.mubr.f32.mxu1 %v28535_v39 }
 0x184   :  { %6569 = vrot.lane.b32.xlu0 %v28572_v52, %s32317_s6  ;;  %v4304_v14 = vsel %vm32324_vm14, %v4293_v12, %v4295_v13  ;;  %4380 = vmatprep.mubr.f32.mxu0 %v28535_v39 }
 0x185   :  { %6571 = vrot.lane.b32.xlu1 %v28578_v54, %s32317_s6  ;;  %4387 = vmatprep.subr.mxu1 %v4304_v14 }
 0x186   :  { %v4289_v15 = vpop.permute.xlu0 %4288 }
 0x187   :  { %v4291_v16 = vpop.permute.xlu1 %4290 }
 0x188   :  { %6565 = vrot.lane.b32.xlu0 %v28582_v57, %s32317_s6  ;;  %v4302_v17 = vsel %vm32324_vm14, %v4289_v15, %v4291_v16  ;;  %v4303_v18 = vsel %vm32324_vm14, %v4291_v16, %v4293_v12 }
 0x189   :  { %6567 = vrot.lane.b32.xlu1 %v28544_v3, %s32317_s6  ;;  %4316 = vmatprep.subr.mxu0 %v4302_v17 }
 0x18a   :  { %4388 = vmatpush1.msra.mxu1 %v4303_v18  ;;  %v4287_v19 = vpop.permute.xlu0 %4286 }
 0x18b   :  { %v4301_v20 = vsel %vm32324_vm14, %v4287_v19, %v4289_v15  ;;  %v4285_v21 = vpop.permute.xlu1 %4284  ;;  %26924 = vmatprep.subr.mxu1 %v28535_v39 }
 0x18c   :  { %6563 = vrot.lane.b32.xlu0 %v28550_v45, %s32317_s6  ;;  %4317 = vmatpush1.msra.mxu0 %v4301_v20 }
 0x18d   :  { %6561 = vrot.lane.b32.xlu1 %v28510_v31, %s27942_s19  ;;  %26426 = vmatmul.mubr.msk.f32.vlgmr.msra.gmra.mrb[0].mxu1 %vm171_vm1, %v4285_v21 }
 0x18e   :  { %26425 = vmatmul.mubr.msk.f32.vlgmr.msra.gmra.mrb[0].mxu0 %vm171_vm1, %v4285_v21  ;;  %v4297_v22 = vpop.permute.xlu0 %4296  ;;  %26926 = vmatprep.mubr.msk.f32.mxu1 %vm27951_vm2, %v28535_v39 }
 0x18f   :  { %v4299_v23 = vpop.permute.xlu1 %4298  ;;  %v4305_v24 = vsel %vm32324_vm14, %v4295_v13, %v4297_v22  ;;  %4522 = vmatprep.mubr.f32.mxu0 %v28535_v39 }
 0x190   :  { %26925 = vmatpush3.msra.mxu1 %v4299_v23  ;;  %6573 = vrot.lane.b32.xlu0 %v28562_v48, %s32317_s6  ;;  %v4306_v25 = vsel %vm32324_vm14, %v4297_v22, %v4299_v23  ;;  %vm32330_vm14 = vcmask 48128  }
 0x191   :  { %6575 = vrot.lane.b32.xlu1 %v28455_v6, %s32317_s6  ;;  %4458 = vmatprep.subr.mxu0 %v4306_v25  ;;  %s32322_s6 = smov 45  }
 0x192   :  { %26927 = vmatmul.mubr.msk.f32.vlgmr.msra.gmra.mrb[28].mxu1 %vm171_vm1, %v4285_v21  ;;  %4459 = vmatpush1.msra.mxu0 %v4305_v24  ;;  %v4615_v26 = vpop.permute.xlu0 %4614 }
 0x193   :  { %26427 = vmatmul.mubr.msk.f32.vlgmr.msra.gmra.mrb[2].mxu0 %vm171_vm1, %v4285_v21  ;;  %v4617_v27 = vpop.permute.xlu1 %4616  ;;  %4773 = vmatprep.mubr.f32.mxu1 %v28535_v39 }
 0x194   :  { %6891 = vrot.lane.b32.xlu0 %v28572_v52, %s32319_s13  ;;  %v4626_v1 = vsel %vm32321_vm15, %v4615_v26, %v4617_v27  ;;  %4702 = vmatprep.mubr.f32.mxu0 %v28535_v39 }
 0x195   :  { %6893 = vrot.lane.b32.xlu1 %v28578_v54, %s32319_s13  ;;  %4709 = vmatprep.subr.mxu1 %v4626_v1 }
 0x196   :  { %v4611_v28 = vpop.permute.xlu0 %4610 }
 0x197   :  { %v4613_v29 = vpop.permute.xlu1 %4612 }
 0x198   :  { %6887 = vrot.lane.b32.xlu0 %v28582_v57, %s32319_s13  ;;  %v4624_v30 = vsel %vm32321_vm15, %v4611_v28, %v4613_v29  ;;  %v4625_v32 = vsel %vm32321_vm15, %v4613_v29, %v4615_v26 }
 0x199   :  { %6889 = vrot.lane.b32.xlu1 %v28544_v3, %s32319_s13  ;;  %4638 = vmatprep.subr.mxu0 %v4624_v30 }
 0x19a   :  { %4710 = vmatpush1.msra.mxu1 %v4625_v32  ;;  %v4609_v2 = vpop.permute.xlu0 %4608 }
 0x19b   :  { %v4623_v33 = vsel %vm32321_vm15, %v4609_v2, %v4611_v28  ;;  %v4607_v5 = vpop.permute.xlu1 %4606  ;;  %26929 = vmatprep.subr.mxu1 %v28535_v39 }
 0x19c   :  { %6885 = vrot.lane.b32.xlu0 %v28550_v45, %s32319_s13  ;;  %4639 = vmatpush1.msra.mxu0 %v4623_v33 }
 0x19d   :  { %6883 = vrot.lane.b32.xlu1 %v28510_v31, %s27944_s21  ;;  %26430 = vmatmul.mubr.msk.f32.vlgmr.msra.gmra.mrb[0].mxu1 %vm171_vm1, %v4607_v5 }
 0x19e   :  { %26429 = vmatmul.mubr.msk.f32.vlgmr.msra.gmra.mrb[0].mxu0 %vm171_vm1, %v4607_v5  ;;  %v4619_v34 = vpop.permute.xlu0 %4618  ;;  %26931 = vmatprep.mubr.msk.f32.mxu1 %vm27951_vm2, %v28535_v39 }
 0x19f   :  { %v4621_v35 = vpop.permute.xlu1 %4620  ;;  %v4627_v36 = vsel %vm32321_vm15, %v4617_v27, %v4619_v34  ;;  %4844 = vmatprep.mubr.f32.mxu0 %v28535_v39 }
 0x1a0   :  { %26930 = vmatpush3.msra.mxu1 %v4621_v35  ;;  %6895 = vrot.lane.b32.xlu0 %v28562_v48, %s32319_s13  ;;  %v4628_v37 = vsel %vm32321_vm15, %v4619_v34, %v4621_v35  ;;  %v453_v38 = vpop.f32.mrb[2].mxu1  ;;  %vm32327_vm15 = vcmask 56320  }
 0x1a1   :  { %6897 = vrot.lane.b32.xlu1 %v28455_v6, %s32319_s13  ;;  %4780 = vmatprep.subr.mxu0 %v4628_v37  ;;  %v26863_v8 = vpop.f32.mrb[3].mxu1  ;;  %s32325_s13 = smov 44  }
 0x1a2   :  { %26932 = vmatmul.mubr.msk.f32.vlgmr.msra.gmra.mrb[30].mxu1 %vm171_vm1, %v4607_v5  ;;  %4781 = vmatpush1.msra.mxu0 %v4627_v36  ;;  %v4953_v40 = vpop.permute.xlu0 %4952 }
 0x1a3   :  { %26431 = vmatmul.mubr.msk.f32.vlgmr.msra.gmra.mrb[2].mxu0 %vm171_vm1, %v4607_v5  ;;  %v4955_v41 = vpop.permute.xlu1 %4954  ;;  %5113 = vmatprep.mubr.f32.mxu1 %v28535_v39 }
 0x1a4   :  { %7213 = vrot.lane.b32.xlu0 %v28572_v52, %s32322_s6  ;;  %v4965_v0 = vsel %vm171_vm1, %v4953_v40, %v4955_v41  ;;  %5042 = vmatprep.mubr.f32.mxu0 %v28535_v39 }
 0x1a5   :  { %7215 = vrot.lane.b32.xlu1 %v28578_v54, %s32322_s6  ;;  %5049 = vmatprep.subr.mxu1 %v4965_v0 }
 0x1a6   :  { %v4949_v42 = vpop.permute.xlu0 %4948 }
 0x1a7   :  { %v4951_v43 = vpop.permute.xlu1 %4950 }
 0x1a8   :  { %7209 = vrot.lane.b32.xlu0 %v28582_v57, %s32322_s6  ;;  %v4963_v7 = vsel %vm171_vm1, %v4949_v42, %v4951_v43  ;;  %v4964_v44 = vsel %vm171_vm1, %v4951_v43, %v4953_v40 }
 0x1a9   :  { %7211 = vrot.lane.b32.xlu1 %v28544_v3, %s32322_s6  ;;  %4978 = vmatprep.subr.mxu0 %v4963_v7 }
 0x1aa   :  { %5050 = vmatpush1.msra.mxu1 %v4964_v44  ;;  %v4947_v4 = vpop.permute.xlu0 %4946 }
 0x1ab   :  { %v4962_v46 = vsel %vm171_vm1, %v4947_v4, %v4949_v42  ;;  %v4937_v47 = vpop.permute.xlu1 %4936  ;;  %26934 = vmatprep.subr.mxu1 %v28535_v39 }
 0x1ac   :  { %v738_v49 = vpop.f32.mrb[4].mxu1  ;;  %7207 = vrot.lane.b32.xlu0 %v28550_v45, %s32322_s6  ;;  %4979 = vmatpush1.msra.mxu0 %v4962_v46 }
 0x1ad   :  { %v739_v50 = vadd.f32 %v738_v49, %v453_v38  ;;  %7205 = vrot.lane.b32.xlu1 %v28510_v31, %s27946_s23  ;;  %26433 = vmatmul.mubr.msk.f32.vlgmr.msra.gmra.mrb[0].mxu0 %vm171_vm1, %v4937_v47  ;;  %v26868_v51 = vpop.f32.mrb[5].mxu1 }
 0x1ae   :  { %26434 = vmatmul.mubr.msk.f32.vlgmr.msra.gmra.mrb[0].mxu1 %vm171_vm1, %v4937_v47  ;;  %v4957_v53 = vpop.permute.xlu0 %4956  ;;  %5184 = vmatprep.mubr.f32.mxu0 %v28535_v39 }
 0x1af   :  { %v4959_v55 = vpop.permute.xlu1 %4958  ;;  %v4966_v56 = vsel %vm171_vm1, %v4955_v41, %v4957_v53  ;;  %26936 = vmatprep.mubr.msk.f32.mxu1 %vm27951_vm2, %v28535_v39 }
 0x1b0   :  { %7217 = vrot.lane.b32.xlu0 %v28562_v48, %s32322_s6  ;;  %v4967_v58 = vsel %vm171_vm1, %v4957_v53, %v4959_v55 }
 0x1b1   :  { %7219 = vrot.lane.b32.xlu1 %v28455_v6, %s32322_s6  ;;  %5120 = vmatprep.subr.mxu0 %v4967_v58  ;;  %s32328_s6 = smov 36  }
 0x1b2   :  { %5121 = vmatpush1.msra.mxu0 %v4966_v56  ;;  %v4961_v59 = vpop.permute.xlu0 %4960 }
 0x1b3   :  { %v4968_v60 = vsel %vm171_vm1, %v4959_v55, %v4961_v59  ;;  %26435 = vmatmul.mubr.msk.f32.vlgmr.msra.gmra.mrb[2].mxu0 %vm171_vm1, %v4937_v47  ;;  %v5275_v61 = vpop.permute.xlu1 %5274 }
 0x1b4   :  { %7535 = vrot.lane.b32.xlu0 %v28572_v52, %s32325_s13  ;;  %26935 = vmatpush3.msra.mxu1 %v4968_v60 }
 0x1b5   :  { %v1053_v62 = vpop.f32.mrb[6].mxu1  ;;  %7537 = vrot.lane.b32.xlu1 %v28578_v54, %s32325_s13  ;;  %26937 = vmatmul.mubr.msk.f32.vlgmr.msra.gmra.mrb[32].mxu1 %vm171_vm1, %v4937_v47 }
 0x1b6   :  { %v1063_v63 = vadd.f32 %v1053_v62, %v739_v50  ;;  %v26873_v9 = vpop.f32.mrb[7].mxu1  ;;  %v5277_v10 = vpop.permute.xlu0 %5276  ;;  %5366 = vmatprep.mubr.f32.mxu0 %v28535_v39  ;;  %5437 = vmatprep.mubr.f32.mxu1 %v28535_v39 }
 0x1b7   :  { %v5271_v11 = vpop.permute.xlu1 %5270  ;;  %v5288_v12 = vsel %vm32327_vm15, %v5275_v61, %v5277_v10 }
 0x1b8   :  { %7531 = vrot.lane.b32.xlu0 %v28582_v57, %s32325_s13  ;;  %5373 = vmatprep.subr.mxu1 %v5288_v12 }
 0x1b9   :  { %7533 = vrot.lane.b32.xlu1 %v28544_v3, %s32325_s13 }
 0x1ba   :  { %v5273_v13 = vpop.permute.xlu0 %5272 }
 0x1bb   :  { %v5269_v14 = vpop.permute.xlu1 %5268  ;;  %v5286_v15 = vsel %vm32327_vm15, %v5271_v11, %v5273_v13  ;;  %v5287_v16 = vsel %vm32327_vm15, %v5273_v13, %v5275_v61 }
 0x1bc   :  { %v5285_v17 = vsel %vm32327_vm15, %v5269_v14, %v5271_v11  ;;  %7529 = vrot.lane.b32.xlu0 %v28550_v45, %s32325_s13  ;;  %5302 = vmatprep.subr.mxu0 %v5286_v15 }
 0x1bd   :  { %7527 = vrot.lane.b32.xlu1 %v28510_v31, %s27948_s25  ;;  %5374 = vmatpush1.msra.mxu1 %v5287_v16 }
 0x1be   :  { %5303 = vmatpush1.msra.mxu0 %v5285_v17  ;;  %v5279_v18 = vpop.permute.xlu0 %5278  ;;  %26438 = vmatmul.mubr.msk.f32.vlgmr.msra.gmra.mrb[0].mxu1 %vm171_vm1, %v28510_v31 }
 0x1bf   :  { %v5281_v19 = vpop.permute.xlu1 %5280  ;;  %26437 = vmatmul.mubr.msk.f32.vlgmr.msra.gmra.mrb[0].mxu0 %vm171_vm1, %v28510_v31  ;;  %v5289_v20 = vsel %vm32327_vm15, %v5277_v10, %v5279_v18  ;;  %26939 = vmatprep.subr.mxu1 %v28535_v39 }
 0x1c0   :  { %7539 = vrot.lane.b32.xlu0 %v28562_v48, %s32325_s13  ;;  %v5290_v21 = vsel %vm32327_vm15, %v5279_v18, %v5281_v19  ;;  %26941 = vmatprep.mubr.msk.f32.mxu1 %vm27951_vm2, %v28535_v39 }
 0x1c1   :  { %7541 = vrot.lane.b32.xlu1 %v28455_v6, %s32325_s13  ;;  %5444 = vmatprep.subr.mxu0 %v5290_v21  ;;  %v1375_v22 = vpop.f32.mrb[8].mxu1  ;;  %s32414_s13 = smov 35  }
 0x1c2   :  { %5445 = vmatpush1.msra.mxu0 %v5289_v20  ;;  %v5283_v23 = vpop.permute.xlu0 %5282  ;;  %v1385_v24 = vadd.f32 %v1375_v22, %v1063_v63  ;;  %v26878_v25 = vpop.f32.mrb[9].mxu1  ;;  %5508 = vmatprep.mubr.f32.mxu0 %v28535_v39 }
 0x1c3   :  { %v5291_v26 = vsel %vm32327_vm15, %v5281_v19, %v5283_v23  ;;  %v5601_v27 = vpop.permute.xlu1 %5600  ;;  %26439 = vmatmul.mubr.msk.f32.vlgmr.msra.gmra.mrb[2].mxu0 %vm171_vm1, %v28510_v31  ;;  %vm32331_vm15 = vcmask 457728  }
 0x1c4   :  { %7857 = vrot.lane.b32.xlu0 %v28572_v52, %s32328_s6  ;;  %26940 = vmatpush3.msra.mxu1 %v5291_v26 }
 0x1c5   :  { %7859 = vrot.lane.b32.xlu1 %v28578_v54, %s32328_s6  ;;  %26942 = vmatmul.mubr.msk.f32.vlgmr.msra.gmra.mrb[34].mxu1 %vm171_vm1, %v28510_v31 }
 0x1c6   :  { %v5603_v1 = vpop.permute.xlu0 %5602  ;;  %5691 = vmatprep.mubr.f32.mxu0 %v28535_v39  ;;  %5762 = vmatprep.mubr.f32.mxu1 %v28535_v39 }
 0x1c7   :  { %v5597_v28 = vpop.permute.xlu1 %5596  ;;  %v5614_v29 = vsel %vm32330_vm14, %v5601_v27, %v5603_v1 }
 0x1c8   :  { %7853 = vrot.lane.b32.xlu0 %v28582_v57, %s32328_s6  ;;  %5698 = vmatprep.subr.mxu1 %v5614_v29 }
 0x1c9   :  { %7855 = vrot.lane.b32.xlu1 %v28544_v3, %s32328_s6 }
 0x1ca   :  { %v5599_v30 = vpop.permute.xlu0 %5598 }
 0x1cb   :  { %v5595_v32 = vpop.permute.xlu1 %5594  ;;  %v5612_v2 = vsel %vm32330_vm14, %v5597_v28, %v5599_v30  ;;  %v5613_v33 = vsel %vm32330_vm14, %v5599_v30, %v5601_v27 }
 0x1cc   :  { %v5611_v5 = vsel %vm32330_vm14, %v5595_v32, %v5597_v28  ;;  %7851 = vrot.lane.b32.xlu0 %v28550_v45, %s32328_s6  ;;  %5627 = vmatprep.subr.mxu0 %v5612_v2 }
 0x1cd   :  { %7849 = vrot.lane.b32.xlu1 %v28510_v31, %s32416_s28  ;;  %5699 = vmatpush1.msra.mxu1 %v5613_v33 }
 0x1ce   :  { %5628 = vmatpush1.msra.mxu0 %v5611_v5  ;;  %v5593_v34 = vpop.permute.xlu0 %5592  ;;  %26944 = vmatprep.subr.mxu1 %v28535_v39 }
 0x1cf   :  { %v5605_v35 = vpop.permute.xlu1 %5604  ;;  %26441 = vmatmul.mubr.msk.f32.vlgmr.msra.gmra.mrb[0].mxu0 %vm171_vm1, %v5593_v34  ;;  %26442 = vmatmul.mubr.msk.f32.vlgmr.msra.gmra.mrb[0].mxu1 %vm171_vm1, %v5593_v34 }
 0x1d0   :  { %7861 = vrot.lane.b32.xlu0 %v28562_v48, %s32328_s6  ;;  %26946 = vmatprep.mubr.msk.f32.mxu1 %vm27951_vm2, %v28535_v39  ;;  %v5615_v42 = vsel %vm32330_vm14, %v5603_v1, %v5605_v35 }
 0x1d1   :  { %7863 = vrot.lane.b32.xlu1 %v28455_v6, %s32328_s6  ;;  %v1697_v36 = vpop.f32.mrb[10].mxu1  ;;  %5833 = vmatprep.mubr.f32.mxu0 %v28535_v39  ;;  %s32411_s6 = smov 34  }
 0x1d2   :  { %v5607_v37 = vpop.permute.xlu0 %5606  ;;  %v1707_v38 = vadd.f32 %v1697_v36, %v1385_v24  ;;  %v26883_v8 = vpop.f32.mrb[11].mxu1 }
 0x1d3   :  { %v5609_v40 = vpop.permute.xlu1 %5608  ;;  %v5616_v41 = vsel %vm32330_vm14, %v5605_v35, %v5607_v37 }
 0x1d4   :  { %v5617_v0 = vsel %vm32330_vm14, %v5607_v37, %v5609_v40  ;;  %8179 = vrot.lane.b32.xlu0 %v28572_v52, %s32414_s13  ;;  %5769 = vmatprep.subr.mxu0 %v5616_v41  ;;  %vm32332_vm14 = vcmask 449536  }
 0x1d5   :  { %8181 = vrot.lane.b32.xlu1 %v28578_v54, %s32414_s13  ;;  %26945 = vmatpush3.msra.mxu1 %v5617_v0 }
 0x1d6   :  { %5770 = vmatpush1.msra.mxu0 %v5615_v42  ;;  %26947 = vmatmul.mubr.msk.f32.vlgmr.msra.gmra.mrb[36].mxu1 %vm171_vm1, %v5593_v34  ;;  %v5926_v43 = vpop.permute.xlu0 %5925 }
 0x1d7   :  { %26443 = vmatmul.mubr.msk.f32.vlgmr.msra.gmra.mrb[2].mxu0 %vm171_vm1, %v5593_v34  ;;  %v5928_v7 = vpop.permute.xlu1 %5927  ;;  %6084 = vmatprep.mubr.f32.mxu1 %v28535_v39 }
 0x1d8   :  { %8175 = vrot.lane.b32.xlu0 %v28582_v57, %s32414_s13  ;;  %v5937_v44 = vsel %vm32331_vm15, %v5926_v43, %v5928_v7  ;;  %6013 = vmatprep.mubr.f32.mxu0 %v28535_v39 }
 0x1d9   :  { %8177 = vrot.lane.b32.xlu1 %v28544_v3, %s32414_s13  ;;  %6020 = vmatprep.subr.mxu1 %v5937_v44 }
 0x1da   :  { %v5922_v4 = vpop.permute.xlu0 %5921 }
 0x1db   :  { %v5924_v46 = vpop.permute.xlu1 %5923 }
 0x1dc   :  { %8173 = vrot.lane.b32.xlu0 %v28550_v45, %s32414_s13  ;;  %v5935_v47 = vsel %vm32331_vm15, %v5922_v4, %v5924_v46  ;;  %v5936_v49 = vsel %vm32331_vm15, %v5924_v46, %v5926_v43 }
 0x1dd   :  { %8171 = vrot.lane.b32.xlu1 %v28510_v31, %s27953_s30  ;;  %5949 = vmatprep.subr.mxu0 %v5935_v47 }
 0x1de   :  { %6021 = vmatpush1.msra.mxu1 %v5936_v49  ;;  %v5920_v50 = vpop.permute.xlu0 %5919 }
 0x1df   :  { %v5934_v51 = vsel %vm32331_vm15, %v5920_v50, %v5922_v4  ;;  %v5918_v53 = vpop.permute.xlu1 %5917  ;;  %26949 = vmatprep.subr.mxu1 %v28535_v39 }
 0x1e0   :  { %8183 = vrot.lane.b32.xlu0 %v28562_v48, %s32414_s13  ;;  %5950 = vmatpush1.msra.mxu0 %v5934_v51 }
 0x1e1   :  { %8185 = vrot.lane.b32.xlu1 %v28455_v6, %s32414_s13  ;;  %26446 = vmatmul.mubr.msk.f32.vlgmr.msra.gmra.mrb[0].mxu1 %vm171_vm1, %v5918_v53  ;;  %v2019_v55 = vpop.f32.mrb[12].mxu1 }
 0x1e2   :  { %26445 = vmatmul.mubr.msk.f32.vlgmr.msra.gmra.mrb[0].mxu0 %vm171_vm1, %v5918_v53  ;;  %v5930_v56 = vpop.permute.xlu0 %5929  ;;  %v2029_v58 = vadd.f32 %v2019_v55, %v1707_v38  ;;  %26951 = vmatprep.mubr.msk.f32.mxu1 %vm27951_vm2, %v28535_v39  ;;  %v26888_v59 = vpop.f32.mrb[13].mxu1 }
 0x1e3   :  { %v5932_v60 = vpop.permute.xlu1 %5931  ;;  %v5938_v61 = vsel %vm32331_vm15, %v5928_v7, %v5930_v56  ;;  %6155 = vmatprep.mubr.f32.mxu0 %v28535_v39 }
 0x1e4   :  { %26950 = vmatpush3.msra.mxu1 %v5932_v60  ;;  %8501 = vrot.lane.b32.xlu0 %v28572_v52, %s32411_s6  ;;  %v5939_v62 = vsel %vm32331_vm15, %v5930_v56, %v5932_v60  ;;  %vm32333_vm15 = vcmask 441344  }
 0x1e5   :  { %8503 = vrot.lane.b32.xlu1 %v28578_v54, %s32411_s6  ;;  %6091 = vmatprep.subr.mxu0 %v5939_v62 }
 0x1e6   :  { %26952 = vmatmul.mubr.msk.f32.vlgmr.msra.gmra.mrb[38].mxu1 %vm171_vm1, %v5918_v53  ;;  %6092 = vmatpush1.msra.mxu0 %v5938_v61  ;;  %v6248_v63 = vpop.permute.xlu0 %6247 }
 0x1e7   :  { %26447 = vmatmul.mubr.msk.f32.vlgmr.msra.gmra.mrb[2].mxu0 %vm171_vm1, %v5918_v53  ;;  %v6250_v9 = vpop.permute.xlu1 %6249  ;;  %6406 = vmatprep.mubr.f32.mxu1 %v28535_v39 }
 0x1e8   :  { %8497 = vrot.lane.b32.xlu0 %v28582_v57, %s32411_s6  ;;  %v6259_v52 = vsel %vm32332_vm14, %v6248_v63, %v6250_v9  ;;  %6335 = vmatprep.mubr.f32.mxu0 %v28535_v39 }
 0x1e9   :  { %8499 = vrot.lane.b32.xlu1 %v28544_v3, %s32411_s6  ;;  %6342 = vmatprep.subr.mxu1 %v6259_v52 }
 0x1ea   :  { %v6244_v54 = vpop.permute.xlu0 %6243 }
 0x1eb   :  { %v6246_v10 = vpop.permute.xlu1 %6245 }
 0x1ec   :  { %8495 = vrot.lane.b32.xlu0 %v28550_v45, %s32411_s6  ;;  %v6257_v11 = vsel %vm32332_vm14, %v6244_v54, %v6246_v10  ;;  %v6258_v12 = vsel %vm32332_vm14, %v6246_v10, %v6248_v63 }
 0x1ed   :  { %8493 = vrot.lane.b32.xlu1 %v28510_v31, %s32413_s7  ;;  %6271 = vmatprep.subr.mxu0 %v6257_v11 }
 0x1ee   :  { %6343 = vmatpush1.msra.mxu1 %v6258_v12  ;;  %v6242_v57 = vpop.permute.xlu0 %6241 }
 0x1ef   :  { %v6256_v13 = vsel %vm32332_vm14, %v6242_v57, %v6244_v54  ;;  %v6240_v14 = vpop.permute.xlu1 %6239  ;;  %26954 = vmatprep.subr.mxu1 %v28535_v39 }
 0x1f0   :  { %8505 = vrot.lane.b32.xlu0 %v28562_v48, %s32411_s6  ;;  %6272 = vmatpush1.msra.mxu0 %v6256_v13 }
 0x1f1   :  { %8507 = vrot.lane.b32.xlu1 %v28455_v6, %s32411_s6  ;;  %26450 = vmatmul.mubr.msk.f32.vlgmr.msra.gmra.mrb[0].mxu1 %vm171_vm1, %v6240_v14  ;;  %v2341_v3 = vpop.f32.mrb[14].mxu1 }
 0x1f2   :  { %26449 = vmatmul.mubr.msk.f32.vlgmr.msra.gmra.mrb[0].mxu0 %vm171_vm1, %v6240_v14  ;;  %v6252_v31 = vpop.permute.xlu0 %6251  ;;  %v2351_v45 = vadd.f32 %v2341_v3, %v2029_v58  ;;  %26956 = vmatprep.mubr.msk.f32.mxu1 %vm27951_vm2, %v28535_v39  ;;  %v26893_v15 = vpop.f32.mrb[15].mxu1 }
 0x1f3   :  { %v6254_v16 = vpop.permute.xlu1 %6253  ;;  %v6260_v17 = vsel %vm32332_vm14, %v6250_v9, %v6252_v31  ;;  %6477 = vmatprep.mubr.f32.mxu0 %v28535_v39 }
 0x1f4   :  { %26955 = vmatpush3.msra.mxu1 %v6254_v16  ;;  %v6261_v48 = vsel %vm32332_vm14, %v6252_v31, %v6254_v16  ;;  %vm32334_vm14 = vcmask 375808   ;;  %v27972_v31 = vmov 0  }
 0x1f5   :  { %6413 = vmatprep.subr.mxu0 %v6261_v48  ;;  %26957 = vmatmul.mubr.msk.f32.vlgmr.msra.gmra.mrb[40].mxu1 %vm171_vm1, %v6240_v14 }
 0x1f6   :  { %6414 = vmatpush1.msra.mxu0 %v6260_v17  ;;  %v6570_v6 = vpop.permute.xlu0 %6569  ;;  %6728 = vmatprep.mubr.f32.mxu1 %v28535_v39 }
 0x1f7   :  { %26451 = vmatmul.mubr.msk.f32.vlgmr.msra.gmra.mrb[2].mxu0 %vm171_vm1, %v6240_v14  ;;  %v6572_v18 = vpop.permute.xlu1 %6571  ;;  %v125_v14 = vld [vmem:[#allocation9] sm:$0xff]  ;;  %27781 = vset.pattern.permute.xlu0 %v27972_v31 }
 0x1f8   :  { %v6581_v19 = vsel %vm32333_vm15, %v6570_v6, %v6572_v18  ;;  %6657 = vmatprep.mubr.f32.mxu0 %v28535_v39  ;;  %27782 = vset.pattern.permute.xlu1 %v27972_v31 }
 0x1f9   :  { %6664 = vmatprep.subr.mxu1 %v6581_v19  ;;  %8817 = vperm.xlu0 %27781, %v125_v14  }
 0x1fa   :  { %v6566_v20 = vpop.permute.xlu0 %6565 }
 0x1fb   :  { %v6568_v21 = vpop.permute.xlu1 %6567 }
 0x1fc   :  { %v6579_v22 = vsel %vm32333_vm15, %v6566_v20, %v6568_v21  ;;  %v6580_v23 = vsel %vm32333_vm15, %v6568_v21, %v6570_v6 }
 0x1fd   :  { %6593 = vmatprep.subr.mxu0 %v6579_v22  ;;  %6665 = vmatpush1.msra.mxu1 %v6580_v23 }
 0x1fe   :  { %v6564_v24 = vpop.permute.xlu0 %6563  ;;  %26959 = vmatprep.subr.mxu1 %v28535_v39 }
 0x1ff   :  { %v6578_v25 = vsel %vm32333_vm15, %v6564_v24, %v6566_v20  ;;  %v6562_v26 = vpop.permute.xlu1 %6561 }
 0x200   :  { %6594 = vmatpush1.msra.mxu0 %v6578_v25  ;;  %26454 = vmatmul.mubr.msk.f32.vlgmr.msra.gmra.mrb[0].mxu1 %vm171_vm1, %v6562_v26  ;;  %v28903_v25 = vld [vmem:[#allocation2] sm:$0xff] }
 0x201   :  { %26453 = vmatmul.mubr.msk.f32.vlgmr.msra.gmra.mrb[0].mxu0 %vm171_vm1, %v6562_v26  ;;  %v2663_v27 = vpop.f32.mrb[16].mxu1  ;;  %26961 = vmatprep.mubr.msk.f32.mxu1 %vm27951_vm2, %v28535_v39 }
 0x202   :  { %v6574_v1 = vpop.permute.xlu0 %6573  ;;  %v2673_v28 = vadd.f32 %v2663_v27, %v2351_v45  ;;  %v26898_v29 = vpop.f32.mrb[17].mxu1  ;;  %6799 = vmatprep.mubr.f32.mxu0 %v28535_v39 }
 0x203   :  { %v6576_v30 = vpop.permute.xlu1 %6575  ;;  %v6582_v32 = vsel %vm32333_vm15, %v6572_v18, %v6574_v1 }
 0x204   :  { %26960 = vmatpush3.msra.mxu1 %v6576_v30  ;;  %v6583_v2 = vsel %vm32333_vm15, %v6574_v1, %v6576_v30  ;;  %vm32335_vm15 = vcmask 367616  }
 0x205   :  { %6735 = vmatprep.subr.mxu0 %v6583_v2  ;;  %26962 = vmatmul.mubr.msk.f32.vlgmr.msra.gmra.mrb[42].mxu1 %vm171_vm1, %v6562_v26 }
 0x206   :  { %6736 = vmatpush1.msra.mxu0 %v6582_v32  ;;  %v6892_v33 = vpop.permute.xlu0 %6891  ;;  %7050 = vmatprep.mubr.f32.mxu1 %v28535_v39 }
 0x207   :  { %26455 = vmatmul.mubr.msk.f32.vlgmr.msra.gmra.mrb[2].mxu0 %vm171_vm1, %v6562_v26  ;;  %v6894_v5 = vpop.permute.xlu1 %6893 }
 0x208   :  { %v6903_v34 = vsel %vm32334_vm14, %v6892_v33, %v6894_v5  ;;  %6979 = vmatprep.mubr.f32.mxu0 %v28535_v39 }
 0x209   :  { %6986 = vmatprep.subr.mxu1 %v6903_v34 }
 0x20a   :  { %v6888_v35 = vpop.permute.xlu0 %6887 }
 0x20b   :  { %v6890_v36 = vpop.permute.xlu1 %6889 }
 0x20c   :  { %v6901_v37 = vsel %vm32334_vm14, %v6888_v35, %v6890_v36  ;;  %v6902_v38 = vsel %vm32334_vm14, %v6890_v36, %v6892_v33 }
 0x20d   :  { %6915 = vmatprep.subr.mxu0 %v6901_v37  ;;  %6987 = vmatpush1.msra.mxu1 %v6902_v38 }
 0x20e   :  { %v6886_v8 = vpop.permute.xlu0 %6885  ;;  %26964 = vmatprep.subr.mxu1 %v28535_v39 }
 0x20f   :  { %v6900_v40 = vsel %vm32334_vm14, %v6886_v8, %v6888_v35  ;;  %v6884_v41 = vpop.permute.xlu1 %6883 }
 0x210   :  { %6916 = vmatpush1.msra.mxu0 %v6900_v40  ;;  %26458 = vmatmul.mubr.msk.f32.vlgmr.msra.gmra.mrb[0].mxu1 %vm171_vm1, %v6884_v41 }
 0x211   :  { %26457 = vmatmul.mubr.msk.f32.vlgmr.msra.gmra.mrb[0].mxu0 %vm171_vm1, %v6884_v41  ;;  %v2985_v0 = vpop.f32.mrb[18].mxu1  ;;  %26966 = vmatprep.mubr.msk.f32.mxu1 %vm27951_vm2, %v28535_v39 }
 0x212   :  { %v6896_v42 = vpop.permute.xlu0 %6895  ;;  %v2995_v43 = vadd.f32 %v2985_v0, %v2673_v28  ;;  %v26903_v7 = vpop.f32.mrb[19].mxu1  ;;  %7121 = vmatprep.mubr.f32.mxu0 %v28535_v39 }
 0x213   :  { %v6898_v44 = vpop.permute.xlu1 %6897  ;;  %v6904_v4 = vsel %vm32334_vm14, %v6894_v5, %v6896_v42 }
 0x214   :  { %26965 = vmatpush3.msra.mxu1 %v6898_v44  ;;  %v6905_v46 = vsel %vm32334_vm14, %v6896_v42, %v6898_v44  ;;  %vm32336_vm14 = vcmask 359424  }
 0x215   :  { %7057 = vmatprep.subr.mxu0 %v6905_v46  ;;  %26967 = vmatmul.mubr.msk.f32.vlgmr.msra.gmra.mrb[44].mxu1 %vm171_vm1, %v6884_v41 }
 0x216   :  { %7058 = vmatpush1.msra.mxu0 %v6904_v4  ;;  %v7214_v47 = vpop.permute.xlu0 %7213  ;;  %7372 = vmatprep.mubr.f32.mxu1 %v28535_v39 }
 0x217   :  { %26459 = vmatmul.mubr.msk.f32.vlgmr.msra.gmra.mrb[2].mxu0 %vm171_vm1, %v6884_v41  ;;  %v7216_v49 = vpop.permute.xlu1 %7215 }
 0x218   :  { %v7225_v50 = vsel %vm32335_vm15, %v7214_v47, %v7216_v49  ;;  %7301 = vmatprep.mubr.f32.mxu0 %v28535_v39 }
 0x219   :  { %7308 = vmatprep.subr.mxu1 %v7225_v50 }
 0x21a   :  { %v7210_v51 = vpop.permute.xlu0 %7209 }
 0x21b   :  { %v7212_v53 = vpop.permute.xlu1 %7211 }
 0x21c   :  { %v7223_v55 = vsel %vm32335_vm15, %v7210_v51, %v7212_v53  ;;  %v7224_v56 = vsel %vm32335_vm15, %v7212_v53, %v7214_v47 }
 0x21d   :  { %7237 = vmatprep.subr.mxu0 %v7223_v55  ;;  %7309 = vmatpush1.msra.mxu1 %v7224_v56 }
 0x21e   :  { %v7208_v58 = vpop.permute.xlu0 %7207  ;;  %26969 = vmatprep.subr.mxu1 %v28535_v39 }
 0x21f   :  { %v7222_v59 = vsel %vm32335_vm15, %v7208_v58, %v7210_v51  ;;  %v7206_v60 = vpop.permute.xlu1 %7205 }
 0x220   :  { %7238 = vmatpush1.msra.mxu0 %v7222_v59  ;;  %26462 = vmatmul.mubr.msk.f32.vlgmr.msra.gmra.mrb[0].mxu1 %vm171_vm1, %v7206_v60 }
 0x221   :  { %26461 = vmatmul.mubr.msk.f32.vlgmr.msra.gmra.mrb[0].mxu0 %vm171_vm1, %v7206_v60  ;;  %26971 = vmatprep.mubr.msk.f32.mxu1 %vm27951_vm2, %v28535_v39 }
 0x222   :  { %v7218_v61 = vpop.permute.xlu0 %7217  ;;  %7443 = vmatprep.mubr.f32.mxu0 %v28535_v39 }
 0x223   :  { %v7220_v62 = vpop.permute.xlu1 %7219  ;;  %v7226_v63 = vsel %vm32335_vm15, %v7216_v49, %v7218_v61 }
 0x224   :  { %v3307_v9 = vpop.f32.mrb[20].mxu1  ;;  %26970 = vmatpush3.msra.mxu1 %v7220_v62  ;;  %v7227_v52 = vsel %vm32335_vm15, %v7218_v61, %v7220_v62  ;;  %vm32337_vm15 = vcmask 293888  }
 0x225   :  { %v3317_v54 = vadd.f32 %v3307_v9, %v2995_v43  ;;  %v26908_v10 = vpop.f32.mrb[21].mxu1  ;;  %7379 = vmatprep.subr.mxu0 %v7227_v52  ;;  %26972 = vmatmul.mubr.msk.f32.vlgmr.msra.gmra.mrb[46].mxu1 %vm171_vm1, %v7206_v60 }
 0x226   :  { %7380 = vmatpush1.msra.mxu0 %v7226_v63  ;;  %v7536_v11 = vpop.permute.xlu0 %7535  ;;  %7694 = vmatprep.mubr.f32.mxu1 %v28535_v39 }
 0x227   :  { %26463 = vmatmul.mubr.msk.f32.vlgmr.msra.gmra.mrb[2].mxu0 %vm171_vm1, %v7206_v60  ;;  %v7538_v12 = vpop.permute.xlu1 %7537 }
 0x228   :  { %v7547_v57 = vsel %vm32336_vm14, %v7536_v11, %v7538_v12  ;;  %7623 = vmatprep.mubr.f32.mxu0 %v28535_v39 }
 0x229   :  { %7630 = vmatprep.subr.mxu1 %v7547_v57 }
 0x22a   :  { %v7532_v13 = vpop.permute.xlu0 %7531 }
 0x22b   :  { %v7534_v3 = vpop.permute.xlu1 %7533 }
 0x22c   :  { %v7545_v45 = vsel %vm32336_vm14, %v7532_v13, %v7534_v3  ;;  %v7546_v15 = vsel %vm32336_vm14, %v7534_v3, %v7536_v11 }
 0x22d   :  { %7559 = vmatprep.subr.mxu0 %v7545_v45  ;;  %7631 = vmatpush1.msra.mxu1 %v7546_v15 }
 0x22e   :  { %v7530_v16 = vpop.permute.xlu0 %7529  ;;  %26974 = vmatprep.subr.mxu1 %v28535_v39 }
 0x22f   :  { %v7544_v17 = vsel %vm32336_vm14, %v7530_v16, %v7532_v13  ;;  %v7528_v48 = vpop.permute.xlu1 %7527 }
 0x230   :  { %7560 = vmatpush1.msra.mxu0 %v7544_v17  ;;  %26466 = vmatmul.mubr.msk.f32.vlgmr.msra.gmra.mrb[0].mxu1 %vm171_vm1, %v7528_v48  ;;  %v28956_v17 = vld [vmem:[#allocation7 + $0x10] sm:$0xff] }
 0x231   :  { %26465 = vmatmul.mubr.msk.f32.vlgmr.msra.gmra.mrb[0].mxu0 %vm171_vm1, %v7528_v48  ;;  %26976 = vmatprep.mubr.msk.f32.mxu1 %vm27951_vm2, %v28535_v39 }
 0x232   :  { %v7540_v6 = vpop.permute.xlu0 %7539  ;;  %7765 = vmatprep.mubr.f32.mxu0 %v28535_v39  ;;  %8898 = vrot.lane.b32.xlu0 %v28956_v17, %s27936_s1 }
 0x233   :  { %v7542_v18 = vpop.permute.xlu1 %7541  ;;  %v7548_v19 = vsel %vm32336_vm14, %v7538_v12, %v7540_v6 }
 0x234   :  { %26975 = vmatpush3.msra.mxu1 %v7542_v18  ;;  %v7549_v20 = vsel %vm32336_vm14, %v7540_v6, %v7542_v18  ;;  %vm32340_vm14 = vcmask 285696  }
 0x235   :  { %v3629_v21 = vpop.f32.mrb[22].mxu1  ;;  %7701 = vmatprep.subr.mxu0 %v7549_v20  ;;  %26977 = vmatmul.mubr.msk.f32.vlgmr.msra.gmra.mrb[48].mxu1 %vm171_vm1, %v7528_v48 }
 0x236   :  { %v3639_v22 = vadd.f32 %v3629_v21, %v3317_v54  ;;  %v26913_v23 = vpop.f32.mrb[23].mxu1  ;;  %7702 = vmatpush1.msra.mxu0 %v7548_v19  ;;  %v7858_v24 = vpop.permute.xlu0 %7857  ;;  %8016 = vmatprep.mubr.f32.mxu1 %v28903_v25 }
 0x237   :  { %26467 = vmatmul.mubr.msk.f32.vlgmr.msra.gmra.mrb[2].mxu0 %vm171_vm1, %v7528_v48  ;;  %v7860_v39 = vpop.permute.xlu1 %7859  ;;  %9504 = vrot.lane.b32.xlu0 %v28956_v17, %s27938_s15 }
 0x238   :  { %v7869_v26 = vsel %vm32337_vm15, %v7858_v24, %v7860_v39  ;;  %7945 = vmatprep.mubr.f32.mxu0 %v28903_v25 }
 0x239   :  { %7952 = vmatprep.subr.mxu1 %v7869_v26 }
 0x23a   :  { %v7854_v27 = vpop.permute.xlu0 %7853 }
 0x23b   :  { %v7856_v1 = vpop.permute.xlu1 %7855  ;;  %9825 = vrot.lane.b32.xlu0 %v28956_v17, %s27940_s17 }
 0x23c   :  { %v7867_v28 = vsel %vm32337_vm15, %v7854_v27, %v7856_v1  ;;  %v7868_v29 = vsel %vm32337_vm15, %v7856_v1, %v7858_v24 }
 0x23d   :  { %7881 = vmatprep.subr.mxu0 %v7867_v28  ;;  %7953 = vmatpush1.msra.mxu1 %v7868_v29 }
 0x23e   :  { %v7852_v30 = vpop.permute.xlu0 %7851  ;;  %26979 = vmatprep.subr.mxu1 %v28903_v25 }
 0x23f   :  { %v7866_v32 = vsel %vm32337_vm15, %v7852_v30, %v7854_v27  ;;  %v7850_v2 = vpop.permute.xlu1 %7849  ;;  %10146 = vrot.lane.b32.xlu0 %v28956_v17, %s27942_s19 }
 0x240   :  { %7882 = vmatpush1.msra.mxu0 %v7866_v32  ;;  %26470 = vmatmul.mubr.msk.f32.vlgmr.msra.gmra.mrb[0].mxu1 %vm171_vm1, %v7850_v2 }
 0x241   :  { %26469 = vmatmul.mubr.msk.f32.vlgmr.msra.gmra.mrb[0].mxu0 %vm171_vm1, %v7850_v2  ;;  %26981 = vmatprep.mubr.msk.f32.mxu1 %vm27951_vm2, %v28903_v25 }
 0x242   :  { %v7862_v33 = vpop.permute.xlu0 %7861  ;;  %8087 = vmatprep.mubr.f32.mxu0 %v28903_v25 }
 0x243   :  { %v7864_v5 = vpop.permute.xlu1 %7863  ;;  %v7870_v34 = vsel %vm32337_vm15, %v7860_v39, %v7862_v33  ;;  %10467 = vrot.lane.b32.xlu0 %v28956_v17, %s27944_s21 }
 0x244   :  { %26980 = vmatpush3.msra.mxu1 %v7864_v5  ;;  %v7871_v35 = vsel %vm32337_vm15, %v7862_v33, %v7864_v5  ;;  %vm32338_vm15 = vcmask 277504  }
 0x245   :  { %v3951_v36 = vpop.f32.mrb[24].mxu1  ;;  %8023 = vmatprep.subr.mxu0 %v7871_v35  ;;  %26982 = vmatmul.mubr.msk.f32.vlgmr.msra.gmra.mrb[50].mxu1 %vm171_vm1, %v7850_v2 }
 0x246   :  { %v3961_v37 = vadd.f32 %v3951_v36, %v3639_v22  ;;  %v26918_v38 = vpop.f32.mrb[25].mxu1  ;;  %8024 = vmatpush1.msra.mxu0 %v7870_v34  ;;  %v8180_v8 = vpop.permute.xlu0 %8179  ;;  %8338 = vmatprep.mubr.f32.mxu1 %v28903_v25 }
 0x247   :  { %26471 = vmatmul.mubr.msk.f32.vlgmr.msra.gmra.mrb[2].mxu0 %vm171_vm1, %v7850_v2  ;;  %v8182_v40 = vpop.permute.xlu1 %8181  ;;  %10788 = vrot.lane.b32.xlu0 %v28956_v17, %s27946_s23 }
 0x248   :  { %v8191_v41 = vsel %vm32340_vm14, %v8180_v8, %v8182_v40  ;;  %8267 = vmatprep.mubr.f32.mxu0 %v28903_v25 }
 0x249   :  { %8274 = vmatprep.subr.mxu1 %v8191_v41 }
 0x24a   :  { %v8176_v0 = vpop.permute.xlu0 %8175 }
 0x24b   :  { %v8178_v42 = vpop.permute.xlu1 %8177  ;;  %11109 = vrot.lane.b32.xlu0 %v28956_v17, %s27948_s25 }
 0x24c   :  { %v8189_v43 = vsel %vm32340_vm14, %v8176_v0, %v8178_v42  ;;  %v8190_v7 = vsel %vm32340_vm14, %v8178_v42, %v8180_v8 }
 0x24d   :  { %8203 = vmatprep.subr.mxu0 %v8189_v43  ;;  %8275 = vmatpush1.msra.mxu1 %v8190_v7 }
 0x24e   :  { %v8174_v44 = vpop.permute.xlu0 %8173  ;;  %26984 = vmatprep.subr.mxu1 %v28903_v25 }
 0x24f   :  { %v8188_v4 = vsel %vm32340_vm14, %v8174_v44, %v8176_v0  ;;  %v8172_v46 = vpop.permute.xlu1 %8171  ;;  %11430 = vrot.lane.b32.xlu0 %v28956_v17, %s32416_s28  ;;  %v88_v44 = vlaneseq }
 0x250   :  { %8204 = vmatpush1.msra.mxu0 %v8188_v4  ;;  %26474 = vmatmul.mubr.msk.f32.vlgmr.msra.gmra.mrb[0].mxu1 %vm171_vm1, %v8172_v46 }
 0x251   :  { %26473 = vmatmul.mubr.msk.f32.vlgmr.msra.gmra.mrb[0].mxu0 %vm171_vm1, %v8172_v46  ;;  %26986 = vmatprep.mubr.msk.f32.mxu1 %vm27951_vm2, %v28903_v25 }
 0x252   :  { %v8184_v47 = vpop.permute.xlu0 %8183  ;;  %8409 = vmatprep.mubr.f32.mxu0 %v28903_v25 }
 0x253   :  { %v8186_v49 = vpop.permute.xlu1 %8185  ;;  %v8192_v50 = vsel %vm32340_vm14, %v8182_v40, %v8184_v47  ;;  %11751 = vrot.lane.b32.xlu0 %v28956_v17, %s27953_s30 }
 0x254   :  { %26985 = vmatpush3.msra.mxu1 %v8186_v49  ;;  %v8193_v51 = vsel %vm32340_vm14, %v8184_v47, %v8186_v49  ;;  %v89_v47 = vshrl.u32 %v88_v44, 7  ;;  %vm8862_vm14 = vcmask 908288  }
 0x255   :  { %v4273_v53 = vpop.f32.mrb[26].mxu1  ;;  %8345 = vmatprep.subr.mxu0 %v8193_v51  ;;  %26987 = vmatmul.mubr.msk.f32.vlgmr.msra.gmra.mrb[52].mxu1 %vm171_vm1, %v8172_v46  ;;  %v86_v51 = vld [vmem:[#allocation10] sm:$0x7f] }
 0x256   :  { %v4283_v55 = vadd.f32 %v4273_v53, %v3961_v37  ;;  %v26923_v56 = vpop.f32.mrb[27].mxu1  ;;  %8346 = vmatpush1.msra.mxu0 %v8192_v50  ;;  %v8502_v58 = vpop.permute.xlu0 %8501  ;;  %8660 = vmatprep.mubr.f32.mxu1 %v28903_v25  ;;  %v98_v49 = vsub.s32 2, %v89_v47  ;;  %v90_v53 = vsub.s32 0, %v89_v47 }
 0x257   :  { %26475 = vmatmul.mubr.msk.f32.vlgmr.msra.gmra.mrb[2].mxu0 %vm171_vm1, %v8172_v46  ;;  %v8504_v59 = vpop.permute.xlu1 %8503  ;;  %12072 = vrot.lane.b32.xlu0 %v28956_v17, %s32413_s7 }
 0x258   :  { %v8513_v60 = vsel %vm32338_vm15, %v8502_v58, %v8504_v59  ;;  %8589 = vmatprep.mubr.f32.mxu0 %v28903_v25  ;;  %v28994_v56 = vrot.slane %v86_v51, %v98_v49 }
 0x259   :  { %8596 = vmatprep.subr.mxu1 %v8513_v60 }
 0x25a   :  { %v8498_v61 = vpop.permute.xlu0 %8497  ;;  %32461 = vst [vmem:[#allocation17_spill] sm:$0xff] %v28994_v56 }
 0x25b   :  { %v8500_v62 = vpop.permute.xlu1 %8499  ;;  %12393 = vrot.lane.b32.xlu0 %v28956_v17, %s27957_s9 }
 0x25c   :  { %v8511_v63 = vsel %vm32338_vm15, %v8498_v61, %v8500_v62  ;;  %v8512_v9 = vsel %vm32338_vm15, %v8500_v62, %v8502_v58  ;;  %v28996_v62 = vrot.slane %v86_v51, %v90_v53 }
 0x25d   :  { %8525 = vmatprep.subr.mxu0 %v8511_v63  ;;  %8597 = vmatpush1.msra.mxu1 %v8512_v9 }
 0x25e   :  { %v8496_v52 = vpop.permute.xlu0 %8495  ;;  %26989 = vmatprep.subr.mxu1 %v28903_v25  ;;  %32462 = vst [vmem:[#allocation18_spill] sm:$0xff] %v28996_v62 }
 0x25f   :  { %v8510_v54 = vsel %vm32338_vm15, %v8496_v52, %v8498_v61  ;;  %v8494_v10 = vpop.permute.xlu1 %8493  ;;  %12714 = vrot.lane.b32.xlu0 %v28956_v17, %s27959_s11  ;;  %v94_v61 = vsub.s32 1, %v89_v47 }
 0x260   :  { %26478 = vmatmul.mubr.msk.f32.vlgmr.msra.gmra.mrb[0].mxu1 %vm171_vm1, %v8494_v10  ;;  %8526 = vmatpush1.msra.mxu0 %v8510_v54 }
 0x261   :  { %26477 = vmatmul.mubr.msk.f32.vlgmr.msra.gmra.mrb[0].mxu0 %vm171_vm1, %v8494_v10  ;;  %26991 = vmatprep.mubr.msk.f32.mxu1 %vm27951_vm2, %v28903_v25 }
 0x262   :  { %v8506_v11 = vpop.permute.xlu0 %8505  ;;  %8731 = vmatprep.mubr.f32.mxu0 %v28903_v25 }
 0x263   :  { %v8508_v12 = vpop.permute.xlu1 %8507  ;;  %v8514_v57 = vsel %vm32338_vm15, %v8504_v59, %v8506_v11  ;;  %13035 = vrot.lane.b32.xlu0 %v28956_v17, %s32339_s2  ;;  %s32342_s2 = smov 111  }
 0x264   :  { %26990 = vmatpush3.msra.mxu1 %v8508_v12  ;;  %v8515_v13 = vsel %vm32338_vm15, %v8506_v11, %v8508_v12  ;;  %vm76_vm15 = vcmask 850944   ;;  %v106_v11 = vsub.s32 4, %v89_v47 }
 0x265   :  { %v4595_v14 = vpop.f32.mrb[28].mxu1  ;;  %8667 = vmatprep.subr.mxu0 %v8515_v13  ;;  %26992 = vmatmul.mubr.msk.f32.vlgmr.msra.gmra.mrb[54].mxu1 %vm171_vm1, %v8494_v10  ;;  %77 = vst.msk [vmem:[#allocation2 + $0x38] sm:$0xff] %vm76_vm15, %v28903_v25  ;;  %85 = vst.msk [vmem:[#allocation3 + $0x38] sm:$0xff] %vm76_vm15, %v28903_v25  ;;  %v28999_v13 = vrot.slane %v86_v51, %v94_v61  ;;  %vm32341_vm15 = vcmask 1048440  }
 0x266   :  { %v4605_v3 = vadd.f32 %v4595_v14, %v4283_v55  ;;  %v26928_v31 = vpop.f32.mrb[29].mxu1  ;;  %8668 = vmatpush1.msra.mxu0 %v8514_v57  ;;  %9071 = vmatprep.mubr.f32.mxu1 %v28903_v25  ;;  %v102_v57 = vsub.s32 3, %v89_v47 }
 0x267   :  { %26479 = vmatmul.mubr.msk.f32.vlgmr.msra.gmra.mrb[2].mxu0 %vm171_vm1, %v8494_v10  ;;  %13356 = vrot.lane.b32.xlu0 %v28956_v17, %s27928_s26  ;;  %32463 = vst [vmem:[#allocation19_spill] sm:$0xff] %v28999_v13 }
 0x268   :  { %9000 = vmatprep.mubr.f32.mxu0 %v28903_v25 }
 0x26b   :  { %13685 = vrot.lane.b32.xlu0 %v28956_v17, %s27932_s24 }
 0x26c   :  { %v28990_v39 = vld [vmem:[#allocation2 + $0x38] sm:$0xff] }
 0x26d   :  { %13709 = vrot.lane.b32.xlu1 %v28990_v39, %s27932_s24 }
 0x275   :  { %v4917_v45 = vpop.f32.mrb[30].mxu1 }
 0x276   :  { %v4927_v15 = vadd.f32 %v4917_v45, %v4605_v3  ;;  %v26933_v16 = vpop.f32.mrb[31].mxu1 }
 0x278   :  { %v8818_v50 = vpop.permute.xlu0 %8817 }
 0x288   :  { %v5257_v48 = vpop.f32.mrb[32].mxu1 }
 0x289   :  { %v5267_v6 = vadd.f32 %v5257_v48, %v4927_v15  ;;  %v26938_v18 = vpop.f32.mrb[33].mxu1 }
 0x298   :  { %v5581_v19 = vpop.f32.mrb[34].mxu1 }
 0x299   :  { %v5591_v20 = vadd.f32 %v5581_v19, %v5267_v6  ;;  %v26943_v21 = vpop.f32.mrb[35].mxu1  ;;  %v114_v6 = vsub.s32 6, %v89_v47  ;;  %v29003_v19 = vrot.slane %v86_v51, %v106_v11 }
 0x29b   :  { %32464 = vst [vmem:[#allocation20_spill] sm:$0xff] %v29003_v19 }
 0x2a9   :  { %v5906_v22 = vpop.f32.mrb[36].mxu1 }
 0x2aa   :  { %v5916_v23 = vadd.f32 %v5906_v22, %v5591_v20  ;;  %v26948_v24 = vpop.f32.mrb[37].mxu1  ;;  %v29006_v22 = vrot.slane %v86_v51, %v102_v57 }
 0x2ac   :  { %32465 = vst [vmem:[#allocation21_spill] sm:$0xff] %v29006_v22 }
 0x2b9   :  { %v6228_v26 = vpop.f32.mrb[38].mxu1 }
 0x2ba   :  { %v6238_v27 = vadd.f32 %v6228_v26, %v5916_v23  ;;  %v26953_v1 = vpop.f32.mrb[39].mxu1  ;;  %v110_v23 = vsub.s32 5, %v89_v47 }
 0x2c8   :  { %v6550_v28 = vpop.f32.mrb[40].mxu1 }
 0x2c9   :  { %v6560_v29 = vadd.f32 %v6550_v28, %v6238_v27  ;;  %v26958_v30 = vpop.f32.mrb[41].mxu1  ;;  %v29009_v28 = vrot.slane %v86_v51, %v114_v6 }
 0x2cb   :  { %32466 = vst [vmem:[#allocation22_spill] sm:$0xff] %v29009_v28 }
 0x2d8   :  { %v6872_v32 = vpop.f32.mrb[42].mxu1 }
 0x2d9   :  { %v6882_v2 = vadd.f32 %v6872_v32, %v6560_v29  ;;  %v26963_v33 = vpop.f32.mrb[43].mxu1 }
 0x2df   :  { %v29050_v47 = vpop.permute.xlu1 %13709 }
 0x2e0   :  { %32473 = vst [vmem:[#allocation29_spill] sm:$0xff] %v29050_v47 }
 0x2e8   :  { %v7194_v5 = vpop.f32.mrb[44].mxu1 }
 0x2e9   :  { %v7204_v34 = vadd.f32 %v7194_v5, %v6882_v2  ;;  %v26968_v35 = vpop.f32.mrb[45].mxu1  ;;  %v29014_v2 = vrot.slane %v86_v51, %v110_v23 }
 0x2ea   :  { %v29022_v35 = vpop.permute.xlu0 %8898 }
 0x2eb   :  { %32467 = vst [vmem:[#allocation23_spill] sm:$0xff] %v29014_v2 }
 0x2f8   :  { %v7516_v36 = vpop.f32.mrb[46].mxu1 }
 0x2f9   :  { %v7526_v37 = vadd.f32 %v7516_v36, %v7204_v34  ;;  %v26973_v38 = vpop.f32.mrb[47].mxu1  ;;  %v29024_v36 = vpop.permute.xlu0 %9504 }
 0x308   :  { %v7838_v8 = vpop.f32.mrb[48].mxu1 }
 0x309   :  { %v7848_v40 = vadd.f32 %v7838_v8, %v7526_v37  ;;  %v26978_v41 = vpop.f32.mrb[49].mxu1  ;;  %v29026_v37 = vpop.permute.xlu0 %9825 }
 0x30d   :  { %v29028_v38 = vpop.permute.xlu0 %10146 }
 0x30e   :  { %32468 = vst [vmem:[#allocation24_spill] sm:$0xff] %v29028_v38 }
 0x311   :  { %v29030_v8 = vpop.permute.xlu0 %10467 }
 0x318   :  { %v8160_v0 = vpop.f32.mrb[50].mxu1 }
 0x319   :  { %v8170_v42 = vadd.f32 %v8160_v0, %v7848_v40  ;;  %v26983_v43 = vpop.f32.mrb[51].mxu1  ;;  %v29032_v40 = vpop.permute.xlu0 %10788 }
 0x31d   :  { %v29034_v41 = vpop.permute.xlu0 %11109 }
 0x321   :  { %v29036_v0 = vpop.permute.xlu0 %11430 }
 0x328   :  { %v8482_v7 = vpop.f32.mrb[52].mxu1 }
 0x329   :  { %v8492_v4 = vadd.f32 %v8482_v7, %v8170_v42  ;;  %v26988_v46 = vpop.f32.mrb[53].mxu1  ;;  %v29038_v42 = vpop.permute.xlu0 %11751 }
 0x32d   :  { %v29040_v43 = vpop.permute.xlu0 %12072 }
 0x331   :  { %v29042_v7 = vpop.permute.xlu0 %12393 }
 0x332   :  { %32469 = vst [vmem:[#allocation25_spill] sm:$0xff] %v29042_v7 }
 0x333   :  { %v8662_v55 = vpop.f32.mrb[0].mxu1 }
 0x334   :  { %v8822_v58 = vadd.f32 %v8818_v50, %v8662_v55  ;;  %v8664_v59 = vpop.f32.mrb[1].mxu1  ;;  %v8591_v60 = vpop.f32.mrb[0].mxu0 }
 0x335   :  { %v8820_v63 = vadd.f32 %v8818_v50, %v8591_v60  ;;  %v8593_v9 = vpop.f32.mrb[1].mxu0  ;;  %v8823_v3 = vadd.f32 %v8818_v50, %v8664_v59  ;;  %v29044_v44 = vpop.permute.xlu0 %12714 }
 0x336   :  { %v8829_v52 = vmax.f32 %v8822_v58, 0.0  ;;  %v8821_v54 = vadd.f32 %v8818_v50, %v8593_v9  ;;  %32470 = vst [vmem:[#allocation26_spill] sm:$0xff] %v29044_v44 }
 0x337   :  { %v8827_v10 = vmax.f32 %v8820_v63, 0.0  ;;  %v8830_v24 = vmax.f32 %v8823_v3, 0.0 }
 0x338   :  { %v8836_v12 = vmul.f32 %v8829_v52, %v28994_v56  ;;  %v8804_v14 = vpop.f32.mrb[54].mxu1  ;;  %v8828_v45 = vmax.f32 %v8821_v54, 0.0 }
 0x339   :  { %v8834_v31 = vmul.f32 %v8827_v10, %v28996_v62  ;;  %v8814_v15 = vadd.f32 %v8804_v14, %v8492_v4  ;;  %v26993_v16 = vpop.f32.mrb[55].mxu1  ;;  %v8837_v32 = vmul.f32 %v8830_v24, %v29006_v22  ;;  %v29046_v4 = vpop.permute.xlu0 %13035 }
 0x33a   :  { %v8733_v48 = vpop.f32.mrb[2].mxu0  ;;  %8852 = vrot.lane.b32.xlu0 %v8836_v12, %s32342_s2  ;;  %v8835_v26 = vmul.f32 %v8828_v45, %v28999_v13  ;;  %32471 = vst [vmem:[#allocation27_spill] sm:$0xff] %v29046_v4 }
 0x33b   :  { %v8826_v18 = vadd.f32 %v8818_v50, %v8814_v15  ;;  %v8824_v20 = vadd.f32 %v8818_v50, %v8733_v48  ;;  %v8735_v21 = vpop.f32.mrb[3].mxu0  ;;  %8848 = vrot.lane.b32.xlu1 %v8834_v31, %s32342_s2 }
 0x33c   :  { %v8825_v1 = vadd.f32 %v8818_v50, %v8735_v21 }
 0x33d   :  { %v8831_v27 = vmax.f32 %v8824_v20, 0.0  ;;  %v8833_v29 = vmax.f32 %v8826_v18, 0.0  ;;  %v29048_v46 = vpop.permute.xlu0 %13356 }
 0x33e   :  { %v8832_v33 = vmax.f32 %v8825_v1, 0.0  ;;  %32472 = vst [vmem:[#allocation28_spill] sm:$0xff] %v29048_v46 }
 0x33f   :  { %v8838_v30 = vmul.f32 %v8831_v27, %v29003_v19  ;;  %8850 = vrot.lane.b32.xlu1 %v8835_v26, %s32342_s2  ;;  %v8840_v5 = vmul.f32 %v8833_v29, %v29009_v28 }
 0x340   :  { %v8839_v34 = vmul.f32 %v8832_v33, %v29014_v2 }
 0x341   :  { %8856 = vrot.lane.b32.xlu0 %v8838_v30, %s32342_s2  ;;  %v29052_v49 = vpop.permute.xlu0 %13685 }
 0x342   :  { %32474 = vst [vmem:[#allocation30_spill] sm:$0xff] %v29052_v49 }
 0x343   :  { %8854 = vrot.lane.b32.xlu1 %v8837_v32, %s32342_s2 }
 0x345   :  { %8860 = vrot.lane.b32.xlu0 %v8840_v5, %s32342_s2 }
 0x347   :  { %8858 = vrot.lane.b32.xlu1 %v8839_v34, %s32342_s2  ;;  %s32475_s2 = smov 7  }
 0x3ac   :  { %v8853_v51 = vpop.permute.xlu0 %8852 }
 0x3ad   :  { %v8849_v50 = vpop.permute.xlu1 %8848 }
 0x3ae   :  { %8877 = vst.msk [vmem:[#allocation2] sm:$0xff] %vm32341_vm15, %v8849_v50  ;;  %vm8883_vm15 = vcmask 990208  }
 0x3b1   :  { %v8851_v53 = vpop.permute.xlu1 %8850 }
 0x3b2   :  { %v29056_v55 = vsel %vm8862_vm14, %v8849_v50, %v8851_v53  ;;  %v29059_v58 = vsel %vm8862_vm14, %v8851_v53, %v8853_v51 }
 0x3b3   :  { %8878 = vst [vmem:[#allocation2 + $0x8] sm:$0xff] %v29056_v55  ;;  %8879 = vst [vmem:[#allocation2 + $0x10] sm:$0xff] %v29059_v58  ;;  %v8857_v59 = vpop.permute.xlu0 %8856  ;;  %8911 = vrot.lane.b32.xlu0 %v29059_v58, %s32350_s3 }
 0x3b5   :  { %v29065_v60 = vld [vmem:[#allocation2] sm:$0xff]  ;;  %v8855_v61 = vpop.permute.xlu1 %8854 }
 0x3b6   :  { %v29068_v63 = vsel %vm8862_vm14, %v8853_v51, %v8855_v61  ;;  %v29071_v9 = vsel %vm8862_vm14, %v8855_v61, %v8857_v59  ;;  %8907 = vrot.lane.b32.xlu1 %v29065_v60, %s32350_s3 }
 0x3b7   :  { %8880 = vst [vmem:[#allocation2 + $0x18] sm:$0xff] %v29068_v63  ;;  %8881 = vst [vmem:[#allocation2 + $0x20] sm:$0xff] %v29071_v9  ;;  %9510 = vrot.lane.b32.xlu0 %v29059_v58, %s27937_s14  ;;  %v8861_v52 = vpop.permute.xlu0 %8860 }
 0x3b9   :  { %v8859_v54 = vpop.permute.xlu1 %8858 }
 0x3ba   :  { %v29080_v10 = vsel %vm8862_vm14, %v8857_v59, %v8859_v54  ;;  %v8868_v11 = vsel %vm8862_vm14, %v8859_v54, %v8861_v52  ;;  %9506 = vrot.lane.b32.xlu1 %v29065_v60, %s27937_s14 }
 0x3bb   :  { %8882 = vst [vmem:[#allocation2 + $0x28] sm:$0xff] %v29080_v10  ;;  %8884 = vst.msk [vmem:[#allocation2 + $0x30] sm:$0xff] %vm8883_vm15, %v8868_v11  ;;  %9831 = vrot.lane.b32.xlu0 %v29059_v58, %s27939_s16 }
 0x3be   :  { %9827 = vrot.lane.b32.xlu1 %v29065_v60, %s27939_s16 }
 0x3bf   :  { %10152 = vrot.lane.b32.xlu0 %v29059_v58, %s27941_s18 }
 0x3c2   :  { %10148 = vrot.lane.b32.xlu1 %v29065_v60, %s27941_s18  ;;  %v29211_v45 = vld [vmem:[#allocation2 + $0x30] sm:$0xff] }
 0x3c3   :  { %10473 = vrot.lane.b32.xlu0 %v29059_v58, %s27943_s20 }
 0x3c6   :  { %10469 = vrot.lane.b32.xlu1 %v29065_v60, %s27943_s20 }
 0x3c7   :  { %10794 = vrot.lane.b32.xlu0 %v29059_v58, %s27945_s22 }
 0x3ca   :  { %10790 = vrot.lane.b32.xlu1 %v29065_v60, %s27945_s22 }
 0x3cb   :  { %11115 = vrot.lane.b32.xlu0 %v29059_v58, %s27947_s0 }
 0x3ce   :  { %11111 = vrot.lane.b32.xlu1 %v29065_v60, %s27947_s0 }
 0x3cf   :  { %11436 = vrot.lane.b32.xlu0 %v29059_v58, %s32400_s27 }
 0x3d2   :  { %11432 = vrot.lane.b32.xlu1 %v29065_v60, %s32400_s27 }
 0x3d3   :  { %11757 = vrot.lane.b32.xlu0 %v29059_v58, %s32394_s29 }
 0x3d6   :  { %11753 = vrot.lane.b32.xlu1 %v29065_v60, %s32394_s29 }
 0x3d7   :  { %12078 = vrot.lane.b32.xlu0 %v29059_v58, %s32360_s5 }
 0x3da   :  { %12074 = vrot.lane.b32.xlu1 %v29065_v60, %s32360_s5 }
 0x3db   :  { %12399 = vrot.lane.b32.xlu0 %v29059_v58, %s32386_s8 }
 0x3de   :  { %12395 = vrot.lane.b32.xlu1 %v29065_v60, %s32386_s8 }
 0x3df   :  { %12720 = vrot.lane.b32.xlu0 %v29059_v58, %s32377_s10 }
 0x3e2   :  { %12716 = vrot.lane.b32.xlu1 %v29065_v60, %s32377_s10 }
 0x3e3   :  { %13041 = vrot.lane.b32.xlu0 %v29059_v58, %s32370_s12 }
 0x3e6   :  { %13037 = vrot.lane.b32.xlu1 %v29065_v60, %s32370_s12 }
 0x3e7   :  { %13362 = vrot.lane.b32.xlu0 %v29059_v58, %s27928_s26 }
 0x3ea   :  { %13358 = vrot.lane.b32.xlu1 %v29065_v60, %s27928_s26 }
 0x3eb   :  { %13699 = vrot.lane.b32.xlu0 %v29059_v58, %s27932_s24 }
 0x3ee   :  { %13695 = vrot.lane.b32.xlu1 %v29065_v60, %s27932_s24 }
 0x3ef   :  { %14019 = vrot.lane.b32.xlu0 %v29056_v55, %s32475_s2 }
 0x3f2   :  { %8909 = vrot.lane.b32.xlu1 %v29056_v55, %s32350_s3 }
 0x3f3   :  { %8915 = vrot.lane.b32.xlu0 %v29071_v9, %s32350_s3 }
 0x3f6   :  { %8913 = vrot.lane.b32.xlu1 %v29068_v63, %s32350_s3 }
 0x3f7   :  { %9514 = vrot.lane.b32.xlu0 %v29071_v9, %s27937_s14 }
 0x3fa   :  { %9508 = vrot.lane.b32.xlu1 %v29056_v55, %s27937_s14 }
 0x3fb   :  { %9835 = vrot.lane.b32.xlu0 %v29071_v9, %s27939_s16 }
 0x3fe   :  { %9512 = vrot.lane.b32.xlu1 %v29068_v63, %s27937_s14 }
 0x3ff   :  { %10156 = vrot.lane.b32.xlu0 %v29071_v9, %s27941_s18 }
 0x402   :  { %9829 = vrot.lane.b32.xlu1 %v29056_v55, %s27939_s16 }
 0x403   :  { %10477 = vrot.lane.b32.xlu0 %v29071_v9, %s27943_s20 }
 0x406   :  { %9833 = vrot.lane.b32.xlu1 %v29068_v63, %s27939_s16 }
 0x407   :  { %10798 = vrot.lane.b32.xlu0 %v29071_v9, %s27945_s22 }
 0x40a   :  { %10150 = vrot.lane.b32.xlu1 %v29056_v55, %s27941_s18 }
 0x40b   :  { %11119 = vrot.lane.b32.xlu0 %v29071_v9, %s27947_s0 }
 0x40e   :  { %10154 = vrot.lane.b32.xlu1 %v29068_v63, %s27941_s18 }
 0x40f   :  { %11440 = vrot.lane.b32.xlu0 %v29071_v9, %s32400_s27 }
 0x412   :  { %10471 = vrot.lane.b32.xlu1 %v29056_v55, %s27943_s20 }
 0x413   :  { %11761 = vrot.lane.b32.xlu0 %v29071_v9, %s32394_s29 }
 0x416   :  { %10475 = vrot.lane.b32.xlu1 %v29068_v63, %s27943_s20 }
 0x417   :  { %12082 = vrot.lane.b32.xlu0 %v29071_v9, %s32360_s5 }
 0x41a   :  { %10792 = vrot.lane.b32.xlu1 %v29056_v55, %s27945_s22 }
 0x41b   :  { %12403 = vrot.lane.b32.xlu0 %v29071_v9, %s32386_s8 }
 0x41e   :  { %10796 = vrot.lane.b32.xlu1 %v29068_v63, %s27945_s22 }
 0x41f   :  { %12724 = vrot.lane.b32.xlu0 %v29071_v9, %s32377_s10 }
 0x422   :  { %11113 = vrot.lane.b32.xlu1 %v29056_v55, %s27947_s0 }
 0x423   :  { %13045 = vrot.lane.b32.xlu0 %v29071_v9, %s32370_s12 }
 0x425   :  { %v29193_v12 = vpop.permute.xlu0 %8911 }
 0x426   :  { %11117 = vrot.lane.b32.xlu1 %v29068_v63, %s27947_s0 }
 0x427   :  { %13366 = vrot.lane.b32.xlu0 %v29071_v9, %s27928_s26 }
 0x428   :  { %v29199_v57 = vpop.permute.xlu1 %8907 }
 0x429   :  { %v29201_v14 = vpop.permute.xlu0 %9510 }
 0x42a   :  { %11434 = vrot.lane.b32.xlu1 %v29056_v55, %s32400_s27 }
 0x42b   :  { %13703 = vrot.lane.b32.xlu0 %v29071_v9, %s27932_s24 }
 0x42c   :  { %v29207_v3 = vpop.permute.xlu1 %9506 }
 0x42d   :  { %v29209_v31 = vpop.permute.xlu0 %9831 }
 0x42e   :  { %11438 = vrot.lane.b32.xlu1 %v29068_v63, %s32400_s27 }
 0x42f   :  { %8919 = vrot.lane.b32.xlu0 %v29211_v45, %s32350_s3 }
 0x430   :  { %v29217_v15 = vpop.permute.xlu1 %9827 }
 0x431   :  { %v29219_v16 = vpop.permute.xlu0 %10152 }
 0x432   :  { %11755 = vrot.lane.b32.xlu1 %v29056_v55, %s32394_s29 }
 0x433   :  { %9518 = vrot.lane.b32.xlu0 %v29211_v45, %s27937_s14 }
 0x434   :  { %v29225_v48 = vpop.permute.xlu1 %10148 }
 0x435   :  { %32476 = vst [vmem:[#allocation31_spill] sm:$0xff] %v29225_v48  ;;  %v29227_v6 = vpop.permute.xlu0 %10473 }
 0x436   :  { %11759 = vrot.lane.b32.xlu1 %v29068_v63, %s32394_s29 }
 0x437   :  { %9839 = vrot.lane.b32.xlu0 %v29211_v45, %s27939_s16 }
 0x438   :  { %v29233_v18 = vpop.permute.xlu1 %10469 }
 0x439   :  { %32477 = vst [vmem:[#allocation32_spill] sm:$0xff] %v29233_v18  ;;  %v29235_v20 = vpop.permute.xlu0 %10794 }
 0x43a   :  { %12076 = vrot.lane.b32.xlu1 %v29056_v55, %s32360_s5 }
 0x43b   :  { %10160 = vrot.lane.b32.xlu0 %v29211_v45, %s27941_s18 }
 0x43c   :  { %v29241_v21 = vpop.permute.xlu1 %10790 }
 0x43d   :  { %32478 = vst [vmem:[#allocation33_spill] sm:$0xff] %v29241_v21  ;;  %v29243_v23 = vpop.permute.xlu0 %11115 }
 0x43e   :  { %12080 = vrot.lane.b32.xlu1 %v29068_v63, %s32360_s5 }
 0x43f   :  { %10481 = vrot.lane.b32.xlu0 %v29211_v45, %s27943_s20 }
 0x440   :  { %v29249_v24 = vpop.permute.xlu1 %11111 }
 0x441   :  { %32479 = vst [vmem:[#allocation34_spill] sm:$0xff] %v29249_v24  ;;  %v29251_v26 = vpop.permute.xlu0 %11436 }
 0x442   :  { %12397 = vrot.lane.b32.xlu1 %v29056_v55, %s32386_s8 }
 0x443   :  { %10802 = vrot.lane.b32.xlu0 %v29211_v45, %s27945_s22 }
 0x444   :  { %v29257_v27 = vpop.permute.xlu1 %11432 }
 0x445   :  { %32480 = vst [vmem:[#allocation35_spill] sm:$0xff] %v29257_v27  ;;  %v29259_v1 = vpop.permute.xlu0 %11757  ;;  %v29415_v27 = vld [vmem:[#allocation7 + $0x18] sm:$0xff] }
 0x446   :  { %12401 = vrot.lane.b32.xlu1 %v29068_v63, %s32386_s8 }
 0x447   :  { %11123 = vrot.lane.b32.xlu0 %v29211_v45, %s27947_s0 }
 0x448   :  { %v29265_v29 = vpop.permute.xlu1 %11753 }
 0x449   :  { %32481 = vst [vmem:[#allocation36_spill] sm:$0xff] %v29265_v29  ;;  %v29267_v30 = vpop.permute.xlu0 %12078 }
 0x44a   :  { %12718 = vrot.lane.b32.xlu1 %v29056_v55, %s32377_s10 }
 0x44b   :  { %11444 = vrot.lane.b32.xlu0 %v29211_v45, %s32400_s27 }
 0x44c   :  { %v29273_v32 = vpop.permute.xlu1 %12074 }
 0x44d   :  { %32482 = vst [vmem:[#allocation37_spill] sm:$0xff] %v29273_v32  ;;  %v29275_v33 = vpop.permute.xlu0 %12399 }
 0x44e   :  { %12722 = vrot.lane.b32.xlu1 %v29068_v63, %s32377_s10 }
 0x44f   :  { %11765 = vrot.lane.b32.xlu0 %v29211_v45, %s32394_s29 }
 0x450   :  { %v29281_v5 = vpop.permute.xlu1 %12395 }
 0x451   :  { %32483 = vst [vmem:[#allocation38_spill] sm:$0xff] %v29281_v5  ;;  %v29283_v34 = vpop.permute.xlu0 %12720 }
 0x452   :  { %32484 = vst [vmem:[#allocation39_spill] sm:$0xff] %v29283_v34  ;;  %13039 = vrot.lane.b32.xlu1 %v29056_v55, %s32370_s12 }
 0x453   :  { %12086 = vrot.lane.b32.xlu0 %v29211_v45, %s32360_s5 }
 0x454   :  { %v29289_v50 = vpop.permute.xlu1 %12716 }
 0x455   :  { %32485 = vst [vmem:[#allocation40_spill] sm:$0xff] %v29289_v50  ;;  %v29291_v51 = vpop.permute.xlu0 %13041 }
 0x456   :  { %32486 = vst [vmem:[#allocation41_spill] sm:$0xff] %v29291_v51  ;;  %13043 = vrot.lane.b32.xlu1 %v29068_v63, %s32370_s12 }
 0x457   :  { %12407 = vrot.lane.b32.xlu0 %v29211_v45, %s32386_s8 }
 0x458   :  { %v29297_v53 = vpop.permute.xlu1 %13037 }
 0x459   :  { %32487 = vst [vmem:[#allocation42_spill] sm:$0xff] %v29297_v53  ;;  %v29299_v59 = vpop.permute.xlu0 %13362 }
 0x45a   :  { %32488 = vst [vmem:[#allocation43_spill] sm:$0xff] %v29299_v59  ;;  %13360 = vrot.lane.b32.xlu1 %v29056_v55, %s27928_s26 }
 0x45b   :  { %12728 = vrot.lane.b32.xlu0 %v29211_v45, %s32377_s10 }
 0x45c   :  { %v29305_v61 = vpop.permute.xlu1 %13358 }
 0x45d   :  { %32489 = vst [vmem:[#allocation44_spill] sm:$0xff] %v29305_v61  ;;  %v29307_v52 = vpop.permute.xlu0 %13699 }
 0x45e   :  { %32490 = vst [vmem:[#allocation45_spill] sm:$0xff] %v29307_v52  ;;  %13364 = vrot.lane.b32.xlu1 %v29068_v63, %s27928_s26 }
 0x45f   :  { %13049 = vrot.lane.b32.xlu0 %v29211_v45, %s32370_s12 }
 0x460   :  { %v29313_v54 = vpop.permute.xlu1 %13695 }
 0x461   :  { %32491 = vst [vmem:[#allocation46_spill] sm:$0xff] %v29313_v54  ;;  %v29315_v11 = vpop.permute.xlu0 %14019 }
 0x462   :  { %32492 = vst [vmem:[#allocation47_spill] sm:$0xff] %v29315_v11  ;;  %13697 = vrot.lane.b32.xlu1 %v29056_v55, %s27932_s24 }
 0x463   :  { %13370 = vrot.lane.b32.xlu0 %v29211_v45, %s27928_s26 }
 0x464   :  { %v8910_v28 = vpop.permute.xlu1 %8909 }
 0x465   :  { %v8922_v2 = vsel %vm157_vm0, %v8910_v28, %v29193_v12  ;;  %v8921_v19 = vsel %vm157_vm0, %v29199_v57, %v8910_v28  ;;  %v29325_v22 = vpop.permute.xlu0 %8915 }
 0x466   :  { %13701 = vrot.lane.b32.xlu1 %v29068_v63, %s27932_s24  ;;  %8936 = vmatprep.subr.mxu0 %v8922_v2 }
 0x467   :  { %8937 = vmatpush1.msra.mxu0 %v8921_v19  ;;  %13707 = vrot.lane.b32.xlu0 %v29211_v45, %s27932_s24 }
 0x468   :  { %26481 = vmatmul.mubr.msk.f32.vlgmr.msra.gmra.mrb[4].mxu0 %vm171_vm1, %v29022_v35  ;;  %v8914_v56 = vpop.permute.xlu1 %8913 }
 0x469   :  { %v8924_v13 = vsel %vm157_vm0, %v8914_v56, %v29325_v22  ;;  %v8923_v28 = vsel %vm157_vm0, %v29193_v12, %v8914_v56  ;;  %v29337_v57 = vpop.permute.xlu0 %9514  ;;  %9142 = vmatprep.mubr.f32.mxu0 %v28903_v25 }
 0x46a   :  { %14021 = vrot.lane.b32.xlu1 %v29059_v58, %s32475_s2  ;;  %9007 = vmatprep.subr.mxu1 %v8924_v13 }
 0x46b   :  { %9008 = vmatpush1.msra.mxu1 %v8923_v28  ;;  %14017 = vrot.lane.b32.xlu0 %v29065_v60, %s32475_s2 }
 0x46c   :  { %v29344_v19 = vpop.permute.xlu1 %9508  ;;  %26482 = vmatmul.mubr.msk.f32.vlgmr.msra.gmra.mrb[56].mxu1 %vm171_vm1, %v29022_v35  ;;  %26994 = vmatprep.subr.mxu1 %v28903_v25 }
 0x46d   :  { %v29349_v56 = vpop.permute.xlu0 %9835  ;;  %26996 = vmatprep.mubr.msk.f32.mxu1 %vm27951_vm2, %v28903_v25 }
 0x46e   :  { %8917 = vrot.lane.b32.xlu1 %v29080_v10, %s32350_s3  ;;  %s32495_s3 = smov 6  }
 0x46f   :  { %14025 = vrot.lane.b32.xlu0 %v29071_v9, %s32475_s2 }
 0x470   :  { %v29357_v13 = vpop.permute.xlu1 %9512 }
 0x471   :  { %v29359_v2 = vpop.permute.xlu0 %10156  ;;  %v9522_v34 = vsel %vm758_vm3, %v29201_v14, %v29357_v13 }
 0x472   :  { %32493 = vst [vmem:[#allocation48_spill] sm:$0xff] %v29359_v2  ;;  %9516 = vrot.lane.b32.xlu1 %v29080_v10, %s27937_s14 }
 0x473   :  { %14029 = vrot.lane.b32.xlu0 %v29211_v45, %s32475_s2 }
 0x474   :  { %v29365_v12 = vpop.permute.xlu1 %9829 }
 0x475   :  { %v29367_v28 = vpop.permute.xlu0 %10477 }
 0x476   :  { %32494 = vst [vmem:[#allocation49_spill] sm:$0xff] %v29367_v28  ;;  %9837 = vrot.lane.b32.xlu1 %v29080_v10, %s27939_s16 }
 0x477   :  { %14344 = vrot.lane.b32.xlu0 %v29056_v55, %s32495_s3 }
 0x478   :  { %v29373_v62 = vpop.permute.xlu1 %9833 }
 0x479   :  { %v29375_v11 = vpop.permute.xlu0 %10798 }
 0x47a   :  { %32496 = vst [vmem:[#allocation50_spill] sm:$0xff] %v29375_v11  ;;  %10158 = vrot.lane.b32.xlu1 %v29080_v10, %s27941_s18 }
 0x47b   :  { %14342 = vrot.lane.b32.xlu0 %v29065_v60, %s32495_s3 }
 0x47c   :  { %v29381_v54 = vpop.permute.xlu1 %10150 }
 0x47d   :  { %v29383_v61 = vpop.permute.xlu0 %11119 }
 0x47e   :  { %32497 = vst [vmem:[#allocation51_spill] sm:$0xff] %v29383_v61  ;;  %10479 = vrot.lane.b32.xlu1 %v29080_v10, %s27943_s20 }
 0x47f   :  { %14348 = vrot.lane.b32.xlu0 %v29068_v63, %s32495_s3 }
 0x480   :  { %v29389_v53 = vpop.permute.xlu1 %10154 }
 0x481   :  { %v29391_v50 = vpop.permute.xlu0 %11440 }
 0x482   :  { %32498 = vst [vmem:[#allocation52_spill] sm:$0xff] %v29391_v50  ;;  %10800 = vrot.lane.b32.xlu1 %v29080_v10, %s27945_s22 }
 0x483   :  { %14352 = vrot.lane.b32.xlu0 %v29080_v10, %s32495_s3 }
 0x484   :  { %v29397_v5 = vpop.permute.xlu1 %10471 }
 0x485   :  { %32499 = vst [vmem:[#allocation53_spill] sm:$0xff] %v29397_v5  ;;  %v29399_v32 = vpop.permute.xlu0 %11761 }
 0x486   :  { %11121 = vrot.lane.b32.xlu1 %v29080_v10, %s27947_s0 }
 0x487   :  { %14356 = vrot.lane.b32.xlu0 %v28990_v39, %s32495_s3 }
 0x488   :  { %v29405_v29 = vpop.permute.xlu1 %10475 }
 0x489   :  { %v29407_v47 = vpop.permute.xlu0 %12082 }
 0x48a   :  { %11442 = vrot.lane.b32.xlu1 %v29080_v10, %s32400_s27  ;;  %s32528_s27 = smov 36  }
 0x48b   :  { %14670 = vrot.lane.b32.xlu0 %v29068_v63, %s27953_s30 }
 0x48c   :  { %v29413_v49 = vpop.permute.xlu1 %10792 }
 0x48d   :  { %32500 = vst [vmem:[#allocation54_spill] sm:$0xff] %v29413_v49  ;;  %v29417_v52 = vpop.permute.xlu0 %12403 }
 0x48e   :  { %11763 = vrot.lane.b32.xlu1 %v29080_v10, %s32394_s29  ;;  %s32522_s29 = smov 44  }
 0x48f   :  { %14664 = vrot.lane.b32.xlu0 %v29415_v27, %s27938_s15 }
 0x490   :  { %v29423_v46 = vpop.permute.xlu1 %10796 }
 0x491   :  { %v29425_v24 = vpop.permute.xlu0 %12724 }
 0x492   :  { %32501 = vst [vmem:[#allocation55_spill] sm:$0xff] %v29425_v24  ;;  %12084 = vrot.lane.b32.xlu1 %v29080_v10, %s32360_s5  ;;  %s32505_s5 = smov 55  }
 0x493   :  { %14674 = vrot.lane.b32.xlu0 %v29080_v10, %s27953_s30 }
 0x494   :  { %v29431_v59 = vpop.permute.xlu1 %11113 }
 0x495   :  { %32502 = vst [vmem:[#allocation56_spill] sm:$0xff] %v29431_v59  ;;  %v29433_v4 = vpop.permute.xlu0 %13045 }
 0x496   :  { %32503 = vst [vmem:[#allocation57_spill] sm:$0xff] %v29433_v4  ;;  %12405 = vrot.lane.b32.xlu1 %v29080_v10, %s32386_s8  ;;  %s32517_s8 = smov 45  }
 0x497   :  { %14678 = vrot.lane.b32.xlu0 %v28990_v39, %s27953_s30 }
 0x498   :  { %v29439_v21 = vpop.permute.xlu1 %11117 }
 0x499   :  { %v29441_v51 = vpop.permute.xlu0 %13366 }
 0x49a   :  { %32504 = vst [vmem:[#allocation58_spill] sm:$0xff] %v29441_v51  ;;  %12726 = vrot.lane.b32.xlu1 %v29080_v10, %s32377_s10  ;;  %v9523_v51 = vsel %vm758_vm3, %v29357_v13, %v29337_v57  ;;  %s32512_s10 = smov 46  }
 0x49b   :  { %14991 = vrot.lane.b32.xlu0 %v29068_v63, %s32505_s5 }
 0x49c   :  { %v29447_v49 = vpop.permute.xlu1 %11434 }
 0x49d   :  { %32506 = vst [vmem:[#allocation59_spill] sm:$0xff] %v29447_v49  ;;  %v29449_v59 = vpop.permute.xlu0 %13703 }
 0x49e   :  { %32507 = vst [vmem:[#allocation60_spill] sm:$0xff] %v29449_v59  ;;  %13047 = vrot.lane.b32.xlu1 %v29080_v10, %s32370_s12  ;;  %s32509_s12 = smov 54  }
 0x49f   :  { %14985 = vrot.lane.b32.xlu0 %v29415_v27, %s27940_s17 }
 0x4a0   :  { %v29455_v4 = vpop.permute.xlu1 %11438 }
 0x4a1   :  { %v29457_v44 = vpop.permute.xlu0 %8919 }
 0x4a2   :  { %13368 = vrot.lane.b32.xlu1 %v29080_v10, %s27928_s26  ;;  %26995 = vmatpush3.msra.mxu1 %v29457_v44 }
 0x4a3   :  { %14995 = vrot.lane.b32.xlu0 %v29080_v10, %s32505_s5  ;;  %26997 = vmatmul.mubr.msk.f32.vlgmr.msra.gmra.mrb[58].mxu1 %vm171_vm1, %v29022_v35 }
 0x4a4   :  { %v29466_v49 = vpop.permute.xlu1 %11755  ;;  %9292 = vmatprep.subr.mxu1 %v29068_v63  ;;  %9356 = vmatprep.mubr.f32.mxu1 %v28903_v25 }
 0x4a5   :  { %32508 = vst [vmem:[#allocation61_spill] sm:$0xff] %v29466_v49  ;;  %9293 = vmatpush1.msra.mxu1 %v29059_v58  ;;  %v29471_v59 = vpop.permute.xlu0 %9518 }
 0x4a6   :  { %13705 = vrot.lane.b32.xlu1 %v29080_v10, %s27932_s24  ;;  %26999 = vmatprep.subr.mxu1 %v28903_v25 }
 0x4a7   :  { %14999 = vrot.lane.b32.xlu0 %v28990_v39, %s32505_s5  ;;  %26486 = vmatmul.mubr.msk.f32.vlgmr.msra.gmra.mrb[56].mxu1 %vm171_vm1, %v28956_v17 }
 0x4a8   :  { %v29480_v49 = vpop.permute.xlu1 %11759  ;;  %27000 = vmatpush3.msra.mxu1 %v29211_v45  ;;  %27001 = vmatprep.mubr.msk.f32.mxu1 %vm27951_vm2, %v28903_v25 }
 0x4a9   :  { %9606 = vmatprep.subr.mxu1 %v9523_v51  ;;  %v29488_v18 = vpop.permute.xlu0 %9839 }
 0x4aa   :  { %14023 = vrot.lane.b32.xlu1 %v29068_v63, %s32475_s2 }
 0x4ab   :  { %15312 = vrot.lane.b32.xlu0 %v29068_v63, %s32509_s12  ;;  %27002 = vmatmul.mubr.msk.f32.vlgmr.msra.gmra.mrb[60].mxu1 %vm171_vm1, %v28956_v17 }
 0x4ac   :  { %v29499_v5 = vpop.permute.xlu1 %12076  ;;  %9607 = vmatpush1.msra.mxu1 %v9522_v34  ;;  %9670 = vmatprep.mubr.f32.mxu1 %v28903_v25  ;;  %v9844_v34 = vsel %vm1080_vm4, %v29373_v62, %v29349_v56 }
 0x4ad   :  { %32510 = vst [vmem:[#allocation62_spill] sm:$0xff] %v29499_v5  ;;  %v29502_v51 = vpop.permute.xlu0 %10160  ;;  %27004 = vmatprep.subr.mxu1 %v28903_v25  ;;  %v9843_v5 = vsel %vm1080_vm4, %v29209_v31, %v29373_v62  ;;  %v10165_v62 = vsel %vm32402_vm5, %v29389_v53, %v29359_v2 }
 0x4ae   :  { %14027 = vrot.lane.b32.xlu1 %v29080_v10, %s32475_s2 }
 0x4af   :  { %15306 = vrot.lane.b32.xlu0 %v29415_v27, %s27942_s19  ;;  %26490 = vmatmul.mubr.msk.f32.vlgmr.msra.gmra.mrb[56].mxu1 %vm171_vm1, %v29024_v36 }
 0x4b0   :  { %v29511_v24 = vpop.permute.xlu1 %12080  ;;  %27005 = vmatpush3.msra.mxu1 %v29471_v59  ;;  %27006 = vmatprep.mubr.msk.f32.mxu1 %vm27951_vm2, %v28903_v25 }
 0x4b1   :  { %9927 = vmatprep.subr.mxu1 %v9844_v34  ;;  %v29519_v13 = vpop.permute.xlu0 %10481 }
 0x4b2   :  { %14031 = vrot.lane.b32.xlu1 %v28990_v39, %s32475_s2 }
 0x4b3   :  { %15316 = vrot.lane.b32.xlu0 %v29080_v10, %s32509_s12  ;;  %27007 = vmatmul.mubr.msk.f32.vlgmr.msra.gmra.mrb[62].mxu1 %vm171_vm1, %v29024_v36 }
 0x4b4   :  { %v29530_v7 = vpop.permute.xlu1 %12397  ;;  %9928 = vmatpush1.msra.mxu1 %v9843_v5  ;;  %9991 = vmatprep.mubr.f32.mxu1 %v28903_v25 }
 0x4b5   :  { %32511 = vst [vmem:[#allocation63_spill] sm:$0xff] %v29530_v7  ;;  %v29533_v34 = vpop.permute.xlu0 %10802  ;;  %27009 = vmatprep.subr.mxu1 %v28903_v25  ;;  %v10164_v7 = vsel %vm32402_vm5, %v29219_v16, %v29389_v53 }
 0x4b6   :  { %14346 = vrot.lane.b32.xlu1 %v29059_v58, %s32495_s3 }
 0x4b7   :  { %15320 = vrot.lane.b32.xlu0 %v28990_v39, %s32509_s12  ;;  %26494 = vmatmul.mubr.msk.f32.vlgmr.msra.gmra.mrb[56].mxu1 %vm171_vm1, %v29026_v37 }
 0x4b8   :  { %v29542_v48 = vpop.permute.xlu1 %12401  ;;  %27010 = vmatpush3.msra.mxu1 %v29488_v18  ;;  %27011 = vmatprep.mubr.msk.f32.mxu1 %vm27951_vm2, %v28903_v25  ;;  %v29563_v25 = vld [vmem:[#allocation3] sm:$0xff] }
 0x4b9   :  { %10248 = vmatprep.subr.mxu1 %v10165_v62  ;;  %v29550_v5 = vpop.permute.xlu0 %11123 }
 0x4ba   :  { %14340 = vrot.lane.b32.xlu1 %v29415_v27, %s27936_s1 }
 0x4bb   :  { %15633 = vrot.lane.b32.xlu0 %v29068_v63, %s32512_s10  ;;  %27012 = vmatmul.mubr.msk.f32.vlgmr.msra.gmra.mrb[64].mxu1 %vm171_vm1, %v29026_v37 }
 0x4bc   :  { %v29561_v2 = vpop.permute.xlu1 %12718  ;;  %10249 = vmatpush1.msra.mxu1 %v10164_v7  ;;  %10312 = vmatprep.mubr.f32.mxu1 %v29563_v25  ;;  %v10486_v7 = vsel %vm1724_vm6, %v29405_v29, %v29367_v28 }
 0x4bd   :  { %32513 = vst [vmem:[#allocation64_spill] sm:$0xff] %v29561_v2  ;;  %v29566_v62 = vpop.permute.xlu0 %11444  ;;  %27014 = vmatprep.subr.mxu1 %v29563_v25 }
 0x4be   :  { %14350 = vrot.lane.b32.xlu1 %v29071_v9, %s32495_s3 }
 0x4bf   :  { %15627 = vrot.lane.b32.xlu0 %v29415_v27, %s27944_s21  ;;  %26498 = vmatmul.mubr.msk.f32.vlgmr.msra.gmra.mrb[56].mxu1 %vm171_vm1, %v29028_v38 }
 0x4c0   :  { %v29575_v53 = vpop.permute.xlu1 %12722  ;;  %27015 = vmatpush3.msra.mxu1 %v29502_v51  ;;  %27016 = vmatprep.mubr.msk.f32.mxu1 %vm27951_vm2, %v29563_v25 }
 0x4c1   :  { %32514 = vst [vmem:[#allocation65_spill] sm:$0xff] %v29575_v53  ;;  %10569 = vmatprep.subr.mxu1 %v10486_v7  ;;  %v29583_v2 = vpop.permute.xlu0 %11765  ;;  %v10485_v53 = vsel %vm1724_vm6, %v29227_v6, %v29405_v29  ;;  %v10807_v29 = vsel %vm2046_vm7, %v29423_v46, %v29375_v11 }
 0x4c2   :  { %14354 = vrot.lane.b32.xlu1 %v29211_v45, %s32495_s3 }
 0x4c3   :  { %15637 = vrot.lane.b32.xlu0 %v29080_v10, %s32512_s10  ;;  %27017 = vmatmul.mubr.msk.f32.vlgmr.msra.gmra.mrb[66].mxu1 %vm171_vm1, %v29028_v38 }
 0x4c4   :  { %v29594_v28 = vpop.permute.xlu1 %13039  ;;  %10570 = vmatpush1.msra.mxu1 %v10485_v53  ;;  %10633 = vmatprep.mubr.f32.mxu1 %v29563_v25 }
 0x4c5   :  { %32515 = vst [vmem:[#allocation66_spill] sm:$0xff] %v29594_v28  ;;  %v29597_v7 = vpop.permute.xlu0 %12086  ;;  %27019 = vmatprep.subr.mxu1 %v29563_v25  ;;  %v10806_v28 = vsel %vm2046_vm7, %v29235_v20, %v29423_v46  ;;  %v11128_v46 = vsel %vm2368_vm8, %v29439_v21, %v29383_v61 }
 0x4c6   :  { %14668 = vrot.lane.b32.xlu1 %v29059_v58, %s27953_s30 }
 0x4c7   :  { %15641 = vrot.lane.b32.xlu0 %v28990_v39, %s32512_s10  ;;  %26502 = vmatmul.mubr.msk.f32.vlgmr.msra.gmra.mrb[56].mxu1 %vm171_vm1, %v29030_v8 }
 0x4c8   :  { %v29606_v38 = vpop.permute.xlu1 %13043  ;;  %27020 = vmatpush3.msra.mxu1 %v29519_v13  ;;  %27021 = vmatprep.mubr.msk.f32.mxu1 %vm27951_vm2, %v29563_v25 }
 0x4c9   :  { %32516 = vst [vmem:[#allocation67_spill] sm:$0xff] %v29606_v38  ;;  %10890 = vmatprep.subr.mxu1 %v10807_v29  ;;  %v29614_v53 = vpop.permute.xlu0 %12407 }
 0x4ca   :  { %14666 = vrot.lane.b32.xlu1 %v29056_v55, %s27953_s30 }
 0x4cb   :  { %15954 = vrot.lane.b32.xlu0 %v29068_v63, %s32517_s8  ;;  %27022 = vmatmul.mubr.msk.f32.vlgmr.msra.gmra.mrb[68].mxu1 %vm171_vm1, %v29030_v8 }
 0x4cc   :  { %v29625_v11 = vpop.permute.xlu1 %13360  ;;  %10891 = vmatpush1.msra.mxu1 %v10806_v28  ;;  %10954 = vmatprep.mubr.f32.mxu1 %v29563_v25 }
 0x4cd   :  { %32518 = vst [vmem:[#allocation68_spill] sm:$0xff] %v29625_v11  ;;  %v29628_v29 = vpop.permute.xlu0 %12728  ;;  %27024 = vmatprep.subr.mxu1 %v29563_v25  ;;  %v11127_v11 = vsel %vm2368_vm8, %v29243_v23, %v29439_v21  ;;  %v11449_v21 = vsel %vm2690_vm9, %v29455_v4, %v29391_v50 }
 0x4ce   :  { %14672 = vrot.lane.b32.xlu1 %v29071_v9, %s27953_s30 }
 0x4cf   :  { %15948 = vrot.lane.b32.xlu0 %v29415_v27, %s27946_s23  ;;  %26506 = vmatmul.mubr.msk.f32.vlgmr.msra.gmra.mrb[56].mxu1 %vm171_vm1, %v29032_v40 }
 0x4d0   :  { %v29637_v38 = vpop.permute.xlu1 %13364  ;;  %27025 = vmatpush3.msra.mxu1 %v29533_v34  ;;  %27026 = vmatprep.mubr.msk.f32.mxu1 %vm27951_vm2, %v29563_v25 }
 0x4d1   :  { %32519 = vst [vmem:[#allocation69_spill] sm:$0xff] %v29637_v38  ;;  %11211 = vmatprep.subr.mxu1 %v11128_v46  ;;  %v29645_v28 = vpop.permute.xlu0 %13049 }
 0x4d2   :  { %14676 = vrot.lane.b32.xlu1 %v29211_v45, %s27953_s30 }
 0x4d3   :  { %15958 = vrot.lane.b32.xlu0 %v29080_v10, %s32517_s8  ;;  %27027 = vmatmul.mubr.msk.f32.vlgmr.msra.gmra.mrb[70].mxu1 %vm171_vm1, %v29032_v40 }
 0x4d4   :  { %v29656_v61 = vpop.permute.xlu1 %13697  ;;  %11212 = vmatpush1.msra.mxu1 %v11127_v11  ;;  %11275 = vmatprep.mubr.f32.mxu1 %v29563_v25 }
 0x4d5   :  { %32520 = vst [vmem:[#allocation70_spill] sm:$0xff] %v29656_v61  ;;  %v29659_v46 = vpop.permute.xlu0 %13370  ;;  %27029 = vmatprep.subr.mxu1 %v29563_v25  ;;  %v11448_v61 = vsel %vm2690_vm9, %v29251_v26, %v29455_v4  ;;  %v11770_v4 = vsel %vm32408_vm10, %v29480_v49, %v29399_v32 }
 0x4d6   :  { %14989 = vrot.lane.b32.xlu1 %v29059_v58, %s32505_s5 }
 0x4d7   :  { %15962 = vrot.lane.b32.xlu0 %v28990_v39, %s32517_s8  ;;  %26510 = vmatmul.mubr.msk.f32.vlgmr.msra.gmra.mrb[56].mxu1 %vm171_vm1, %v29034_v41 }
 0x4d8   :  { %v29668_v38 = vpop.permute.xlu1 %13701  ;;  %27030 = vmatpush3.msra.mxu1 %v29550_v5  ;;  %27031 = vmatprep.mubr.msk.f32.mxu1 %vm27951_vm2, %v29563_v25 }
 0x4d9   :  { %11532 = vmatprep.subr.mxu1 %v11449_v21  ;;  %v29676_v11 = vpop.permute.xlu0 %13707 }
 0x4da   :  { %32521 = vst [vmem:[#allocation71_spill] sm:$0xff] %v29676_v11  ;;  %14987 = vrot.lane.b32.xlu1 %v29056_v55, %s32505_s5 }
 0x4db   :  { %16275 = vrot.lane.b32.xlu0 %v29068_v63, %s32522_s29  ;;  %27032 = vmatmul.mubr.msk.f32.vlgmr.msra.gmra.mrb[72].mxu1 %vm171_vm1, %v29034_v41 }
 0x4dc   :  { %v29687_v50 = vpop.permute.xlu1 %14021  ;;  %11533 = vmatpush1.msra.mxu1 %v11448_v61  ;;  %11596 = vmatprep.mubr.f32.mxu1 %v29563_v25 }
 0x4dd   :  { %32523 = vst [vmem:[#allocation72_spill] sm:$0xff] %v29687_v50  ;;  %v29690_v21 = vpop.permute.xlu0 %14017  ;;  %27034 = vmatprep.subr.mxu1 %v29563_v25 }
 0x4de   :  { %32524 = vst [vmem:[#allocation73_spill] sm:$0xff] %v29690_v21  ;;  %14993 = vrot.lane.b32.xlu1 %v29071_v9, %s32505_s5 }
 0x4df   :  { %16269 = vrot.lane.b32.xlu0 %v29415_v27, %s27948_s25  ;;  %26514 = vmatmul.mubr.msk.f32.vlgmr.msra.gmra.mrb[56].mxu1 %vm171_vm1, %v29036_v0 }
 0x4e0   :  { %v8918_v11 = vpop.permute.xlu1 %8917  ;;  %27035 = vmatpush3.msra.mxu1 %v29566_v62  ;;  %27036 = vmatprep.mubr.msk.f32.mxu1 %vm27951_vm2, %v29563_v25 }
 0x4e1   :  { %v8926_v61 = vsel %vm157_vm0, %v8918_v11, %v29457_v44  ;;  %v8925_v21 = vsel %vm157_vm0, %v29325_v22, %v8918_v11  ;;  %11853 = vmatprep.subr.mxu1 %v11770_v4  ;;  %v29709_v50 = vpop.permute.xlu0 %14025  ;;  %v9521_v11 = vsel %vm758_vm3, %v29344_v19, %v29201_v14 }
 0x4e2   :  { %32525 = vst [vmem:[#allocation74_spill] sm:$0xff] %v29709_v50  ;;  %14997 = vrot.lane.b32.xlu1 %v29211_v45, %s32505_s5  ;;  %9078 = vmatprep.subr.mxu0 %v8926_v61  ;;  %v9842_v61 = vsel %vm1080_vm4, %v29365_v12, %v29209_v31  ;;  %v9841_v31 = vsel %vm1080_vm4, %v29217_v15, %v29365_v12 }
 0x4e3   :  { %9079 = vmatpush1.msra.mxu0 %v8925_v21  ;;  %16279 = vrot.lane.b32.xlu0 %v29080_v10, %s32522_s29  ;;  %v10163_v12 = vsel %vm32402_vm5, %v29381_v54, %v29219_v16  ;;  %v12411_v16 = vsel %vm32410_vm12, %v29275_v33, %v29542_v48 }
 0x4e4   :  { %26483 = vmatmul.mubr.msk.f32.vlgmr.msra.gmra.mrb[6].mxu0 %vm171_vm1, %v29022_v35  ;;  %9221 = vmatprep.subr.mxu0 %v29056_v55  ;;  %v9517_v44 = vpop.permute.xlu1 %9516  ;;  %v11769_v35 = vsel %vm32408_vm10, %v29259_v1, %v29480_v49 }
 0x4e5   :  { %9222 = vmatpush1.msra.mxu0 %v29065_v60  ;;  %9285 = vmatprep.mubr.f32.mxu0 %v29563_v25  ;;  %v29720_v22 = vpop.permute.xlu0 %14029  ;;  %v9525_v14 = vsel %vm758_vm3, %v9517_v44, %v29471_v59  ;;  %v9524_v59 = vsel %vm758_vm3, %v29337_v57, %v9517_v44  ;;  %v12090_v57 = vsel %vm3334_vm11, %v29267_v30, %v29511_v24 }
 0x4e6   :  { %15310 = vrot.lane.b32.xlu1 %v29059_v58, %s32509_s12  ;;  %9363 = vmatprep.subr.mxu0 %v29080_v10 }
 0x4e7   :  { %27037 = vmatmul.mubr.msk.f32.vlgmr.msra.gmra.mrb[74].mxu1 %vm171_vm1, %v29036_v0  ;;  %16283 = vrot.lane.b32.xlu0 %v28990_v39, %s32522_s29  ;;  %v9520_v39 = vsel %vm758_vm3, %v29207_v3, %v29344_v19  ;;  %v12091_v3 = vsel %vm3334_vm11, %v29511_v24, %v29407_v47 }
 0x4e8   :  { %26485 = vmatmul.mubr.msk.f32.vlgmr.msra.gmra.mrb[4].mxu0 %vm171_vm1, %v28956_v17  ;;  %v9838_v60 = vpop.permute.xlu1 %9837  ;;  %11854 = vmatpush1.msra.mxu1 %v11769_v35  ;;  %v27792_v17 = vld [vmem:[#allocation7 + $0x10] sm:$0xff] }
 0x4e9   :  { %9364 = vmatpush1.msra.mxu0 %v29071_v9  ;;  %9427 = vmatprep.mubr.f32.mxu0 %v29563_v25  ;;  %v29739_v21 = vpop.permute.xlu0 %14344  ;;  %v9845_v15 = vsel %vm1080_vm4, %v29349_v56, %v9838_v60 }
 0x4ea   :  { %32526 = vst [vmem:[#allocation75_spill] sm:$0xff] %v29739_v21  ;;  %9535 = vmatprep.subr.mxu0 %v9521_v11  ;;  %15308 = vrot.lane.b32.xlu1 %v29056_v55, %s32509_s12  ;;  %v9846_v11 = vsel %vm1080_vm4, %v9838_v60, %v29488_v18  ;;  %v12412_v18 = vsel %vm32410_vm12, %v29542_v48, %v29417_v52 }
 0x4eb   :  { %11917 = vmatprep.mubr.f32.mxu1 %v29563_v25  ;;  %27039 = vmatprep.subr.mxu1 %v29563_v25 }
 0x4ec   :  { %26487 = vmatmul.mubr.msk.f32.vlgmr.msra.gmra.mrb[6].mxu0 %vm171_vm1, %v27792_v17  ;;  %v29749_v49 = vpop.permute.xlu1 %10158  ;;  %26518 = vmatmul.mubr.msk.f32.vlgmr.msra.gmra.mrb[56].mxu1 %vm171_vm1, %v29038_v42 }
 0x4ed   :  { %9536 = vmatpush1.msra.mxu0 %v9520_v39  ;;  %9599 = vmatprep.mubr.f32.mxu0 %v29563_v25  ;;  %v29756_v4 = vpop.permute.xlu0 %14342  ;;  %v32530_v39 = vld [vmem:[#allocation31_spill] sm:$0xff] }
 0x4ee   :  { %32527 = vst [vmem:[#allocation76_spill] sm:$0xff] %v29756_v4  ;;  %9677 = vmatprep.subr.mxu0 %v9525_v14  ;;  %15314 = vrot.lane.b32.xlu1 %v29071_v9, %s32509_s12  ;;  %v10162_v14 = vsel %vm32402_vm5, %v32530_v39, %v29381_v54  ;;  %v32531_v54 = vld [vmem:[#allocation25_spill] sm:$0xff]  ;;  %v32538_v39 = vld [vmem:[#allocation32_spill] sm:$0xff] }
 0x4ef   :  { %27040 = vmatpush3.msra.mxu1 %v29583_v2  ;;  %27041 = vmatprep.mubr.msk.f32.mxu1 %vm27951_vm2, %v29563_v25  ;;  %v30021_v4 = vld [vmem:[#allocation2 + $0x8] sm:$0xff] }
 0x4f0   :  { %26489 = vmatmul.mubr.msk.f32.vlgmr.msra.gmra.mrb[4].mxu0 %vm171_vm1, %v29024_v36  ;;  %12174 = vmatprep.subr.mxu1 %v12091_v3  ;;  %v29770_v19 = vpop.permute.xlu1 %10479  ;;  %v10167_v3 = vsel %vm32402_vm5, %v29749_v49, %v29502_v51 }
 0x4f1   :  { %9678 = vmatpush1.msra.mxu0 %v9524_v59  ;;  %16596 = vrot.lane.b32.xlu0 %v29068_v63, %s32528_s27  ;;  %v29777_v35 = vpop.permute.xlu0 %14348  ;;  %v32532_v59 = vld [vmem:[#allocation24_spill] sm:$0xff] }
 0x4f2   :  { %9856 = vmatprep.subr.mxu0 %v9842_v61  ;;  %15318 = vrot.lane.b32.xlu1 %v29211_v45, %s32509_s12  ;;  %v32533_v61 = vld [vmem:[#allocation48_spill] sm:$0xff] }
 0x4f3   :  { %9741 = vmatprep.mubr.f32.mxu0 %v29563_v25  ;;  %27042 = vmatmul.mubr.msk.f32.vlgmr.msra.gmra.mrb[76].mxu1 %vm171_vm1, %v29038_v42 }
 0x4f4   :  { %12175 = vmatpush1.msra.mxu1 %v12090_v57  ;;  %26491 = vmatmul.mubr.msk.f32.vlgmr.msra.gmra.mrb[6].mxu0 %vm171_vm1, %v29024_v36  ;;  %v29792_v44 = vpop.permute.xlu1 %10800  ;;  %v10166_v57 = vsel %vm32402_vm5, %v32533_v61, %v29749_v49  ;;  %v32537_v49 = vld [vmem:[#allocation39_spill] sm:$0xff]  ;;  %v10488_v61 = vsel %vm1724_vm6, %v29770_v19, %v29519_v13  ;;  %vm32543_vm5 = vcmask 138240  }
 0x4f5   :  { %9857 = vmatpush1.msra.mxu0 %v9841_v31  ;;  %12238 = vmatprep.mubr.f32.mxu1 %v29563_v25  ;;  %v29797_v17 = vpop.permute.xlu0 %14352  ;;  %v32534_v31 = vld [vmem:[#allocation55_spill] sm:$0xff] }
 0x4f6   :  { %32529 = vst [vmem:[#allocation77_spill] sm:$0xff] %v29797_v17  ;;  %9998 = vmatprep.subr.mxu0 %v9846_v11  ;;  %15631 = vrot.lane.b32.xlu1 %v29059_v58, %s32512_s10  ;;  %v32535_v11 = vld [vmem:[#allocation65_spill] sm:$0xff] }
 0x4f7   :  { %27044 = vmatprep.subr.mxu1 %v29563_v25  ;;  %16590 = vrot.lane.b32.xlu0 %v29415_v27, %s32416_s28 }
 0x4f8   :  { %9920 = vmatprep.mubr.f32.mxu0 %v29563_v25  ;;  %26522 = vmatmul.mubr.msk.f32.vlgmr.msra.gmra.mrb[56].mxu1 %vm171_vm1, %v29040_v43  ;;  %v29807_v36 = vpop.permute.xlu1 %11121 }
 0x4f9   :  { %27045 = vmatpush3.msra.mxu1 %v29597_v7  ;;  %26493 = vmatmul.mubr.msk.f32.vlgmr.msra.gmra.mrb[4].mxu0 %vm171_vm1, %v29026_v37  ;;  %v29817_v24 = vpop.permute.xlu0 %14356 }
 0x4fa   :  { %9999 = vmatpush1.msra.mxu0 %v9845_v15  ;;  %12495 = vmatprep.subr.mxu1 %v12412_v18  ;;  %v12733_v15 = vsel %vm32409_vm13, %v32535_v11, %v32534_v31  ;;  %v32536_v18 = vld [vmem:[#allocation53_spill] sm:$0xff] }
 0x4fb   :  { %10177 = vmatprep.subr.mxu0 %v10163_v12  ;;  %15629 = vrot.lane.b32.xlu1 %v29056_v55, %s32512_s10  ;;  %v10484_v12 = vsel %vm1724_vm6, %v32536_v18, %v29227_v6  ;;  %v12732_v6 = vsel %vm32409_vm13, %v32537_v49, %v32535_v11  ;;  %v32541_v11 = vld [vmem:[#allocation57_spill] sm:$0xff] }
 0x4fc   :  { %27046 = vmatprep.mubr.msk.f32.mxu1 %vm27951_vm2, %v29563_v25  ;;  %16600 = vrot.lane.b32.xlu0 %v29080_v10, %s32528_s27  ;;  %v29828_v56 = vpop.permute.xlu1 %11442 }
 0x4fd   :  { %10062 = vmatprep.mubr.f32.mxu0 %v29563_v25  ;;  %27047 = vmatmul.mubr.msk.f32.vlgmr.msra.gmra.mrb[78].mxu1 %vm171_vm1, %v29040_v43  ;;  %v29836_v60 = vpop.permute.xlu0 %14670 }
 0x4fe   :  { %12496 = vmatpush1.msra.mxu1 %v12411_v16  ;;  %26495 = vmatmul.mubr.msk.f32.vlgmr.msra.gmra.mrb[6].mxu0 %vm171_vm1, %v29026_v37  ;;  %v29852_v37 = vld [vmem:[#allocation2 + $0x38] sm:$0xff] }
 0x4ff   :  { %10178 = vmatpush1.msra.mxu0 %v10162_v14  ;;  %15635 = vrot.lane.b32.xlu1 %v29071_v9, %s32512_s10  ;;  %v10483_v14 = vsel %vm1724_vm6, %v32538_v39, %v32536_v18 }
 0x500   :  { %10319 = vmatprep.subr.mxu0 %v10167_v3  ;;  %12559 = vmatprep.mubr.f32.mxu1 %v29563_v25  ;;  %v29849_v48 = vpop.permute.xlu1 %11763 }
 0x501   :  { %27049 = vmatprep.subr.mxu1 %v29563_v25  ;;  %16604 = vrot.lane.b32.xlu0 %v29852_v37, %s32528_s27  ;;  %v29859_v51 = vpop.permute.xlu0 %14664 }
 0x502   :  { %10241 = vmatprep.mubr.f32.mxu0 %v29563_v25  ;;  %26526 = vmatmul.mubr.msk.f32.vlgmr.msra.gmra.mrb[56].mxu1 %vm171_vm1, %v32531_v54 }
 0x503   :  { %27050 = vmatpush3.msra.mxu1 %v29614_v53  ;;  %26497 = vmatmul.mubr.msk.f32.vlgmr.msra.gmra.mrb[4].mxu0 %vm171_vm1, %v32532_v59 }
 0x504   :  { %10320 = vmatpush1.msra.mxu0 %v10166_v57  ;;  %12816 = vmatprep.subr.mxu1 %v12733_v15  ;;  %v29873_v16 = vpop.permute.xlu1 %12084  ;;  %v32542_v15 = vld [vmem:[#allocation67_spill] sm:$0xff] }
 0x505   :  { %10498 = vmatprep.subr.mxu0 %v10484_v12  ;;  %15639 = vrot.lane.b32.xlu1 %v29211_v45, %s32512_s10  ;;  %v13054_v18 = vsel %vm32543_vm5, %v32542_v15, %v32541_v11  ;;  %v32544_v12 = vld [vmem:[#allocation54_spill] sm:$0xff] }
 0x506   :  { %27051 = vmatprep.mubr.msk.f32.mxu1 %vm27951_vm2, %v29563_v25  ;;  %16917 = vrot.lane.b32.xlu0 %v29068_v63, %s32414_s13  ;;  %v29894_v63 = vpop.permute.xlu0 %14674 }
 0x507   :  { %10383 = vmatprep.mubr.f32.mxu0 %v29563_v25  ;;  %27052 = vmatmul.mubr.msk.f32.vlgmr.msra.gmra.mrb[80].mxu1 %vm171_vm1, %v32531_v54 }
 0x508   :  { %12817 = vmatpush1.msra.mxu1 %v12732_v6  ;;  %26499 = vmatmul.mubr.msk.f32.vlgmr.msra.gmra.mrb[6].mxu0 %vm171_vm1, %v32532_v59  ;;  %v29892_v3 = vpop.permute.xlu1 %12405  ;;  %v32539_v59 = vld [vmem:[#allocation26_spill] sm:$0xff]  ;;  %v10805_v6 = vsel %vm2046_vm7, %v32544_v12, %v29235_v20  ;;  %v32545_v20 = vld [vmem:[#allocation41_spill] sm:$0xff] }
 0x509   :  { %10499 = vmatpush1.msra.mxu0 %v10483_v14  ;;  %15952 = vrot.lane.b32.xlu1 %v29059_v58, %s32517_s8  ;;  %v32540_v58 = vld [vmem:[#allocation49_spill] sm:$0xff]  ;;  %v13053_v14 = vsel %vm32543_vm5, %v32545_v20, %v32542_v15  ;;  %v32549_v15 = vld [vmem:[#allocation58_spill] sm:$0xff]  ;;  %vm32551_vm5 = vcmask 130048  }
 0x50a   :  { %10640 = vmatprep.subr.mxu0 %v10488_v61  ;;  %12880 = vmatprep.mubr.f32.mxu1 %v29563_v25  ;;  %v10487_v13 = vsel %vm1724_vm6, %v32540_v58, %v29770_v19  ;;  %v29922_v39 = vpop.permute.xlu0 %14678 }
 0x50b   :  { %27054 = vmatprep.subr.mxu1 %v29563_v25  ;;  %16911 = vrot.lane.b32.xlu0 %v29415_v27, %s27953_s30 }
 0x50c   :  { %10562 = vmatprep.mubr.f32.mxu0 %v29563_v25  ;;  %26530 = vmatmul.mubr.msk.f32.vlgmr.msra.gmra.mrb[56].mxu1 %vm171_vm1, %v32539_v59  ;;  %v29908_v57 = vpop.permute.xlu1 %12726 }
 0x50d   :  { %27055 = vmatpush3.msra.mxu1 %v29628_v29  ;;  %26501 = vmatmul.mubr.msk.f32.vlgmr.msra.gmra.mrb[4].mxu0 %vm171_vm1, %v29030_v8 }
 0x50e   :  { %10641 = vmatpush1.msra.mxu0 %v10487_v13  ;;  %13137 = vmatprep.subr.mxu1 %v13054_v18  ;;  %v29951_v13 = vpop.permute.xlu0 %14991  ;;  %v32550_v18 = vld [vmem:[#allocation69_spill] sm:$0xff] }
 0x50f   :  { %10819 = vmatprep.subr.mxu0 %v10805_v6  ;;  %15950 = vrot.lane.b32.xlu1 %v29056_v55, %s32517_s8  ;;  %v32546_v55 = vld [vmem:[#allocation33_spill] sm:$0xff]  ;;  %v32552_v6 = vld [vmem:[#allocation56_spill] sm:$0xff] }
 0x510   :  { %27056 = vmatprep.mubr.msk.f32.mxu1 %vm27951_vm2, %v29563_v25  ;;  %16921 = vrot.lane.b32.xlu0 %v29080_v10, %s32414_s13  ;;  %v29930_v19 = vpop.permute.xlu1 %13047  ;;  %v10804_v61 = vsel %vm2046_vm7, %v32546_v55, %v32544_v12  ;;  %v10809_v10 = vsel %vm2046_vm7, %v29792_v44, %v29533_v34  ;;  %v13375_v12 = vsel %vm32551_vm5, %v32550_v18, %v32549_v15 }
 0x511   :  { %10704 = vmatprep.mubr.f32.mxu0 %v29563_v25  ;;  %27057 = vmatmul.mubr.msk.f32.vlgmr.msra.gmra.mrb[82].mxu1 %vm171_vm1, %v32539_v59 }
 0x512   :  { %13138 = vmatpush1.msra.mxu1 %v13053_v14  ;;  %26503 = vmatmul.mubr.msk.f32.vlgmr.msra.gmra.mrb[6].mxu0 %vm171_vm1, %v29030_v8  ;;  %v32547_v8 = vld [vmem:[#allocation27_spill] sm:$0xff]  ;;  %v11126_v14 = vsel %vm2368_vm8, %v32552_v6, %v29243_v23 }
 0x513   :  { %10820 = vmatpush1.msra.mxu0 %v10804_v61  ;;  %15956 = vrot.lane.b32.xlu1 %v29071_v9, %s32517_s8  ;;  %v32548_v9 = vld [vmem:[#allocation50_spill] sm:$0xff]  ;;  %v29978_v61 = vpop.permute.xlu0 %14985  ;;  %v32554_v23 = vld [vmem:[#allocation43_spill] sm:$0xff] }
 0x514   :  { %10961 = vmatprep.subr.mxu0 %v10809_v10  ;;  %13201 = vmatprep.mubr.f32.mxu1 %v29563_v25  ;;  %v29949_v58 = vpop.permute.xlu1 %13368  ;;  %v10808_v34 = vsel %vm2046_vm7, %v32548_v9, %v29792_v44  ;;  %v27794_v44 = vld [vmem:[#allocation2 + $0x18] sm:$0xff]  ;;  %v13374_v10 = vsel %vm32551_vm5, %v32554_v23, %v32550_v18  ;;  %v32555_v9 = vld [vmem:[#allocation34_spill] sm:$0xff]  ;;  %vm32563_vm5 = vcmask 56320  }
 0x515   :  { %27059 = vmatprep.subr.mxu1 %v29563_v25  ;;  %16925 = vrot.lane.b32.xlu0 %v29852_v37, %s32414_s13 }
 0x516   :  { %10883 = vmatprep.mubr.f32.mxu0 %v29563_v25  ;;  %26534 = vmatmul.mubr.msk.f32.vlgmr.msra.gmra.mrb[56].mxu1 %vm171_vm1, %v32547_v8 }
 0x517   :  { %27060 = vmatpush3.msra.mxu1 %v29645_v28  ;;  %26505 = vmatmul.mubr.msk.f32.vlgmr.msra.gmra.mrb[4].mxu0 %vm171_vm1, %v29032_v40  ;;  %v30005_v18 = vpop.permute.xlu0 %14995 }
 0x518   :  { %10962 = vmatpush1.msra.mxu0 %v10808_v34  ;;  %13458 = vmatprep.subr.mxu1 %v13375_v12  ;;  %v29971_v55 = vpop.permute.xlu1 %13705  ;;  %v11125_v34 = vsel %vm2368_vm8, %v32555_v9, %v32552_v6  ;;  %v32558_v6 = vld [vmem:[#allocation51_spill] sm:$0xff]  ;;  %v32559_v9 = vld [vmem:[#allocation60_spill] sm:$0xff] }
 0x519   :  { %32553 = vst [vmem:[#allocation31_spill] sm:$0xff] %v29971_v55  ;;  %11140 = vmatprep.subr.mxu0 %v11126_v14  ;;  %15960 = vrot.lane.b32.xlu1 %v29211_v45, %s32517_s8  ;;  %v11130_v14 = vsel %vm2368_vm8, %v29807_v36, %v29550_v5  ;;  %v32569_v55 = vld [vmem:[#allocation72_spill] sm:$0xff] }
 0x51a   :  { %27061 = vmatprep.mubr.msk.f32.mxu1 %vm27951_vm2, %v29563_v25  ;;  %17238 = vrot.lane.b32.xlu0 %v27794_v44, %s32411_s6  ;;  %v29994_v44 = vld [vmem:[#allocation2 + $0x10] sm:$0xff] }
 0x51b   :  { %11025 = vmatprep.mubr.f32.mxu0 %v29563_v25  ;;  %27062 = vmatmul.mubr.msk.f32.vlgmr.msra.gmra.mrb[84].mxu1 %vm171_vm1, %v32547_v8  ;;  %v30039_v21 = vpop.permute.xlu0 %14999 }
 0x51c   :  { %13459 = vmatpush1.msra.mxu1 %v13374_v10  ;;  %26507 = vmatmul.mubr.msk.f32.vlgmr.msra.gmra.mrb[6].mxu0 %vm171_vm1, %v29032_v40  ;;  %v14024_v12 = vpop.permute.xlu1 %14023  ;;  %v32556_v40 = vld [vmem:[#allocation28_spill] sm:$0xff]  ;;  %v11129_v10 = vsel %vm2368_vm8, %v32558_v6, %v29807_v36  ;;  %v27797_v36 = vld [vmem:[#allocation2 + $0x28] sm:$0xff] }
 0x51d   :  { %11141 = vmatpush1.msra.mxu0 %v11125_v34  ;;  %16273 = vrot.lane.b32.xlu1 %v29994_v44, %s32522_s29  ;;  %v13714_v34 = vsel %vm171_vm1, %v29668_v38, %v32559_v9  ;;  %v32568_v9 = vld [vmem:[#allocation61_spill] sm:$0xff] }
 0x51e   :  { %11282 = vmatprep.subr.mxu0 %v11130_v14  ;;  %13522 = vmatprep.mubr.f32.mxu1 %v29563_v25  ;;  %v32560_v14 = vld [vmem:[#allocation59_spill] sm:$0xff] }
 0x51f   :  { %27064 = vmatprep.subr.mxu1 %v29563_v25  ;;  %17232 = vrot.lane.b32.xlu0 %v29415_v27, %s32413_s7  ;;  %v11447_v17 = vsel %vm2690_vm9, %v32560_v14, %v29251_v26  ;;  %v32561_v26 = vld [vmem:[#allocation45_spill] sm:$0xff]  ;;  %v30070_v15 = vpop.permute.xlu0 %15312 }
 0x520   :  { %11204 = vmatprep.mubr.f32.mxu0 %v29563_v25  ;;  %26538 = vmatmul.mubr.msk.f32.vlgmr.msra.gmra.mrb[56].mxu1 %vm171_vm1, %v32556_v40  ;;  %v30007_v5 = vpop.permute.xlu1 %14027 }
 0x521   :  { %32557 = vst [vmem:[#allocation25_spill] sm:$0xff] %v30007_v5  ;;  %27065 = vmatpush3.msra.mxu1 %v29659_v46  ;;  %26509 = vmatmul.mubr.msk.f32.vlgmr.msra.gmra.mrb[4].mxu0 %vm171_vm1, %v29034_v41  ;;  %v30044_v5 = vld [vmem:[#allocation2 + $0x20] sm:$0xff] }
 0x522   :  { %11283 = vmatpush1.msra.mxu0 %v11129_v10  ;;  %13798 = vmatprep.subr.mxu1 %v13714_v34  ;;  %v32562_v10 = vld [vmem:[#allocation35_spill] sm:$0xff] }
 0x523   :  { %11461 = vmatprep.subr.mxu0 %v11447_v17  ;;  %16271 = vrot.lane.b32.xlu1 %v30021_v4, %s32522_s29  ;;  %v13713_v17 = vsel %vm171_vm1, %v32561_v26, %v29668_v38  ;;  %v11446_v34 = vsel %vm2690_vm9, %v32562_v10, %v32560_v14  ;;  %v32564_v14 = vld [vmem:[#allocation30_spill] sm:$0xff]  ;;  %v14035_v26 = vsel %vm32563_vm5, %v32569_v55, %v14024_v12 }
 0x524   :  { %27066 = vmatprep.mubr.msk.f32.mxu1 %vm27951_vm2, %v29563_v25  ;;  %17242 = vrot.lane.b32.xlu0 %v27797_v36, %s32411_s6  ;;  %v14032_v6 = vpop.permute.xlu1 %14031  ;;  %v11451_v36 = vsel %vm2690_vm9, %v29828_v56, %v29566_v62  ;;  %v32565_v62 = vld [vmem:[#allocation29_spill] sm:$0xff] }
 0x525   :  { %11346 = vmatprep.mubr.f32.mxu0 %v29563_v25  ;;  %27067 = vmatmul.mubr.msk.f32.vlgmr.msra.gmra.mrb[86].mxu1 %vm171_vm1, %v32556_v40 }
 0x526   :  { %13799 = vmatpush1.msra.mxu1 %v13713_v17  ;;  %26511 = vmatmul.mubr.msk.f32.vlgmr.msra.gmra.mrb[6].mxu0 %vm171_vm1, %v29034_v41  ;;  %v14036_v41 = vsel %vm32563_vm5, %v14024_v12, %v29709_v50  ;;  %v32566_v17 = vld [vmem:[#allocation71_spill] sm:$0xff]  ;;  %v11768_v50 = vsel %vm32408_vm10, %v32568_v9, %v29259_v1  ;;  %v32570_v1 = vld [vmem:[#allocation36_spill] sm:$0xff]  ;;  %v14039_v12 = vsel %vm32563_vm5, %v29720_v22, %v14032_v6  ;;  %vm32573_vm5 = vcmask 48128  }
 0x527   :  { %11462 = vmatpush1.msra.mxu0 %v11446_v34  ;;  %16277 = vrot.lane.b32.xlu1 %v30044_v5, %s32522_s29  ;;  %v13717_v10 = vsel %vm171_vm1, %v32566_v17, %v32565_v62  ;;  %v32567_v34 = vld [vmem:[#allocation52_spill] sm:$0xff] }
 0x528   :  { %11603 = vmatprep.subr.mxu0 %v11451_v36  ;;  %13862 = vmatprep.mubr.f32.mxu1 %v29563_v25  ;;  %v30049_v38 = vpop.permute.xlu1 %14346  ;;  %v11450_v36 = vsel %vm2690_vm9, %v32567_v34, %v29828_v56  ;;  %v32575_v34 = vld [vmem:[#allocation63_spill] sm:$0xff] }
 0x529   :  { %27069 = vmatprep.subr.mxu1 %v29563_v25  ;;  %11525 = vmatprep.mubr.f32.mxu0 %v29563_v25 }
 0x52a   :  { %26542 = vmatmul.mubr.msk.f32.vlgmr.msra.gmra.mrb[56].mxu1 %vm171_vm1, %v32564_v14  ;;  %26513 = vmatmul.mubr.msk.f32.vlgmr.msra.gmra.mrb[4].mxu0 %vm171_vm1, %v29036_v0 }
 0x52b   :  { %27070 = vmatpush3.msra.mxu1 %v13717_v10  ;;  %11604 = vmatpush1.msra.mxu0 %v11450_v36  ;;  %v12093_v10 = vsel %vm3334_vm11, %v29873_v16, %v29597_v7  ;;  %v12092_v7 = vsel %vm3334_vm11, %v29407_v47, %v29873_v16  ;;  %v12410_v36 = vsel %vm32410_vm12, %v32575_v34, %v29275_v33  ;;  %v32577_v33 = vld [vmem:[#allocation38_spill] sm:$0xff] }
 0x52c   :  { %14121 = vmatprep.subr.mxu1 %v14036_v41  ;;  %11782 = vmatprep.subr.mxu0 %v11768_v50  ;;  %v30072_v62 = vpop.permute.xlu1 %14340  ;;  %v11767_v50 = vsel %vm32408_vm10, %v32570_v1, %v32568_v9  ;;  %v32571_v9 = vld [vmem:[#allocation62_spill] sm:$0xff]  ;;  %v12414_v16 = vsel %vm32410_vm12, %v29892_v3, %v29614_v53  ;;  %v12413_v53 = vsel %vm32410_vm12, %v29417_v52, %v29892_v3  ;;  %v32581_v52 = vld [vmem:[#allocation40_spill] sm:$0xff] }
 0x52d   :  { %16281 = vrot.lane.b32.xlu1 %v29211_v45, %s32522_s29  ;;  %27071 = vmatprep.mubr.msk.f32.mxu1 %vm27951_vm2, %v29563_v25  ;;  %v11772_v45 = vsel %vm32408_vm10, %v29849_v48, %v29583_v2  ;;  %v11771_v2 = vsel %vm32408_vm10, %v29399_v32, %v29849_v48  ;;  %v12089_v6 = vsel %vm3334_vm11, %v32571_v9, %v29267_v30  ;;  %v32572_v32 = vld [vmem:[#allocation37_spill] sm:$0xff]  ;;  %vm32574_vm10 = vmmov %vm32573_vm5 }
 0x52e   :  { %11667 = vmatprep.mubr.f32.mxu0 %v29563_v25  ;;  %27072 = vmatmul.mubr.msk.f32.vlgmr.msra.gmra.mrb[88].mxu1 %vm171_vm1, %v32564_v14  ;;  %v12088_v30 = vsel %vm3334_vm11, %v32572_v32, %v32571_v9  ;;  %v32580_v9 = vld [vmem:[#allocation64_spill] sm:$0xff] }
 0x52f   :  { %14122 = vmatpush1.msra.mxu1 %v14035_v26  ;;  %26515 = vmatmul.mubr.msk.f32.vlgmr.msra.gmra.mrb[6].mxu0 %vm171_vm1, %v29036_v0  ;;  %v30098_v0 = vpop.permute.xlu0 %15306  ;;  %v12730_v3 = vsel %vm32409_vm13, %v32581_v52, %v32580_v9 }
 0x530   :  { %11783 = vmatpush1.msra.mxu0 %v11767_v50  ;;  %14185 = vmatprep.mubr.f32.mxu1 %v29563_v25  ;;  %v30090_v56 = vpop.permute.xlu1 %14350  ;;  %v30155_v50 = vld [vmem:[#allocation2 + $0x30] sm:$0xff] }
 0x531   :  { %11924 = vmatprep.subr.mxu0 %v11772_v45  ;;  %16594 = vrot.lane.b32.xlu1 %v29994_v44, %s32528_s27  ;;  %v14361_v48 = vsel %vm32573_vm5, %v29777_v35, %v30090_v56 }
 0x532   :  { %27074 = vmatprep.subr.mxu1 %v29563_v25  ;;  %11846 = vmatprep.mubr.f32.mxu0 %v29563_v25 }
 0x533   :  { %26546 = vmatmul.mubr.msk.f32.vlgmr.msra.gmra.mrb[56].mxu1 %vm171_vm1, %v29415_v27  ;;  %26517 = vmatmul.mubr.msk.f32.vlgmr.msra.gmra.mrb[4].mxu0 %vm171_vm1, %v29038_v42  ;;  %v30127_v41 = vpop.permute.xlu0 %15316 }
 0x534   :  { %27075 = vmatpush3.msra.mxu1 %v14039_v12  ;;  %11925 = vmatpush1.msra.mxu0 %v11771_v2  ;;  %v30110_v26 = vpop.permute.xlu1 %14354 }
 0x535   :  { %12103 = vmatprep.subr.mxu0 %v12089_v6  ;;  %16592 = vrot.lane.b32.xlu1 %v30021_v4, %s32528_s27  ;;  %v12731_v6 = vsel %vm32409_vm13, %v32580_v9, %v32537_v49  ;;  %v12735_v49 = vsel %vm32409_vm13, %v29908_v57, %v29628_v29  ;;  %v12734_v29 = vsel %vm32409_vm13, %v32534_v31, %v29908_v57  ;;  %v32584_v31 = vld [vmem:[#allocation42_spill] sm:$0xff]  ;;  %vm32586_vm13 = vcmask 449536  }
 0x536   :  { %27076 = vmatprep.mubr.msk.f32.mxu1 %vm27951_vm2, %v29563_v25  ;;  %11988 = vmatprep.mubr.f32.mxu0 %v29563_v25 }
 0x537   :  { %27077 = vmatmul.mubr.msk.f32.vlgmr.msra.gmra.mrb[90].mxu1 %vm171_vm1, %v29415_v27  ;;  %26519 = vmatmul.mubr.msk.f32.vlgmr.msra.gmra.mrb[6].mxu0 %vm171_vm1, %v29038_v42  ;;  %v14360_v42 = vsel %vm32574_vm10, %v30049_v38, %v29777_v35  ;;  %vm32576_vm10 = vmmov %vm32573_vm5  ;;  %v30159_v47 = vpop.permute.xlu0 %15320  ;;  %vm32578_vm5 = vcmask 457728  }
 0x538   :  { %12104 = vmatpush1.msra.mxu0 %v12088_v30  ;;  %12167 = vmatprep.mubr.f32.mxu0 %v29563_v25  ;;  %v30133_v27 = vpop.permute.xlu1 %14668  ;;  %v14364_v35 = vsel %vm32576_vm10, %v30110_v26, %v29817_v24  ;;  %v12409_v24 = vsel %vm32410_vm12, %v32577_v33, %v32575_v34  ;;  %vm32579_vm10 = vmmov %vm32578_vm5  ;;  %vm32589_vm12 = vcmask 130048  }
 0x539   :  { %12245 = vmatprep.subr.mxu0 %v12093_v10  ;;  %16598 = vrot.lane.b32.xlu1 %v30044_v5, %s32528_s27 }
 0x53a   :  { %14445 = vmatprep.subr.mxu1 %v14361_v48  ;;  %14509 = vmatprep.mubr.f32.mxu1 %v29563_v25  ;;  %v32582_v48 = vld [vmem:[#allocation66_spill] sm:$0xff] }
 0x53b   :  { %26521 = vmatmul.mubr.msk.f32.vlgmr.msra.gmra.mrb[4].mxu0 %vm171_vm1, %v29040_v43  ;;  %14446 = vmatpush1.msra.mxu1 %v14360_v42  ;;  %v30188_v2 = vpop.permute.xlu0 %15633 }
 0x53c   :  { %12246 = vmatpush1.msra.mxu0 %v12092_v7  ;;  %12309 = vmatprep.mubr.f32.mxu0 %v29563_v25  ;;  %v30153_v1 = vpop.permute.xlu1 %14666 }
 0x53d   :  { %12424 = vmatprep.subr.mxu0 %v12410_v36  ;;  %16602 = vrot.lane.b32.xlu1 %v30155_v50, %s32528_s27  ;;  %v32588_v36 = vld [vmem:[#allocation68_spill] sm:$0xff] }
 0x53e   :  { %26550 = vmatmul.mubr.msk.f32.vlgmr.msra.gmra.mrb[56].mxu1 %vm171_vm1, %v30072_v62  ;;  %27079 = vmatprep.subr.mxu1 %v29563_v25 }
 0x53f   :  { %26523 = vmatmul.mubr.msk.f32.vlgmr.msra.gmra.mrb[6].mxu0 %vm171_vm1, %v29040_v43  ;;  %27080 = vmatpush3.msra.mxu1 %v14364_v35 }
 0x540   :  { %12425 = vmatpush1.msra.mxu0 %v12409_v24  ;;  %12488 = vmatprep.mubr.f32.mxu0 %v29563_v25  ;;  %v14673_v45 = vpop.permute.xlu1 %14672 }
 0x541   :  { %12566 = vmatprep.subr.mxu0 %v12414_v16  ;;  %16915 = vrot.lane.b32.xlu1 %v29994_v44, %s32414_s13  ;;  %v14683_v43 = vsel %vm32578_vm5, %v14673_v45, %v29894_v63  ;;  %v14682_v12 = vsel %vm32579_vm10, %v29836_v60, %v14673_v45  ;;  %vm32583_vm5 = vcmask 138240   ;;  %v32594_v16 = vld [vmem:[#allocation45_spill] sm:$0xff]  ;;  %v32595_v45 = vld [vmem:[#allocation70_spill] sm:$0xff] }
 0x542   :  { %27081 = vmatprep.mubr.msk.f32.mxu1 %vm27951_vm2, %v29563_v25  ;;  %14766 = vmatprep.subr.mxu1 %v14683_v43  ;;  %v13052_v10 = vsel %vm32583_vm5, %v32582_v48, %v32545_v20  ;;  %vm32585_vm10 = vmmov %vm32583_vm5  ;;  %v13056_v7 = vsel %vm32583_vm5, %v29930_v19, %v29645_v28  ;;  %v13055_v28 = vsel %vm32583_vm5, %v32541_v11, %v29930_v19  ;;  %v32590_v11 = vld [vmem:[#allocation44_spill] sm:$0xff]  ;;  %vm32598_vm5 = vcmask 441344  }
 0x543   :  { %26525 = vmatmul.mubr.msk.f32.vlgmr.msra.gmra.mrb[4].mxu0 %vm171_vm1, %v32531_v54  ;;  %27082 = vmatmul.mubr.msk.f32.vlgmr.msra.gmra.mrb[92].mxu1 %vm171_vm1, %v30072_v62  ;;  %v13051_v57 = vsel %vm32585_vm10, %v32584_v31, %v32582_v48  ;;  %vm32587_vm10 = vmmov %vm32586_vm13  ;;  %v13372_v19 = vsel %vm32589_vm12, %v32590_v11, %v32588_v36  ;;  %v32611_v11 = vld [vmem:[#allocation76_spill] sm:$0xff] }
 0x544   :  { %12567 = vmatpush1.msra.mxu0 %v12413_v53  ;;  %12630 = vmatprep.mubr.f32.mxu0 %v29563_v25  ;;  %v30194_v32 = vpop.permute.xlu1 %14676 }
 0x545   :  { %12745 = vmatprep.subr.mxu0 %v12731_v6  ;;  %16913 = vrot.lane.b32.xlu1 %v30021_v4, %s32414_s13 }
 0x546   :  { %14767 = vmatpush1.msra.mxu1 %v14682_v12  ;;  %14830 = vmatprep.mubr.f32.mxu1 %v29563_v25  ;;  %v32597_v12 = vld [vmem:[#allocation31_spill] sm:$0xff] }
 0x547   :  { %26527 = vmatmul.mubr.msk.f32.vlgmr.msra.gmra.mrb[6].mxu0 %vm171_vm1, %v32531_v54  ;;  %26554 = vmatmul.mubr.msk.f32.vlgmr.msra.gmra.mrb[56].mxu1 %vm171_vm1, %v29859_v51  ;;  %v30214_v54 = vpop.permute.xlu0 %15627  ;;  %v13716_v9 = vsel %vm171_vm1, %v32597_v12, %v32566_v17 }
 0x548   :  { %12746 = vmatpush1.msra.mxu0 %v12730_v3  ;;  %12809 = vmatprep.mubr.f32.mxu0 %v29563_v25  ;;  %v30210_v30 = vpop.permute.xlu1 %14989  ;;  %v32600_v3 = vld [vmem:[#allocation60_spill] sm:$0xff] }
 0x549   :  { %12887 = vmatprep.subr.mxu0 %v12735_v49  ;;  %16919 = vrot.lane.b32.xlu1 %v30044_v5, %s32414_s13  ;;  %v13715_v17 = vsel %vm171_vm1, %v32600_v3, %v32597_v12  ;;  %v32601_v49 = vld [vmem:[#allocation47_spill] sm:$0xff] }
 0x54a   :  { %27084 = vmatprep.subr.mxu1 %v29563_v25  ;;  %27086 = vmatprep.mubr.msk.f32.mxu1 %vm27951_vm2, %v29563_v25 }
 0x54b   :  { %26529 = vmatmul.mubr.msk.f32.vlgmr.msra.gmra.mrb[4].mxu0 %vm171_vm1, %v32539_v59  ;;  %27085 = vmatpush3.msra.mxu1 %v29922_v39  ;;  %v30243_v20 = vpop.permute.xlu0 %15637 }
 0x54c   :  { %12888 = vmatpush1.msra.mxu0 %v12734_v29  ;;  %12951 = vmatprep.mubr.f32.mxu0 %v29563_v25  ;;  %v30229_v42 = vpop.permute.xlu1 %14987 }
 0x54d   :  { %13066 = vmatprep.subr.mxu0 %v13052_v10  ;;  %16923 = vrot.lane.b32.xlu1 %v30155_v50, %s32414_s13  ;;  %v32603_v10 = vld [vmem:[#allocation73_spill] sm:$0xff]  ;;  %s32684_s13 = smov 18  }
 0x54e   :  { %27087 = vmatmul.mubr.msk.f32.vlgmr.msra.gmra.mrb[94].mxu1 %vm171_vm1, %v29859_v51  ;;  %17246 = vrot.lane.b32.xlu0 %v29852_v37, %s32411_s6 }
 0x54f   :  { %26531 = vmatmul.mubr.msk.f32.vlgmr.msra.gmra.mrb[6].mxu0 %vm171_vm1, %v32539_v59  ;;  %15151 = vmatprep.mubr.f32.mxu1 %v29563_v25  ;;  %v30268_v33 = vpop.permute.xlu0 %15641 }
 0x550   :  { %13067 = vmatpush1.msra.mxu0 %v13051_v57  ;;  %13130 = vmatprep.mubr.f32.mxu0 %v29563_v25  ;;  %v14994_v34 = vpop.permute.xlu1 %14993  ;;  %v32605_v57 = vld [vmem:[#allocation25_spill] sm:$0xff] }
 0x551   :  { %13208 = vmatprep.subr.mxu0 %v13056_v7  ;;  %17236 = vrot.lane.b32.xlu1 %v29994_v44, %s32411_s6  ;;  %v15004_v37 = vsel %vm32586_vm13, %v14994_v34, %v30005_v18  ;;  %v15003_v59 = vsel %vm32587_vm10, %v29951_v13, %v14994_v34  ;;  %v13373_v44 = vsel %vm32589_vm12, %v32588_v36, %v32554_v23  ;;  %vm32591_vm13 = vmmov %vm32589_vm12 }
 0x552   :  { %15087 = vmatprep.subr.mxu1 %v15004_v37  ;;  %vm32593_vm10 = vmmov %vm32589_vm12  ;;  %v32607_v37 = vld [vmem:[#allocation74_spill] sm:$0xff] }
 0x553   :  { %26533 = vmatmul.mubr.msk.f32.vlgmr.msra.gmra.mrb[4].mxu0 %vm171_vm1, %v32547_v8  ;;  %15088 = vmatpush1.msra.mxu1 %v15003_v59  ;;  %vm32599_vm12 = vmmov %vm32598_vm5 }
 0x554   :  { %13209 = vmatpush1.msra.mxu0 %v13055_v28  ;;  %13272 = vmatprep.mubr.f32.mxu0 %v29563_v25  ;;  %v30264_v35 = vpop.permute.xlu1 %14997 }
 0x555   :  { %13387 = vmatprep.subr.mxu0 %v13373_v44  ;;  %17234 = vrot.lane.b32.xlu1 %v30021_v4, %s32411_s6  ;;  %v13377_v4 = vsel %vm32591_vm13, %v29949_v58, %v29659_v46  ;;  %v30296_v46 = vpop.permute.xlu0 %15954  ;;  %vm32602_vm13 = vcmask 56320  }
 0x556   :  { %26558 = vmatmul.mubr.msk.f32.vlgmr.msra.gmra.mrb[56].mxu1 %vm171_vm1, %v29978_v61  ;;  %27089 = vmatprep.subr.mxu1 %v29563_v25  ;;  %v14034_v29 = vsel %vm32602_vm13, %v32601_v49, %v32569_v55 }
 0x557   :  { %26535 = vmatmul.mubr.msk.f32.vlgmr.msra.gmra.mrb[6].mxu0 %vm171_vm1, %v32547_v8  ;;  %27090 = vmatpush3.msra.mxu1 %v30039_v21  ;;  %v32592_v8 = vld [vmem:[#allocation58_spill] sm:$0xff] }
 0x558   :  { %13388 = vmatpush1.msra.mxu0 %v13372_v19  ;;  %13451 = vmatprep.mubr.f32.mxu0 %v29563_v25  ;;  %v30283_v23 = vpop.permute.xlu1 %15310  ;;  %v13376_v24 = vsel %vm32593_vm10, %v32592_v8, %v29949_v58  ;;  %v32596_v58 = vld [vmem:[#allocation46_spill] sm:$0xff]  ;;  %vm32604_vm10 = vmmov %vm32602_vm13  ;;  %vm32610_vm13 = vcmask 48128  }
 0x559   :  { %13529 = vmatprep.subr.mxu0 %v13377_v4  ;;  %17240 = vrot.lane.b32.xlu1 %v30044_v5, %s32411_s6  ;;  %v13712_v5 = vsel %vm171_vm1, %v32595_v45, %v32594_v16  ;;  %v13711_v53 = vsel %vm171_vm1, %v32596_v58, %v32595_v45  ;;  %v14033_v31 = vsel %vm32604_vm10, %v32603_v10, %v32601_v49  ;;  %v32613_v4 = vld [vmem:[#allocation77_spill] sm:$0xff] }
 0x55a   :  { %27091 = vmatprep.mubr.msk.f32.mxu1 %vm27951_vm2, %v29563_v25 }
 0x55b   :  { %26537 = vmatmul.mubr.msk.f32.vlgmr.msra.gmra.mrb[4].mxu0 %vm171_vm1, %v32556_v40  ;;  %27092 = vmatmul.mubr.msk.f32.vlgmr.msra.gmra.mrb[96].mxu1 %vm171_vm1, %v29978_v61 }
 0x55c   :  { %13530 = vmatpush1.msra.mxu0 %v13376_v24  ;;  %13593 = vmatprep.mubr.f32.mxu0 %v29563_v25  ;;  %v30302_v43 = vpop.permute.xlu1 %15308 }
 0x55d   :  { %13727 = vmatprep.subr.mxu0 %v13712_v5  ;;  %17244 = vrot.lane.b32.xlu1 %v30155_v50, %s32411_s6  ;;  %s32661_s6 = smov 24  }
 0x55e   :  { %15472 = vmatprep.mubr.f32.mxu1 %v29563_v25 }
 0x55f   :  { %26539 = vmatmul.mubr.msk.f32.vlgmr.msra.gmra.mrb[6].mxu0 %vm171_vm1, %v32556_v40  ;;  %v30320_v40 = vpop.permute.xlu0 %15948 }
 0x560   :  { %13728 = vmatpush1.msra.mxu0 %v13711_v53  ;;  %13791 = vmatprep.mubr.f32.mxu0 %v29563_v25  ;;  %v15315_v6 = vpop.permute.xlu1 %15314 }
 0x561   :  { %13869 = vmatprep.subr.mxu0 %v13716_v9  ;;  %v15325_v50 = vsel %vm32598_vm5, %v15315_v6, %v30127_v41  ;;  %v15324_v52 = vsel %vm32599_vm12, %v30070_v15, %v15315_v6  ;;  %vm32606_vm5 = vmmov %vm32604_vm10 }
 0x562   :  { %15408 = vmatprep.subr.mxu1 %v15325_v50  ;;  %v14038_v7 = vsel %vm32606_vm5, %v32605_v57, %v29720_v22  ;;  %vm32608_vm12 = vmmov %vm32606_vm5  ;;  %v32609_v22 = vld [vmem:[#allocation75_spill] sm:$0xff] }
 0x563   :  { %26541 = vmatmul.mubr.msk.f32.vlgmr.msra.gmra.mrb[4].mxu0 %vm171_vm1, %v32564_v14  ;;  %15409 = vmatpush1.msra.mxu1 %v15324_v52  ;;  %v30344_v55 = vpop.permute.xlu0 %15958  ;;  %v14037_v59 = vsel %vm32608_vm12, %v32607_v37, %v32605_v57  ;;  %v14359_v28 = vsel %vm32610_vm13, %v32609_v22, %v30049_v38  ;;  %vm32612_vm10 = vmmov %vm32610_vm13  ;;  %vm32615_vm12 = vcmask 375808  }
 0x564   :  { %13870 = vmatpush1.msra.mxu0 %v13715_v17  ;;  %13933 = vmatprep.mubr.f32.mxu0 %v29563_v25  ;;  %v30331_v48 = vpop.permute.xlu1 %15318  ;;  %v14358_v19 = vsel %vm32612_vm10, %v32611_v11, %v32609_v22  ;;  %vm32614_vm5 = vmmov %vm32612_vm10 }
 0x565   :  { %14050 = vmatprep.subr.mxu0 %v14034_v29  ;;  %26562 = vmatmul.mubr.msk.f32.vlgmr.msra.gmra.mrb[56].mxu1 %vm171_vm1, %v30098_v0  ;;  %v14363_v8 = vsel %vm32614_vm5, %v32613_v4, %v30110_v26  ;;  %vm32616_vm13 = vmmov %vm32615_vm12  ;;  %v30389_v26 = vld [vmem:[#allocation3] sm:$0xff] }
 0x566   :  { %27094 = vmatprep.subr.mxu1 %v29563_v25  ;;  %27096 = vmatprep.mubr.msk.f32.mxu1 %vm27951_vm2, %v29563_v25  ;;  %vm32617_vm10 = vmmov %vm32614_vm5  ;;  %vm32618_vm5 = vcmask 457728  }
 0x567   :  { %26543 = vmatmul.mubr.msk.f32.vlgmr.msra.gmra.mrb[6].mxu0 %vm171_vm1, %v32564_v14  ;;  %27095 = vmatpush3.msra.mxu1 %v30159_v47  ;;  %v27800_v14 = vld [vmem:[#allocation7 + $0x18] sm:$0xff]  ;;  %v30365_v44 = vpop.permute.xlu0 %15962  ;;  %v14362_v45 = vsel %vm32617_vm10, %v30090_v56, %v32613_v4  ;;  %vm32621_vm10 = vmmov %vm32618_vm5 }
 0x568   :  { %14051 = vmatpush1.msra.mxu0 %v14033_v31  ;;  %14114 = vmatprep.mubr.f32.mxu0 %v29563_v25  ;;  %v30350_v34 = vpop.permute.xlu1 %15631 }
 0x569   :  { %14192 = vmatprep.subr.mxu0 %v14038_v7  ;;  %27097 = vmatmul.mubr.msk.f32.vlgmr.msra.gmra.mrb[98].mxu1 %vm171_vm1, %v30098_v0 }
 0x56a   :  { %15793 = vmatprep.mubr.f32.mxu1 %v29563_v25 }
 0x56b   :  { %26545 = vmatmul.mubr.msk.f32.vlgmr.msra.gmra.mrb[4].mxu0 %vm171_vm1, %v27800_v14  ;;  %v30384_v5 = vpop.permute.xlu0 %16275 }
 0x56c   :  { %14193 = vmatpush1.msra.mxu0 %v14037_v59  ;;  %14256 = vmatprep.mubr.f32.mxu0 %v29563_v25 }
 0x56d   :  { %14374 = vmatprep.subr.mxu0 %v14359_v28  ;;  %v30363_v36 = vpop.permute.xlu1 %15629  ;;  %v8889_v28 = vld [vmem:[#allocation9 + $0x8] sm:$0xff] }
 0x56e   :  { %17555 = vperm.xlu1 %27782, %v8889_v28  }
 0x56f   :  { %26547 = vmatmul.mubr.msk.f32.vlgmr.msra.gmra.mrb[6].mxu0 %vm171_vm1, %v27800_v14 }
 0x570   :  { %14375 = vmatpush1.msra.mxu0 %v14358_v19  ;;  %14438 = vmatprep.mubr.f32.mxu0 %v29563_v25  ;;  %v14681_v25 = vsel %vm32618_vm5, %v30133_v27, %v29836_v60 }
 0x571   :  { %14516 = vmatprep.subr.mxu0 %v14363_v8  ;;  %v15636_v38 = vpop.permute.xlu1 %15635 }
 0x572   :  { %v15646_v24 = vsel %vm32615_vm12, %v15636_v38, %v30243_v20  ;;  %v15645_v16 = vsel %vm32616_vm13, %v30188_v2, %v15636_v38  ;;  %vm32619_vm12 = vmmov %vm32618_vm5 }
 0x573   :  { %26549 = vmatmul.mubr.msk.f32.vlgmr.msra.gmra.mrb[4].mxu0 %vm171_vm1, %v30072_v62  ;;  %15729 = vmatprep.subr.mxu1 %v15646_v24  ;;  %v14680_v58 = vsel %vm32619_vm12, %v30153_v1, %v30133_v27  ;;  %vm32620_vm13 = vmmov %vm32618_vm5  ;;  %v30409_v27 = vpop.permute.xlu0 %16269  ;;  %vm32622_vm5 = vcmask 449536  }
 0x574   :  { %14517 = vmatpush1.msra.mxu0 %v14362_v45  ;;  %14580 = vmatprep.mubr.f32.mxu0 %v30389_v26  ;;  %v14685_v12 = vsel %vm32620_vm13, %v30194_v32, %v29922_v39  ;;  %v15002_v39 = vsel %vm32622_vm5, %v30210_v30, %v29951_v13  ;;  %vm32623_vm12 = vmmov %vm32622_vm5 }
 0x575   :  { %14695 = vmatprep.subr.mxu0 %v14681_v25  ;;  %15730 = vmatpush1.msra.mxu1 %v15645_v16  ;;  %v15001_v6 = vsel %vm32623_vm12, %v30229_v42, %v30210_v30  ;;  %vm32624_vm13 = vmmov %vm32622_vm5  ;;  %vm32627_vm12 = vcmask 367616  }
 0x576   :  { %26566 = vmatmul.mubr.msk.f32.vlgmr.msra.gmra.mrb[56].mxu1 %vm171_vm1, %v30214_v54  ;;  %27099 = vmatprep.subr.mxu1 %v30389_v26  ;;  %v9215_v56 = vpop.f32.mrb[58].mxu1  ;;  %v15006_v13 = vsel %vm32624_vm13, %v30264_v35, %v30039_v21  ;;  %vm32628_vm13 = vmmov %vm32627_vm12 }
 0x577   :  { %26551 = vmatmul.mubr.msk.f32.vlgmr.msra.gmra.mrb[6].mxu0 %vm171_vm1, %v30072_v62  ;;  %v30400_v60 = vpop.permute.xlu1 %15639  ;;  %27100 = vmatpush3.msra.mxu1 %v30268_v33  ;;  %v26998_v53 = vpop.f32.mrb[59].mxu1  ;;  %v14684_v62 = vsel %vm32621_vm10, %v29894_v63, %v30194_v32  ;;  %vm32625_vm10 = vmmov %vm32622_vm5  ;;  %vm32626_vm5 = vcmask 441344  }
 0x578   :  { %14696 = vmatpush1.msra.mxu0 %v14680_v58  ;;  %14759 = vmatprep.mubr.f32.mxu0 %v30389_v26  ;;  %v30430_v50 = vpop.permute.xlu0 %16279  ;;  %v15323_v30 = vsel %vm32626_vm5, %v30283_v23, %v30070_v15  ;;  %v15327_v29 = vsel %vm32626_vm5, %v30331_v48, %v30159_v47 }
 0x579   :  { %14837 = vmatprep.subr.mxu0 %v14685_v12  ;;  %27101 = vmatprep.mubr.msk.f32.mxu1 %vm27951_vm2, %v30389_v26 }
 0x57a   :  { %27102 = vmatmul.mubr.msk.f32.vlgmr.msra.gmra.mrb[100].mxu1 %vm171_vm1, %v30214_v54 }
 0x57b   :  { %26553 = vmatmul.mubr.msk.f32.vlgmr.msra.gmra.mrb[4].mxu0 %vm171_vm1, %v29859_v51  ;;  %v30418_v1 = vpop.permute.xlu1 %15952  ;;  %16114 = vmatprep.mubr.f32.mxu1 %v30389_v26 }
 0x57c   :  { %14838 = vmatpush1.msra.mxu0 %v14684_v62  ;;  %14901 = vmatprep.mubr.f32.mxu0 %v30389_v26  ;;  %v30445_v42 = vpop.permute.xlu0 %16283 }
 0x57d   :  { %15016 = vmatprep.subr.mxu0 %v15002_v39 }
 0x57e   :  { %v9500_v9 = vpop.f32.mrb[60].mxu1 }
 0x57f   :  { %26555 = vmatmul.mubr.msk.f32.vlgmr.msra.gmra.mrb[6].mxu0 %vm171_vm1, %v29859_v51  ;;  %v9501_v63 = vadd.f32 %v9500_v9, %v9215_v56  ;;  %v27003_v32 = vpop.f32.mrb[61].mxu1  ;;  %v15005_v51 = vsel %vm32625_vm10, %v30005_v18, %v30264_v35  ;;  %vm32629_vm10 = vmmov %vm32626_vm5 }
 0x580   :  { %15017 = vmatpush1.msra.mxu0 %v15001_v6  ;;  %15080 = vmatprep.mubr.f32.mxu0 %v30389_v26  ;;  %v15322_v18 = vsel %vm32629_vm10, %v30302_v43, %v30283_v23  ;;  %v30469_v47 = vpop.permute.xlu0 %16596 }
 0x581   :  { %15158 = vmatprep.subr.mxu0 %v15006_v13  ;;  %v15951_v52 = vpop.permute.xlu1 %15950 }
 0x583   :  { %26557 = vmatmul.mubr.msk.f32.vlgmr.msra.gmra.mrb[4].mxu0 %vm171_vm1, %v29978_v61 }
 0x584   :  { %15159 = vmatpush1.msra.mxu0 %v15005_v51  ;;  %15222 = vmatprep.mubr.f32.mxu0 %v30389_v26  ;;  %v30489_v7 = vpop.permute.xlu0 %16590 }
 0x585   :  { %15337 = vmatprep.subr.mxu0 %v15323_v30  ;;  %v15957_v21 = vpop.permute.xlu1 %15956 }
 0x586   :  { %v15967_v3 = vsel %vm32627_vm12, %v15957_v21, %v30344_v55  ;;  %v15966_v17 = vsel %vm32628_vm13, %v30296_v46, %v15957_v21  ;;  %v9814_v49 = vpop.f32.mrb[62].mxu1  ;;  %vm32630_vm12 = vmmov %vm32626_vm5  ;;  %vm32631_vm13 = vcmask 375808  }
 0x587   :  { %26559 = vmatmul.mubr.msk.f32.vlgmr.msra.gmra.mrb[6].mxu0 %vm171_vm1, %v29978_v61  ;;  %16050 = vmatprep.subr.mxu1 %v15967_v3  ;;  %v9824_v15 = vadd.f32 %v9814_v49, %v9501_v63  ;;  %v27008_v35 = vpop.f32.mrb[63].mxu1  ;;  %v15326_v61 = vsel %vm32630_vm12, %v30127_v41, %v30331_v48  ;;  %v15644_v43 = vsel %vm32631_vm13, %v30350_v34, %v30188_v2  ;;  %vm32632_vm10 = vmmov %vm32631_vm13  ;;  %vm32635_vm13 = vcmask 367616  }
 0x588   :  { %15338 = vmatpush1.msra.mxu0 %v15322_v18  ;;  %15401 = vmatprep.mubr.f32.mxu0 %v30389_v26  ;;  %v15643_v48 = vsel %vm32632_vm10, %v30363_v36, %v30350_v34  ;;  %vm32633_vm5 = vmmov %vm32632_vm10  ;;  %v15965_v34 = vsel %vm32635_vm13, %v30418_v1, %v30296_v46 }
 0x589   :  { %15479 = vmatprep.subr.mxu0 %v15327_v29  ;;  %16051 = vmatpush1.msra.mxu1 %v15966_v17  ;;  %v15648_v57 = vsel %vm32633_vm5, %v30400_v60, %v30268_v33  ;;  %vm32634_vm12 = vmmov %vm32633_vm5 }
 0x58a   :  { %26570 = vmatmul.mubr.msk.f32.vlgmr.msra.gmra.mrb[56].mxu1 %vm171_vm1, %v30320_v40  ;;  %27104 = vmatprep.subr.mxu1 %v30389_v26  ;;  %vm32636_vm10 = vmmov %vm32635_vm13 }
 0x58b   :  { %26561 = vmatmul.mubr.msk.f32.vlgmr.msra.gmra.mrb[4].mxu0 %vm171_vm1, %v30098_v0  ;;  %v15961_v23 = vpop.permute.xlu1 %15960  ;;  %27105 = vmatpush3.msra.mxu1 %v30365_v44  ;;  %v15964_v37 = vsel %vm32636_vm10, %v15951_v52, %v30418_v1  ;;  %vm32637_vm5 = vmmov %vm32636_vm10 }
 0x58c   :  { %15480 = vmatpush1.msra.mxu0 %v15326_v61  ;;  %15543 = vmatprep.mubr.f32.mxu0 %v30389_v26  ;;  %v15969_v46 = vsel %vm32637_vm5, %v15961_v23, %v30365_v44  ;;  %vm32640_vm10 = vmmov %vm32637_vm5 }
 0x58d   :  { %15658 = vmatprep.subr.mxu0 %v15644_v43  ;;  %27106 = vmatprep.mubr.msk.f32.mxu1 %vm27951_vm2, %v30389_v26  ;;  %v15968_v19 = vsel %vm32640_vm10, %v30344_v55, %v15961_v23 }
 0x58e   :  { %27107 = vmatmul.mubr.msk.f32.vlgmr.msra.gmra.mrb[102].mxu1 %vm171_vm1, %v30320_v40  ;;  %v10135_v41 = vpop.f32.mrb[64].mxu1 }
 0x58f   :  { %26563 = vmatmul.mubr.msk.f32.vlgmr.msra.gmra.mrb[6].mxu0 %vm171_vm1, %v30098_v0  ;;  %v16274_v10 = vpop.permute.xlu1 %16273  ;;  %16435 = vmatprep.mubr.f32.mxu1 %v30389_v26  ;;  %v10145_v2 = vadd.f32 %v10135_v41, %v9824_v15  ;;  %v27013_v31 = vpop.f32.mrb[65].mxu1  ;;  %v15647_v0 = vsel %vm32634_vm12, %v30243_v20, %v30400_v60  ;;  %vm32638_vm12 = vcmask 359424  }
 0x590   :  { %15659 = vmatpush1.msra.mxu0 %v15643_v48  ;;  %15722 = vmatprep.mubr.f32.mxu0 %v30389_v26  ;;  %v30504_v20 = vpop.permute.xlu0 %16600  ;;  %vm32639_vm13 = vmmov %vm32638_vm12 }
 0x591   :  { %15800 = vmatprep.subr.mxu0 %v15648_v57  ;;  %vm32641_vm5 = vmmov %vm32638_vm12 }
 0x592   :  { %v16286_v44 = vsel %vm32641_vm5, %v16274_v10, %v30384_v5  ;;  %vm32644_vm10 = vmmov %vm32641_vm5 }
 0x593   :  { %26565 = vmatmul.mubr.msk.f32.vlgmr.msra.gmra.mrb[4].mxu0 %vm171_vm1, %v30214_v54 }
 0x594   :  { %15801 = vmatpush1.msra.mxu0 %v15647_v0  ;;  %15864 = vmatprep.mubr.f32.mxu0 %v30389_v26  ;;  %v16605_v4 = vpop.permute.xlu0 %16604 }
 0x595   :  { %15979 = vmatprep.subr.mxu0 %v15965_v34  ;;  %v16272_v33 = vpop.permute.xlu1 %16271 }
 0x596   :  { %v10456_v14 = vpop.f32.mrb[66].mxu1 }
 0x597   :  { %26567 = vmatmul.mubr.msk.f32.vlgmr.msra.gmra.mrb[6].mxu0 %vm171_vm1, %v30214_v54  ;;  %v10466_v59 = vadd.f32 %v10456_v14, %v10145_v2  ;;  %v27018_v22 = vpop.f32.mrb[67].mxu1 }
 0x598   :  { %15980 = vmatpush1.msra.mxu0 %v15964_v37  ;;  %16043 = vmatprep.mubr.f32.mxu0 %v30389_v26  ;;  %v16918_v56 = vpop.permute.xlu0 %16917 }
 0x599   :  { %16121 = vmatprep.subr.mxu0 %v15969_v46  ;;  %v16278_v36 = vpop.permute.xlu1 %16277 }
 0x59a   :  { %v16288_v11 = vsel %vm32638_vm12, %v16278_v36, %v30430_v50  ;;  %v16287_v54 = vsel %vm32639_vm13, %v30384_v5, %v16278_v36  ;;  %vm32642_vm12 = vmmov %vm32641_vm5 }
 0x59b   :  { %26569 = vmatmul.mubr.msk.f32.vlgmr.msra.gmra.mrb[4].mxu0 %vm171_vm1, %v30320_v40  ;;  %16371 = vmatprep.subr.mxu1 %v16288_v11  ;;  %v16285_v38 = vsel %vm32642_vm12, %v16272_v33, %v16274_v10  ;;  %vm32643_vm13 = vmmov %vm32641_vm5  ;;  %vm32645_vm5 = vcmask 293888  }
 0x59c   :  { %16122 = vmatpush1.msra.mxu0 %v15968_v19  ;;  %16185 = vmatprep.mubr.f32.mxu0 %v30389_v26  ;;  %vm32646_vm12 = vmmov %vm32645_vm5  ;;  %v16912_v1 = vpop.permute.xlu0 %16911 }
 0x59d   :  { %16300 = vmatprep.subr.mxu0 %v16286_v44  ;;  %16372 = vmatpush1.msra.mxu1 %v16287_v54 }
 0x59e   :  { %26574 = vmatmul.mubr.msk.f32.vlgmr.msra.gmra.mrb[56].mxu1 %vm171_vm1, %v30409_v27  ;;  %27109 = vmatprep.subr.mxu1 %v30389_v26  ;;  %v10777_v8 = vpop.f32.mrb[68].mxu1 }
 0x59f   :  { %26571 = vmatmul.mubr.msk.f32.vlgmr.msra.gmra.mrb[6].mxu0 %vm171_vm1, %v30320_v40  ;;  %v16282_v55 = vpop.permute.xlu1 %16281  ;;  %27110 = vmatpush3.msra.mxu1 %v30445_v42  ;;  %v10787_v24 = vadd.f32 %v10777_v8, %v10466_v59  ;;  %v27023_v16 = vpop.f32.mrb[69].mxu1  ;;  %v30599_v8 = vld [vmem:[#allocation7 + $0x20] sm:$0xff] }
 0x5a0   :  { %16301 = vmatpush1.msra.mxu0 %v16285_v38  ;;  %v16290_v45 = vsel %vm32643_vm13, %v16282_v55, %v30445_v42  ;;  %16364 = vmatprep.mubr.f32.mxu0 %v30389_v26  ;;  %v16289_v40 = vsel %vm32644_vm10, %v30430_v50, %v16282_v55  ;;  %vm32647_vm13 = vmmov %vm32645_vm5  ;;  %v16922_v51 = vpop.permute.xlu0 %16921 }
 0x5a1   :  { %16442 = vmatprep.subr.mxu0 %v16290_v45  ;;  %27111 = vmatprep.mubr.msk.f32.mxu1 %vm27951_vm2, %v30389_v26  ;;  %vm32648_vm10 = vmmov %vm32645_vm5 }
 0x5a2   :  { %27112 = vmatmul.mubr.msk.f32.vlgmr.msra.gmra.mrb[104].mxu1 %vm171_vm1, %v30409_v27  ;;  %17633 = vrot.lane.b32.xlu0 %v30599_v8, %s27936_s1 }
 0x5a3   :  { %26573 = vmatmul.mubr.msk.f32.vlgmr.msra.gmra.mrb[4].mxu0 %vm171_vm1, %v30409_v27  ;;  %v16595_v5 = vpop.permute.xlu1 %16594  ;;  %16756 = vmatprep.mubr.f32.mxu1 %v30389_v26 }
 0x5a4   :  { %16443 = vmatpush1.msra.mxu0 %v16289_v40  ;;  %v16607_v25 = vsel %vm32645_vm5, %v16595_v5, %v30469_v47  ;;  %16506 = vmatprep.mubr.f32.mxu0 %v30389_v26  ;;  %v16926_v42 = vpop.permute.xlu0 %16925 }
 0x5a5   :  { %16621 = vmatprep.subr.mxu0 %v16607_v25 }
 0x5a6   :  { %v11098_v58 = vpop.f32.mrb[70].mxu1  ;;  %18239 = vrot.lane.b32.xlu0 %v30599_v8, %s27938_s15 }
 0x5a7   :  { %26575 = vmatmul.mubr.msk.f32.vlgmr.msra.gmra.mrb[6].mxu0 %vm171_vm1, %v30409_v27  ;;  %v16593_v60 = vpop.permute.xlu1 %16592  ;;  %v11108_v53 = vadd.f32 %v11098_v58, %v10787_v24  ;;  %v27028_v12 = vpop.f32.mrb[71].mxu1 }
 0x5a8   :  { %v16606_v62 = vsel %vm32646_vm12, %v16593_v60, %v16595_v5  ;;  %16685 = vmatprep.mubr.f32.mxu0 %v30389_v26  ;;  %vm32649_vm12 = vmmov %vm32645_vm5  ;;  %v17239_v23 = vpop.permute.xlu0 %17238 }
 0x5a9   :  { %16622 = vmatpush1.msra.mxu0 %v16606_v62 }
 0x5aa   :  { %18560 = vrot.lane.b32.xlu0 %v30599_v8, %s27940_s17 }
 0x5ab   :  { %26577 = vmatmul.mubr.msk.f32.vlgmr.msra.gmra.mrb[4].mxu0 %vm171_vm1, %v30489_v7  ;;  %v16599_v39 = vpop.permute.xlu1 %16598 }
 0x5ac   :  { %v16609_v9 = vsel %vm32647_vm13, %v16599_v39, %v30504_v20  ;;  %v16608_v6 = vsel %vm32648_vm10, %v30469_v47, %v16599_v39  ;;  %16827 = vmatprep.mubr.f32.mxu0 %v30389_v26  ;;  %vm32650_vm13 = vcmask 285696   ;;  %v17233_v48 = vpop.permute.xlu0 %17232 }
 0x5ad   :  { %16692 = vmatprep.subr.mxu1 %v16609_v9  ;;  %vm32651_vm10 = vmmov %vm32650_vm13 }
 0x5ae   :  { %16693 = vmatpush1.msra.mxu1 %v16608_v6  ;;  %v11419_v27 = vpop.f32.mrb[72].mxu1  ;;  %18881 = vrot.lane.b32.xlu0 %v30599_v8, %s27942_s19 }
 0x5af   :  { %26578 = vmatmul.mubr.msk.f32.vlgmr.msra.gmra.mrb[56].mxu1 %vm171_vm1, %v30489_v7  ;;  %v16603_v63 = vpop.permute.xlu1 %16602  ;;  %27114 = vmatprep.subr.mxu1 %v30389_v26  ;;  %v11429_v32 = vadd.f32 %v11419_v27, %v11108_v53  ;;  %v27033_v50 = vpop.f32.mrb[73].mxu1  ;;  %v30627_v27 = vld [vmem:[#allocation3 + $0x38] sm:$0xff] }
 0x5b0   :  { %v16611_v13 = vsel %vm32645_vm5, %v16603_v63, %v16605_v4  ;;  %v16610_v52 = vsel %vm32649_vm12, %v30504_v20, %v16603_v63  ;;  %27115 = vmatpush3.msra.mxu1 %v16605_v4  ;;  %27116 = vmatprep.mubr.msk.f32.mxu1 %vm27951_vm2, %v30389_v26  ;;  %vm32652_vm5 = vmmov %vm32651_vm10  ;;  %v17243_v33 = vpop.permute.xlu0 %17242 }
 0x5b1   :  { %16763 = vmatprep.subr.mxu0 %v16611_v13  ;;  %vm32653_vm12 = vmmov %vm32652_vm5  ;;  %22444 = vrot.lane.b32.xlu1 %v30627_v27, %s27932_s24  ;;  %v30637_v13 = vld [vmem:[#allocation7 + $0x28] sm:$0xff] }
 0x5b2   :  { %16764 = vmatpush1.msra.mxu0 %v16610_v52  ;;  %19202 = vrot.lane.b32.xlu0 %v30599_v8, %s27944_s21 }
 0x5b3   :  { %26579 = vmatmul.mubr.msk.f32.vlgmr.msra.gmra.mrb[6].mxu0 %vm171_vm1, %v30489_v7  ;;  %27117 = vmatmul.mubr.msk.f32.vlgmr.msra.gmra.mrb[106].mxu1 %vm171_vm1, %v30489_v7  ;;  %v16916_v30 = vpop.permute.xlu1 %16915 }
 0x5b4   :  { %v16928_v21 = vsel %vm32650_vm13, %v16916_v30, %v16918_v56  ;;  %17006 = vmatprep.mubr.f32.mxu0 %v30389_v26  ;;  %17077 = vmatprep.mubr.f32.mxu1 %v30389_v26  ;;  %vm32654_vm13 = vmmov %vm32652_vm5 }
 0x5b5   :  { %16942 = vmatprep.subr.mxu0 %v16928_v21  ;;  %22766 = vrot.lane.b32.xlu1 %v30627_v27, %s32475_s2 }
 0x5b6   :  { %19523 = vrot.lane.b32.xlu0 %v30599_v8, %s27946_s23 }
 0x5b7   :  { %v16914_v3 = vpop.permute.xlu1 %16913 }
 0x5b8   :  { %v16927_v17 = vsel %vm32651_vm10, %v16914_v3, %v16916_v30  ;;  %vm32655_vm10 = vmmov %vm32652_vm5 }
 0x5b9   :  { %16943 = vmatpush1.msra.mxu0 %v16927_v17  ;;  %23075 = vrot.lane.b32.xlu1 %v30637_v13, %s27936_s1  ;;  %s32664_s1 = smov 111  }
 0x5ba   :  { %26581 = vmatmul.mubr.msk.f32.vlgmr.msra.gmra.mrb[4].mxu0 %vm171_vm1, %v16912_v1  ;;  %v11740_v49 = vpop.f32.mrb[74].mxu1  ;;  %19844 = vrot.lane.b32.xlu0 %v30599_v8, %s27948_s25 }
 0x5bb   :  { %v16920_v18 = vpop.permute.xlu1 %16919  ;;  %17148 = vmatprep.mubr.f32.mxu0 %v30389_v26  ;;  %v11750_v15 = vadd.f32 %v11740_v49, %v11429_v32  ;;  %v27038_v35 = vpop.f32.mrb[75].mxu1 }
 0x5bc   :  { %v16930_v29 = vsel %vm32652_vm5, %v16920_v18, %v16922_v51  ;;  %v16929_v61 = vsel %vm32653_vm12, %v16918_v56, %v16920_v18  ;;  %vm32656_vm5 = vcmask 277504  }
 0x5bd   :  { %17013 = vmatprep.subr.mxu1 %v16930_v29  ;;  %vm32657_vm12 = vmmov %vm32656_vm5 }
 0x5be   :  { %17014 = vmatpush1.msra.mxu1 %v16929_v61  ;;  %20165 = vrot.lane.b32.xlu0 %v30599_v8, %s32416_s28  ;;  %s32685_s28 = smov 17  }
 0x5bf   :  { %26582 = vmatmul.mubr.msk.f32.vlgmr.msra.gmra.mrb[56].mxu1 %vm171_vm1, %v16912_v1  ;;  %v16924_v47 = vpop.permute.xlu1 %16923  ;;  %27119 = vmatprep.subr.mxu1 %v30389_v26 }
 0x5c0   :  { %v16932_v43 = vsel %vm32654_vm13, %v16924_v47, %v16926_v42  ;;  %v16931_v41 = vsel %vm32655_vm10, %v16922_v51, %v16924_v47  ;;  %27120 = vmatpush3.msra.mxu1 %v16926_v42  ;;  %27121 = vmatprep.mubr.msk.f32.mxu1 %vm27951_vm2, %v30389_v26  ;;  %vm32658_vm13 = vmmov %vm32656_vm5  ;;  %v17247_v22 = vpop.permute.xlu0 %17246 }
 0x5c1   :  { %17084 = vmatprep.subr.mxu0 %v16932_v43  ;;  %vm32659_vm10 = vmmov %vm32656_vm5 }
 0x5c2   :  { %17085 = vmatpush1.msra.mxu0 %v16931_v41  ;;  %20486 = vrot.lane.b32.xlu0 %v30599_v8, %s27953_s30 }
 0x5c3   :  { %26583 = vmatmul.mubr.msk.f32.vlgmr.msra.gmra.mrb[6].mxu0 %vm171_vm1, %v16912_v1  ;;  %27122 = vmatmul.mubr.msk.f32.vlgmr.msra.gmra.mrb[108].mxu1 %vm171_vm1, %v16912_v1  ;;  %v17237_v10 = vpop.permute.xlu1 %17236 }
 0x5c4   :  { %v17249_v2 = vsel %vm32656_vm5, %v17237_v10, %v17239_v23  ;;  %17327 = vmatprep.mubr.f32.mxu0 %v30389_v26  ;;  %17398 = vmatprep.mubr.f32.mxu1 %v30389_v26 }
 0x5c5   :  { %17263 = vmatprep.subr.mxu0 %v17249_v2 }
 0x5c6   :  { %v12061_v31 = vpop.f32.mrb[76].mxu1  ;;  %20807 = vrot.lane.b32.xlu0 %v30599_v8, %s32413_s7  ;;  %s32683_s7 = smov 26  }
 0x5c7   :  { %v17235_v57 = vpop.permute.xlu1 %17234  ;;  %v12071_v7 = vadd.f32 %v12061_v31, %v11750_v15  ;;  %v27043_v0 = vpop.f32.mrb[77].mxu1 }
 0x5c8   :  { %v17248_v34 = vsel %vm32657_vm12, %v17235_v57, %v17237_v10  ;;  %vm32660_vm12 = vmmov %vm32656_vm5 }
 0x5c9   :  { %17264 = vmatpush1.msra.mxu0 %v17248_v34 }
 0x5ca   :  { %26585 = vmatmul.mubr.msk.f32.vlgmr.msra.gmra.mrb[4].mxu0 %vm171_vm1, %v17233_v48  ;;  %21128 = vrot.lane.b32.xlu0 %v30599_v8, %s27957_s9  ;;  %s32679_s9 = smov 127  }
 0x5cb   :  { %v17241_v14 = vpop.permute.xlu1 %17240  ;;  %17469 = vmatprep.mubr.f32.mxu0 %v30389_v26 }
 0x5cc   :  { %v17251_v37 = vsel %vm32658_vm13, %v17241_v14, %v17243_v33  ;;  %v17250_v59 = vsel %vm32659_vm10, %v17239_v23, %v17241_v14  ;;  %vm32678_vm13 = vcmask 1048440  }
 0x5cd   :  { %17334 = vmatprep.subr.mxu1 %v17251_v37 }
 0x5ce   :  { %17335 = vmatpush1.msra.mxu1 %v17250_v59  ;;  %21449 = vrot.lane.b32.xlu0 %v30599_v8, %s27959_s11  ;;  %s32680_s11 = smov 106  }
 0x5cf   :  { %26586 = vmatmul.mubr.msk.f32.vlgmr.msra.gmra.mrb[56].mxu1 %vm171_vm1, %v17233_v48  ;;  %v17245_v28 = vpop.permute.xlu1 %17244  ;;  %27124 = vmatprep.subr.mxu1 %v30389_v26 }
 0x5d0   :  { %v17253_v20 = vsel %vm32656_vm5, %v17245_v28, %v17247_v22  ;;  %v17252_v46 = vsel %vm32660_vm12, %v17243_v33, %v17245_v28  ;;  %27125 = vmatpush3.msra.mxu1 %v17247_v22  ;;  %27126 = vmatprep.mubr.msk.f32.mxu1 %vm27951_vm2, %v30389_v26  ;;  %v12382_v36 = vpop.f32.mrb[78].mxu1  ;;  %v32662_v22 = vld [vmem:[#allocation18_spill] sm:$0xff] }
 0x5d1   :  { %17405 = vmatprep.subr.mxu0 %v17253_v20  ;;  %v12392_v11 = vadd.f32 %v12382_v36, %v12071_v7  ;;  %v27048_v54 = vpop.f32.mrb[79].mxu1  ;;  %v32663_v20 = vld [vmem:[#allocation19_spill] sm:$0xff] }
 0x5d2   :  { %17406 = vmatpush1.msra.mxu0 %v17252_v46  ;;  %21770 = vrot.lane.b32.xlu0 %v30599_v8, %s32661_s6  ;;  %s32681_s6 = smov 28  }
 0x5d3   :  { %26587 = vmatmul.mubr.msk.f32.vlgmr.msra.gmra.mrb[6].mxu0 %vm171_vm1, %v17233_v48  ;;  %27127 = vmatmul.mubr.msk.f32.vlgmr.msra.gmra.mrb[110].mxu1 %vm171_vm1, %v17233_v48 }
 0x5d4   :  { %17735 = vmatprep.mubr.f32.mxu0 %v30389_v26  ;;  %17806 = vmatprep.mubr.f32.mxu1 %v30389_v26 }
 0x5d6   :  { %22091 = vrot.lane.b32.xlu0 %v30599_v8, %s27928_s26 }
 0x5da   :  { %v12703_v19 = vpop.f32.mrb[80].mxu1  ;;  %22420 = vrot.lane.b32.xlu0 %v30599_v8, %s27932_s24 }
 0x5db   :  { %v12713_v44 = vadd.f32 %v12703_v19, %v12392_v11  ;;  %v27053_v4 = vpop.f32.mrb[81].mxu1 }
 0x5e4   :  { %v13024_v38 = vpop.f32.mrb[82].mxu1 }
 0x5e5   :  { %v13034_v55 = vadd.f32 %v13024_v38, %v12713_v44  ;;  %v27058_v24 = vpop.f32.mrb[83].mxu1 }
 0x5ed   :  { %v17556_v57 = vpop.permute.xlu1 %17555 }
 0x5ee   :  { %v13345_v16 = vpop.f32.mrb[84].mxu1 }
 0x5ef   :  { %v13355_v45 = vadd.f32 %v13345_v16, %v13034_v55  ;;  %v27063_v40 = vpop.f32.mrb[85].mxu1  ;;  %v32665_v55 = vld [vmem:[#allocation17_spill] sm:$0xff] }
 0x5f8   :  { %v13666_v5 = vpop.f32.mrb[86].mxu1 }
 0x5f9   :  { %v13676_v25 = vadd.f32 %v13666_v5, %v13355_v45  ;;  %v27068_v56 = vpop.f32.mrb[87].mxu1 }
 0x601   :  { %v14006_v58 = vpop.f32.mrb[88].mxu1 }
 0x602   :  { %v14016_v60 = vadd.f32 %v14006_v58, %v13676_v25  ;;  %v27073_v53 = vpop.f32.mrb[89].mxu1  ;;  %v32666_v25 = vld [vmem:[#allocation21_spill] sm:$0xff] }
 0x60a   :  { %v14329_v12 = vpop.f32.mrb[90].mxu1 }
 0x60b   :  { %v14339_v62 = vadd.f32 %v14329_v12, %v14016_v60  ;;  %v27078_v1 = vpop.f32.mrb[91].mxu1 }
 0x616   :  { %v14653_v39 = vpop.f32.mrb[92].mxu1 }
 0x617   :  { %v14663_v9 = vadd.f32 %v14653_v39, %v14339_v62  ;;  %v27083_v6 = vpop.f32.mrb[93].mxu1  ;;  %v32667_v62 = vld [vmem:[#allocation20_spill] sm:$0xff] }
 0x621   :  { %v14974_v63 = vpop.f32.mrb[94].mxu1 }
 0x622   :  { %v14984_v32 = vadd.f32 %v14974_v63, %v14663_v9  ;;  %v27088_v50 = vpop.f32.mrb[95].mxu1  ;;  %v32668_v9 = vld [vmem:[#allocation23_spill] sm:$0xff]  ;;  %v32669_v63 = vld [vmem:[#allocation22_spill] sm:$0xff] }
 0x623   :  { %v30655_v50 = vpop.permute.xlu0 %17633 }
 0x62e   :  { %v15295_v52 = vpop.f32.mrb[96].mxu1 }
 0x62f   :  { %v15305_v51 = vadd.f32 %v15295_v52, %v14984_v32  ;;  %v27093_v30 = vpop.f32.mrb[97].mxu1  ;;  %v30657_v52 = vpop.permute.xlu0 %18239 }
 0x63c   :  { %v15616_v21 = vpop.f32.mrb[98].mxu1 }
 0x63d   :  { %v15626_v42 = vadd.f32 %v15616_v21, %v15305_v51  ;;  %v27098_v3 = vpop.f32.mrb[99].mxu1  ;;  %v30659_v51 = vpop.permute.xlu0 %18560 }
 0x641   :  { %v30661_v30 = vpop.permute.xlu0 %18881 }
 0x645   :  { %v30663_v21 = vpop.permute.xlu0 %19202 }
 0x64d   :  { %v15937_v17 = vpop.f32.mrb[100].mxu1 }
 0x64e   :  { %v15947_v49 = vadd.f32 %v15937_v17, %v15626_v42  ;;  %v27103_v18 = vpop.f32.mrb[101].mxu1  ;;  %v30665_v42 = vpop.permute.xlu0 %19523 }
 0x652   :  { %v30667_v3 = vpop.permute.xlu0 %19844 }
 0x656   :  { %v30669_v17 = vpop.permute.xlu0 %20165 }
 0x661   :  { %v16258_v15 = vpop.f32.mrb[102].mxu1 }
 0x662   :  { %v16268_v35 = vadd.f32 %v16258_v15, %v15947_v49  ;;  %v27108_v29 = vpop.f32.mrb[103].mxu1  ;;  %v30671_v49 = vpop.permute.xlu0 %20486 }
 0x663   :  { %v30679_v29 = vpop.permute.xlu1 %22444 }
 0x664   :  { %32672 = vst [vmem:[#allocation55_spill] sm:$0xff] %v30679_v29 }
 0x666   :  { %v30673_v18 = vpop.permute.xlu0 %20807 }
 0x66a   :  { %v30675_v15 = vpop.permute.xlu0 %21128 }
 0x66b   :  { %32670 = vst [vmem:[#allocation24_spill] sm:$0xff] %v30675_v15 }
 0x675   :  { %v16579_v61 = vpop.f32.mrb[104].mxu1 }
 0x676   :  { %v16589_v23 = vadd.f32 %v16579_v61, %v16268_v35  ;;  %v27113_v47 = vpop.f32.mrb[105].mxu1  ;;  %v30677_v35 = vpop.permute.xlu0 %21449 }
 0x677   :  { %32671 = vst [vmem:[#allocation48_spill] sm:$0xff] %v30677_v35 }
 0x67a   :  { %v30681_v61 = vpop.permute.xlu0 %21770 }
 0x67b   :  { %32673 = vst [vmem:[#allocation65_spill] sm:$0xff] %v30681_v61 }
 0x67e   :  { %v30685_v47 = vpop.permute.xlu0 %22091 }
 0x67f   :  { %32675 = vst [vmem:[#allocation39_spill] sm:$0xff] %v30685_v47 }
 0x686   :  { %v16900_v43 = vpop.f32.mrb[106].mxu1 }
 0x687   :  { %v16910_v41 = vadd.f32 %v16900_v43, %v16589_v23  ;;  %v27118_v48 = vpop.f32.mrb[107].mxu1  ;;  %v30683_v23 = vpop.permute.xlu1 %22766 }
 0x688   :  { %32674 = vst [vmem:[#allocation53_spill] sm:$0xff] %v30683_v23 }
 0x68b   :  { %v30687_v43 = vpop.permute.xlu1 %23075 }
 0x68c   :  { %32676 = vst [vmem:[#allocation32_spill] sm:$0xff] %v30687_v43 }
 0x696   :  { %v17221_v10 = vpop.f32.mrb[108].mxu1 }
 0x697   :  { %v17231_v2 = vadd.f32 %v17221_v10, %v16910_v41  ;;  %v27123_v31 = vpop.f32.mrb[109].mxu1  ;;  %v30689_v41 = vpop.permute.xlu0 %22420 }
 0x698   :  { %32677 = vst [vmem:[#allocation26_spill] sm:$0xff] %v30689_v41 }
 0x69d   :  { %v17329_v7 = vpop.f32.mrb[4].mxu0 }
 0x69e   :  { %v17331_v0 = vpop.f32.mrb[5].mxu0  ;;  %v17558_v34 = vadd.f32 %v17556_v57, %v17329_v7 }
 0x69f   :  { %v17559_v33 = vadd.f32 %v17556_v57, %v17331_v0 }
 0x6a0   :  { %v17565_v14 = vmax.f32 %v17558_v34, 0.0 }
 0x6a1   :  { %v17566_v37 = vmax.f32 %v17559_v33, 0.0 }
 0x6a2   :  { %v17400_v59 = vpop.f32.mrb[56].mxu1  ;;  %v17572_v28 = vmul.f32 %v17565_v14, %v32662_v22 }
 0x6a3   :  { %v17573_v46 = vmul.f32 %v17566_v37, %v32663_v20  ;;  %v17560_v36 = vadd.f32 %v17556_v57, %v17400_v59  ;;  %v17402_v11 = vpop.f32.mrb[57].mxu1 }
 0x6a4   :  { %v17561_v54 = vadd.f32 %v17556_v57, %v17402_v11  ;;  %17586 = vrot.lane.b32.xlu1 %v17572_v28, %s32664_s1 }
 0x6a5   :  { %v17567_v19 = vmax.f32 %v17560_v36, 0.0  ;;  %17588 = vrot.lane.b32.xlu0 %v17573_v46, %s32664_s1 }
 0x6a6   :  { %v17568_v44 = vmax.f32 %v17561_v54, 0.0  ;;  %v17471_v4 = vpop.f32.mrb[6].mxu0  ;;  %v17542_v38 = vpop.f32.mrb[110].mxu1 }
 0x6a7   :  { %v17574_v24 = vmul.f32 %v17567_v19, %v32665_v55  ;;  %v17562_v16 = vadd.f32 %v17556_v57, %v17471_v4  ;;  %v17552_v45 = vadd.f32 %v17542_v38, %v17231_v2  ;;  %v17473_v40 = vpop.f32.mrb[7].mxu0  ;;  %v27128_v5 = vpop.f32.mrb[111].mxu1 }
 0x6a8   :  { %v17575_v56 = vmul.f32 %v17568_v44, %v32666_v25  ;;  %v17563_v58 = vadd.f32 %v17556_v57, %v17473_v40 }
 0x6a9   :  { %v17569_v60 = vmax.f32 %v17562_v16, 0.0  ;;  %v17564_v53 = vadd.f32 %v17556_v57, %v17552_v45  ;;  %17590 = vrot.lane.b32.xlu0 %v17574_v24, %s32664_s1 }
 0x6aa   :  { %v17570_v12 = vmax.f32 %v17563_v58, 0.0  ;;  %17592 = vrot.lane.b32.xlu1 %v17575_v56, %s32664_s1 }
 0x6ab   :  { %v17576_v1 = vmul.f32 %v17569_v60, %v32667_v62  ;;  %v17571_v39 = vmax.f32 %v17564_v53, 0.0 }
 0x6ac   :  { %v17577_v6 = vmul.f32 %v17570_v12, %v32668_v9 }
 0x6ad   :  { %17594 = vrot.lane.b32.xlu0 %v17576_v1, %s32664_s1  ;;  %v17578_v32 = vmul.f32 %v17571_v39, %v32669_v63 }
 0x6ae   :  { %17596 = vrot.lane.b32.xlu1 %v17577_v6, %s32664_s1 }
 0x6b1   :  { %17598 = vrot.lane.b32.xlu0 %v17578_v32, %s32664_s1  ;;  %s32682_s1 = smov 27  }
 0x716   :  { %v17587_v48 = vpop.permute.xlu1 %17586 }
 0x717   :  { %17613 = vst.msk [vmem:[#allocation3] sm:$0xff] %vm32678_vm13, %v17587_v48  ;;  %v17589_v10 = vpop.permute.xlu0 %17588  ;;  %vm32748_vm13 = vcmask 211968  }
 0x718   :  { %v30693_v2 = vsel %vm8862_vm14, %v17587_v48, %v17589_v10 }
 0x719   :  { %17614 = vst [vmem:[#allocation3 + $0x8] sm:$0xff] %v30693_v2 }
 0x71b   :  { %v17591_v31 = vpop.permute.xlu0 %17590 }
 0x71c   :  { %v30697_v57 = vsel %vm8862_vm14, %v17589_v10, %v17591_v31  ;;  %v17593_v7 = vpop.permute.xlu1 %17592 }
 0x71d   :  { %17615 = vst [vmem:[#allocation3 + $0x10] sm:$0xff] %v30697_v57  ;;  %v30701_v0 = vsel %vm8862_vm14, %v17591_v31, %v17593_v7 }
 0x71e   :  { %v30703_v34 = vld [vmem:[#allocation3] sm:$0xff] }
 0x71f   :  { %v17595_v33 = vpop.permute.xlu0 %17594  ;;  %22752 = vrot.lane.b32.xlu0 %v30703_v34, %s32475_s2  ;;  %17642 = vrot.lane.b32.xlu1 %v30703_v34, %s32679_s9 }
 0x720   :  { %v30710_v14 = vsel %vm8862_vm14, %v17593_v7, %v17595_v33  ;;  %v17597_v37 = vpop.permute.xlu1 %17596 }
 0x721   :  { %17617 = vst [vmem:[#allocation3 + $0x20] sm:$0xff] %v30710_v14  ;;  %v30714_v59 = vsel %vm8862_vm14, %v17595_v33, %v17597_v37 }
 0x723   :  { %v17599_v22 = vpop.permute.xlu0 %17598  ;;  %23077 = vrot.lane.b32.xlu0 %v30703_v34, %s32495_s3  ;;  %18241 = vrot.lane.b32.xlu1 %v30703_v34, %s27937_s14 }
 0x724   :  { %v17605_v28 = vsel %vm8862_vm14, %v17597_v37, %v17599_v22  ;;  %vm32729_vm14 = vcmask 957440  }
 0x725   :  { %17619 = vst.msk [vmem:[#allocation3 + $0x30] sm:$0xff] %vm8883_vm15, %v17605_v28  ;;  %vm32730_vm15 = vmmov %vm32729_vm14 }
 0x726   :  { %vm32743_vm10 = vmmov %vm32729_vm14 }
 0x727   :  { %18562 = vrot.lane.b32.xlu1 %v30703_v34, %s27939_s16  ;;  %22754 = vrot.lane.b32.xlu0 %v30693_v2, %s32475_s2 }
 0x72b   :  { %18883 = vrot.lane.b32.xlu1 %v30703_v34, %s27941_s18  ;;  %23079 = vrot.lane.b32.xlu0 %v30693_v2, %s32495_s3 }
 0x72c   :  { %v30898_v60 = vld [vmem:[#allocation3 + $0x30] sm:$0xff] }
 0x72f   :  { %19204 = vrot.lane.b32.xlu1 %v30703_v34, %s27943_s20  ;;  %17646 = vrot.lane.b32.xlu0 %v30697_v57, %s32679_s9 }
 0x733   :  { %19525 = vrot.lane.b32.xlu1 %v30703_v34, %s27945_s22  ;;  %18245 = vrot.lane.b32.xlu0 %v30697_v57, %s27937_s14 }
 0x737   :  { %19846 = vrot.lane.b32.xlu1 %v30703_v34, %s27947_s0  ;;  %18566 = vrot.lane.b32.xlu0 %v30697_v57, %s27939_s16 }
 0x73b   :  { %20167 = vrot.lane.b32.xlu1 %v30703_v34, %s32680_s11  ;;  %18887 = vrot.lane.b32.xlu0 %v30697_v57, %s27941_s18 }
 0x73f   :  { %20488 = vrot.lane.b32.xlu1 %v30703_v34, %s32681_s6  ;;  %19208 = vrot.lane.b32.xlu0 %v30697_v57, %s27943_s20 }
 0x743   :  { %20809 = vrot.lane.b32.xlu1 %v30703_v34, %s32682_s1  ;;  %19529 = vrot.lane.b32.xlu0 %v30697_v57, %s27945_s22 }
 0x747   :  { %21130 = vrot.lane.b32.xlu1 %v30703_v34, %s32683_s7  ;;  %19850 = vrot.lane.b32.xlu0 %v30697_v57, %s27947_s0 }
 0x74b   :  { %21451 = vrot.lane.b32.xlu1 %v30703_v34, %s32684_s13  ;;  %20171 = vrot.lane.b32.xlu0 %v30697_v57, %s32680_s11 }
 0x74f   :  { %21772 = vrot.lane.b32.xlu1 %v30703_v34, %s32685_s28  ;;  %20492 = vrot.lane.b32.xlu0 %v30697_v57, %s32681_s6 }
 0x753   :  { %22093 = vrot.lane.b32.xlu1 %v30703_v34, %s27928_s26  ;;  %20813 = vrot.lane.b32.xlu0 %v30697_v57, %s32682_s1 }
 0x757   :  { %22430 = vrot.lane.b32.xlu1 %v30703_v34, %s27932_s24  ;;  %21134 = vrot.lane.b32.xlu0 %v30697_v57, %s32683_s7 }
 0x75b   :  { %21455 = vrot.lane.b32.xlu0 %v30697_v57, %s32684_s13  ;;  %17644 = vrot.lane.b32.xlu1 %v30693_v2, %s32679_s9 }
 0x75f   :  { %21776 = vrot.lane.b32.xlu0 %v30697_v57, %s32685_s28  ;;  %18243 = vrot.lane.b32.xlu1 %v30693_v2, %s27937_s14 }
 0x763   :  { %22097 = vrot.lane.b32.xlu0 %v30697_v57, %s27928_s26  ;;  %18564 = vrot.lane.b32.xlu1 %v30693_v2, %s27939_s16 }
 0x767   :  { %22434 = vrot.lane.b32.xlu0 %v30697_v57, %s27932_s24  ;;  %18885 = vrot.lane.b32.xlu1 %v30693_v2, %s27941_s18 }
 0x76b   :  { %19206 = vrot.lane.b32.xlu1 %v30693_v2, %s27943_s20  ;;  %22758 = vrot.lane.b32.xlu0 %v30701_v0, %s32475_s2 }
 0x76f   :  { %19527 = vrot.lane.b32.xlu1 %v30693_v2, %s27945_s22  ;;  %23083 = vrot.lane.b32.xlu0 %v30701_v0, %s32495_s3 }
 0x773   :  { %19848 = vrot.lane.b32.xlu1 %v30693_v2, %s27947_s0  ;;  %17650 = vrot.lane.b32.xlu0 %v30710_v14, %s32679_s9 }
 0x777   :  { %20169 = vrot.lane.b32.xlu1 %v30693_v2, %s32680_s11  ;;  %18249 = vrot.lane.b32.xlu0 %v30710_v14, %s27937_s14 }
 0x77b   :  { %20490 = vrot.lane.b32.xlu1 %v30693_v2, %s32681_s6  ;;  %18570 = vrot.lane.b32.xlu0 %v30710_v14, %s27939_s16 }
 0x77f   :  { %20811 = vrot.lane.b32.xlu1 %v30693_v2, %s32682_s1  ;;  %18891 = vrot.lane.b32.xlu0 %v30710_v14, %s27941_s18 }
 0x783   :  { %21132 = vrot.lane.b32.xlu1 %v30693_v2, %s32683_s7  ;;  %19212 = vrot.lane.b32.xlu0 %v30710_v14, %s27943_s20 }
 0x787   :  { %21453 = vrot.lane.b32.xlu1 %v30693_v2, %s32684_s13  ;;  %19533 = vrot.lane.b32.xlu0 %v30710_v14, %s27945_s22 }
 0x78b   :  { %21774 = vrot.lane.b32.xlu1 %v30693_v2, %s32685_s28  ;;  %19854 = vrot.lane.b32.xlu0 %v30710_v14, %s27947_s0 }
 0x78f   :  { %22095 = vrot.lane.b32.xlu1 %v30693_v2, %s27928_s26  ;;  %20175 = vrot.lane.b32.xlu0 %v30710_v14, %s32680_s11 }
 0x791   :  { %v30830_v20 = vpop.permute.xlu0 %22752  ;;  %v30832_v46 = vpop.permute.xlu1 %17642 }
 0x792   :  { %32686 = vst [vmem:[#allocation49_spill] sm:$0xff] %v30830_v20 }
 0x793   :  { %22432 = vrot.lane.b32.xlu1 %v30693_v2, %s27932_s24  ;;  %20496 = vrot.lane.b32.xlu0 %v30710_v14, %s32681_s6 }
 0x795   :  { %v30838_v36 = vpop.permute.xlu0 %23077  ;;  %v30840_v11 = vpop.permute.xlu1 %18241 }
 0x796   :  { %32687 = vst [vmem:[#allocation57_spill] sm:$0xff] %v30838_v36 }
 0x797   :  { %22756 = vrot.lane.b32.xlu1 %v30697_v57, %s32475_s2  ;;  %20817 = vrot.lane.b32.xlu0 %v30710_v14, %s32682_s1 }
 0x799   :  { %v30846_v54 = vpop.permute.xlu0 %22754  ;;  %v30848_v19 = vpop.permute.xlu1 %18562 }
 0x79a   :  { %32688 = vst [vmem:[#allocation67_spill] sm:$0xff] %v30846_v54 }
 0x79b   :  { %23081 = vrot.lane.b32.xlu1 %v30697_v57, %s32495_s3  ;;  %21138 = vrot.lane.b32.xlu0 %v30710_v14, %s32683_s7 }
 0x79d   :  { %v30854_v44 = vpop.permute.xlu0 %23079  ;;  %v30856_v4 = vpop.permute.xlu1 %18883 }
 0x79e   :  { %32689 = vst [vmem:[#allocation54_spill] sm:$0xff] %v30854_v44 }
 0x79f   :  { %21459 = vrot.lane.b32.xlu0 %v30710_v14, %s32684_s13  ;;  %17648 = vrot.lane.b32.xlu1 %v30701_v0, %s32679_s9 }
 0x7a1   :  { %v30862_v38 = vpop.permute.xlu0 %17646  ;;  %v30864_v55 = vpop.permute.xlu1 %19204 }
 0x7a2   :  { %32690 = vst [vmem:[#allocation41_spill] sm:$0xff] %v30864_v55 }
 0x7a3   :  { %21780 = vrot.lane.b32.xlu0 %v30710_v14, %s32685_s28  ;;  %18247 = vrot.lane.b32.xlu1 %v30701_v0, %s27937_s14 }
 0x7a5   :  { %v30870_v24 = vpop.permute.xlu0 %18245  ;;  %v30872_v16 = vpop.permute.xlu1 %19525 }
 0x7a6   :  { %32691 = vst [vmem:[#allocation33_spill] sm:$0xff] %v30872_v16 }
 0x7a7   :  { %22101 = vrot.lane.b32.xlu0 %v30710_v14, %s27928_s26  ;;  %18568 = vrot.lane.b32.xlu1 %v30701_v0, %s27939_s16 }
 0x7a9   :  { %v30878_v45 = vpop.permute.xlu0 %18566  ;;  %v30880_v40 = vpop.permute.xlu1 %19846 }
 0x7aa   :  { %32692 = vst [vmem:[#allocation27_spill] sm:$0xff] %v30880_v40 }
 0x7ab   :  { %22438 = vrot.lane.b32.xlu0 %v30710_v14, %s27932_s24  ;;  %18889 = vrot.lane.b32.xlu1 %v30701_v0, %s27941_s18 }
 0x7ad   :  { %v30886_v5 = vpop.permute.xlu0 %18887  ;;  %v30888_v25 = vpop.permute.xlu1 %20167 }
 0x7ae   :  { %32693 = vst [vmem:[#allocation50_spill] sm:$0xff] %v30888_v25 }
 0x7af   :  { %19210 = vrot.lane.b32.xlu1 %v30701_v0, %s27943_s20  ;;  %23087 = vrot.lane.b32.xlu0 %v30714_v59, %s32495_s3 }
 0x7b1   :  { %v30894_v56 = vpop.permute.xlu0 %19208  ;;  %v30896_v58 = vpop.permute.xlu1 %20488 }
 0x7b2   :  { %32694 = vst [vmem:[#allocation69_spill] sm:$0xff] %v30896_v58 }
 0x7b3   :  { %19531 = vrot.lane.b32.xlu1 %v30701_v0, %s27945_s22  ;;  %17654 = vrot.lane.b32.xlu0 %v30898_v60, %s32679_s9 }
 0x7b5   :  { %v30904_v53 = vpop.permute.xlu0 %19529  ;;  %v30906_v12 = vpop.permute.xlu1 %20809 }
 0x7b6   :  { %32695 = vst [vmem:[#allocation56_spill] sm:$0xff] %v30906_v12 }
 0x7b7   :  { %19852 = vrot.lane.b32.xlu1 %v30701_v0, %s27947_s0  ;;  %23091 = vrot.lane.b32.xlu0 %v30627_v27, %s32495_s3 }
 0x7b9   :  { %v30912_v62 = vpop.permute.xlu0 %19850  ;;  %v30914_v1 = vpop.permute.xlu1 %21130 }
 0x7ba   :  { %32696 = vst [vmem:[#allocation43_spill] sm:$0xff] %v30914_v1 }
 0x7bb   :  { %20173 = vrot.lane.b32.xlu1 %v30701_v0, %s32680_s11  ;;  %23409 = vrot.lane.b32.xlu0 %v30714_v59, %s27953_s30 }
 0x7bd   :  { %v30920_v39 = vpop.permute.xlu0 %20171  ;;  %v30922_v9 = vpop.permute.xlu1 %21451 }
 0x7be   :  { %32697 = vst [vmem:[#allocation34_spill] sm:$0xff] %v30922_v9 }
 0x7bf   :  { %20494 = vrot.lane.b32.xlu1 %v30701_v0, %s32681_s6  ;;  %23405 = vrot.lane.b32.xlu0 %v30701_v0, %s27953_s30 }
 0x7c1   :  { %v30928_v6 = vpop.permute.xlu0 %20492  ;;  %v30930_v63 = vpop.permute.xlu1 %21772 }
 0x7c2   :  { %32698 = vst [vmem:[#allocation28_spill] sm:$0xff] %v30930_v63 }
 0x7c3   :  { %20815 = vrot.lane.b32.xlu1 %v30701_v0, %s32682_s1  ;;  %18253 = vrot.lane.b32.xlu0 %v30898_v60, %s27937_s14 }
 0x7c5   :  { %v30936_v32 = vpop.permute.xlu0 %20813  ;;  %v30938_v48 = vpop.permute.xlu1 %22093 }
 0x7c6   :  { %32699 = vst [vmem:[#allocation51_spill] sm:$0xff] %v30938_v48 }
 0x7c7   :  { %21136 = vrot.lane.b32.xlu1 %v30701_v0, %s32683_s7  ;;  %23399 = vrot.lane.b32.xlu0 %v30637_v13, %s27938_s15  ;;  %s27974_s15 = smov [#allocation12]  }
 0x7c9   :  { %v30944_v10 = vpop.permute.xlu0 %21134  ;;  %v30946_v31 = vpop.permute.xlu1 %22430 }
 0x7ca   :  { %32700 = vst [vmem:[#allocation59_spill] sm:$0xff] %v30946_v31 }
 0x7cb   :  { %21457 = vrot.lane.b32.xlu1 %v30701_v0, %s32684_s13  ;;  %18574 = vrot.lane.b32.xlu0 %v30898_v60, %s27939_s16 }
 0x7cd   :  { %v30952_v7 = vpop.permute.xlu0 %21455  ;;  %v17645_v33 = vpop.permute.xlu1 %17644 }
 0x7ce   :  { %32701 = vst [vmem:[#allocation35_spill] sm:$0xff] %v30952_v7  ;;  %v17657_v37 = vsel %vm157_vm0, %v17645_v33, %v30862_v38  ;;  %v17656_v22 = vsel %vm157_vm0, %v30832_v46, %v17645_v33 }
 0x7cf   :  { %21778 = vrot.lane.b32.xlu1 %v30701_v0, %s32685_s28  ;;  %23413 = vrot.lane.b32.xlu0 %v30627_v27, %s27953_s30 }
 0x7d0   :  { %17671 = vmatprep.subr.mxu0 %v17657_v37 }
 0x7d1   :  { %17672 = vmatpush1.msra.mxu0 %v17656_v22  ;;  %v30962_v28 = vpop.permute.xlu0 %21776  ;;  %v30964_v36 = vpop.permute.xlu1 %18243 }
 0x7d2   :  { %32702 = vst [vmem:[#allocation30_spill] sm:$0xff] %v30962_v28  ;;  %26589 = vmatmul.mubr.msk.f32.vlgmr.msra.gmra.mrb[8].mxu0 %vm171_vm1, %v30655_v50 }
 0x7d3   :  { %22099 = vrot.lane.b32.xlu1 %v30701_v0, %s27928_s26  ;;  %18895 = vrot.lane.b32.xlu0 %v30898_v60, %s27941_s18 }
 0x7d4   :  { %17877 = vmatprep.mubr.f32.mxu0 %v30389_v26 }
 0x7d5   :  { %v30973_v46 = vpop.permute.xlu0 %22097  ;;  %v30975_v33 = vpop.permute.xlu1 %18564 }
 0x7d6   :  { %32703 = vst [vmem:[#allocation29_spill] sm:$0xff] %v30973_v46 }
 0x7d7   :  { %22436 = vrot.lane.b32.xlu1 %v30701_v0, %s27932_s24  ;;  %23730 = vrot.lane.b32.xlu0 %v30714_v59, %s32505_s5 }
 0x7d9   :  { %v30981_v37 = vpop.permute.xlu0 %22434  ;;  %v30983_v22 = vpop.permute.xlu1 %18885 }
 0x7da   :  { %32704 = vst [vmem:[#allocation71_spill] sm:$0xff] %v30981_v37 }
 0x7db   :  { %22760 = vrot.lane.b32.xlu1 %v30710_v14, %s32475_s2  ;;  %19216 = vrot.lane.b32.xlu0 %v30898_v60, %s27943_s20 }
 0x7dd   :  { %v30989_v44 = vpop.permute.xlu0 %22758  ;;  %v30991_v20 = vpop.permute.xlu1 %19206 }
 0x7de   :  { %32705 = vst [vmem:[#allocation52_spill] sm:$0xff] %v30989_v44 }
 0x7df   :  { %23726 = vrot.lane.b32.xlu0 %v30701_v0, %s32505_s5  ;;  %23085 = vrot.lane.b32.xlu1 %v30710_v14, %s32495_s3 }
 0x7e1   :  { %v30997_v54 = vpop.permute.xlu0 %23083  ;;  %v30999_v31 = vpop.permute.xlu1 %19527 }
 0x7e2   :  { %32706 = vst [vmem:[#allocation61_spill] sm:$0xff] %v30997_v54  ;;  %32707 = vst [vmem:[#allocation72_spill] sm:$0xff] %v30999_v31 }
 0x7e3   :  { %19537 = vrot.lane.b32.xlu0 %v30898_v60, %s27945_s22  ;;  %17652 = vrot.lane.b32.xlu1 %v30714_v59, %s32679_s9 }
 0x7e5   :  { %v31005_v48 = vpop.permute.xlu0 %17650  ;;  %v31007_v63 = vpop.permute.xlu1 %19848 }
 0x7e6   :  { %32708 = vst [vmem:[#allocation36_spill] sm:$0xff] %v31007_v63 }
 0x7e7   :  { %23720 = vrot.lane.b32.xlu0 %v30637_v13, %s27940_s17  ;;  %18251 = vrot.lane.b32.xlu1 %v30714_v59, %s27937_s14  ;;  %s32815_s14 = smov 48  }
 0x7e9   :  { %v31013_v9 = vpop.permute.xlu0 %18249  ;;  %v31015_v43 = vpop.permute.xlu1 %20169 }
 0x7ea   :  { %32709 = vst [vmem:[#allocation62_spill] sm:$0xff] %v31015_v43 }
 0x7eb   :  { %19858 = vrot.lane.b32.xlu0 %v30898_v60, %s27947_s0  ;;  %18572 = vrot.lane.b32.xlu1 %v30714_v59, %s27939_s16  ;;  %s26362_s16 = sshll.u32 %s27974_s15, 4  ;;  %s26363_s16 = int_to_ptr.vmem [resolvable:$true] %s26362_s16 }
 0x7ec   :  { %s27896_s17 = scalar_lea.vmem %s26363_s16, 896  ;;  %p27901_p5 = scmp.lt.s32.totalorder %s26363_s16, %s26363_s16 }
 0x7ed   :  { %v31021_v1 = vpop.permute.xlu0 %18570  ;;  %v31023_v54 = vpop.permute.xlu1 %20490  ;;  %p27897_p4 = scmp.ne.s32.totalorder %s26363_s16, %s27896_s17  ;;  %p27902_p6 = scmp.lt.s32.totalorder %s27896_s17, %s27896_s17 }
 0x7ee   :  { %32710 = vst [vmem:[#allocation37_spill] sm:$0xff] %v31023_v54 }
 0x7ef   :  { %23734 = vrot.lane.b32.xlu0 %v30627_v27, %s32505_s5  ;;  %18893 = vrot.lane.b32.xlu1 %v30714_v59, %s27941_s18  ;;  %p27903_p7 = por %p27902_p6, %p27901_p5 }
 0x7f1   :  { %v31029_v23 = vpop.permute.xlu0 %18891  ;;  %v31031_v12 = vpop.permute.xlu1 %20811  ;;  %p27904_p8 = pnand %p27903_p7, %p27897_p4 }
 0x7f2   :  { %32711 = vst [vmem:[#allocation63_spill] sm:$0xff] %v31031_v12 }
 0x7f3   :  { %20179 = vrot.lane.b32.xlu0 %v30898_v60, %s32680_s11  ;;  %19214 = vrot.lane.b32.xlu1 %v30714_v59, %s27943_s20 }
 0x7f5   :  { %v31037_v44 = vpop.permute.xlu0 %19212  ;;  %v31039_v29 = vpop.permute.xlu1 %21132 }
 0x7f6   :  { %32712 = vst [vmem:[#allocation38_spill] sm:$0xff] %v31039_v29 }
 0x7f7   :  { %24051 = vrot.lane.b32.xlu0 %v30714_v59, %s32509_s12  ;;  %19535 = vrot.lane.b32.xlu1 %v30714_v59, %s27945_s22 }
 0x7f9   :  { %v31045_v41 = vpop.permute.xlu0 %19533  ;;  %v31047_v58 = vpop.permute.xlu1 %21453 }
 0x7fa   :  { %32713 = vst [vmem:[#allocation64_spill] sm:$0xff] %v31047_v58 }
 0x7fb   :  { %20500 = vrot.lane.b32.xlu0 %v30898_v60, %s32681_s6  ;;  %19856 = vrot.lane.b32.xlu1 %v30714_v59, %s27947_s0 }
 0x7fd   :  { %v31053_v12 = vpop.permute.xlu0 %19854  ;;  %v31055_v37 = vpop.permute.xlu1 %21774 }
 0x7fe   :  { %32714 = vst [vmem:[#allocation40_spill] sm:$0xff] %v31055_v37 }
 0x7ff   :  { %24047 = vrot.lane.b32.xlu0 %v30701_v0, %s32509_s12  ;;  %20177 = vrot.lane.b32.xlu1 %v30714_v59, %s32680_s11 }
 0x801   :  { %v31061_v29 = vpop.permute.xlu0 %20175  ;;  %v31063_v54 = vpop.permute.xlu1 %22095 }
 0x802   :  { %32715 = vst [vmem:[#allocation66_spill] sm:$0xff] %v31063_v54 }
 0x803   :  { %20821 = vrot.lane.b32.xlu0 %v30898_v60, %s32682_s1  ;;  %20498 = vrot.lane.b32.xlu1 %v30714_v59, %s32681_s6 }
 0x805   :  { %v31069_v58 = vpop.permute.xlu0 %20496  ;;  %v31071_v47 = vpop.permute.xlu1 %22432 }
 0x806   :  { %32716 = vst [vmem:[#allocation42_spill] sm:$0xff] %v31071_v47 }
 0x807   :  { %24041 = vrot.lane.b32.xlu0 %v30637_v13, %s27942_s19  ;;  %20819 = vrot.lane.b32.xlu1 %v30714_v59, %s32682_s1 }
 0x809   :  { %v31077_v37 = vpop.permute.xlu0 %20817  ;;  %v31079_v25 = vpop.permute.xlu1 %22756 }
 0x80a   :  { %32717 = vst [vmem:[#allocation68_spill] sm:$0xff] %v31079_v25 }
 0x80b   :  { %21142 = vrot.lane.b32.xlu0 %v30898_v60, %s32683_s7  ;;  %21140 = vrot.lane.b32.xlu1 %v30714_v59, %s32683_s7 }
 0x80d   :  { %v31085_v54 = vpop.permute.xlu0 %21138  ;;  %v31087_v46 = vpop.permute.xlu1 %23081 }
 0x80e   :  { %32718 = vst [vmem:[#allocation44_spill] sm:$0xff] %v31087_v46 }
 0x80f   :  { %24055 = vrot.lane.b32.xlu0 %v30627_v27, %s32509_s12  ;;  %21461 = vrot.lane.b32.xlu1 %v30714_v59, %s32684_s13 }
 0x811   :  { %v31093_v47 = vpop.permute.xlu0 %21459  ;;  %v17649_v43 = vpop.permute.xlu1 %17648 }
 0x812   :  { %32719 = vst [vmem:[#allocation58_spill] sm:$0xff] %v31093_v47  ;;  %v17659_v25 = vsel %vm157_vm0, %v17649_v43, %v31005_v48  ;;  %v17658_v61 = vsel %vm157_vm0, %v30862_v38, %v17649_v43 }
 0x813   :  { %21463 = vrot.lane.b32.xlu0 %v30898_v60, %s32684_s13  ;;  %21782 = vrot.lane.b32.xlu1 %v30714_v59, %s32685_s28 }
 0x814   :  { %17742 = vmatprep.subr.mxu1 %v17659_v25 }
 0x815   :  { %17743 = vmatpush1.msra.mxu1 %v17658_v61  ;;  %v31103_v46 = vpop.permute.xlu0 %21780  ;;  %v18248_v40 = vpop.permute.xlu1 %18247 }
 0x816   :  { %32720 = vst [vmem:[#allocation45_spill] sm:$0xff] %v31103_v46  ;;  %26590 = vmatmul.mubr.msk.f32.vlgmr.msra.gmra.mrb[112].mxu1 %vm171_vm1, %v30655_v50  ;;  %27129 = vmatprep.subr.mxu1 %v30389_v26  ;;  %v18257_v7 = vsel %vm758_vm3, %v30870_v24, %v18248_v40 }
 0x817   :  { %24372 = vrot.lane.b32.xlu0 %v30714_v59, %s32512_s10  ;;  %22103 = vrot.lane.b32.xlu1 %v30714_v59, %s27928_s26 }
 0x818   :  { %27131 = vmatprep.mubr.msk.f32.mxu1 %vm27951_vm2, %v30389_v26 }
 0x819   :  { %v31114_v43 = vpop.permute.xlu0 %22101  ;;  %v18569_v61 = vpop.permute.xlu1 %18568 }
 0x81a   :  { %32721 = vst [vmem:[#allocation70_spill] sm:$0xff] %v31114_v43 }
 0x81b   :  { %21784 = vrot.lane.b32.xlu0 %v30898_v60, %s32685_s28  ;;  %22440 = vrot.lane.b32.xlu1 %v30714_v59, %s27932_s24 }
 0x81d   :  { %v31120_v38 = vpop.permute.xlu0 %22438  ;;  %v31122_v25 = vpop.permute.xlu1 %18889 }
 0x81e   :  { %32722 = vst [vmem:[#allocation46_spill] sm:$0xff] %v31120_v38 }
 0x81f   :  { %24368 = vrot.lane.b32.xlu0 %v30701_v0, %s32512_s10  ;;  %22762 = vrot.lane.b32.xlu1 %v30714_v59, %s32475_s2 }
 0x821   :  { %v31128_v28 = vpop.permute.xlu0 %23087  ;;  %v31130_v43 = vpop.permute.xlu1 %19210 }
 0x822   :  { %32723 = vst [vmem:[#allocation31_spill] sm:$0xff] %v31128_v28 }
 0x823   :  { %22105 = vrot.lane.b32.xlu0 %v30898_v60, %s27928_s26  ;;  %23407 = vrot.lane.b32.xlu1 %v30710_v14, %s27953_s30  ;;  %s32739_s26 = smov 64  }
 0x825   :  { %v31136_v46 = vpop.permute.xlu0 %17654  ;;  %v31138_v38 = vpop.permute.xlu1 %19531 }
 0x826   :  { %27130 = vmatpush3.msra.mxu1 %v31136_v46 }
 0x827   :  { %24362 = vrot.lane.b32.xlu0 %v30637_v13, %s27944_s21  ;;  %23403 = vrot.lane.b32.xlu1 %v30697_v57, %s27953_s30 }
 0x828   :  { %27132 = vmatmul.mubr.msk.f32.vlgmr.msra.gmra.mrb[114].mxu1 %vm171_vm1, %v30655_v50  ;;  %18027 = vmatprep.subr.mxu1 %v30701_v0 }
 0x829   :  { %18028 = vmatpush1.msra.mxu1 %v30697_v57  ;;  %v31149_v28 = vpop.permute.xlu0 %23091  ;;  %v31151_v63 = vpop.permute.xlu1 %19852  ;;  %18091 = vmatprep.mubr.f32.mxu1 %v30389_v26 }
 0x82a   :  { %32724 = vst [vmem:[#allocation60_spill] sm:$0xff] %v31149_v28  ;;  %27134 = vmatprep.subr.mxu1 %v30389_v26  ;;  %v18258_v28 = vsel %vm758_vm3, %v18248_v40, %v31013_v9 }
 0x82b   :  { %22442 = vrot.lane.b32.xlu0 %v30898_v60, %s27932_s24  ;;  %23401 = vrot.lane.b32.xlu1 %v30693_v2, %s27953_s30  ;;  %s32740_s24 = smov 35  }
 0x82c   :  { %26594 = vmatmul.mubr.msk.f32.vlgmr.msra.gmra.mrb[112].mxu1 %vm171_vm1, %v30599_v8 }
 0x82d   :  { %27135 = vmatpush3.msra.mxu1 %v30898_v60  ;;  %v31164_v35 = vpop.permute.xlu0 %23409  ;;  %v31166_v16 = vpop.permute.xlu1 %20173  ;;  %27136 = vmatprep.mubr.msk.f32.mxu1 %vm27951_vm2, %v30389_v26 }
 0x82e   :  { %32725 = vst [vmem:[#allocation47_spill] sm:$0xff] %v31164_v35  ;;  %18341 = vmatprep.subr.mxu1 %v18258_v28 }
 0x82f   :  { %24376 = vrot.lane.b32.xlu0 %v30627_v27, %s32512_s10  ;;  %23728 = vrot.lane.b32.xlu1 %v30710_v14, %s32505_s5 }
 0x830   :  { %27137 = vmatmul.mubr.msk.f32.vlgmr.msra.gmra.mrb[116].mxu1 %vm171_vm1, %v30599_v8 }
 0x831   :  { %18342 = vmatpush1.msra.mxu1 %v18257_v7  ;;  %v31178_v35 = vpop.permute.xlu0 %23405  ;;  %v31180_v47 = vpop.permute.xlu1 %20494  ;;  %18405 = vmatprep.mubr.f32.mxu1 %v30389_v26  ;;  %v18579_v7 = vsel %vm1080_vm4, %v18569_v61, %v31021_v1 }
 0x832   :  { %32726 = vst [vmem:[#allocation73_spill] sm:$0xff] %v31178_v35  ;;  %27139 = vmatprep.subr.mxu1 %v30389_v26  ;;  %v18578_v35 = vsel %vm1080_vm4, %v30878_v45, %v18569_v61  ;;  %v18900_v61 = vsel %vm32729_vm14, %v31122_v25, %v31029_v23  ;;  %vm32749_vm14 = vmmov %vm32748_vm13 }
 0x833   :  { %22764 = vrot.lane.b32.xlu0 %v30898_v60, %s32475_s2  ;;  %23724 = vrot.lane.b32.xlu1 %v30697_v57, %s32505_s5 }
 0x834   :  { %26598 = vmatmul.mubr.msk.f32.vlgmr.msra.gmra.mrb[112].mxu1 %vm171_vm1, %v30657_v52 }
 0x835   :  { %v31190_v28 = vpop.permute.xlu0 %18253  ;;  %v31192_v40 = vpop.permute.xlu1 %20815  ;;  %27141 = vmatprep.mubr.msk.f32.mxu1 %vm27951_vm2, %v30389_v26 }
 0x836   :  { %27140 = vmatpush3.msra.mxu1 %v31190_v28 }
 0x837   :  { %24693 = vrot.lane.b32.xlu0 %v30714_v59, %s32517_s8  ;;  %23722 = vrot.lane.b32.xlu1 %v30693_v2, %s32505_s5 }
 0x838   :  { %27142 = vmatmul.mubr.msk.f32.vlgmr.msra.gmra.mrb[118].mxu1 %vm171_vm1, %v30657_v52  ;;  %18662 = vmatprep.subr.mxu1 %v18579_v7 }
 0x839   :  { %18663 = vmatpush1.msra.mxu1 %v18578_v35  ;;  %v31207_v31 = vpop.permute.xlu0 %23399  ;;  %v31209_v15 = vpop.permute.xlu1 %21136  ;;  %18726 = vmatprep.mubr.f32.mxu1 %v30389_v26 }
 0x83a   :  { %32727 = vst [vmem:[#allocation25_spill] sm:$0xff] %v31207_v31  ;;  %27144 = vmatprep.subr.mxu1 %v30389_v26  ;;  %v18899_v31 = vsel %vm32730_vm15, %v30886_v5, %v31122_v25  ;;  %v19221_v25 = vsel %vm1724_vm6, %v31130_v43, %v31037_v44 }
 0x83b   :  { %24689 = vrot.lane.b32.xlu0 %v30701_v0, %s32517_s8  ;;  %24049 = vrot.lane.b32.xlu1 %v30710_v14, %s32509_s12 }
 0x83c   :  { %26602 = vmatmul.mubr.msk.f32.vlgmr.msra.gmra.mrb[112].mxu1 %vm171_vm1, %v30659_v51 }
 0x83d   :  { %v31219_v7 = vpop.permute.xlu0 %18574  ;;  %v31221_v35 = vpop.permute.xlu1 %21457  ;;  %27146 = vmatprep.mubr.msk.f32.mxu1 %vm27951_vm2, %v30389_v26 }
 0x83e   :  { %32728 = vst [vmem:[#allocation74_spill] sm:$0xff] %v31221_v35  ;;  %27145 = vmatpush3.msra.mxu1 %v31219_v7 }
 0x83f   :  { %24683 = vrot.lane.b32.xlu0 %v30637_v13, %s27946_s23  ;;  %24045 = vrot.lane.b32.xlu1 %v30697_v57, %s32509_s12 }
 0x840   :  { %27147 = vmatmul.mubr.msk.f32.vlgmr.msra.gmra.mrb[120].mxu1 %vm171_vm1, %v30659_v51  ;;  %18983 = vmatprep.subr.mxu1 %v18900_v61 }
 0x841   :  { %18984 = vmatpush1.msra.mxu1 %v18899_v31  ;;  %v31238_v35 = vpop.permute.xlu0 %23413  ;;  %v31240_v55 = vpop.permute.xlu1 %21778  ;;  %19047 = vmatprep.mubr.f32.mxu1 %v30389_v26 }
 0x842   :  { %32731 = vst [vmem:[#allocation75_spill] sm:$0xff] %v31238_v35  ;;  %32732 = vst [vmem:[#allocation76_spill] sm:$0xff] %v31240_v55  ;;  %27149 = vmatprep.subr.mxu1 %v30389_v26  ;;  %v19220_v35 = vsel %vm1724_vm6, %v30894_v56, %v31130_v43 }
 0x843   :  { %24697 = vrot.lane.b32.xlu0 %v30627_v27, %s32517_s8  ;;  %24043 = vrot.lane.b32.xlu1 %v30693_v2, %s32509_s12 }
 0x844   :  { %26606 = vmatmul.mubr.msk.f32.vlgmr.msra.gmra.mrb[112].mxu1 %vm171_vm1, %v30661_v30 }
 0x845   :  { %v31250_v61 = vpop.permute.xlu0 %18895  ;;  %v31252_v31 = vpop.permute.xlu1 %22099  ;;  %27151 = vmatprep.mubr.msk.f32.mxu1 %vm27951_vm2, %v30389_v26 }
 0x846   :  { %32733 = vst [vmem:[#allocation77_spill] sm:$0xff] %v31252_v31  ;;  %27150 = vmatpush3.msra.mxu1 %v31250_v61 }
 0x847   :  { %25014 = vrot.lane.b32.xlu0 %v30714_v59, %s32522_s29  ;;  %24370 = vrot.lane.b32.xlu1 %v30710_v14, %s32512_s10 }
 0x848   :  { %27152 = vmatmul.mubr.msk.f32.vlgmr.msra.gmra.mrb[122].mxu1 %vm171_vm1, %v30661_v30  ;;  %19304 = vmatprep.subr.mxu1 %v19221_v25 }
 0x849   :  { %19305 = vmatpush1.msra.mxu1 %v19220_v35  ;;  %v31269_v31 = vpop.permute.xlu0 %23730  ;;  %v31271_v55 = vpop.permute.xlu1 %22436  ;;  %19368 = vmatprep.mubr.f32.mxu1 %v30389_v26  ;;  %v19542_v35 = vsel %vm2046_vm7, %v31138_v38, %v31045_v41 }
 0x84a   :  { %32734 = vst [vmem:[#allocation18_spill] sm:$0xff] %v31269_v31  ;;  %32735 = vst [vmem:[#allocation19_spill] sm:$0xff] %v31271_v55  ;;  %27154 = vmatprep.subr.mxu1 %v30389_v26  ;;  %v19541_v31 = vsel %vm2046_vm7, %v30904_v53, %v31138_v38 }
 0x84b   :  { %25010 = vrot.lane.b32.xlu0 %v30701_v0, %s32522_s29  ;;  %24366 = vrot.lane.b32.xlu1 %v30697_v57, %s32512_s10 }
 0x84c   :  { %26610 = vmatmul.mubr.msk.f32.vlgmr.msra.gmra.mrb[112].mxu1 %vm171_vm1, %v30663_v21 }
 0x84d   :  { %v31281_v25 = vpop.permute.xlu0 %19216  ;;  %v31283_v43 = vpop.permute.xlu1 %22760  ;;  %27156 = vmatprep.mubr.msk.f32.mxu1 %vm27951_vm2, %v30389_v26 }
 0x84e   :  { %32736 = vst [vmem:[#allocation17_spill] sm:$0xff] %v31283_v43  ;;  %27155 = vmatpush3.msra.mxu1 %v31281_v25 }
 0x84f   :  { %25004 = vrot.lane.b32.xlu0 %v30637_v13, %s27948_s25  ;;  %24364 = vrot.lane.b32.xlu1 %v30693_v2, %s32512_s10 }
 0x850   :  { %27157 = vmatmul.mubr.msk.f32.vlgmr.msra.gmra.mrb[124].mxu1 %vm171_vm1, %v30663_v21  ;;  %19625 = vmatprep.subr.mxu1 %v19542_v35 }
 0x851   :  { %19626 = vmatpush1.msra.mxu1 %v19541_v31  ;;  %v31300_v43 = vpop.permute.xlu0 %23726  ;;  %v31302_v55 = vpop.permute.xlu1 %23085  ;;  %19689 = vmatprep.mubr.f32.mxu1 %v30389_v26 }
 0x852   :  { %32737 = vst [vmem:[#allocation21_spill] sm:$0xff] %v31300_v43  ;;  %32738 = vst [vmem:[#allocation20_spill] sm:$0xff] %v31302_v55  ;;  %27159 = vmatprep.subr.mxu1 %v30389_v26  ;;  %v19863_v55 = vsel %vm2368_vm8, %v31151_v63, %v31053_v12 }
 0x853   :  { %25018 = vrot.lane.b32.xlu0 %v30627_v27, %s32522_s29  ;;  %24691 = vrot.lane.b32.xlu1 %v30710_v14, %s32517_s8 }
 0x854   :  { %26614 = vmatmul.mubr.msk.f32.vlgmr.msra.gmra.mrb[112].mxu1 %vm171_vm1, %v30665_v42 }
 0x855   :  { %v31312_v35 = vpop.permute.xlu0 %19537  ;;  %v17653_v38 = vpop.permute.xlu1 %17652  ;;  %27161 = vmatprep.mubr.msk.f32.mxu1 %vm27951_vm2, %v30389_v26 }
 0x856   :  { %27160 = vmatpush3.msra.mxu1 %v31312_v35  ;;  %v17661_v31 = vsel %vm157_vm0, %v17653_v38, %v31136_v46  ;;  %v17660_v43 = vsel %vm157_vm0, %v31005_v48, %v17653_v38  ;;  %v19862_v48 = vsel %vm2368_vm8, %v30912_v62, %v31151_v63  ;;  %vm32741_vm0 = vcmask 228352  }
 0x857   :  { %25335 = vrot.lane.b32.xlu0 %v30714_v59, %s32528_s27  ;;  %24687 = vrot.lane.b32.xlu1 %v30697_v57, %s32517_s8 }
 0x858   :  { %17813 = vmatprep.subr.mxu0 %v17661_v31  ;;  %27162 = vmatmul.mubr.msk.f32.vlgmr.msra.gmra.mrb[126].mxu1 %vm171_vm1, %v30665_v42  ;;  %v20183_v31 = vsel %vm2690_vm9, %v30920_v39, %v31166_v16 }
 0x859   :  { %19946 = vmatprep.subr.mxu1 %v19863_v55  ;;  %17814 = vmatpush1.msra.mxu0 %v17660_v43  ;;  %v31333_v46 = vpop.permute.xlu0 %23720  ;;  %v18252_v38 = vpop.permute.xlu1 %18251 }
 0x85a   :  { %19947 = vmatpush1.msra.mxu1 %v19862_v48  ;;  %26591 = vmatmul.mubr.msk.f32.vlgmr.msra.gmra.mrb[10].mxu0 %vm171_vm1, %v30655_v50  ;;  %v18256_v50 = vsel %vm758_vm3, %v30964_v36, %v30870_v24  ;;  %v20184_v24 = vsel %vm2690_vm9, %v31166_v16, %v31061_v29  ;;  %v18260_v16 = vsel %vm758_vm3, %v18252_v38, %v31190_v28 }
 0x85b   :  { %17956 = vmatprep.subr.mxu0 %v30693_v2  ;;  %20010 = vmatprep.mubr.f32.mxu1 %v30389_v26 }
 0x85c   :  { %17957 = vmatpush1.msra.mxu0 %v30703_v34  ;;  %25331 = vrot.lane.b32.xlu0 %v30701_v0, %s32528_s27 }
 0x85d   :  { %24685 = vrot.lane.b32.xlu1 %v30693_v2, %s32517_s8  ;;  %18098 = vmatprep.subr.mxu0 %v30714_v59  ;;  %v31345_v55 = vpop.permute.xlu0 %19858  ;;  %v31347_v63 = vpop.permute.xlu1 %18572 }
 0x85e   :  { %26618 = vmatmul.mubr.msk.f32.vlgmr.msra.gmra.mrb[112].mxu1 %vm171_vm1, %v30667_v3  ;;  %18020 = vmatprep.mubr.f32.mxu0 %v30389_v26 }
 0x85f   :  { %26593 = vmatmul.mubr.msk.f32.vlgmr.msra.gmra.mrb[8].mxu0 %vm171_vm1, %v30599_v8  ;;  %27164 = vmatprep.subr.mxu1 %v30389_v26 }
 0x860   :  { %18099 = vmatpush1.msra.mxu0 %v30710_v14  ;;  %27165 = vmatpush3.msra.mxu1 %v31345_v55 }
 0x861   :  { %18270 = vmatprep.subr.mxu0 %v18256_v50  ;;  %27166 = vmatprep.mubr.msk.f32.mxu1 %vm27951_vm2, %v30389_v26  ;;  %v31362_v34 = vpop.permute.xlu0 %23734  ;;  %v31364_v43 = vpop.permute.xlu1 %18893 }
 0x862   :  { %25325 = vrot.lane.b32.xlu0 %v30637_v13, %s32739_s26  ;;  %25012 = vrot.lane.b32.xlu1 %v30710_v14, %s32522_s29  ;;  %v18255_v13 = vsel %vm758_vm3, %v30840_v11, %v30964_v36  ;;  %v18577_v11 = vsel %vm1080_vm4, %v30975_v33, %v30878_v45 }
 0x863   :  { %27167 = vmatmul.mubr.msk.f32.vlgmr.msra.gmra.mrb[128].mxu1 %vm171_vm1, %v30667_v3  ;;  %20267 = vmatprep.subr.mxu1 %v20184_v24  ;;  %v18576_v24 = vsel %vm1080_vm4, %v30848_v19, %v30975_v33  ;;  %v18580_v19 = vsel %vm1080_vm4, %v31021_v1, %v31347_v63  ;;  %v18898_v33 = vsel %vm32743_vm10, %v30983_v22, %v30886_v5 }
 0x864   :  { %18162 = vmatprep.mubr.f32.mxu0 %v30389_v26  ;;  %20268 = vmatpush1.msra.mxu1 %v20183_v31  ;;  %v20826_v5 = vsel %vm3334_vm11, %v31192_v40, %v31077_v37  ;;  %v20825_v1 = vsel %vm3334_vm11, %v30936_v32, %v31192_v40 }
 0x865   :  { %26595 = vmatmul.mubr.msk.f32.vlgmr.msra.gmra.mrb[10].mxu0 %vm171_vm1, %v30599_v8  ;;  %20331 = vmatprep.mubr.f32.mxu1 %v30389_v26  ;;  %v31385_v48 = vpop.permute.xlu0 %20179  ;;  %v31387_v50 = vpop.permute.xlu1 %19214  ;;  %v18259_v8 = vsel %vm758_vm3, %v31013_v9, %v18252_v38  ;;  %v20505_v9 = vsel %vm32741_vm0, %v31180_v47, %v31069_v58  ;;  %vm32742_vm3 = vmmov %vm32741_vm0 }
 0x866   :  { %18271 = vmatpush1.msra.mxu0 %v18255_v13  ;;  %25339 = vrot.lane.b32.xlu0 %v30627_v27, %s32528_s27  ;;  %v20504_v45 = vsel %vm32742_vm3, %v30928_v6, %v31180_v47  ;;  %v18581_v47 = vsel %vm1080_vm4, %v31347_v63, %v31219_v7  ;;  %vm32744_vm4 = vmmov %vm32743_vm10  ;;  %vm32775_vm10 = vcmask 457728  }
 0x867   :  { %18412 = vmatprep.subr.mxu0 %v18260_v16  ;;  %25008 = vrot.lane.b32.xlu1 %v30697_v57, %s32522_s29  ;;  %v31466_v16 = vld [vmem:[#allocation7 + $0x28] sm:$0xff]  ;;  %vm32745_vm5 = vmmov %vm32744_vm4 }
 0x868   :  { %26622 = vmatmul.mubr.msk.f32.vlgmr.msra.gmra.mrb[112].mxu1 %vm171_vm1, %v30669_v17  ;;  %18334 = vmatprep.mubr.f32.mxu0 %v30389_v26  ;;  %v18902_v40 = vsel %vm32745_vm5, %v31364_v43, %v31250_v61  ;;  %vm32746_vm12 = vmmov %vm32744_vm4  ;;  %v19219_v61 = vsel %vm1724_vm6, %v30991_v20, %v30894_v56  ;;  %v21146_v56 = vsel %vm32749_vm14, %v30944_v10, %v31209_v15  ;;  %vm32793_vm14 = vcmask 56320  }
 0x869   :  { %26597 = vmatmul.mubr.msk.f32.vlgmr.msra.gmra.mrb[8].mxu0 %vm171_vm1, %v30657_v52  ;;  %27169 = vmatprep.subr.mxu1 %v30389_v26  ;;  %v31403_v36 = vpop.permute.xlu0 %24051  ;;  %v31405_v27 = vpop.permute.xlu1 %19535 }
 0x86a   :  { %18413 = vmatpush1.msra.mxu0 %v18259_v8  ;;  %27170 = vmatpush3.msra.mxu1 %v31385_v48 }
 0x86b   :  { %18591 = vmatprep.subr.mxu0 %v18577_v11  ;;  %27171 = vmatprep.mubr.msk.f32.mxu1 %vm27951_vm2, %v30389_v26  ;;  %v31494_v11 = vld [vmem:[#allocation3 + $0x38] sm:$0xff] }
 0x86c   :  { %25656 = vrot.lane.b32.xlu0 %v30714_v59, %s32740_s24  ;;  %25006 = vrot.lane.b32.xlu1 %v30693_v2, %s32522_s29 }
 0x86d   :  { %27172 = vmatmul.mubr.msk.f32.vlgmr.msra.gmra.mrb[130].mxu1 %vm171_vm1, %v30669_v17  ;;  %20588 = vmatprep.subr.mxu1 %v20505_v9  ;;  %v31425_v28 = vpop.permute.xlu0 %20500  ;;  %v31427_v38 = vpop.permute.xlu1 %19856 }
 0x86e   :  { %18476 = vmatprep.mubr.f32.mxu0 %v30389_v26  ;;  %20589 = vmatpush1.msra.mxu1 %v20504_v45 }
 0x86f   :  { %26599 = vmatmul.mubr.msk.f32.vlgmr.msra.gmra.mrb[10].mxu0 %vm171_vm1, %v30657_v52  ;;  %20652 = vmatprep.mubr.f32.mxu1 %v30389_v26 }
 0x870   :  { %18592 = vmatpush1.msra.mxu0 %v18576_v24  ;;  %25652 = vrot.lane.b32.xlu0 %v30701_v0, %s32740_s24  ;;  %v32751_v24 = vld [vmem:[#allocation24_spill] sm:$0xff] }
 0x871   :  { %18733 = vmatprep.subr.mxu0 %v18581_v47  ;;  %23089 = vrot.lane.b32.xlu1 %v30898_v60, %s32495_s3  ;;  %v31443_v31 = vpop.permute.xlu0 %24047  ;;  %v31445_v52 = vpop.permute.xlu1 %20177  ;;  %s32747_s3 = smov 34  }
 0x872   :  { %26626 = vmatmul.mubr.msk.f32.vlgmr.msra.gmra.mrb[112].mxu1 %vm171_vm1, %v30671_v49  ;;  %18655 = vmatprep.mubr.f32.mxu0 %v30389_v26 }
 0x873   :  { %26601 = vmatmul.mubr.msk.f32.vlgmr.msra.gmra.mrb[8].mxu0 %vm171_vm1, %v30659_v51  ;;  %27174 = vmatprep.subr.mxu1 %v30389_v26 }
 0x874   :  { %18734 = vmatpush1.msra.mxu0 %v18580_v19  ;;  %27175 = vmatpush3.msra.mxu1 %v31425_v28 }
 0x875   :  { %18912 = vmatprep.subr.mxu0 %v18898_v33  ;;  %27176 = vmatprep.mubr.msk.f32.mxu1 %vm27951_vm2, %v30389_v26  ;;  %v31462_v7 = vpop.permute.xlu0 %20821  ;;  %v31464_v13 = vpop.permute.xlu1 %20498  ;;  %v32756_v33 = vld [vmem:[#allocation35_spill] sm:$0xff] }
 0x876   :  { %25646 = vrot.lane.b32.xlu0 %v31466_v16, %s27953_s30  ;;  %25333 = vrot.lane.b32.xlu1 %v30710_v14, %s32528_s27  ;;  %v18897_v14 = vsel %vm32744_vm4, %v30856_v4, %v30983_v22  ;;  %vm32778_vm4 = vcmask 228352  }
 0x877   :  { %27177 = vmatmul.mubr.msk.f32.vlgmr.msra.gmra.mrb[132].mxu1 %vm171_vm1, %v30671_v49  ;;  %20909 = vmatprep.subr.mxu1 %v20826_v5  ;;  %vm32784_vm5 = vmmov %vm32778_vm4 }
 0x878   :  { %18797 = vmatprep.mubr.f32.mxu0 %v30389_v26  ;;  %20910 = vmatpush1.msra.mxu1 %v20825_v1 }
 0x879   :  { %26603 = vmatmul.mubr.msk.f32.vlgmr.msra.gmra.mrb[10].mxu0 %vm171_vm1, %v30659_v51  ;;  %20973 = vmatprep.mubr.f32.mxu1 %v30389_v26  ;;  %v31487_v63 = vpop.permute.xlu0 %24041  ;;  %v31489_v8 = vpop.permute.xlu1 %20819  ;;  %v18901_v51 = vsel %vm32746_vm12, %v31029_v23, %v31364_v43  ;;  %v21147_v23 = vsel %vm32748_vm13, %v31209_v15, %v31085_v54  ;;  %v19223_v15 = vsel %vm1724_vm6, %v31387_v50, %v31281_v25  ;;  %vm32788_vm12 = vcmask 449536   ;;  %vm32789_vm13 = vmmov %vm32778_vm4 }
 0x87a   :  { %18913 = vmatpush1.msra.mxu0 %v18897_v14  ;;  %25660 = vrot.lane.b32.xlu0 %v31494_v11, %s32740_s24  ;;  %v19544_v14 = vsel %vm2046_vm7, %v31405_v27, %v31312_v35  ;;  %v19543_v35 = vsel %vm2046_vm7, %v31045_v41, %v31405_v27  ;;  %v32761_v41 = vld [vmem:[#allocation45_spill] sm:$0xff] }
 0x87b   :  { %19054 = vmatprep.subr.mxu0 %v18902_v40  ;;  %23411 = vrot.lane.b32.xlu1 %v30898_v60, %s27953_s30 }
 0x87c   :  { %26630 = vmatmul.mubr.msk.f32.vlgmr.msra.gmra.mrb[112].mxu1 %vm171_vm1, %v30673_v18  ;;  %18976 = vmatprep.mubr.f32.mxu0 %v30389_v26 }
 0x87d   :  { %26605 = vmatmul.mubr.msk.f32.vlgmr.msra.gmra.mrb[8].mxu0 %vm171_vm1, %v30661_v30  ;;  %27179 = vmatprep.subr.mxu1 %v30389_v26  ;;  %v31509_v4 = vpop.permute.xlu0 %21142  ;;  %v31511_v22 = vpop.permute.xlu1 %21140 }
 0x87e   :  { %19055 = vmatpush1.msra.mxu0 %v18901_v51  ;;  %27180 = vmatpush3.msra.mxu1 %v31462_v7 }
 0x87f   :  { %19233 = vmatprep.subr.mxu0 %v19219_v61  ;;  %27181 = vmatprep.mubr.msk.f32.mxu1 %vm27951_vm2, %v30389_v26  ;;  %v32760_v61 = vld [vmem:[#allocation36_spill] sm:$0xff] }
 0x880   :  { %25977 = vrot.lane.b32.xlu0 %v30714_v59, %s32747_s3  ;;  %25329 = vrot.lane.b32.xlu1 %v30697_v57, %s32528_s27  ;;  %v32750_v57 = vld [vmem:[#allocation41_spill] sm:$0xff] }
 0x881   :  { %27182 = vmatmul.mubr.msk.f32.vlgmr.msra.gmra.mrb[134].mxu1 %vm171_vm1, %v30673_v18  ;;  %21230 = vmatprep.subr.mxu1 %v21147_v23  ;;  %v31531_v43 = vpop.permute.xlu0 %24055  ;;  %v31533_v9 = vpop.permute.xlu1 %21461  ;;  %v19218_v59 = vsel %vm1724_vm6, %v32750_v57, %v30991_v20  ;;  %v32752_v20 = vld [vmem:[#allocation72_spill] sm:$0xff]  ;;  %v19861_v23 = vsel %vm2368_vm8, %v32760_v61, %v30912_v62 }
 0x882   :  { %19118 = vmatprep.mubr.f32.mxu0 %v30389_v26  ;;  %21231 = vmatpush1.msra.mxu1 %v21146_v56  ;;  %v19540_v25 = vsel %vm2046_vm7, %v32752_v20, %v30904_v53  ;;  %v32762_v62 = vld [vmem:[#allocation76_spill] sm:$0xff] }
 0x883   :  { %26607 = vmatmul.mubr.msk.f32.vlgmr.msra.gmra.mrb[10].mxu0 %vm171_vm1, %v30661_v30  ;;  %21294 = vmatprep.mubr.f32.mxu1 %v30389_v26 }
 0x884   :  { %19234 = vmatpush1.msra.mxu0 %v19218_v59  ;;  %25973 = vrot.lane.b32.xlu0 %v30701_v0, %s32747_s3  ;;  %v19222_v0 = vsel %vm1724_vm6, %v31037_v44, %v31387_v50  ;;  %v32753_v44 = vld [vmem:[#allocation58_spill] sm:$0xff]  ;;  %vm32755_vm6 = vcmask 146432   ;;  %v31617_v59 = vld [vmem:[#allocation3 + $0x20] sm:$0xff] }
 0x885   :  { %19375 = vmatprep.subr.mxu0 %v19223_v15  ;;  %23732 = vrot.lane.b32.xlu1 %v30898_v60, %s32505_s5  ;;  %v31549_v45 = vpop.permute.xlu0 %21463  ;;  %v31551_v30 = vpop.permute.xlu1 %21782  ;;  %v32754_v50 = vld [vmem:[#allocation74_spill] sm:$0xff]  ;;  %vm32757_vm15 = vmmov %vm32755_vm6 }
 0x886   :  { %26634 = vmatmul.mubr.msk.f32.vlgmr.msra.gmra.mrb[112].mxu1 %vm171_vm1, %v32751_v24  ;;  %19297 = vmatprep.mubr.f32.mxu0 %v30389_v26  ;;  %v21468_v53 = vsel %vm32755_vm6, %v32754_v50, %v32753_v44  ;;  %v21467_v5 = vsel %vm32757_vm15, %v32756_v33, %v32754_v50  ;;  %v32764_v15 = vld [vmem:[#allocation30_spill] sm:$0xff]  ;;  %vm32794_vm6 = vcmask 441344   ;;  %vm32796_vm15 = vmmov %vm32793_vm14 }
 0x887   :  { %26609 = vmatmul.mubr.msk.f32.vlgmr.msra.gmra.mrb[8].mxu0 %vm171_vm1, %v30663_v21  ;;  %27184 = vmatprep.subr.mxu1 %v30389_v26 }
 0x888   :  { %19376 = vmatpush1.msra.mxu0 %v19222_v0  ;;  %27185 = vmatpush3.msra.mxu1 %v31509_v4 }
 0x889   :  { %19554 = vmatprep.subr.mxu0 %v19540_v25  ;;  %27186 = vmatprep.mubr.msk.f32.mxu1 %vm27951_vm2, %v30389_v26  ;;  %v31568_v47 = vpop.permute.xlu0 %24372  ;;  %v31570_v19 = vpop.permute.xlu1 %22103 }
 0x88a   :  { %25327 = vrot.lane.b32.xlu1 %v30693_v2, %s32528_s27  ;;  %27187 = vmatmul.mubr.msk.f32.vlgmr.msra.gmra.mrb[136].mxu1 %vm171_vm1, %v32751_v24  ;;  %v32758_v2 = vld [vmem:[#allocation33_spill] sm:$0xff] }
 0x88b   :  { %21551 = vmatprep.subr.mxu1 %v21468_v53  ;;  %19439 = vmatprep.mubr.f32.mxu0 %v30389_v26  ;;  %v19539_v1 = vsel %vm2046_vm7, %v32758_v2, %v32752_v20  ;;  %vm32763_vm7 = vcmask 138240   ;;  %v32766_v20 = vld [vmem:[#allocation27_spill] sm:$0xff]  ;;  %v19865_v53 = vsel %vm2368_vm8, %v31427_v38, %v31345_v55  ;;  %v19864_v55 = vsel %vm2368_vm8, %v31053_v12, %v31427_v38  ;;  %v32769_v12 = vld [vmem:[#allocation70_spill] sm:$0xff]  ;;  %v32770_v38 = vld [vmem:[#allocation77_spill] sm:$0xff] }
 0x88c   :  { %21552 = vmatpush1.msra.mxu1 %v21467_v5  ;;  %26611 = vmatmul.mubr.msk.f32.vlgmr.msra.gmra.mrb[10].mxu0 %vm171_vm1, %v30663_v21  ;;  %v32759_v21 = vld [vmem:[#allocation48_spill] sm:$0xff]  ;;  %v21789_v27 = vsel %vm32763_vm7, %v32762_v62, %v32761_v41  ;;  %vm32765_vm0 = vmmov %vm32763_vm7  ;;  %v19860_v25 = vsel %vm2368_vm8, %v32766_v20, %v32760_v61  ;;  %vm32771_vm8 = vcmask 130048  }
 0x88d   :  { %19555 = vmatpush1.msra.mxu0 %v19539_v1  ;;  %21615 = vmatprep.mubr.f32.mxu1 %v30389_v26  ;;  %v31592_v40 = vpop.permute.xlu0 %21784  ;;  %v31594_v51 = vpop.permute.xlu1 %22440  ;;  %v21788_v0 = vsel %vm32765_vm0, %v32764_v15, %v32762_v62  ;;  %v32768_v1 = vld [vmem:[#allocation62_spill] sm:$0xff]  ;;  %v22110_v61 = vsel %vm32771_vm8, %v32770_v38, %v32769_v12  ;;  %vm32773_vm3 = vmmov %vm32771_vm8  ;;  %vm32802_vm8 = vcmask 211968  }
 0x88e   :  { %19696 = vmatprep.subr.mxu0 %v19544_v14  ;;  %24053 = vrot.lane.b32.xlu1 %v30898_v60, %s32509_s12  ;;  %v20182_v14 = vsel %vm2690_vm9, %v32768_v1, %v30920_v39  ;;  %v32772_v39 = vld [vmem:[#allocation29_spill] sm:$0xff]  ;;  %vm32799_vm7 = vmmov %vm32793_vm14 }
 0x88f   :  { %26638 = vmatmul.mubr.msk.f32.vlgmr.msra.gmra.mrb[112].mxu1 %vm171_vm1, %v32759_v21  ;;  %19618 = vmatprep.mubr.f32.mxu0 %v30389_v26  ;;  %vm32800_vm0 = vmmov %vm32794_vm6 }
 0x890   :  { %26613 = vmatmul.mubr.msk.f32.vlgmr.msra.gmra.mrb[8].mxu0 %vm171_vm1, %v30665_v42  ;;  %27189 = vmatprep.subr.mxu1 %v30389_v26 }
 0x891   :  { %19697 = vmatpush1.msra.mxu0 %v19543_v35  ;;  %27190 = vmatpush3.msra.mxu1 %v31549_v45  ;;  %v31611_v56 = vpop.permute.xlu0 %24368  ;;  %v31613_v57 = vpop.permute.xlu1 %22762  ;;  %v31662_v35 = vld [vmem:[#allocation3 + $0x10] sm:$0xff] }
 0x892   :  { %19875 = vmatprep.subr.mxu0 %v19861_v23  ;;  %27191 = vmatprep.mubr.msk.f32.mxu1 %vm27951_vm2, %v30389_v26  ;;  %v22109_v23 = vsel %vm32773_vm3, %v32772_v39, %v32770_v38  ;;  %vm32803_vm3 = vmmov %vm32800_vm0 }
 0x893   :  { %25654 = vrot.lane.b32.xlu1 %v31617_v59, %s32740_s24  ;;  %27192 = vmatmul.mubr.msk.f32.vlgmr.msra.gmra.mrb[138].mxu1 %vm171_vm1, %v32759_v21 }
 0x894   :  { %21872 = vmatprep.subr.mxu1 %v21789_v27  ;;  %19760 = vmatprep.mubr.f32.mxu0 %v30389_v26 }
 0x895   :  { %21873 = vmatpush1.msra.mxu1 %v21788_v0  ;;  %26615 = vmatmul.mubr.msk.f32.vlgmr.msra.gmra.mrb[10].mxu0 %vm171_vm1, %v30665_v42  ;;  %v31635_v50 = vpop.permute.xlu1 %23407  ;;  %v31643_v5 = vpop.permute.xlu0 %22105  ;;  %v32767_v42 = vld [vmem:[#allocation65_spill] sm:$0xff]  ;;  %v32774_v0 = vld [vmem:[#allocation50_spill] sm:$0xff] }
 0x896   :  { %19876 = vmatpush1.msra.mxu0 %v19860_v25  ;;  %21936 = vmatprep.mubr.f32.mxu1 %v30389_v26  ;;  %v20181_v20 = vsel %vm2690_vm9, %v32774_v0, %v32768_v1  ;;  %v32777_v1 = vld [vmem:[#allocation37_spill] sm:$0xff] }
 0x897   :  { %20017 = vmatprep.subr.mxu0 %v19865_v53  ;;  %24374 = vrot.lane.b32.xlu1 %v30898_v60, %s32512_s10  ;;  %v20186_v53 = vsel %vm2690_vm9, %v31445_v52, %v31385_v48  ;;  %v20185_v48 = vsel %vm2690_vm9, %v31061_v29, %v31445_v52  ;;  %v32779_v29 = vld [vmem:[#allocation46_spill] sm:$0xff]  ;;  %v32780_v52 = vld [vmem:[#allocation19_spill] sm:$0xff]  ;;  %vm32783_vm9 = vmmov %vm32778_vm4 }
 0x898   :  { %26642 = vmatmul.mubr.msk.f32.vlgmr.msra.gmra.mrb[112].mxu1 %vm171_vm1, %v32767_v42  ;;  %19939 = vmatprep.mubr.f32.mxu0 %v30389_v26 }
 0x899   :  { %26617 = vmatmul.mubr.msk.f32.vlgmr.msra.gmra.mrb[8].mxu0 %vm171_vm1, %v30667_v3  ;;  %27194 = vmatprep.subr.mxu1 %v30389_v26  ;;  %v31654_v2 = vpop.permute.xlu1 %23403  ;;  %v31675_v62 = vpop.permute.xlu0 %24362 }
 0x89a   :  { %20018 = vmatpush1.msra.mxu0 %v19864_v55  ;;  %27195 = vmatpush3.msra.mxu1 %v31592_v40 }
 0x89b   :  { %20196 = vmatprep.subr.mxu0 %v20182_v14  ;;  %27196 = vmatprep.mubr.msk.f32.mxu1 %vm27951_vm2, %v30389_v26  ;;  %v20503_v14 = vsel %vm32778_vm4, %v32777_v1, %v30928_v6  ;;  %v22449_v6 = vsel %vm171_vm1, %v32780_v52, %v32779_v29  ;;  %vm32810_vm4 = vmmov %vm32802_vm8 }
 0x89c   :  { %25650 = vrot.lane.b32.xlu1 %v31662_v35, %s32740_s24  ;;  %27197 = vmatmul.mubr.msk.f32.vlgmr.msra.gmra.mrb[140].mxu1 %vm171_vm1, %v32767_v42 }
 0x89d   :  { %22193 = vmatprep.subr.mxu1 %v22110_v61  ;;  %20081 = vmatprep.mubr.f32.mxu0 %v30389_v26  ;;  %v23402_v27 = vpop.permute.xlu1 %23401  ;;  %v31707_v38 = vpop.permute.xlu0 %22442  ;;  %v31713_v61 = vld [vmem:[#allocation3 + $0x8] sm:$0xff] }
 0x89e   :  { %22194 = vmatpush1.msra.mxu1 %v22109_v23  ;;  %26619 = vmatmul.mubr.msk.f32.vlgmr.msra.gmra.mrb[10].mxu0 %vm171_vm1, %v30667_v3  ;;  %v31684_v25 = vsel %vm32775_vm10, %v23402_v27, %v31654_v2  ;;  %v32776_v3 = vld [vmem:[#allocation39_spill] sm:$0xff] }
 0x89f   :  { %20197 = vmatpush1.msra.mxu0 %v20181_v20  ;;  %22257 = vmatprep.mubr.f32.mxu1 %v30389_v26  ;;  %v32781_v27 = vld [vmem:[#allocation71_spill] sm:$0xff]  ;;  %v32782_v20 = vld [vmem:[#allocation69_spill] sm:$0xff] }
 0x8a0   :  { %20338 = vmatprep.subr.mxu0 %v20186_v53  ;;  %24695 = vrot.lane.b32.xlu1 %v30898_v60, %s32517_s8  ;;  %v22448_v0 = vsel %vm171_vm1, %v32781_v27, %v32780_v52  ;;  %v20502_v53 = vsel %vm32783_vm9, %v32782_v20, %v32777_v1  ;;  %v32786_v52 = vld [vmem:[#allocation55_spill] sm:$0xff]  ;;  %v20506_v1 = vsel %vm32789_vm13, %v31069_v58, %v31464_v13  ;;  %v32791_v58 = vld [vmem:[#allocation17_spill] sm:$0xff]  ;;  %vm32811_vm9 = vmmov %vm32810_vm4  ;;  %vm32817_vm13 = vcmask 146432  }
 0x8a1   :  { %26646 = vmatmul.mubr.msk.f32.vlgmr.msra.gmra.mrb[112].mxu1 %vm171_vm1, %v32776_v3  ;;  %20260 = vmatprep.mubr.f32.mxu0 %v30389_v26  ;;  %v31695_v55 = vpop.permute.xlu1 %23728  ;;  %v32790_v20 = vld [vmem:[#allocation63_spill] sm:$0xff] }
 0x8a2   :  { %26621 = vmatmul.mubr.msk.f32.vlgmr.msra.gmra.mrb[8].mxu0 %vm171_vm1, %v30669_v17  ;;  %27199 = vmatprep.subr.mxu1 %v30389_v26 }
 0x8a3   :  { %20339 = vmatpush1.msra.mxu0 %v20185_v48  ;;  %27200 = vmatpush3.msra.mxu1 %v31643_v5  ;;  %v20507_v48 = vsel %vm32784_vm5, %v31464_v13, %v31425_v28  ;;  %v32792_v13 = vld [vmem:[#allocation52_spill] sm:$0xff]  ;;  %vm32812_vm5 = vcmask 375808  }
 0x8a4   :  { %20517 = vmatprep.subr.mxu0 %v20503_v14  ;;  %27201 = vmatprep.mubr.msk.f32.mxu1 %vm27951_vm2, %v30389_v26  ;;  %v32785_v14 = vld [vmem:[#allocation26_spill] sm:$0xff] }
 0x8a5   :  { %27202 = vmatmul.mubr.msk.f32.vlgmr.msra.gmra.mrb[142].mxu1 %vm171_vm1, %v32776_v3  ;;  %25648 = vrot.lane.b32.xlu1 %v31713_v61, %s32740_s24  ;;  %v31720_v23 = vpop.permute.xlu1 %23724 }
 0x8a6   :  { %22533 = vmatprep.subr.mxu1 %v22449_v6  ;;  %20402 = vmatprep.mubr.f32.mxu0 %v30389_v26  ;;  %v22452_v6 = vsel %vm171_vm1, %v31707_v38, %v32786_v52  ;;  %v32795_v52 = vld [vmem:[#allocation68_spill] sm:$0xff] }
 0x8a7   :  { %22534 = vmatpush1.msra.mxu1 %v22448_v0  ;;  %26623 = vmatmul.mubr.msk.f32.vlgmr.msra.gmra.mrb[10].mxu0 %vm171_vm1, %v30669_v17  ;;  %v31740_v17 = vpop.permute.xlu0 %24376 }
 0x8a8   :  { %20518 = vmatpush1.msra.mxu0 %v20502_v53  ;;  %22597 = vmatprep.mubr.f32.mxu1 %v30389_v26  ;;  %32787 = vst [vmem:[#allocation23_spill] sm:$0xff] %v31740_v17  ;;  %v32798_v17 = vld [vmem:[#allocation53_spill] sm:$0xff] }
 0x8a9   :  { %20659 = vmatprep.subr.mxu0 %v20507_v48  ;;  %26650 = vmatmul.mubr.msk.f32.vlgmr.msra.gmra.mrb[112].mxu1 %vm171_vm1, %v32785_v14  ;;  %v23723_v0 = vpop.permute.xlu1 %23722  ;;  %v22771_v48 = vsel %vm32793_vm14, %v32792_v13, %v32791_v58  ;;  %vm32818_vm14 = vmmov %vm32812_vm5 }
 0x8aa   :  { %25016 = vrot.lane.b32.xlu1 %v30898_v60, %s32522_s29  ;;  %20581 = vmatprep.mubr.f32.mxu0 %v30389_v26  ;;  %v31747_v28 = vsel %vm32788_vm12, %v23723_v0, %v31720_v23  ;;  %v20824_v60 = vsel %vm3334_vm11, %v32790_v20, %v30936_v32  ;;  %v32797_v0 = vld [vmem:[#allocation56_spill] sm:$0xff]  ;;  %vm32814_vm12 = vmmov %vm32810_vm4 }
 0x8ab   :  { %26625 = vmatmul.mubr.msk.f32.vlgmr.msra.gmra.mrb[8].mxu0 %vm171_vm1, %v30671_v49  ;;  %27204 = vmatprep.subr.mxu1 %v30389_v26 }
 0x8ac   :  { %20660 = vmatpush1.msra.mxu0 %v20506_v1  ;;  %27205 = vmatpush3.msra.mxu1 %v22452_v6  ;;  %v22770_v6 = vsel %vm32796_vm15, %v32795_v52, %v32792_v13  ;;  %v20823_v1 = vsel %vm3334_vm11, %v32797_v0, %v32790_v20  ;;  %v27807_v13 = vld [vmem:[#allocation3 + $0x30] sm:$0xff] }
 0x8ad   :  { %20838 = vmatprep.subr.mxu0 %v20824_v60  ;;  %27206 = vmatprep.mubr.msk.f32.mxu1 %vm27951_vm2, %v30389_v26  ;;  %v31760_v53 = vpop.permute.xlu1 %24049  ;;  %v20828_v60 = vsel %vm3334_vm11, %v31489_v8, %v31462_v7  ;;  %v20827_v7 = vsel %vm3334_vm11, %v31077_v37, %v31489_v8  ;;  %v32804_v37 = vld [vmem:[#allocation20_spill] sm:$0xff]  ;;  %v32805_v8 = vld [vmem:[#allocation61_spill] sm:$0xff]  ;;  %vm32806_vm11 = vcmask 48128  }
 0x8ae   :  { %25975 = vrot.lane.b32.xlu1 %v31617_v59, %s32747_s3  ;;  %20723 = vmatprep.mubr.f32.mxu0 %v30389_v26  ;;  %v31771_v32 = vsel %vm32794_vm6, %v31443_v31, %v31760_v53  ;;  %v31778_v59 = vpop.permute.xlu0 %22764  ;;  %vm32808_vm10 = vmmov %vm32806_vm11 }
 0x8af   :  { %27207 = vmatmul.mubr.msk.f32.vlgmr.msra.gmra.mrb[144].mxu1 %vm171_vm1, %v32785_v14  ;;  %22856 = vmatprep.subr.mxu1 %v22771_v48  ;;  %vm32820_vm6 = vmmov %vm32817_vm13 }
 0x8b0   :  { %26627 = vmatmul.mubr.msk.f32.vlgmr.msra.gmra.mrb[10].mxu0 %vm171_vm1, %v30671_v49  ;;  %22857 = vmatpush1.msra.mxu1 %v22770_v6  ;;  %v22774_v49 = vsel %vm32799_vm7, %v31778_v59, %v32798_v17  ;;  %v32801_v17 = vld [vmem:[#allocation38_spill] sm:$0xff]  ;;  %vm32821_vm15 = vmmov %vm32820_vm6 }
 0x8b1   :  { %20839 = vmatpush1.msra.mxu0 %v20823_v1  ;;  %22920 = vmatprep.mubr.f32.mxu1 %v30389_v26  ;;  %v24046_v48 = vpop.permute.xlu1 %24045  ;;  %v23096_v1 = vsel %vm32806_vm11, %v32805_v8, %v32804_v37  ;;  %vm32822_vm7 = vmmov %vm32812_vm5 }
 0x8b2   :  { %20980 = vmatprep.subr.mxu0 %v20828_v60  ;;  %25337 = vrot.lane.b32.xlu1 %v27807_v13, %s32528_s27  ;;  %v31795_v20 = vsel %vm32800_vm0, %v24046_v48, %v31443_v31  ;;  %v21145_v31 = vsel %vm32802_vm8, %v32801_v17, %v30944_v10  ;;  %v32807_v10 = vld [vmem:[#allocation44_spill] sm:$0xff]  ;;  %vm32823_vm0 = vmmov %vm32820_vm6  ;;  %vm32825_vm8 = vcmask 138240  }
 0x8b3   :  { %20902 = vmatprep.mubr.f32.mxu0 %v30389_v26  ;;  %26654 = vmatmul.mubr.msk.f32.vlgmr.msra.gmra.mrb[112].mxu1 %vm171_vm1, %v31466_v16  ;;  %v23095_v60 = vsel %vm32808_vm10, %v32807_v10, %v32805_v8 }
 0x8b4   :  { %26629 = vmatmul.mubr.msk.f32.vlgmr.msra.gmra.mrb[8].mxu0 %vm171_vm1, %v30673_v18  ;;  %27209 = vmatprep.subr.mxu1 %v30389_v26 }
 0x8b5   :  { %20981 = vmatpush1.msra.mxu0 %v20827_v7  ;;  %27210 = vmatpush3.msra.mxu1 %v22774_v49  ;;  %v24044_v6 = vpop.permute.xlu1 %24043  ;;  %v21149_v7 = vsel %vm32811_vm9, %v31511_v22, %v31509_v4 }
 0x8b6   :  { %21159 = vmatprep.subr.mxu0 %v21145_v31  ;;  %27211 = vmatprep.mubr.msk.f32.mxu1 %vm27951_vm2, %v30389_v26  ;;  %v31812_v0 = vsel %vm32803_vm3, %v24044_v6, %v24046_v48  ;;  %v32809_v48 = vld [vmem:[#allocation43_spill] sm:$0xff]  ;;  %v32816_v6 = vld [vmem:[#allocation64_spill] sm:$0xff]  ;;  %vm32827_vm3 = vmmov %vm32825_vm8 }
 0x8b7   :  { %25971 = vrot.lane.b32.xlu1 %v31662_v35, %s32747_s3  ;;  %21044 = vmatprep.mubr.f32.mxu0 %v30389_v26  ;;  %v21144_v35 = vsel %vm32810_vm4, %v32809_v48, %v32801_v17  ;;  %v21148_v17 = vsel %vm32814_vm12, %v31085_v54, %v31511_v22  ;;  %v21466_v8 = vsel %vm32817_vm13, %v32816_v6, %v32756_v33  ;;  %v32819_v54 = vld [vmem:[#allocation34_spill] sm:$0xff]  ;;  %vm32828_vm11 = vmmov %vm32827_vm3  ;;  %vm32831_vm4 = vcmask 130048  }
 0x8b8   :  { %27212 = vmatmul.mubr.msk.f32.vlgmr.msra.gmra.mrb[146].mxu1 %vm171_vm1, %v31466_v16  ;;  %23180 = vmatprep.subr.mxu1 %v23096_v1  ;;  %v21465_v22 = vsel %vm32820_vm6, %v32819_v54, %v32816_v6  ;;  %vm32829_vm10 = vmmov %vm32827_vm3  ;;  %vm32839_vm13 = vcmask 56320  }
 0x8b9   :  { %26631 = vmatmul.mubr.msk.f32.vlgmr.msra.gmra.mrb[10].mxu0 %vm171_vm1, %v30673_v18  ;;  %23181 = vmatpush1.msra.mxu1 %v23095_v60  ;;  %v31830_v49 = vpop.permute.xlu1 %24370  ;;  %v32813_v18 = vld [vmem:[#allocation32_spill] sm:$0xff]  ;;  %v21469_v60 = vsel %vm32823_vm0, %v32753_v44, %v31533_v9  ;;  %vm32833_vm9 = vmmov %vm32831_vm4 }
 0x8ba   :  { %21160 = vmatpush1.msra.mxu0 %v21144_v35  ;;  %23244 = vmatprep.mubr.f32.mxu1 %v30389_v26  ;;  %v31839_v31 = vsel %vm32812_vm5, %v31611_v56, %v31830_v49  ;;  %vm32834_vm5 = vmmov %vm32831_vm4 }
 0x8bb   :  { %21301 = vmatprep.subr.mxu0 %v21149_v7  ;;  %25658 = vrot.lane.b32.xlu1 %v27807_v13, %s32740_s24  ;;  %v21791_v7 = vsel %vm32828_vm11, %v31551_v30, %v31592_v40  ;;  %vm32835_vm12 = vmmov %vm32831_vm4 }
 0x8bc   :  { %21223 = vmatprep.mubr.f32.mxu0 %v30389_v26  ;;  %26658 = vmatmul.mubr.msk.f32.vlgmr.msra.gmra.mrb[112].mxu1 %vm171_vm1, %v32813_v18  ;;  %v22111_v54 = vsel %vm32835_vm12, %v32769_v12, %v31570_v19  ;;  %vm32842_vm6 = vmmov %vm32839_vm13 }
 0x8bd   :  { %26633 = vmatmul.mubr.msk.f32.vlgmr.msra.gmra.mrb[8].mxu0 %vm171_vm1, %v32751_v24  ;;  %25967 = vrot.lane.b32.xlu0 %v31466_v16, %s32815_s14  ;;  %v24367_v4 = vpop.permute.xlu1 %24366 }
 0x8be   :  { %21302 = vmatpush1.msra.mxu0 %v21148_v17  ;;  %21365 = vmatprep.mubr.f32.mxu0 %v30389_v26  ;;  %v31858_v1 = vsel %vm32818_vm14, %v24367_v4, %v31611_v56  ;;  %v21470_v56 = vsel %vm32821_vm15, %v31533_v9, %v31549_v45  ;;  %v32824_v45 = vld [vmem:[#allocation40_spill] sm:$0xff]  ;;  %v32830_v17 = vld [vmem:[#allocation66_spill] sm:$0xff]  ;;  %vm32841_vm14 = vmmov %vm32839_vm13  ;;  %vm32844_vm15 = vcmask 48128  }
 0x8bf   :  { %21480 = vmatprep.subr.mxu0 %v21466_v8  ;;  %25969 = vrot.lane.b32.xlu1 %v31713_v61, %s32747_s3  ;;  %v21787_v35 = vsel %vm32825_vm8, %v32824_v45, %v32764_v15  ;;  %v32826_v9 = vld [vmem:[#allocation28_spill] sm:$0xff]  ;;  %v22112_v8 = vsel %vm32834_vm5, %v31570_v19, %v31643_v5  ;;  %vm32847_vm0 = vmmov %vm32844_vm15  ;;  %vm32849_vm8 = vcmask 457728   ;;  %vm32861_vm5 = vcmask 449536  }
 0x8c0   :  { %27214 = vmatprep.subr.mxu1 %v30389_v26  ;;  %27216 = vmatprep.mubr.msk.f32.mxu1 %vm27951_vm2, %v30389_v26  ;;  %v21786_v44 = vsel %vm32827_vm3, %v32826_v9, %v32824_v45  ;;  %v22773_v45 = vsel %vm32842_vm6, %v31613_v57, %v31778_v59  ;;  %v32843_v9 = vld [vmem:[#allocation60_spill] sm:$0xff]  ;;  %v32846_v59 = vld [vmem:[#allocation54_spill] sm:$0xff]  ;;  %vm32851_vm3 = vmmov %vm32849_vm8 }
 0x8c1   :  { %26635 = vmatmul.mubr.msk.f32.vlgmr.msra.gmra.mrb[10].mxu0 %vm171_vm1, %v32751_v24  ;;  %25981 = vrot.lane.b32.xlu0 %v31494_v11, %s32747_s3  ;;  %v24365_v33 = vpop.permute.xlu1 %24364  ;;  %v17624_v24 = vld [vmem:[#allocation9 + $0x10] sm:$0xff]  ;;  %v31883_v11 = vpop.permute.xlu0 %24693  ;;  %vm32853_vm11 = vmmov %vm32847_vm0 }
 0x8c2   :  { %21481 = vmatpush1.msra.mxu0 %v21465_v22  ;;  %21544 = vmatprep.mubr.f32.mxu0 %v30389_v26  ;;  %v31877_v61 = vsel %vm32822_vm7, %v24365_v33, %v24367_v4  ;;  %v22108_v4 = vsel %vm32831_vm4, %v32830_v17, %v32772_v39  ;;  %v32837_v33 = vld [vmem:[#allocation59_spill] sm:$0xff]  ;;  %vm32845_vm7 = vmmov %vm32842_vm6 }
 0x8c3   :  { %21622 = vmatprep.subr.mxu0 %v21470_v56  ;;  %25979 = vrot.lane.b32.xlu1 %v27807_v13, %s32747_s3  ;;  %v22451_v56 = vsel %vm171_vm1, %v31594_v51, %v31707_v38  ;;  %vm32857_vm4 = vmmov %vm32847_vm0 }
 0x8c4   :  { %vm32862_vm12 = vmmov %vm32851_vm3 }
 0x8c5   :  { %26637 = vmatmul.mubr.msk.f32.vlgmr.msra.gmra.mrb[8].mxu0 %vm171_vm1, %v32759_v21  ;;  %v31887_v48 = vpop.permute.xlu1 %24691  ;;  %v31904_v15 = vpop.permute.xlu0 %24689  ;;  %vm32866_vm6 = vmmov %vm32861_vm5 }
 0x8c6   :  { %21623 = vmatpush1.msra.mxu0 %v21469_v60  ;;  %21686 = vmatprep.mubr.f32.mxu0 %v30389_v26 }
 0x8c7   :  { %21801 = vmatprep.subr.mxu0 %v21787_v35  ;;  %26290 = vperm.xlu1 %27782, %v17624_v24  }
 0x8c9   :  { %26639 = vmatmul.mubr.msk.f32.vlgmr.msra.gmra.mrb[10].mxu0 %vm171_vm1, %v32759_v21  ;;  %v31898_v13 = vpop.permute.xlu1 %24687  ;;  %v21790_v21 = vsel %vm32829_vm10, %v32761_v41, %v31551_v30  ;;  %v31917_v6 = vpop.permute.xlu0 %24683  ;;  %v32832_v30 = vld [vmem:[#allocation51_spill] sm:$0xff]  ;;  %vm32855_vm10 = vmmov %vm32847_vm0 }
 0x8ca   :  { %21802 = vmatpush1.msra.mxu0 %v21786_v44  ;;  %21865 = vmatprep.mubr.f32.mxu0 %v30389_v26  ;;  %v22107_v41 = vsel %vm32833_vm9, %v32832_v30, %v32830_v17  ;;  %vm32859_vm9 = vmmov %vm32851_vm3 }
 0x8cb   :  { %21943 = vmatprep.subr.mxu0 %v21791_v7  ;;  %v23094_v7 = vsel %vm32847_vm0, %v32846_v59, %v32807_v10  ;;  %vm32869_vm0 = vmmov %vm32861_vm5 }
 0x8cd   :  { %26641 = vmatmul.mubr.msk.f32.vlgmr.msra.gmra.mrb[8].mxu0 %vm171_vm1, %v32767_v42  ;;  %v31939_v5 = vpop.permute.xlu0 %24697 }
 0x8ce   :  { %21944 = vmatpush1.msra.mxu0 %v21790_v21  ;;  %22007 = vmatprep.mubr.f32.mxu0 %v30389_v26  ;;  %v32848_v21 = vld [vmem:[#allocation47_spill] sm:$0xff] }
 0x8cf   :  { %22122 = vmatprep.subr.mxu0 %v22108_v4  ;;  %v31915_v40 = vpop.permute.xlu1 %24685  ;;  %v23418_v17 = vsel %vm32849_vm8, %v31635_v50, %v32848_v21  ;;  %v32852_v4 = vld [vmem:[#allocation31_spill] sm:$0xff]  ;;  %vm32870_vm8 = vcmask 375808  }
 0x8d1   :  { %26643 = vmatmul.mubr.msk.f32.vlgmr.msra.gmra.mrb[10].mxu0 %vm171_vm1, %v32767_v42  ;;  %v32836_v42 = vld [vmem:[#allocation42_spill] sm:$0xff]  ;;  %v31955_v24 = vpop.permute.xlu0 %25014 }
 0x8d2   :  { %22123 = vmatpush1.msra.mxu0 %v22107_v41  ;;  %22186 = vmatprep.mubr.f32.mxu0 %v30389_v26  ;;  %v22447_v22 = vsel %vm171_vm1, %v32836_v42, %v32781_v27  ;;  %v22446_v19 = vsel %vm171_vm1, %v32837_v33, %v32836_v42  ;;  %v22450_v27 = vsel %vm171_vm1, %v32779_v29, %v31594_v51  ;;  %v32840_v51 = vld [vmem:[#allocation49_spill] sm:$0xff]  ;;  %v32858_v42 = vld [vmem:[#allocation75_spill] sm:$0xff] }
 0x8d3   :  { %22264 = vmatprep.subr.mxu0 %v22112_v8  ;;  %v32854_v8 = vld [vmem:[#allocation57_spill] sm:$0xff] }
 0x8d4   :  { %v31928_v39 = vpop.permute.xlu1 %25012 }
 0x8d5   :  { %26645 = vmatmul.mubr.msk.f32.vlgmr.msra.gmra.mrb[8].mxu0 %vm171_vm1, %v32776_v3 }
 0x8d6   :  { %22265 = vmatpush1.msra.mxu0 %v22111_v54  ;;  %22328 = vmatprep.mubr.f32.mxu0 %v30389_v26  ;;  %v23093_v54 = vsel %vm32855_vm10, %v32854_v8, %v32846_v59  ;;  %vm32874_vm10 = vcmask 367616  }
 0x8d7   :  { %22462 = vmatprep.subr.mxu0 %v22447_v22 }
 0x8d9   :  { %26647 = vmatmul.mubr.msk.f32.vlgmr.msra.gmra.mrb[10].mxu0 %vm171_vm1, %v32776_v3  ;;  %v31946_v12 = vpop.permute.xlu1 %25008  ;;  %v32838_v3 = vld [vmem:[#allocation67_spill] sm:$0xff] }
 0x8da   :  { %22463 = vmatpush1.msra.mxu0 %v22446_v19  ;;  %22526 = vmatprep.mubr.f32.mxu0 %v30389_v26  ;;  %v22769_v60 = vsel %vm32839_vm13, %v32838_v3, %v32795_v52  ;;  %v22768_v29 = vsel %vm32841_vm14, %v32840_v51, %v32838_v3  ;;  %v31974_v52 = vpop.permute.xlu0 %25010  ;;  %v32860_v19 = vld [vmem:[#allocation18_spill] sm:$0xff]  ;;  %vm32864_vm13 = vmmov %vm32861_vm5 }
 0x8db   :  { %22604 = vmatprep.subr.mxu0 %v22451_v56  ;;  %v23739_v56 = vsel %vm32861_vm5, %v31695_v55, %v32860_v19  ;;  %vm32865_vm14 = vmmov %vm32851_vm3 }
 0x8dd   :  { %26649 = vmatmul.mubr.msk.f32.vlgmr.msra.gmra.mrb[8].mxu0 %vm171_vm1, %v32785_v14 }
 0x8de   :  { %22605 = vmatpush1.msra.mxu0 %v22450_v27  ;;  %22668 = vmatprep.mubr.f32.mxu0 %v30389_v26  ;;  %v31963_v38 = vpop.permute.xlu1 %25006  ;;  %v32000_v10 = vpop.permute.xlu0 %25004 }
 0x8df   :  { %22785 = vmatprep.subr.mxu0 %v22769_v60 }
 0x8e1   :  { %26651 = vmatmul.mubr.msk.f32.vlgmr.msra.gmra.mrb[10].mxu0 %vm171_vm1, %v32785_v14  ;;  %v22772_v14 = vsel %vm32845_vm7, %v32791_v58, %v31613_v57  ;;  %v32850_v57 = vld [vmem:[#allocation73_spill] sm:$0xff]  ;;  %vm32868_vm7 = vmmov %vm32861_vm5 }
 0x8e2   :  { %22786 = vmatpush1.msra.mxu0 %v22768_v29  ;;  %22849 = vmatprep.mubr.f32.mxu0 %v30389_v26  ;;  %v23417_v58 = vsel %vm32851_vm3, %v32850_v57, %v31635_v50  ;;  %v32856_v50 = vld [vmem:[#allocation25_spill] sm:$0xff]  ;;  %v23416_v33 = vsel %vm32859_vm9, %v31654_v2, %v32850_v57  ;;  %v32024_v27 = vpop.permute.xlu0 %25018  ;;  %vm32876_vm9 = vmmov %vm32870_vm8 }
 0x8e3   :  { %22927 = vmatprep.subr.mxu0 %v22773_v45  ;;  %v23090_v35 = vpop.permute.xlu1 %23089  ;;  %v32863_v2 = vld [vmem:[#allocation21_spill] sm:$0xff]  ;;  %vm32877_vm5 = vmmov %vm32870_vm8 }
 0x8e4   :  { %v23099_v44 = vsel %vm32844_vm15, %v23090_v35, %v32843_v9  ;;  %v23098_v30 = vsel %vm32853_vm11, %v32852_v4, %v23090_v35  ;;  %v23738_v3 = vsel %vm32864_vm13, %v32863_v2, %v31695_v55  ;;  %vm32867_vm15 = vcmask 441344  }
 0x8e5   :  { %26653 = vmatmul.mubr.msk.f32.vlgmr.msra.gmra.mrb[8].mxu0 %vm171_vm1, %v31466_v16  ;;  %27215 = vmatpush3.msra.mxu1 %v23099_v44  ;;  %v24060_v55 = vsel %vm32867_vm15, %v31760_v53, %v31403_v36  ;;  %vm32871_vm3 = vmmov %vm32867_vm15  ;;  %vm32879_vm13 = vcmask 359424  }
 0x8e6   :  { %22928 = vmatpush1.msra.mxu0 %v22772_v14  ;;  %22991 = vmatprep.mubr.f32.mxu0 %v30389_v26  ;;  %vm32872_vm11 = vmmov %vm32871_vm3 }
 0x8e7   :  { %23109 = vmatprep.subr.mxu0 %v23094_v7  ;;  %27217 = vmatmul.mubr.msk.f32.vlgmr.msra.gmra.mrb[148].mxu1 %vm171_vm1, %v32813_v18 }
 0x8e8   :  { %23501 = vmatprep.subr.mxu1 %v23418_v17  ;;  %v31997_v41 = vpop.permute.xlu1 %25333  ;;  %23565 = vmatprep.mubr.f32.mxu1 %v30389_v26 }
 0x8e9   :  { %26655 = vmatmul.mubr.msk.f32.vlgmr.msra.gmra.mrb[10].mxu0 %vm171_vm1, %v31466_v16  ;;  %23502 = vmatpush1.msra.mxu1 %v23417_v58  ;;  %v23097_v16 = vsel %vm32857_vm4, %v32804_v37, %v32852_v4  ;;  %vm32875_vm4 = vmmov %vm32874_vm10  ;;  %v25023_v4 = vsel %vm32879_vm13, %v31928_v39, %v31955_v24 }
 0x8ea   :  { %23110 = vmatpush1.msra.mxu0 %v23093_v54  ;;  %23173 = vmatprep.mubr.f32.mxu0 %v30389_v26  ;;  %vm32882_vm15 = vmmov %vm32875_vm4 }
 0x8eb   :  { %23251 = vmatprep.subr.mxu0 %v23098_v30  ;;  %27219 = vmatprep.subr.mxu1 %v30389_v26 }
 0x8ec   :  { %26662 = vmatmul.mubr.msk.f32.vlgmr.msra.gmra.mrb[112].mxu1 %vm171_vm1, %v32856_v50 }
 0x8ed   :  { %26657 = vmatmul.mubr.msk.f32.vlgmr.msra.gmra.mrb[8].mxu0 %vm171_vm1, %v32813_v18  ;;  %27220 = vmatpush3.msra.mxu1 %v32858_v42  ;;  %v23412_v22 = vpop.permute.xlu1 %23411 }
 0x8ee   :  { %23252 = vmatpush1.msra.mxu0 %v23097_v16  ;;  %23315 = vmatprep.mubr.f32.mxu0 %v30389_v26  ;;  %v23420_v37 = vsel %vm32862_vm12, %v23412_v22, %v32858_v42  ;;  %v23419_v51 = vsel %vm32865_vm14, %v32848_v21, %v23412_v22  ;;  %vm32878_vm12 = vmmov %vm32875_vm4 }
 0x8ef   :  { %23430 = vmatprep.subr.mxu0 %v23416_v33  ;;  %23822 = vmatprep.subr.mxu1 %v23739_v56  ;;  %vm32880_vm14 = vmmov %vm32875_vm4 }
 0x8f0   :  { %27221 = vmatprep.mubr.msk.f32.mxu1 %vm27951_vm2, %v30389_v26  ;;  %v24699_v30 = vsel %vm32880_vm14, %v31915_v40, %v31898_v13 }
 0x8f1   :  { %26659 = vmatmul.mubr.msk.f32.vlgmr.msra.gmra.mrb[10].mxu0 %vm171_vm1, %v32813_v18  ;;  %27222 = vmatmul.mubr.msk.f32.vlgmr.msra.gmra.mrb[150].mxu1 %vm171_vm1, %v32856_v50  ;;  %v32045_v18 = vpop.permute.xlu0 %25335 }
 0x8f2   :  { %23431 = vmatpush1.msra.mxu0 %v31684_v25  ;;  %23494 = vmatprep.mubr.f32.mxu0 %v30389_v26  ;;  %v32039_v60 = vpop.permute.xlu1 %25329  ;;  %v23737_v25 = vsel %vm32866_vm6, %v31720_v23, %v32863_v2  ;;  %vm32881_vm6 = vmmov %vm32879_vm13 }
 0x8f3   :  { %23572 = vmatprep.subr.mxu0 %v23420_v37  ;;  %23823 = vmatpush1.msra.mxu1 %v23738_v3  ;;  %v26301_v3 = vld [vmem:[#allocation4 + $0x8] sm:$0xff] }
 0x8f4   :  { %23886 = vmatprep.mubr.f32.mxu1 %v30389_v26  ;;  %27224 = vmatprep.subr.mxu1 %v30389_v26 }
 0x8f5   :  { %26661 = vmatmul.mubr.msk.f32.vlgmr.msra.gmra.mrb[8].mxu0 %vm171_vm1, %v32856_v50  ;;  %26666 = vmatmul.mubr.msk.f32.vlgmr.msra.gmra.mrb[112].mxu1 %vm171_vm1, %v31333_v46  ;;  %v32069_v23 = vpop.permute.xlu0 %25331 }
 0x8f6   :  { %23573 = vmatpush1.msra.mxu0 %v23419_v51  ;;  %23636 = vmatprep.mubr.f32.mxu0 %v30389_v26 }
 0x8f7   :  { %23751 = vmatprep.subr.mxu0 %v23737_v25  ;;  %27225 = vmatpush3.msra.mxu1 %v31362_v34  ;;  %v23733_v29 = vpop.permute.xlu1 %23732 }
 0x8f8   :  { %24143 = vmatprep.subr.mxu1 %v24060_v55  ;;  %v23741_v45 = vsel %vm32868_vm7, %v23733_v29, %v31362_v34  ;;  %27226 = vmatprep.mubr.msk.f32.mxu1 %vm27951_vm2, %v30389_v26  ;;  %v23740_v53 = vsel %vm32869_vm0, %v32860_v19, %v23733_v29  ;;  %vm32883_vm7 = vmmov %vm32875_vm4 }
 0x8f9   :  { %26663 = vmatmul.mubr.msk.f32.vlgmr.msra.gmra.mrb[10].mxu0 %vm171_vm1, %v32856_v50  ;;  %27227 = vmatmul.mubr.msk.f32.vlgmr.msra.gmra.mrb[152].mxu1 %vm171_vm1, %v31333_v46  ;;  %v32090_v44 = vpop.permute.xlu0 %25325  ;;  %vm32884_vm0 = vmmov %vm32881_vm6 }
 0x8fa   :  { %23752 = vmatpush1.msra.mxu0 %v31747_v28  ;;  %23815 = vmatprep.mubr.f32.mxu0 %v30389_v26  ;;  %v24381_v28 = vsel %vm32870_vm8, %v31830_v49, %v31568_v47  ;;  %vm32885_vm8 = vcmask 293888  }
 0x8fb   :  { %23893 = vmatprep.subr.mxu0 %v23741_v45  ;;  %24144 = vmatpush1.msra.mxu1 %v31771_v32  ;;  %v17950_v34 = vpop.f32.mrb[114].mxu1  ;;  %v25344_v16 = vsel %vm32885_vm8, %v31997_v41, %v32045_v18  ;;  %vm32894_vm14 = vmmov %vm32885_vm8 }
 0x8fc   :  { %v32074_v35 = vpop.permute.xlu1 %25327  ;;  %24207 = vmatprep.mubr.f32.mxu1 %v30389_v26  ;;  %27229 = vmatprep.subr.mxu1 %v30389_v26  ;;  %v27133_v9 = vpop.f32.mrb[115].mxu1 }
 0x8fd   :  { %26665 = vmatmul.mubr.msk.f32.vlgmr.msra.gmra.mrb[8].mxu0 %vm171_vm1, %v31333_v46  ;;  %26670 = vmatmul.mubr.msk.f32.vlgmr.msra.gmra.mrb[112].mxu1 %vm171_vm1, %v31487_v63 }
 0x8fe   :  { %23894 = vmatpush1.msra.mxu0 %v23740_v53  ;;  %23957 = vmatprep.mubr.f32.mxu0 %v30389_v26 }
 0x8ff   :  { %24072 = vmatprep.subr.mxu0 %v31795_v20  ;;  %27230 = vmatpush3.msra.mxu1 %v31531_v43 }
 0x900   :  { %24464 = vmatprep.subr.mxu1 %v24381_v28  ;;  %v24054_v32 = vpop.permute.xlu1 %24053  ;;  %27231 = vmatprep.mubr.msk.f32.mxu1 %vm27951_vm2, %v30389_v26 }
 0x901   :  { %26667 = vmatmul.mubr.msk.f32.vlgmr.msra.gmra.mrb[10].mxu0 %vm171_vm1, %v31333_v46  ;;  %v24062_v14 = vsel %vm32871_vm3, %v24054_v32, %v31531_v43  ;;  %27232 = vmatmul.mubr.msk.f32.vlgmr.msra.gmra.mrb[154].mxu1 %vm171_vm1, %v31487_v63  ;;  %v24061_v20 = vsel %vm32872_vm11, %v31403_v36, %v24054_v32  ;;  %v32112_v36 = vpop.permute.xlu0 %25339  ;;  %vm32886_vm3 = vmmov %vm32884_vm0  ;;  %v26303_v32 = vld [vmem:[#allocation4 + $0x18] sm:$0xff] }
 0x902   :  { %24073 = vmatpush1.msra.mxu0 %v31812_v0  ;;  %24136 = vmatprep.mubr.f32.mxu0 %v30389_v26  ;;  %v32873_v0 = vld [vmem:[#allocation23_spill] sm:$0xff]  ;;  %v25020_v42 = vsel %vm32886_vm3, %v31963_v38, %v31946_v12  ;;  %vm32887_vm11 = vmmov %vm32885_vm8 }
 0x903   :  { %24214 = vmatprep.subr.mxu0 %v24062_v14  ;;  %24465 = vmatpush1.msra.mxu1 %v31839_v31  ;;  %v18235_v49 = vpop.f32.mrb[116].mxu1  ;;  %v24702_v31 = vsel %vm32874_vm10, %v31887_v48, %v31883_v11  ;;  %v25343_v33 = vsel %vm32887_vm11, %v32069_v23, %v31997_v41  ;;  %vm32888_vm10 = vmmov %vm32884_vm0 }
 0x904   :  { %24528 = vmatprep.mubr.f32.mxu1 %v30389_v26  ;;  %27234 = vmatprep.subr.mxu1 %v30389_v26  ;;  %v18236_v46 = vadd.f32 %v18235_v49, %v17950_v34  ;;  %v27138_v43 = vpop.f32.mrb[117].mxu1 }
 0x905   :  { %26669 = vmatmul.mubr.msk.f32.vlgmr.msra.gmra.mrb[8].mxu0 %vm171_vm1, %v31487_v63  ;;  %v32107_v59 = vpop.permute.xlu1 %25654  ;;  %26674 = vmatmul.mubr.msk.f32.vlgmr.msra.gmra.mrb[112].mxu1 %vm171_vm1, %v31675_v62 }
 0x906   :  { %24215 = vmatpush1.msra.mxu0 %v24061_v20  ;;  %24278 = vmatprep.mubr.f32.mxu0 %v30389_v26 }
 0x907   :  { %24393 = vmatprep.subr.mxu0 %v31858_v1  ;;  %27235 = vmatpush3.msra.mxu1 %v32873_v0  ;;  %v24701_v1 = vsel %vm32875_vm4, %v31904_v15, %v31887_v48  ;;  %v32136_v48 = vpop.permute.xlu0 %25656  ;;  %vm32889_vm4 = vmmov %vm32884_vm0 }
 0x908   :  { %24785 = vmatprep.subr.mxu1 %v24702_v31  ;;  %27236 = vmatprep.mubr.msk.f32.mxu1 %vm27951_vm2, %v30389_v26 }
 0x909   :  { %26671 = vmatmul.mubr.msk.f32.vlgmr.msra.gmra.mrb[10].mxu0 %vm171_vm1, %v31487_v63  ;;  %v24375_v7 = vpop.permute.xlu1 %24374  ;;  %27237 = vmatmul.mubr.msk.f32.vlgmr.msra.gmra.mrb[156].mxu1 %vm171_vm1, %v31675_v62 }
 0x90a   :  { %24394 = vmatpush1.msra.mxu0 %v31877_v61  ;;  %24457 = vmatprep.mubr.f32.mxu0 %v30389_v26  ;;  %v24383_v21 = vsel %vm32876_vm9, %v24375_v7, %v32873_v0  ;;  %v24382_v17 = vsel %vm32877_vm5, %v31568_v47, %v24375_v7  ;;  %v24700_v47 = vsel %vm32878_vm12, %v31898_v13, %v31904_v15  ;;  %vm32890_vm9 = vmmov %vm32885_vm8  ;;  %vm32891_vm5 = vcmask 285696   ;;  %v26304_v7 = vld [vmem:[#allocation4 + $0x20] sm:$0xff] }
 0x90b   :  { %24535 = vmatprep.subr.mxu0 %v24383_v21  ;;  %24786 = vmatpush1.msra.mxu1 %v24701_v1  ;;  %v18549_v63 = vpop.f32.mrb[118].mxu1  ;;  %v25022_v15 = vsel %vm32881_vm6, %v31974_v52, %v31928_v39  ;;  %v32165_v54 = vpop.permute.xlu0 %25652  ;;  %v25342_v2 = vsel %vm32890_vm9, %v32039_v60, %v32069_v23  ;;  %vm32892_vm12 = vmmov %vm32885_vm8  ;;  %v26305_v21 = vld [vmem:[#allocation4 + $0x28] sm:$0xff] }
 0x90c   :  { %24849 = vmatprep.mubr.f32.mxu1 %v30389_v26  ;;  %27239 = vmatprep.subr.mxu1 %v30389_v26  ;;  %v18559_v57 = vadd.f32 %v18549_v63, %v18236_v46  ;;  %v27143_v58 = vpop.f32.mrb[119].mxu1  ;;  %v25341_v51 = vsel %vm32892_vm12, %v32074_v35, %v32039_v60  ;;  %vm32893_vm13 = vmmov %vm32891_vm5  ;;  %v26302_v35 = vld [vmem:[#allocation4 + $0x10] sm:$0xff] }
 0x90d   :  { %26673 = vmatmul.mubr.msk.f32.vlgmr.msra.gmra.mrb[8].mxu0 %vm171_vm1, %v31675_v62  ;;  %26678 = vmatmul.mubr.msk.f32.vlgmr.msra.gmra.mrb[112].mxu1 %vm171_vm1, %v31917_v6  ;;  %v25664_v25 = vsel %vm32893_vm13, %v32165_v54, %v32107_v59  ;;  %vm32895_vm6 = vmmov %vm32885_vm8 }
 0x90e   :  { %24536 = vmatpush1.msra.mxu0 %v24382_v17  ;;  %24599 = vmatprep.mubr.f32.mxu0 %v30389_v26  ;;  %v32146_v61 = vpop.permute.xlu1 %25650 }
 0x90f   :  { %24714 = vmatprep.subr.mxu0 %v24700_v47  ;;  %27240 = vmatpush3.msra.mxu1 %v31939_v5  ;;  %v32192_v22 = vpop.permute.xlu0 %25646 }
 0x910   :  { %25106 = vmatprep.subr.mxu1 %v25023_v4  ;;  %27241 = vmatprep.mubr.msk.f32.mxu1 %vm27951_vm2, %v30389_v26 }
 0x911   :  { %26675 = vmatmul.mubr.msk.f32.vlgmr.msra.gmra.mrb[10].mxu0 %vm171_vm1, %v31675_v62  ;;  %27242 = vmatmul.mubr.msk.f32.vlgmr.msra.gmra.mrb[158].mxu1 %vm171_vm1, %v31917_v6 }
 0x912   :  { %24715 = vmatpush1.msra.mxu0 %v24699_v30  ;;  %24778 = vmatprep.mubr.f32.mxu0 %v30389_v26  ;;  %v24696_v8 = vpop.permute.xlu1 %24695 }
 0x913   :  { %v24703_v50 = vsel %vm32882_vm15, %v31883_v11, %v24696_v8  ;;  %v24704_v13 = vsel %vm32883_vm7, %v24696_v8, %v31939_v5  ;;  %25107 = vmatpush1.msra.mxu1 %v25022_v15  ;;  %25170 = vmatprep.mubr.f32.mxu1 %v30389_v26  ;;  %v18870_v62 = vpop.f32.mrb[120].mxu1  ;;  %v25021_v11 = vsel %vm32884_vm0, %v31946_v12, %v31974_v52  ;;  %v26300_v52 = vld [vmem:[#allocation4] sm:$0xff]  ;;  %v25661_v37 = vpop.permute.xlu0 %25660  ;;  %vm32896_vm15 = vmmov %vm32891_vm5  ;;  %vm32897_vm7 = vcmask 277504  }
 0x914   :  { %24856 = vmatprep.subr.mxu0 %v24704_v13  ;;  %27244 = vmatprep.subr.mxu1 %v30389_v26  ;;  %v18880_v40 = vadd.f32 %v18870_v62, %v18559_v57  ;;  %v27148_v39 = vpop.f32.mrb[121].mxu1  ;;  %v25663_v34 = vsel %vm32896_vm15, %v32146_v61, %v32165_v54  ;;  %vm32898_vm0 = vmmov %vm32891_vm5  ;;  %v26306_v57 = vld [vmem:[#allocation4 + $0x30] sm:$0xff] }
 0x915   :  { %26677 = vmatmul.mubr.msk.f32.vlgmr.msra.gmra.mrb[8].mxu0 %vm171_vm1, %v31917_v6  ;;  %26682 = vmatmul.mubr.msk.f32.vlgmr.msra.gmra.mrb[112].mxu1 %vm171_vm1, %v32000_v10  ;;  %vm32899_vm8 = vmmov %vm32897_vm7 }
 0x916   :  { %24857 = vmatpush1.msra.mxu0 %v24703_v50  ;;  %24920 = vmatprep.mubr.f32.mxu0 %v30389_v26  ;;  %vm32900_vm3 = vmmov %vm32898_vm0 }
 0x917   :  { %25035 = vmatprep.subr.mxu0 %v25021_v11  ;;  %v32181_v5 = vpop.permute.xlu1 %25648  ;;  %27245 = vmatpush3.msra.mxu1 %v32024_v27  ;;  %v25978_v45 = vpop.permute.xlu0 %25977  ;;  %vm32901_vm11 = vmmov %vm32898_vm0 }
 0x918   :  { %25427 = vmatprep.subr.mxu1 %v25344_v16  ;;  %27246 = vmatprep.mubr.msk.f32.mxu1 %vm27951_vm2, %v30389_v26  ;;  %v25662_v9 = vsel %vm32898_vm0, %v32181_v5, %v32146_v61 }
 0x919   :  { %26679 = vmatmul.mubr.msk.f32.vlgmr.msra.gmra.mrb[10].mxu0 %vm171_vm1, %v31917_v6  ;;  %27247 = vmatmul.mubr.msk.f32.vlgmr.msra.gmra.mrb[160].mxu1 %vm171_vm1, %v32000_v10 }
 0x91a   :  { %25036 = vmatpush1.msra.mxu0 %v25020_v42  ;;  %25099 = vmatprep.mubr.f32.mxu0 %v30389_v26 }
 0x91b   :  { %25428 = vmatpush1.msra.mxu1 %v25343_v33  ;;  %25491 = vmatprep.mubr.f32.mxu1 %v30389_v26  ;;  %v19191_v12 = vpop.f32.mrb[122].mxu1  ;;  %v25974_v14 = vpop.permute.xlu0 %25973 }
 0x91c   :  { %v25017_v38 = vpop.permute.xlu1 %25016  ;;  %27249 = vmatprep.subr.mxu1 %v30389_v26  ;;  %v19201_v19 = vadd.f32 %v19191_v12, %v18880_v40  ;;  %v27153_v6 = vpop.f32.mrb[123].mxu1  ;;  %26314 = vrot.lane.b32.xlu0 %v26300_v52, %s32685_s28 }
 0x91d   :  { %26681 = vmatmul.mubr.msk.f32.vlgmr.msra.gmra.mrb[8].mxu0 %vm171_vm1, %v32000_v10  ;;  %v25024_v41 = vsel %vm32888_vm10, %v31955_v24, %v25017_v38  ;;  %v25025_v56 = vsel %vm32889_vm4, %v25017_v38, %v32024_v27  ;;  %26686 = vmatmul.mubr.msk.f32.vlgmr.msra.gmra.mrb[112].mxu1 %vm171_vm1, %v32090_v44  ;;  %v25665_v24 = vsel %vm32891_vm5, %v32107_v59, %v32136_v48  ;;  %vm32902_vm10 = vmmov %vm32897_vm7 }
 0x91e   :  { %25177 = vmatprep.subr.mxu0 %v25025_v56  ;;  %25241 = vmatprep.mubr.f32.mxu0 %v30389_v26  ;;  %vm32903_vm4 = vmmov %vm32897_vm7 }
 0x91f   :  { %25178 = vmatpush1.msra.mxu0 %v25024_v41  ;;  %27250 = vmatpush3.msra.mxu1 %v32112_v36  ;;  %vm32904_vm9 = vmmov %vm32903_vm4 }
 0x920   :  { %25356 = vmatprep.subr.mxu0 %v25342_v2  ;;  %v25976_v27 = vpop.permute.xlu1 %25975  ;;  %25748 = vmatprep.subr.mxu1 %v25665_v24  ;;  %vm32905_vm5 = vmmov %vm32903_vm4 }
 0x921   :  { %26683 = vmatmul.mubr.msk.f32.vlgmr.msra.gmra.mrb[10].mxu0 %vm171_vm1, %v32000_v10  ;;  %27251 = vmatprep.mubr.msk.f32.mxu1 %vm27951_vm2, %v30389_v26  ;;  %v25985_v49 = vsel %vm32899_vm8, %v25974_v14, %v25976_v27 }
 0x922   :  { %25357 = vmatpush1.msra.mxu0 %v25341_v51  ;;  %25420 = vmatprep.mubr.f32.mxu0 %v30389_v26 }
 0x923   :  { %27252 = vmatmul.mubr.msk.f32.vlgmr.msra.gmra.mrb[162].mxu1 %vm171_vm1, %v32090_v44  ;;  %v19512_v55 = vpop.f32.mrb[124].mxu1  ;;  %26316 = vrot.lane.b32.xlu1 %v26301_v3, %s32685_s28 }
 0x924   :  { %v25338_v60 = vpop.permute.xlu1 %25337  ;;  %25749 = vmatpush1.msra.mxu1 %v25664_v25  ;;  %25812 = vmatprep.mubr.f32.mxu1 %v30389_v26  ;;  %v19522_v10 = vadd.f32 %v19512_v55, %v19201_v19  ;;  %v27158_v29 = vpop.f32.mrb[125].mxu1 }
 0x925   :  { %26685 = vmatmul.mubr.msk.f32.vlgmr.msra.gmra.mrb[8].mxu0 %vm171_vm1, %v32090_v44  ;;  %v25345_v23 = vsel %vm32894_vm14, %v32045_v18, %v25338_v60  ;;  %v25346_v53 = vsel %vm32895_vm6, %v25338_v60, %v32112_v36  ;;  %27254 = vmatprep.subr.mxu1 %v30389_v26  ;;  %v25986_v18 = vsel %vm32897_vm7, %v25976_v27, %v25978_v45  ;;  %vm26354_vm14 = vcmask 80896  }
 0x926   :  { %25498 = vmatprep.subr.mxu0 %v25346_v53  ;;  %25562 = vmatprep.mubr.f32.mxu0 %v30389_v26 }
 0x927   :  { %25499 = vmatpush1.msra.mxu0 %v25345_v23  ;;  %26690 = vmatmul.mubr.msk.f32.vlgmr.msra.gmra.mrb[112].mxu1 %vm171_vm1, %v32192_v22 }
 0x928   :  { %25677 = vmatprep.subr.mxu0 %v25663_v34  ;;  %27255 = vmatpush3.msra.mxu1 %v25661_v37 }
 0x929   :  { %26687 = vmatmul.mubr.msk.f32.vlgmr.msra.gmra.mrb[10].mxu0 %vm171_vm1, %v32090_v44  ;;  %v25972_v28 = vpop.permute.xlu1 %25971  ;;  %26069 = vmatprep.subr.mxu1 %v25986_v18 }
 0x92a   :  { %25678 = vmatpush1.msra.mxu0 %v25662_v9  ;;  %25741 = vmatprep.mubr.f32.mxu0 %v30389_v26  ;;  %v25984_v31 = vsel %vm32902_vm10, %v25972_v28, %v25974_v14 }
 0x92b   :  { %27256 = vmatprep.mubr.msk.f32.mxu1 %vm27951_vm2, %v30389_v26  ;;  %v19833_v20 = vpop.f32.mrb[126].mxu1  ;;  %26318 = vrot.lane.b32.xlu0 %v26302_v35, %s32685_s28 }
 0x92c   :  { %27257 = vmatmul.mubr.msk.f32.vlgmr.msra.gmra.mrb[164].mxu1 %vm171_vm1, %v32192_v22  ;;  %v19843_v46 = vadd.f32 %v19833_v20, %v19522_v10  ;;  %v27163_v44 = vpop.f32.mrb[127].mxu1  ;;  %26320 = vrot.lane.b32.xlu1 %v26303_v32, %s32685_s28 }
 0x92d   :  { %26689 = vmatmul.mubr.msk.f32.vlgmr.msra.gmra.mrb[8].mxu0 %vm171_vm1, %v32192_v22  ;;  %v25659_v43 = vpop.permute.xlu1 %25658  ;;  %26070 = vmatpush1.msra.mxu1 %v25985_v49 }
 0x92e   :  { %v25666_v59 = vsel %vm32900_vm3, %v32136_v48, %v25659_v43  ;;  %v25667_v36 = vsel %vm32901_vm11, %v25659_v43, %v25661_v37  ;;  %25883 = vmatprep.mubr.f32.mxu0 %v30389_v26  ;;  %26133 = vmatprep.mubr.f32.mxu1 %v30389_v26 }
 0x92f   :  { %25819 = vmatprep.subr.mxu0 %v25667_v36  ;;  %v25968_v0 = vpop.permute.xlu0 %25967  ;;  %27259 = vmatprep.subr.mxu1 %v30389_v26 }
 0x930   :  { %25820 = vmatpush1.msra.mxu0 %v25666_v59  ;;  %26694 = vmatmul.mubr.msk.f32.vlgmr.msra.gmra.mrb[112].mxu1 %vm171_vm1, %v25968_v0 }
 0x931   :  { %26691 = vmatmul.mubr.msk.f32.vlgmr.msra.gmra.mrb[10].mxu0 %vm171_vm1, %v32192_v22  ;;  %25998 = vmatprep.subr.mxu0 %v25984_v31  ;;  %v25970_v1 = vpop.permute.xlu1 %25969 }
 0x932   :  { %v25983_v17 = vsel %vm32903_vm4, %v25970_v1, %v25972_v28  ;;  %26062 = vmatprep.mubr.f32.mxu0 %v30389_v26  ;;  %27261 = vmatprep.mubr.msk.f32.mxu1 %vm27951_vm2, %v30389_v26 }
 0x933   :  { %25999 = vmatpush1.msra.mxu0 %v25983_v17  ;;  %v25982_v63 = vpop.permute.xlu0 %25981  ;;  %26322 = vrot.lane.b32.xlu0 %v26304_v7, %s32685_s28 }
 0x934   :  { %27260 = vmatpush3.msra.mxu1 %v25982_v63  ;;  %26324 = vrot.lane.b32.xlu1 %v26305_v21, %s32685_s28 }
 0x935   :  { %26693 = vmatmul.mubr.msk.f32.vlgmr.msra.gmra.mrb[8].mxu0 %vm171_vm1, %v25968_v0  ;;  %v25980_v58 = vpop.permute.xlu1 %25979  ;;  %27262 = vmatmul.mubr.msk.f32.vlgmr.msra.gmra.mrb[166].mxu1 %vm171_vm1, %v25968_v0 }
 0x936   :  { %v25987_v48 = vsel %vm32904_vm9, %v25978_v45, %v25980_v58  ;;  %v25988_v47 = vsel %vm32905_vm5, %v25980_v58, %v25982_v63  ;;  %26204 = vmatprep.mubr.f32.mxu0 %v30389_v26  ;;  %v20154_v61 = vpop.f32.mrb[128].mxu1 }
 0x937   :  { %26140 = vmatprep.subr.mxu0 %v25988_v47  ;;  %v20164_v4 = vadd.f32 %v20154_v61, %v19843_v46  ;;  %v27168_v30 = vpop.f32.mrb[129].mxu1  ;;  %26326 = vrot.lane.b32.xlu0 %v26306_v57, %s32685_s28 }
 0x938   :  { %26141 = vmatpush1.msra.mxu0 %v25987_v48 }
 0x939   :  { %26695 = vmatmul.mubr.msk.f32.vlgmr.msra.gmra.mrb[10].mxu0 %vm171_vm1, %v25968_v0  ;;  %vm32906_vm1 = vcmask 138240  }
 0x93a   :  { %vm32907_vm2 = vmmov %vm32906_vm1 }
 0x93b   :  { %vm32908_vm12 = vmmov %vm32906_vm1 }
 0x93c   :  { %vm32909_vm13 = vmmov %vm32906_vm1 }
 0x93d   :  { %vm32910_vm6 = vmmov %vm32906_vm1 }
 0x93e   :  { %vm32911_vm15 = vmmov %vm32906_vm1 }
 0x940   :  { %v20475_v15 = vpop.f32.mrb[130].mxu1 }
 0x941   :  { %v20485_v8 = vadd.f32 %v20475_v15, %v20164_v4  ;;  %v27173_v54 = vpop.f32.mrb[131].mxu1 }
 0x946   :  { %v26291_v7 = vpop.permute.xlu1 %26290 }
 0x94a   :  { %v20796_v50 = vpop.f32.mrb[132].mxu1 }
 0x94b   :  { %v20806_v13 = vadd.f32 %v20796_v50, %v20485_v8  ;;  %v27178_v62 = vpop.f32.mrb[133].mxu1 }
 0x954   :  { %v21117_v40 = vpop.f32.mrb[134].mxu1 }
 0x955   :  { %v21127_v39 = vadd.f32 %v21117_v40, %v20806_v13  ;;  %v27183_v11 = vpop.f32.mrb[135].mxu1 }
 0x95d   :  { %v21438_v5 = vpop.f32.mrb[136].mxu1 }
 0x95e   :  { %v21448_v26 = vadd.f32 %v21438_v5, %v21127_v39  ;;  %v27188_v16 = vpop.f32.mrb[137].mxu1 }
 0x966   :  { %v21759_v42 = vpop.f32.mrb[138].mxu1 }
 0x967   :  { %v21769_v22 = vadd.f32 %v21759_v42, %v21448_v26  ;;  %v27193_v52 = vpop.f32.mrb[139].mxu1 }
 0x96f   :  { %v22080_v33 = vpop.f32.mrb[140].mxu1 }
 0x970   :  { %v22090_v12 = vadd.f32 %v22080_v33, %v21769_v22  ;;  %v27198_v38 = vpop.f32.mrb[141].mxu1 }
 0x978   :  { %v22401_v19 = vpop.f32.mrb[142].mxu1 }
 0x979   :  { %v22411_v6 = vadd.f32 %v22401_v19, %v22090_v12  ;;  %v27203_v41 = vpop.f32.mrb[143].mxu1 }
 0x982   :  { %v22741_v56 = vpop.f32.mrb[144].mxu1 }
 0x983   :  { %v22751_v37 = vadd.f32 %v22741_v56, %v22411_v6  ;;  %v27208_v2 = vpop.f32.mrb[145].mxu1 }
 0x98b   :  { %v23064_v24 = vpop.f32.mrb[146].mxu1 }
 0x98c   :  { %v23074_v27 = vadd.f32 %v23064_v24, %v22751_v37  ;;  %v27213_v3 = vpop.f32.mrb[147].mxu1 }
 0x98e   :  { %v26315_v59 = vpop.permute.xlu0 %26314 }
 0x995   :  { %v26317_v21 = vpop.permute.xlu1 %26316 }
 0x996   :  { %v26328_v26 = vsel %vm32908_vm12, %v26315_v59, %v26317_v21 }
 0x99d   :  { %v26319_v1 = vpop.permute.xlu0 %26318 }
 0x99e   :  { %v26321_v48 = vpop.permute.xlu1 %26320  ;;  %v26329_v22 = vsel %vm32909_vm13, %v26317_v21, %v26319_v1 }
 0x99f   :  { %v26330_v8 = vsel %vm32907_vm2, %v26319_v1, %v26321_v48 }
 0x9a5   :  { %v26323_v58 = vpop.permute.xlu0 %26322 }
 0x9a6   :  { %v26331_v30 = vsel %vm32906_vm1, %v26321_v48, %v26323_v58  ;;  %v26325_v33 = vpop.permute.xlu1 %26324 }
 0x9a7   :  { %v26332_v24 = vsel %vm32911_vm15, %v26323_v58, %v26325_v33 }
 0x9a9   :  { %v26327_v42 = vpop.permute.xlu0 %26326 }
 0x9aa   :  { %v26333_v56 = vsel %vm32910_vm6, %v26325_v33, %v26327_v42 }
 0x9ba   :  { %v23388_v51 = vpop.f32.mrb[148].mxu1 }
 0x9bb   :  { %v23398_v25 = vadd.f32 %v23388_v51, %v23074_v27  ;;  %v27218_v55 = vpop.f32.mrb[149].mxu1 }
 0x9c4   :  { %v23709_v60 = vpop.f32.mrb[150].mxu1 }
 0x9c5   :  { %v23719_v10 = vadd.f32 %v23709_v60, %v23398_v25  ;;  %v27223_v29 = vpop.f32.mrb[151].mxu1 }
 0x9cc   :  { %v24030_v45 = vpop.f32.mrb[152].mxu1 }
 0x9cd   :  { %v24040_v23 = vadd.f32 %v24030_v45, %v23719_v10  ;;  %v27228_v53 = vpop.f32.mrb[153].mxu1 }
 0x9d4   :  { %v24351_v34 = vpop.f32.mrb[154].mxu1 }
 0x9d5   :  { %v24361_v18 = vadd.f32 %v24351_v34, %v24040_v23  ;;  %v27233_v35 = vpop.f32.mrb[155].mxu1 }
 0x9dc   :  { %v24672_v9 = vpop.f32.mrb[156].mxu1 }
 0x9dd   :  { %v24682_v28 = vadd.f32 %v24672_v9, %v24361_v18  ;;  %v27238_v32 = vpop.f32.mrb[157].mxu1 }
 0x9e4   :  { %v24993_v14 = vpop.f32.mrb[158].mxu1 }
 0x9e5   :  { %v25003_v20 = vadd.f32 %v24993_v14, %v24682_v28  ;;  %v27243_v49 = vpop.f32.mrb[159].mxu1 }
 0x9ec   :  { %v25314_v46 = vpop.f32.mrb[160].mxu1 }
 0x9ed   :  { %v25324_v44 = vadd.f32 %v25314_v46, %v25003_v20  ;;  %v27248_v43 = vpop.f32.mrb[161].mxu1 }
 0x9f6   :  { %v25635_v36 = vpop.f32.mrb[162].mxu1 }
 0x9f7   :  { %v25645_v0 = vadd.f32 %v25635_v36, %v25324_v44  ;;  %v27253_v31 = vpop.f32.mrb[163].mxu1 }
 0x9ff   :  { %v25956_v17 = vpop.f32.mrb[164].mxu1 }
 0xa00   :  { %v25966_v63 = vadd.f32 %v25956_v17, %v25645_v0  ;;  %v27258_v57 = vpop.f32.mrb[165].mxu1 }
 0xa03   :  { %v26135_v47 = vpop.f32.mrb[112].mxu1 }
 0xa04   :  { %v26295_v61 = vadd.f32 %v26291_v7, %v26135_v47  ;;  %v26137_v4 = vpop.f32.mrb[113].mxu1 }
 0xa05   :  { %v26296_v15 = vadd.f32 %v26291_v7, %v26137_v4 }
 0xa06   :  { %v26343_v54 = vadd.f32 %v26330_v8, %v26295_v61 }
 0xa07   :  { %v26344_v50 = vadd.f32 %v26331_v30, %v26296_v15 }
 0xa08   :  { %v26064_v13 = vpop.f32.mrb[8].mxu0  ;;  %26350 = vst [vmem:[#allocation12 + $0x10] sm:$0xff] %v26343_v54  ;;  %v26277_v62 = vpop.f32.mrb[166].mxu1 }
 0xa09   :  { %v26293_v40 = vadd.f32 %v26291_v7, %v26064_v13  ;;  %26351 = vst [vmem:[#allocation12 + $0x18] sm:$0xff] %v26344_v50  ;;  %v26066_v39 = vpop.f32.mrb[9].mxu0  ;;  %v26287_v11 = vadd.f32 %v26277_v62, %v25966_v63  ;;  %v27263_v5 = vpop.f32.mrb[167].mxu1 }
 0xa0a   :  { %v26294_v16 = vadd.f32 %v26291_v7, %v26066_v39 }
 0xa0b   :  { %v26341_v52 = vadd.f32 %v26328_v26, %v26293_v40  ;;  %v26299_v12 = vadd.f32 %v26291_v7, %v26287_v11 }
 0xa0c   :  { %v26342_v38 = vadd.f32 %v26329_v22, %v26294_v16  ;;  %v26206_v19 = vpop.f32.mrb[10].mxu0 }
 0xa0d   :  { %26348 = vst [vmem:[#allocation12] sm:$0xff] %v26341_v52  ;;  %v26297_v6 = vadd.f32 %v26291_v7, %v26206_v19  ;;  %v26208_v41 = vpop.f32.mrb[11].mxu0  ;;  %v26347_v37 = vadd.f32 %v26327_v42, %v26299_v12 }
 0xa0e   :  { %26349 = vst [vmem:[#allocation12 + $0x8] sm:$0xff] %v26342_v38  ;;  %v26298_v2 = vadd.f32 %v26291_v7, %v26208_v41 }
 0xa0f   :  { %v26345_v27 = vadd.f32 %v26332_v24, %v26297_v6  ;;  %26355 = vst.msk [vmem:[#allocation12 + $0x30] sm:$0xff] %vm26354_vm14, %v26347_v37 }
 0xa10   :  { %v26346_v3 = vadd.f32 %v26333_v56, %v26298_v2 }
 0xa11   :  { %26352 = vst [vmem:[#allocation12 + $0x20] sm:$0xff] %v26345_v27 }
 0xa12   :  { %26353 = vst [vmem:[#allocation12 + $0x28] sm:$0xff] %v26346_v3 }
 0xa13   :  { %27907 = shalt.err (!%p27904_p8)
}
 0xa14   :  { %s27908_s20 = scalar_lea.hbm %s32310_s4, 896 }
 0xa15   :  { %p27909_p9 = scmp.ne.s32.totalorder %s32310_s4, %s27908_s20  ;;  %p27912_p10 = scmp.lt.u32.totalorder %s27908_s20, %s32310_s4 }
 0xa17   :  { %p27914_p11 = pnand %p27912_p10, %p27909_p9 }
 0xa19   :  { %27917 = shalt.err (!%p27914_p11)
}
 0xa1a   :  { %26365 = dma.vmem_to_hbm [thread:$0]  %s26363_s16, 896, %s32310_s4, [#allocation6]  }
 0xa1b   :  { %27924 = dma.done.wait [#allocation6], 896  }
 0xa1c   :  { %27925 = vsyncadd [#allocation6], 4294966400 }
 0xa1d   :  { %26369 = vsyncpa [#allocation5], 1 }
 0xa1e   :  { %26370 = vsyncpa [#allocation8], 1 }
 0xa1f   :  { %26371 = vsyncpa [#allocation11], 1 }
 0xa20   :  { %26372 = vsyncpa [#allocation6], 1 }

</bundles_post_ra>
